<compile_context>
chip_gen: v7x
topology: tpu7x:2x2x1
jax: 0.10.0
libtpu: 0.0.40
codegen_flags: <defaults>
</compile_context>

<pallas_src>
import math

import jax
import jax.numpy as jnp
from jax.experimental import pallas as pl
from jax.experimental.pallas import tpu as pltpu

LANE = 128


def _round_up(x, m):
    return ((x + m - 1) // m) * m


def block_structure(input_size, num_channels, num_layers):
    """Static per-block metadata for num_layers stacked TemporalConvNets."""
    dilations, ds_flags, cins, couts = [], [], [], []
    for layer in range(num_layers):
        tcn_in = input_size if layer == 0 else num_channels[-1]
        for i, ch in enumerate(num_channels):
            cin = tcn_in if i == 0 else num_channels[i - 1]
            dilations.append(2 ** i)          # dilation = 2**level
            ds_flags.append(cin != ch)        # 1x1 downsample only if Cin != Cout
            cins.append(cin)
            couts.append(ch)
    return tuple(dilations), tuple(ds_flags), tuple(cins), tuple(couts)


# ----------------------------------------------------------------------------
# Fused Pallas kernel
# ----------------------------------------------------------------------------
def make_tcn_embedding_kernel(*, K, dilations, ds_flags, L, Cin, CP, pad_rows,
                              Lbuf, TB, num_ensembles, num_blocks):
    NB = num_blocks
    E = num_ensembles
    has_ds = any(ds_flags)
    n_ds = sum(ds_flags)
    inv_sqrt_e = 1.0 / math.sqrt(E)
    TBL = TB * Lbuf               # flat (padded) time length of a batch tile
    M = TBL - pad_rows            # rows of every flat conv output / store

    def kernel(*refs):
        if has_ds:
            (x_ref, w1_ref, b1_ref, w2_ref, b2_ref, wd_ref, bd_ref,
             wl_ref, bl_ref, o_ref, xpad_ref, act_ref, tmp_ref) = refs
        else:
            (x_ref, w1_ref, b1_ref, w2_ref, b2_ref,
             wl_ref, bl_ref, o_ref, xpad_ref, act_ref, tmp_ref) = refs
            wd_ref = bd_ref = None

        # ---- stage the lane-padded, causally padded input once per step ----
        # Layout per batch row t: [pad_rows zeros][L data] at stride Lbuf;
        # trailing alignment rows (if any) stay zero.
        xpad_ref[...] = jnp.zeros((TBL, CP), jnp.float32)
        tmp_ref[0:pad_rows, :] = jnp.zeros((pad_rows, CP), jnp.float32)
        for t in range(TB):
            base = t * Lbuf + pad_rows
            xpad_ref[base:base + L, :Cin] = x_ref[t].astype(jnp.float32)

        # 0/1 mask over flat output rows selecting real time steps, so the
        # per-row causal-padding rows stay exactly zero after every store.
        idx = jax.lax.broadcasted_iota(jnp.int32, (M, 1), 0) + pad_rows
        valid = None
        for t in range(TB):
            lo = t * Lbuf + pad_rows
            term = jnp.logical_and(idx >= lo, idx < lo + L)
            valid = term if valid is None else jnp.logical_or(valid, term)
        maskf = valid.astype(jnp.float32)                       # (M, 1)

        def causal_conv(src_ref, w_ref, w_base, bias, d):
            # Each tap is a static-offset (M, CP) view of the flat padded
            # buffer; the batch tile rides along the M (sublane) axis, so the
            # MXU sees M ~= TB*L rows with a CP=128-wide bf16 contraction.
            acc = None
            for k in range(K):
                s = (K - 1 - k) * d
                tap = src_ref[pad_rows - s:pad_rows - s + M, :]
                part = jnp.dot(tap.astype(jnp.bfloat16), w_ref[w_base + k],
                               preferred_element_type=jnp.float32)
                acc = part if acc is None else acc + part
            return acc + bias                                   # (M, CP) f32

        # Running sum over ensembles of the last-time-step activations.
        ens_last = jnp.zeros((TB, CP), jnp.float32)

        for e in range(E):
            # Every ensemble starts from the same staged (padded) input.
            act_ref[...] = xpad_ref[...]
            ds_idx = 0
            for n in range(NB):
                d = dilations[n]
                blk = e * NB + n
                # conv1 -> chomp -> relu   (dropout == identity, eval mode)
                h1 = jnp.maximum(
                    causal_conv(act_ref, w1_ref, blk * K, b1_ref[blk], d), 0.0)
                tmp_ref[pad_rows:, :] = h1 * maskf
                # conv2 -> chomp -> relu
                h2 = jnp.maximum(
                    causal_conv(tmp_ref, w2_ref, blk * K, b2_ref[blk], d), 0.0)
                # residual: 1x1 conv only when Cin != Cout, else identity add
                xin = act_ref[pad_rows:, :]                     # (M, CP)
                if ds_flags[n]:
                    res = jnp.dot(xin.astype(jnp.bfloat16),
                                  wd_ref[e * n_ds + ds_idx],
                                  preferred_element_type=jnp.float32)
                    res = res + bd_ref[e * n_ds + ds_idx]
                    ds_idx += 1
                else:
                    res = xin
                act_ref[pad_rows:, :] = jnp.maximum(h2 + res, 0.0) * maskf
            # last real time step of every batch row in this tile
            last_rows = [
                act_ref[t * Lbuf + pad_rows + L - 1:t * Lbuf + pad_rows + L, :]
                for t in range(TB)]
            ens_last = ens_last + jnp.concatenate(last_rows, axis=0)

        # ensemble sum / sqrt(E), then the final (shared) Linear, fused.
        pooled = (ens_last * inv_sqrt_e).astype(jnp.bfloat16)   # (TB, CP)
        out = jnp.dot(pooled, wl_ref[...],
                      preferred_element_type=jnp.float32) + bl_ref[...]
        o_ref[...] = out.astype(o_ref.dtype)                    # (TB, OP)

    return kernel


def _resident_spec(arr):
    """Whole (small) weight array in VMEM; constant block index -> revisited."""
    ndim = arr.ndim

    def index_map(b):
        return (0,) * ndim

    return pl.BlockSpec(arr.shape, index_map)


def tcn_embedding_forward(params, x, *, input_size, output_size, num_channels,
                          kernel_size, num_layers, num_ensembles,
                          batch_tile=8):
    dilations, ds_flags, _, _ = block_structure(input_size, num_channels,
                                                num_layers)
    K = kernel_size
    E = num_ensembles
    NB = len(dilations)
    B, L, Cin = x.shape
    CP = params["W1"].shape[-1]            # lane-padded channel width
    OP = params["WL"].shape[-1]            # lane-padded output width
    has_ds = "WD" in params

    TB = max(1, min(batch_tile, B))        # batch rows folded into each step
    Bp = _round_up(B, TB)
    xx = x.astype(jnp.float32)
    if Bp != B:
        xx = jnp.concatenate(
            [xx, jnp.zeros((Bp - B, L, Cin), jnp.float32)], axis=0)

    max_shift = (K - 1) * max(dilations)
    pad_rows = _round_up(max_shift, 8)     # 8-row aligned per-row causal pad
    Lbuf = _round_up(pad_rows + L, 8)      # per-row stride in the flat buffer
    TBL = TB * Lbuf

    kernel = make_tcn_embedding_kernel(
        K=K, dilations=dilations, ds_flags=ds_flags, L=L, Cin=Cin, CP=CP,
        pad_rows=pad_rows, Lbuf=Lbuf, TB=TB, num_ensembles=E, num_blocks=NB)

    weight_args = [params["W1"], params["B1"], params["W2"], params["B2"]]
    if has_ds:
        weight_args += [params["WD"], params["BD"]]
    weight_args += [params["WL"], params["BL"]]

    # VMEM budget from actual buffer sizes (double-buffered operands + scratch)
    def _nbytes(a):
        return int(a.size) * a.dtype.itemsize
    need = (2 * (sum(_nbytes(w) for w in weight_args)
                 + TB * L * Cin * 4 + TB * OP * 4)
            + 3 * TBL * CP * 4)
    vmem_limit = int(min(48 * 2 ** 20, max(24 * 2 ** 20, 2 * need)))

    grid_spec = pltpu.PrefetchScalarGridSpec(
        num_scalar_prefetch=0,
        grid=(Bp // TB,),                                  # batch -> parallel
        in_specs=[pl.BlockSpec((TB, L, Cin), lambda b: (b, 0, 0))]
        + [_resident_spec(w) for w in weight_args],
        out_specs=pl.BlockSpec((TB, OP), lambda b: (b, 0)),
        scratch_shapes=[pltpu.VMEM((TBL, CP), jnp.float32),   # staged input
                        pltpu.VMEM((TBL, CP), jnp.float32),   # block act
                        pltpu.VMEM((TBL, CP), jnp.float32)],  # conv1 out
    )

    out = pl.pallas_call(
        kernel,
        out_shape=jax.ShapeDtypeStruct((Bp, OP), jnp.float32),
        grid_spec=grid_spec,
        compiler_params=pltpu.CompilerParams(
            dimension_semantics=("parallel",),
            vmem_limit_bytes=vmem_limit,
        ),
    )(xx, *weight_args)

    return out[:B, :output_size]


# ----------------------------------------------------------------------------
# Plain-JAX reference (same padded bf16 params, same cast points)
# ----------------------------------------------------------------------------
def tcn_embedding_reference(params, x, *, input_size, output_size,
                            num_channels, kernel_size, num_layers,
                            num_ensembles):
    dilations, ds_flags, _, _ = block_structure(input_size, num_channels,
                                                num_layers)
    K = kernel_size
    E = num_ensembles
    NB = len(dilations)
    n_ds = sum(ds_flags)
    B, L, Cin = x.shape
    CP = params["W1"].shape[-1]
    xp = jnp.zeros((B, L, CP), jnp.float32).at[:, :, :Cin].set(
        x.astype(jnp.float32))

    def conv(h, wstack, w_base, bias, d):
        hb = h.astype(jnp.bfloat16)
        out = None
        for k in range(K):
            s = (K - 1 - k) * d
            shifted = jnp.pad(hb, ((0, 0), (s, 0), (0, 0)))[:, :L, :]
            part = jnp.einsum("blc,cd->bld", shifted, wstack[w_base + k],
                              preferred_element_type=jnp.float32)
            out = part if out is None else out + part
        return out + bias

    acc = jnp.zeros((B, CP), jnp.float32)
    for e in range(E):
        h = xp
        ds_idx = 0
        for n in range(NB):
            d = dilations[n]
            blk = e * NB + n
            h1 = jax.nn.relu(conv(h, params["W1"], blk * K,
                                  params["B1"][blk], d))
            h2 = jax.nn.relu(conv(h1, params["W2"], blk * K,
                                  params["B2"][blk], d))
            if ds_flags[n]:
                res = jnp.einsum("blc,cd->bld", h.astype(jnp.bfloat16),
                                 params["WD"][e * n_ds + ds_idx],
                                 preferred_element_type=jnp.float32) \
                      + params["BD"][e * n_ds + ds_idx]
                ds_idx += 1
            else:
                res = h
            h = jax.nn.relu(h2 + res)
        acc = acc + h[:, -1, :]
    pooled = acc / math.sqrt(E)
    out = jnp.dot(pooled.astype(jnp.bfloat16), params["WL"],
                  preferred_element_type=jnp.float32) + params["BL"]
    return out[:, :output_size]


# ----------------------------------------------------------------------------
# Deterministic synthetic parameters (padded + stacked, bf16 weights)
# ----------------------------------------------------------------------------
def init_params(key, input_size, output_size, num_channels, kernel_size,
                num_layers, num_ensembles):
    dilations, ds_flags, cins, couts = block_structure(input_size,
                                                       num_channels,
                                                       num_layers)
    K = kernel_size
    NB = len(dilations)
    E = num_ensembles
    n_ds = sum(ds_flags)
    CP = _round_up(max([input_size] + list(num_channels)), LANE)
    OP = _round_up(output_size, LANE)

    W1 = jnp.zeros((E * NB * K, CP, CP), jnp.float32)
    B1 = jnp.zeros((E * NB, 1, CP), jnp.float32)
    W2 = jnp.zeros((E * NB * K, CP, CP), jnp.float32)
    B2 = jnp.zeros((E * NB, 1, CP), jnp.float32)
    WD = jnp.zeros((max(E * n_ds, 1), CP, CP), jnp.float32)
    BD = jnp.zeros((max(E * n_ds, 1), 1, CP), jnp.float32)

    for e in range(E):
        ds_idx = 0
        for n in range(NB):
            cin, ch = cins[n], couts[n]
            blk = e * NB + n
            key, k1, k2, k3, k4, k5, k6 = jax.random.split(key, 7)
            w1 = 0.3 * jax.random.normal(k1, (K, cin, ch), jnp.float32)
            b1 = 0.1 * jax.random.normal(k2, (ch,), jnp.float32)
            w2 = 0.3 * jax.random.normal(k3, (K, ch, ch), jnp.float32)
            b2 = 0.1 * jax.random.normal(k4, (ch,), jnp.float32)
            W1 = W1.at[blk * K:(blk + 1) * K, :cin, :ch].set(w1)
            B1 = B1.at[blk, 0, :ch].set(b1)
            W2 = W2.at[blk * K:(blk + 1) * K, :ch, :ch].set(w2)
            B2 = B2.at[blk, 0, :ch].set(b2)
            if ds_flags[n]:
                wd = 0.3 * jax.random.normal(k5, (cin, ch), jnp.float32)
                bd = 0.1 * jax.random.normal(k6, (ch,), jnp.float32)
                WD = WD.at[e * n_ds + ds_idx, :cin, :ch].set(wd)
                BD = BD.at[e * n_ds + ds_idx, 0, :ch].set(bd)
                ds_idx += 1

    key, kw, kb = jax.random.split(key, 3)
    ch_last = num_channels[-1]
    WL = jnp.zeros((CP, OP), jnp.float32).at[:ch_last, :output_size].set(
        0.3 * jax.random.normal(kw, (ch_last, output_size), jnp.float32))
    BL = jnp.zeros((1, OP), jnp.float32).at[0, :output_size].set(
        0.1 * jax.random.normal(kb, (output_size,), jnp.float32))

    params = {"W1": W1.astype(jnp.bfloat16), "B1": B1,
              "W2": W2.astype(jnp.bfloat16), "B2": B2,
              "WL": WL.astype(jnp.bfloat16), "BL": BL}
    if n_ds > 0:
        params["WD"] = WD.astype(jnp.bfloat16)
        params["BD"] = BD
    return params


# ----------------------------------------------------------------------------
if __name__ == "__main__":
    input_size = 4
    output_size = 8
    num_channels = (8, 8)
    kernel_size = 3
    dropout = 0.0            # eval mode: dropout == identity
    num_layers = 2
    num_ensembles = 2
    batch, seq = 16, 16      # batch_tile=8 -> grid of 2 parallel steps

    key = jax.random.PRNGKey(0)
    key, kx = jax.random.split(key)
    # Module input is (B, L, C); PyTorch transposes to NCW internally.
    x = jax.random.normal(kx, (batch, seq, input_size), jnp.float32)

    params = init_params(key, input_size, output_size, num_channels,
                         kernel_size, num_layers, num_ensembles)

    cfg = dict(input_size=input_size, output_size=output_size,
               num_channels=num_channels, kernel_size=kernel_size,
               num_layers=num_layers, num_ensembles=num_ensembles)

    fwd = jax.jit(lambda p, xx: tcn_embedding_forward(p, xx, batch_tile=8,
                                                      **cfg))
    out = jax.block_until_ready(fwd(params, x))

    assert out.shape == (batch, output_size), out.shape
    assert bool(jnp.all(jnp.isfinite(out)))

    # Self-check against the plain-JAX reference (same bf16 cast points, so
    # only matmul accumulation-order differences remain).
    ref = jax.block_until_ready(
        jax.jit(lambda p, xx: tcn_embedding_reference(p, xx, **cfg))(params, x))
    assert bool(jnp.allclose(out, ref, rtol=2e-2, atol=2e-2)), (out, ref)

    print("KERNEL_OK")
</pallas_src>

<mosaic_0001>
module attributes {stable_mosaic.version = 11 : i64} {
  func.func @kernel(%arg0: i32, %arg1: memref<8x16x4xf32, #tpu.memory_space<vmem>>, %arg2: memref<24x128x128xbf16, #tpu.memory_space<vmem>>, %arg3: memref<8x1x128xf32, #tpu.memory_space<vmem>>, %arg4: memref<24x128x128xbf16, #tpu.memory_space<vmem>>, %arg5: memref<8x1x128xf32, #tpu.memory_space<vmem>>, %arg6: memref<2x128x128xbf16, #tpu.memory_space<vmem>>, %arg7: memref<2x1x128xf32, #tpu.memory_space<vmem>>, %arg8: memref<128x128xbf16, #tpu.memory_space<vmem>>, %arg9: memref<1x128xf32, #tpu.memory_space<vmem>>, %arg10: memref<8x128xf32, #tpu.memory_space<vmem>>, %arg11: memref<192x128xf32, #tpu.memory_space<vmem>>, %arg12: memref<192x128xf32, #tpu.memory_space<vmem>>, %arg13: memref<192x128xf32, #tpu.memory_space<vmem>>) attributes {dimension_semantics = [#tpu.dimension_semantics<parallel>], iteration_bounds = array<i64: 2>, scalar_prefetch = 0 : i64, scratch_operands = 3 : i64, tpu.core_type = #tpu.core_type<tc>, window_params = [{transform_indices = @transform_0, window_bounds = array<i64: 8, 16, 4>}, {pipeline_mode = #tpu.pipeline_mode<synchronous>, transform_indices = @transform_1, window_bounds = array<i64: 24, 128, 128>}, {pipeline_mode = #tpu.pipeline_mode<synchronous>, transform_indices = @transform_2, window_bounds = array<i64: 8, 1, 128>}, {pipeline_mode = #tpu.pipeline_mode<synchronous>, transform_indices = @transform_3, window_bounds = array<i64: 24, 128, 128>}, {pipeline_mode = #tpu.pipeline_mode<synchronous>, transform_indices = @transform_4, window_bounds = array<i64: 8, 1, 128>}, {pipeline_mode = #tpu.pipeline_mode<synchronous>, transform_indices = @transform_5, window_bounds = array<i64: 2, 128, 128>}, {pipeline_mode = #tpu.pipeline_mode<synchronous>, transform_indices = @transform_6, window_bounds = array<i64: 2, 1, 128>}, {pipeline_mode = #tpu.pipeline_mode<synchronous>, transform_indices = @transform_7, window_bounds = array<i64: 128, 128>}, {pipeline_mode = #tpu.pipeline_mode<synchronous>, transform_indices = @transform_8, window_bounds = array<i64: 1, 128>}, {transform_indices = @transform_9, window_bounds = array<i64: 8, 128>}]} {
    %cst = arith.constant 0.000000e+00 : f32
    %0 = vector.broadcast %cst : f32 to vector<192x128xf32>
    %c0 = arith.constant 0 : index
    %c0_0 = arith.constant 0 : index
    %1 = vector.load %arg11[%c0, %c0_0] : memref<192x128xf32, #tpu.memory_space<vmem>>, vector<192x128xf32>
    tpu.vector_store %arg11[%c0, %c0_0], %0 {strides = array<i32>} : memref<192x128xf32, #tpu.memory_space<vmem>>, vector<192x128xf32>,
    %cst_1 = arith.constant 0.000000e+00 : f32
    %2 = vector.broadcast %cst_1 : f32 to vector<8x128xf32>
    %c0_2 = arith.constant 0 : index
    %c0_3 = arith.constant 0 : index
    %3 = vector.load %arg13[%c0_2, %c0_3] : memref<192x128xf32, #tpu.memory_space<vmem>>, vector<8x128xf32>
    tpu.vector_store %arg13[%c0_2, %c0_3], %2 {strides = array<i32>} : memref<192x128xf32, #tpu.memory_space<vmem>>, vector<8x128xf32>,
    %c0_4 = arith.constant 0 : index
    %c0_5 = arith.constant 0 : index
    %c0_6 = arith.constant 0 : index
    %4 = vector.load %arg1[%c0_4, %c0_5, %c0_6] : memref<8x16x4xf32, #tpu.memory_space<vmem>>, vector<1x16x4xf32>
    %5 = vector.shape_cast %4 : vector<1x16x4xf32> to vector<16x4xf32>
    %c8 = arith.constant 8 : index
    %c0_7 = arith.constant 0 : index
    %6 = vector.load %arg11[%c8, %c0_7] : memref<192x128xf32, #tpu.memory_space<vmem>>, vector<16x4xf32>
    tpu.vector_store %arg11[%c8, %c0_7], %5 {strides = array<i32>} : memref<192x128xf32, #tpu.memory_space<vmem>>, vector<16x4xf32>,
    %c1 = arith.constant 1 : index
    %c0_8 = arith.constant 0 : index
    %c0_9 = arith.constant 0 : index
    %7 = vector.load %arg1[%c1, %c0_8, %c0_9] : memref<8x16x4xf32, #tpu.memory_space<vmem>>, vector<1x16x4xf32>
    %8 = vector.shape_cast %7 : vector<1x16x4xf32> to vector<16x4xf32>
    %c32 = arith.constant 32 : index
    %c0_10 = arith.constant 0 : index
    %9 = vector.load %arg11[%c32, %c0_10] : memref<192x128xf32, #tpu.memory_space<vmem>>, vector<16x4xf32>
    tpu.vector_store %arg11[%c32, %c0_10], %8 {strides = array<i32>} : memref<192x128xf32, #tpu.memory_space<vmem>>, vector<16x4xf32>,
    %c2 = arith.constant 2 : index
    %c0_11 = arith.constant 0 : index
    %c0_12 = arith.constant 0 : index
    %10 = vector.load %arg1[%c2, %c0_11, %c0_12] : memref<8x16x4xf32, #tpu.memory_space<vmem>>, vector<1x16x4xf32>
    %11 = vector.shape_cast %10 : vector<1x16x4xf32> to vector<16x4xf32>
    %c56 = arith.constant 56 : index
    %c0_13 = arith.constant 0 : index
    %12 = vector.load %arg11[%c56, %c0_13] : memref<192x128xf32, #tpu.memory_space<vmem>>, vector<16x4xf32>
    tpu.vector_store %arg11[%c56, %c0_13], %11 {strides = array<i32>} : memref<192x128xf32, #tpu.memory_space<vmem>>, vector<16x4xf32>,
    %c3 = arith.constant 3 : index
    %c0_14 = arith.constant 0 : index
    %c0_15 = arith.constant 0 : index
    %13 = vector.load %arg1[%c3, %c0_14, %c0_15] : memref<8x16x4xf32, #tpu.memory_space<vmem>>, vector<1x16x4xf32>
    %14 = vector.shape_cast %13 : vector<1x16x4xf32> to vector<16x4xf32>
    %c80 = arith.constant 80 : index
    %c0_16 = arith.constant 0 : index
    %15 = vector.load %arg11[%c80, %c0_16] : memref<192x128xf32, #tpu.memory_space<vmem>>, vector<16x4xf32>
    tpu.vector_store %arg11[%c80, %c0_16], %14 {strides = array<i32>} : memref<192x128xf32, #tpu.memory_space<vmem>>, vector<16x4xf32>,
    %c4 = arith.constant 4 : index
    %c0_17 = arith.constant 0 : index
    %c0_18 = arith.constant 0 : index
    %16 = vector.load %arg1[%c4, %c0_17, %c0_18] : memref<8x16x4xf32, #tpu.memory_space<vmem>>, vector<1x16x4xf32>
    %17 = vector.shape_cast %16 : vector<1x16x4xf32> to vector<16x4xf32>
    %c104 = arith.constant 104 : index
    %c0_19 = arith.constant 0 : index
    %18 = vector.load %arg11[%c104, %c0_19] : memref<192x128xf32, #tpu.memory_space<vmem>>, vector<16x4xf32>
    tpu.vector_store %arg11[%c104, %c0_19], %17 {strides = array<i32>} : memref<192x128xf32, #tpu.memory_space<vmem>>, vector<16x4xf32>,
    %c5 = arith.constant 5 : index
    %c0_20 = arith.constant 0 : index
    %c0_21 = arith.constant 0 : index
    %19 = vector.load %arg1[%c5, %c0_20, %c0_21] : memref<8x16x4xf32, #tpu.memory_space<vmem>>, vector<1x16x4xf32>
    %20 = vector.shape_cast %19 : vector<1x16x4xf32> to vector<16x4xf32>
    %c128 = arith.constant 128 : index
    %c0_22 = arith.constant 0 : index
    %21 = vector.load %arg11[%c128, %c0_22] : memref<192x128xf32, #tpu.memory_space<vmem>>, vector<16x4xf32>
    tpu.vector_store %arg11[%c128, %c0_22], %20 {strides = array<i32>} : memref<192x128xf32, #tpu.memory_space<vmem>>, vector<16x4xf32>,
    %c6 = arith.constant 6 : index
    %c0_23 = arith.constant 0 : index
    %c0_24 = arith.constant 0 : index
    %22 = vector.load %arg1[%c6, %c0_23, %c0_24] : memref<8x16x4xf32, #tpu.memory_space<vmem>>, vector<1x16x4xf32>
    %23 = vector.shape_cast %22 : vector<1x16x4xf32> to vector<16x4xf32>
    %c152 = arith.constant 152 : index
    %c0_25 = arith.constant 0 : index
    %24 = vector.load %arg11[%c152, %c0_25] : memref<192x128xf32, #tpu.memory_space<vmem>>, vector<16x4xf32>
    tpu.vector_store %arg11[%c152, %c0_25], %23 {strides = array<i32>} : memref<192x128xf32, #tpu.memory_space<vmem>>, vector<16x4xf32>,
    %c7 = arith.constant 7 : index
    %c0_26 = arith.constant 0 : index
    %c0_27 = arith.constant 0 : index
    %25 = vector.load %arg1[%c7, %c0_26, %c0_27] : memref<8x16x4xf32, #tpu.memory_space<vmem>>, vector<1x16x4xf32>
    %26 = vector.shape_cast %25 : vector<1x16x4xf32> to vector<16x4xf32>
    %c176 = arith.constant 176 : index
    %c0_28 = arith.constant 0 : index
    %27 = vector.load %arg11[%c176, %c0_28] : memref<192x128xf32, #tpu.memory_space<vmem>>, vector<16x4xf32>
    tpu.vector_store %arg11[%c176, %c0_28], %26 {strides = array<i32>} : memref<192x128xf32, #tpu.memory_space<vmem>>, vector<16x4xf32>,
    %28 = tpu.iota {dimensions = array<i32: 0>} : vector<184x1xi32>
    %c8_i32 = arith.constant 8 : i32
    %29 = vector.broadcast %c8_i32 : i32 to vector<184x1xi32>
    %30 = arith.addi %28, %29 : vector<184x1xi32>
    %c8_i32_29 = arith.constant 8 : i32
    %31 = vector.broadcast %c8_i32_29 : i32 to vector<184x1xi32>
    %32 = arith.cmpi sge, %30, %31 : vector<184x1xi32>
    %c24_i32 = arith.constant 24 : i32
    %33 = vector.broadcast %c24_i32 : i32 to vector<184x1xi32>
    %34 = arith.cmpi slt, %30, %33 : vector<184x1xi32>
    %35 = arith.andi %32, %34 : vector<184x1xi1>
    %c32_i32 = arith.constant 32 : i32
    %36 = vector.broadcast %c32_i32 : i32 to vector<184x1xi32>
    %37 = arith.cmpi sge, %30, %36 : vector<184x1xi32>
    %c48_i32 = arith.constant 48 : i32
    %38 = vector.broadcast %c48_i32 : i32 to vector<184x1xi32>
    %39 = arith.cmpi slt, %30, %38 : vector<184x1xi32>
    %40 = arith.andi %37, %39 : vector<184x1xi1>
    %41 = arith.ori %35, %40 : vector<184x1xi1>
    %c56_i32 = arith.constant 56 : i32
    %42 = vector.broadcast %c56_i32 : i32 to vector<184x1xi32>
    %43 = arith.cmpi sge, %30, %42 : vector<184x1xi32>
    %c72_i32 = arith.constant 72 : i32
    %44 = vector.broadcast %c72_i32 : i32 to vector<184x1xi32>
    %45 = arith.cmpi slt, %30, %44 : vector<184x1xi32>
    %46 = arith.andi %43, %45 : vector<184x1xi1>
    %47 = arith.ori %41, %46 : vector<184x1xi1>
    %c80_i32 = arith.constant 80 : i32
    %48 = vector.broadcast %c80_i32 : i32 to vector<184x1xi32>
    %49 = arith.cmpi sge, %30, %48 : vector<184x1xi32>
    %c96_i32 = arith.constant 96 : i32
    %50 = vector.broadcast %c96_i32 : i32 to vector<184x1xi32>
    %51 = arith.cmpi slt, %30, %50 : vector<184x1xi32>
    %52 = arith.andi %49, %51 : vector<184x1xi1>
    %53 = arith.ori %47, %52 : vector<184x1xi1>
    %c104_i32 = arith.constant 104 : i32
    %54 = vector.broadcast %c104_i32 : i32 to vector<184x1xi32>
    %55 = arith.cmpi sge, %30, %54 : vector<184x1xi32>
    %c120_i32 = arith.constant 120 : i32
    %56 = vector.broadcast %c120_i32 : i32 to vector<184x1xi32>
    %57 = arith.cmpi slt, %30, %56 : vector<184x1xi32>
    %58 = arith.andi %55, %57 : vector<184x1xi1>
    %59 = arith.ori %53, %58 : vector<184x1xi1>
    %c128_i32 = arith.constant 128 : i32
    %60 = vector.broadcast %c128_i32 : i32 to vector<184x1xi32>
    %61 = arith.cmpi sge, %30, %60 : vector<184x1xi32>
    %c144_i32 = arith.constant 144 : i32
    %62 = vector.broadcast %c144_i32 : i32 to vector<184x1xi32>
    %63 = arith.cmpi slt, %30, %62 : vector<184x1xi32>
    %64 = arith.andi %61, %63 : vector<184x1xi1>
    %65 = arith.ori %59, %64 : vector<184x1xi1>
    %c152_i32 = arith.constant 152 : i32
    %66 = vector.broadcast %c152_i32 : i32 to vector<184x1xi32>
    %67 = arith.cmpi sge, %30, %66 : vector<184x1xi32>
    %c168_i32 = arith.constant 168 : i32
    %68 = vector.broadcast %c168_i32 : i32 to vector<184x1xi32>
    %69 = arith.cmpi slt, %30, %68 : vector<184x1xi32>
    %70 = arith.andi %67, %69 : vector<184x1xi1>
    %71 = arith.ori %65, %70 : vector<184x1xi1>
    %c176_i32 = arith.constant 176 : i32
    %72 = vector.broadcast %c176_i32 : i32 to vector<184x1xi32>
    %73 = arith.cmpi sge, %30, %72 : vector<184x1xi32>
    %c192_i32 = arith.constant 192 : i32
    %74 = vector.broadcast %c192_i32 : i32 to vector<184x1xi32>
    %75 = arith.cmpi slt, %30, %74 : vector<184x1xi32>
    %76 = arith.andi %73, %75 : vector<184x1xi1>
    %77 = arith.ori %71, %76 : vector<184x1xi1>
    %78 = arith.extui %77 : vector<184x1xi1> to vector<184x1xi32>
    %79 = arith.sitofp %78 : vector<184x1xi32> to vector<184x1xf32>
    %cst_30 = arith.constant 0.000000e+00 : f32
    %80 = vector.broadcast %cst_30 : f32 to vector<8x128xf32>
    %c0_31 = arith.constant 0 : index
    %c0_32 = arith.constant 0 : index
    %81 = vector.load %arg11[%c0_31, %c0_32] : memref<192x128xf32, #tpu.memory_space<vmem>>, vector<192x128xf32>
    %c0_33 = arith.constant 0 : index
    %c0_34 = arith.constant 0 : index
    %82 = vector.load %arg12[%c0_33, %c0_34] : memref<192x128xf32, #tpu.memory_space<vmem>>, vector<192x128xf32>
    tpu.vector_store %arg12[%c0_33, %c0_34], %81 {strides = array<i32>} : memref<192x128xf32, #tpu.memory_space<vmem>>, vector<192x128xf32>,
    %c0_35 = arith.constant 0 : index
    %c0_36 = arith.constant 0 : index
    %c0_37 = arith.constant 0 : index
    %83 = vector.load %arg3[%c0_35, %c0_36, %c0_37] : memref<8x1x128xf32, #tpu.memory_space<vmem>>, vector<1x1x128xf32>
    %84 = vector.shape_cast %83 : vector<1x1x128xf32> to vector<1x128xf32>
    %c6_38 = arith.constant 6 : index
    %c0_39 = arith.constant 0 : index
    %85 = vector.load %arg12[%c6_38, %c0_39] : memref<192x128xf32, #tpu.memory_space<vmem>>, vector<184x128xf32>
    %86 = arith.truncf %85 : vector<184x128xf32> to vector<184x128xbf16>
    %c0_40 = arith.constant 0 : index
    %c0_41 = arith.constant 0 : index
    %c0_42 = arith.constant 0 : index
    %87 = vector.load %arg2[%c0_40, %c0_41, %c0_42] : memref<24x128x128xbf16, #tpu.memory_space<vmem>>, vector<1x128x128xbf16>
    %88 = vector.shape_cast %87 : vector<1x128x128xbf16> to vector<128x128xbf16>
    %cst_43 = arith.constant dense<0.000000e+00> : vector<184x128xf32>
    %89 = tpu.matmul %86, %88, %cst_43 {dimension_numbers = #tpu.dot_dimension_numbers<[1], [0], [0], [1], [0, 0, 1, 1], [], []>} : vector<184x128xbf16>, vector<128x128xbf16>, vector<184x128xf32> -> vector<184x128xf32>
    %c7_44 = arith.constant 7 : index
    %c0_45 = arith.constant 0 : index
    %90 = vector.load %arg12[%c7_44, %c0_45] : memref<192x128xf32, #tpu.memory_space<vmem>>, vector<184x128xf32>
    %91 = arith.truncf %90 : vector<184x128xf32> to vector<184x128xbf16>
    %c1_46 = arith.constant 1 : index
    %c0_47 = arith.constant 0 : index
    %c0_48 = arith.constant 0 : index
    %92 = vector.load %arg2[%c1_46, %c0_47, %c0_48] : memref<24x128x128xbf16, #tpu.memory_space<vmem>>, vector<1x128x128xbf16>
    %93 = vector.shape_cast %92 : vector<1x128x128xbf16> to vector<128x128xbf16>
    %cst_49 = arith.constant dense<0.000000e+00> : vector<184x128xf32>
    %94 = tpu.matmul %91, %93, %cst_49 {dimension_numbers = #tpu.dot_dimension_numbers<[1], [0], [0], [1], [0, 0, 1, 1], [], []>} : vector<184x128xbf16>, vector<128x128xbf16>, vector<184x128xf32> -> vector<184x128xf32>
    %95 = arith.addf %89, %94 : vector<184x128xf32>
    %c8_50 = arith.constant 8 : index
    %c0_51 = arith.constant 0 : index
    %96 = vector.load %arg12[%c8_50, %c0_51] : memref<192x128xf32, #tpu.memory_space<vmem>>, vector<184x128xf32>
    %97 = arith.truncf %96 : vector<184x128xf32> to vector<184x128xbf16>
    %c2_52 = arith.constant 2 : index
    %c0_53 = arith.constant 0 : index
    %c0_54 = arith.constant 0 : index
    %98 = vector.load %arg2[%c2_52, %c0_53, %c0_54] : memref<24x128x128xbf16, #tpu.memory_space<vmem>>, vector<1x128x128xbf16>
    %99 = vector.shape_cast %98 : vector<1x128x128xbf16> to vector<128x128xbf16>
    %cst_55 = arith.constant dense<0.000000e+00> : vector<184x128xf32>
    %100 = tpu.matmul %97, %99, %cst_55 {dimension_numbers = #tpu.dot_dimension_numbers<[1], [0], [0], [1], [0, 0, 1, 1], [], []>} : vector<184x128xbf16>, vector<128x128xbf16>, vector<184x128xf32> -> vector<184x128xf32>
    %101 = arith.addf %95, %100 : vector<184x128xf32>
    %102 = vector.broadcast %84 : vector<1x128xf32> to vector<184x128xf32>
    %103 = arith.addf %101, %102 : vector<184x128xf32>
    %cst_56 = arith.constant 0.000000e+00 : f32
    %104 = vector.broadcast %cst_56 : f32 to vector<184x128xf32>
    %105 = arith.maximumf %103, %104 : vector<184x128xf32>
    %106 = vector.broadcast %79 : vector<184x1xf32> to vector<184x128xf32>
    %107 = arith.mulf %105, %106 : vector<184x128xf32>
    %c8_57 = arith.constant 8 : index
    %c0_58 = arith.constant 0 : index
    %108 = vector.load %arg13[%c8_57, %c0_58] : memref<192x128xf32, #tpu.memory_space<vmem>>, vector<184x128xf32>
    tpu.vector_store %arg13[%c8_57, %c0_58], %107 {strides = array<i32>} : memref<192x128xf32, #tpu.memory_space<vmem>>, vector<184x128xf32>,
    %c0_59 = arith.constant 0 : index
    %c0_60 = arith.constant 0 : index
    %c0_61 = arith.constant 0 : index
    %109 = vector.load %arg5[%c0_59, %c0_60, %c0_61] : memref<8x1x128xf32, #tpu.memory_space<vmem>>, vector<1x1x128xf32>
    %110 = vector.shape_cast %109 : vector<1x1x128xf32> to vector<1x128xf32>
    %c6_62 = arith.constant 6 : index
    %c0_63 = arith.constant 0 : index
    %111 = vector.load %arg13[%c6_62, %c0_63] : memref<192x128xf32, #tpu.memory_space<vmem>>, vector<184x128xf32>
    %112 = arith.truncf %111 : vector<184x128xf32> to vector<184x128xbf16>
    %c0_64 = arith.constant 0 : index
    %c0_65 = arith.constant 0 : index
    %c0_66 = arith.constant 0 : index
    %113 = vector.load %arg4[%c0_64, %c0_65, %c0_66] : memref<24x128x128xbf16, #tpu.memory_space<vmem>>, vector<1x128x128xbf16>
    %114 = vector.shape_cast %113 : vector<1x128x128xbf16> to vector<128x128xbf16>
    %cst_67 = arith.constant dense<0.000000e+00> : vector<184x128xf32>
    %115 = tpu.matmul %112, %114, %cst_67 {dimension_numbers = #tpu.dot_dimension_numbers<[1], [0], [0], [1], [0, 0, 1, 1], [], []>} : vector<184x128xbf16>, vector<128x128xbf16>, vector<184x128xf32> -> vector<184x128xf32>
    %c7_68 = arith.constant 7 : index
    %c0_69 = arith.constant 0 : index
    %116 = vector.load %arg13[%c7_68, %c0_69] : memref<192x128xf32, #tpu.memory_space<vmem>>, vector<184x128xf32>
    %117 = arith.truncf %116 : vector<184x128xf32> to vector<184x128xbf16>
    %c1_70 = arith.constant 1 : index
    %c0_71 = arith.constant 0 : index
    %c0_72 = arith.constant 0 : index
    %118 = vector.load %arg4[%c1_70, %c0_71, %c0_72] : memref<24x128x128xbf16, #tpu.memory_space<vmem>>, vector<1x128x128xbf16>
    %119 = vector.shape_cast %118 : vector<1x128x128xbf16> to vector<128x128xbf16>
    %cst_73 = arith.constant dense<0.000000e+00> : vector<184x128xf32>
    %120 = tpu.matmul %117, %119, %cst_73 {dimension_numbers = #tpu.dot_dimension_numbers<[1], [0], [0], [1], [0, 0, 1, 1], [], []>} : vector<184x128xbf16>, vector<128x128xbf16>, vector<184x128xf32> -> vector<184x128xf32>
    %121 = arith.addf %115, %120 : vector<184x128xf32>
    %c8_74 = arith.constant 8 : index
    %c0_75 = arith.constant 0 : index
    %122 = vector.load %arg13[%c8_74, %c0_75] : memref<192x128xf32, #tpu.memory_space<vmem>>, vector<184x128xf32>
    %123 = arith.truncf %122 : vector<184x128xf32> to vector<184x128xbf16>
    %c2_76 = arith.constant 2 : index
    %c0_77 = arith.constant 0 : index
    %c0_78 = arith.constant 0 : index
    %124 = vector.load %arg4[%c2_76, %c0_77, %c0_78] : memref<24x128x128xbf16, #tpu.memory_space<vmem>>, vector<1x128x128xbf16>
    %125 = vector.shape_cast %124 : vector<1x128x128xbf16> to vector<128x128xbf16>
    %cst_79 = arith.constant dense<0.000000e+00> : vector<184x128xf32>
    %126 = tpu.matmul %123, %125, %cst_79 {dimension_numbers = #tpu.dot_dimension_numbers<[1], [0], [0], [1], [0, 0, 1, 1], [], []>} : vector<184x128xbf16>, vector<128x128xbf16>, vector<184x128xf32> -> vector<184x128xf32>
    %127 = arith.addf %121, %126 : vector<184x128xf32>
    %128 = vector.broadcast %110 : vector<1x128xf32> to vector<184x128xf32>
    %129 = arith.addf %127, %128 : vector<184x128xf32>
    %cst_80 = arith.constant 0.000000e+00 : f32
    %130 = vector.broadcast %cst_80 : f32 to vector<184x128xf32>
    %131 = arith.maximumf %129, %130 : vector<184x128xf32>
    %c8_81 = arith.constant 8 : index
    %c0_82 = arith.constant 0 : index
    %132 = vector.load %arg12[%c8_81, %c0_82] : memref<192x128xf32, #tpu.memory_space<vmem>>, vector<184x128xf32>
    %133 = arith.truncf %132 : vector<184x128xf32> to vector<184x128xbf16>
    %c0_83 = arith.constant 0 : index
    %c0_84 = arith.constant 0 : index
    %c0_85 = arith.constant 0 : index
    %134 = vector.load %arg6[%c0_83, %c0_84, %c0_85] : memref<2x128x128xbf16, #tpu.memory_space<vmem>>, vector<1x128x128xbf16>
    %135 = vector.shape_cast %134 : vector<1x128x128xbf16> to vector<128x128xbf16>
    %cst_86 = arith.constant dense<0.000000e+00> : vector<184x128xf32>
    %136 = tpu.matmul %133, %135, %cst_86 {dimension_numbers = #tpu.dot_dimension_numbers<[1], [0], [0], [1], [0, 0, 1, 1], [], []>} : vector<184x128xbf16>, vector<128x128xbf16>, vector<184x128xf32> -> vector<184x128xf32>
    %c0_87 = arith.constant 0 : index
    %c0_88 = arith.constant 0 : index
    %c0_89 = arith.constant 0 : index
    %137 = vector.load %arg7[%c0_87, %c0_88, %c0_89] : memref<2x1x128xf32, #tpu.memory_space<vmem>>, vector<1x1x128xf32>
    %138 = vector.shape_cast %137 : vector<1x1x128xf32> to vector<1x128xf32>
    %139 = vector.broadcast %138 : vector<1x128xf32> to vector<184x128xf32>
    %140 = arith.addf %136, %139 : vector<184x128xf32>
    %141 = arith.addf %131, %140 : vector<184x128xf32>
    %cst_90 = arith.constant 0.000000e+00 : f32
    %142 = vector.broadcast %cst_90 : f32 to vector<184x128xf32>
    %143 = arith.maximumf %141, %142 : vector<184x128xf32>
    %144 = vector.broadcast %79 : vector<184x1xf32> to vector<184x128xf32>
    %145 = arith.mulf %143, %144 : vector<184x128xf32>
    %c8_91 = arith.constant 8 : index
    %c0_92 = arith.constant 0 : index
    %146 = vector.load %arg12[%c8_91, %c0_92] : memref<192x128xf32, #tpu.memory_space<vmem>>, vector<184x128xf32>
    tpu.vector_store %arg12[%c8_91, %c0_92], %145 {strides = array<i32>} : memref<192x128xf32, #tpu.memory_space<vmem>>, vector<184x128xf32>,
    %c1_93 = arith.constant 1 : index
    %c0_94 = arith.constant 0 : index
    %c0_95 = arith.constant 0 : index
    %147 = vector.load %arg3[%c1_93, %c0_94, %c0_95] : memref<8x1x128xf32, #tpu.memory_space<vmem>>, vector<1x1x128xf32>
    %148 = vector.shape_cast %147 : vector<1x1x128xf32> to vector<1x128xf32>
    %c4_96 = arith.constant 4 : index
    %c0_97 = arith.constant 0 : index
    %149 = vector.load %arg12[%c4_96, %c0_97] : memref<192x128xf32, #tpu.memory_space<vmem>>, vector<184x128xf32>
    %150 = arith.truncf %149 : vector<184x128xf32> to vector<184x128xbf16>
    %c3_98 = arith.constant 3 : index
    %c0_99 = arith.constant 0 : index
    %c0_100 = arith.constant 0 : index
    %151 = vector.load %arg2[%c3_98, %c0_99, %c0_100] : memref<24x128x128xbf16, #tpu.memory_space<vmem>>, vector<1x128x128xbf16>
    %152 = vector.shape_cast %151 : vector<1x128x128xbf16> to vector<128x128xbf16>
    %cst_101 = arith.constant dense<0.000000e+00> : vector<184x128xf32>
    %153 = tpu.matmul %150, %152, %cst_101 {dimension_numbers = #tpu.dot_dimension_numbers<[1], [0], [0], [1], [0, 0, 1, 1], [], []>} : vector<184x128xbf16>, vector<128x128xbf16>, vector<184x128xf32> -> vector<184x128xf32>
    %c6_102 = arith.constant 6 : index
    %c0_103 = arith.constant 0 : index
    %154 = vector.load %arg12[%c6_102, %c0_103] : memref<192x128xf32, #tpu.memory_space<vmem>>, vector<184x128xf32>
    %155 = arith.truncf %154 : vector<184x128xf32> to vector<184x128xbf16>
    %c4_104 = arith.constant 4 : index
    %c0_105 = arith.constant 0 : index
    %c0_106 = arith.constant 0 : index
    %156 = vector.load %arg2[%c4_104, %c0_105, %c0_106] : memref<24x128x128xbf16, #tpu.memory_space<vmem>>, vector<1x128x128xbf16>
    %157 = vector.shape_cast %156 : vector<1x128x128xbf16> to vector<128x128xbf16>
    %cst_107 = arith.constant dense<0.000000e+00> : vector<184x128xf32>
    %158 = tpu.matmul %155, %157, %cst_107 {dimension_numbers = #tpu.dot_dimension_numbers<[1], [0], [0], [1], [0, 0, 1, 1], [], []>} : vector<184x128xbf16>, vector<128x128xbf16>, vector<184x128xf32> -> vector<184x128xf32>
    %159 = arith.addf %153, %158 : vector<184x128xf32>
    %c8_108 = arith.constant 8 : index
    %c0_109 = arith.constant 0 : index
    %160 = vector.load %arg12[%c8_108, %c0_109] : memref<192x128xf32, #tpu.memory_space<vmem>>, vector<184x128xf32>
    %161 = arith.truncf %160 : vector<184x128xf32> to vector<184x128xbf16>
    %c5_110 = arith.constant 5 : index
    %c0_111 = arith.constant 0 : index
    %c0_112 = arith.constant 0 : index
    %162 = vector.load %arg2[%c5_110, %c0_111, %c0_112] : memref<24x128x128xbf16, #tpu.memory_space<vmem>>, vector<1x128x128xbf16>
    %163 = vector.shape_cast %162 : vector<1x128x128xbf16> to vector<128x128xbf16>
    %cst_113 = arith.constant dense<0.000000e+00> : vector<184x128xf32>
    %164 = tpu.matmul %161, %163, %cst_113 {dimension_numbers = #tpu.dot_dimension_numbers<[1], [0], [0], [1], [0, 0, 1, 1], [], []>} : vector<184x128xbf16>, vector<128x128xbf16>, vector<184x128xf32> -> vector<184x128xf32>
    %165 = arith.addf %159, %164 : vector<184x128xf32>
    %166 = vector.broadcast %148 : vector<1x128xf32> to vector<184x128xf32>
    %167 = arith.addf %165, %166 : vector<184x128xf32>
    %cst_114 = arith.constant 0.000000e+00 : f32
    %168 = vector.broadcast %cst_114 : f32 to vector<184x128xf32>
    %169 = arith.maximumf %167, %168 : vector<184x128xf32>
    %170 = vector.broadcast %79 : vector<184x1xf32> to vector<184x128xf32>
    %171 = arith.mulf %169, %170 : vector<184x128xf32>
    %c8_115 = arith.constant 8 : index
    %c0_116 = arith.constant 0 : index
    %172 = vector.load %arg13[%c8_115, %c0_116] : memref<192x128xf32, #tpu.memory_space<vmem>>, vector<184x128xf32>
    tpu.vector_store %arg13[%c8_115, %c0_116], %171 {strides = array<i32>} : memref<192x128xf32, #tpu.memory_space<vmem>>, vector<184x128xf32>,
    %c1_117 = arith.constant 1 : index
    %c0_118 = arith.constant 0 : index
    %c0_119 = arith.constant 0 : index
    %173 = vector.load %arg5[%c1_117, %c0_118, %c0_119] : memref<8x1x128xf32, #tpu.memory_space<vmem>>, vector<1x1x128xf32>
    %174 = vector.shape_cast %173 : vector<1x1x128xf32> to vector<1x128xf32>
    %c4_120 = arith.constant 4 : index
    %c0_121 = arith.constant 0 : index
    %175 = vector.load %arg13[%c4_120, %c0_121] : memref<192x128xf32, #tpu.memory_space<vmem>>, vector<184x128xf32>
    %176 = arith.truncf %175 : vector<184x128xf32> to vector<184x128xbf16>
    %c3_122 = arith.constant 3 : index
    %c0_123 = arith.constant 0 : index
    %c0_124 = arith.constant 0 : index
    %177 = vector.load %arg4[%c3_122, %c0_123, %c0_124] : memref<24x128x128xbf16, #tpu.memory_space<vmem>>, vector<1x128x128xbf16>
    %178 = vector.shape_cast %177 : vector<1x128x128xbf16> to vector<128x128xbf16>
    %cst_125 = arith.constant dense<0.000000e+00> : vector<184x128xf32>
    %179 = tpu.matmul %176, %178, %cst_125 {dimension_numbers = #tpu.dot_dimension_numbers<[1], [0], [0], [1], [0, 0, 1, 1], [], []>} : vector<184x128xbf16>, vector<128x128xbf16>, vector<184x128xf32> -> vector<184x128xf32>
    %c6_126 = arith.constant 6 : index
    %c0_127 = arith.constant 0 : index
    %180 = vector.load %arg13[%c6_126, %c0_127] : memref<192x128xf32, #tpu.memory_space<vmem>>, vector<184x128xf32>
    %181 = arith.truncf %180 : vector<184x128xf32> to vector<184x128xbf16>
    %c4_128 = arith.constant 4 : index
    %c0_129 = arith.constant 0 : index
    %c0_130 = arith.constant 0 : index
    %182 = vector.load %arg4[%c4_128, %c0_129, %c0_130] : memref<24x128x128xbf16, #tpu.memory_space<vmem>>, vector<1x128x128xbf16>
    %183 = vector.shape_cast %182 : vector<1x128x128xbf16> to vector<128x128xbf16>
    %cst_131 = arith.constant dense<0.000000e+00> : vector<184x128xf32>
    %184 = tpu.matmul %181, %183, %cst_131 {dimension_numbers = #tpu.dot_dimension_numbers<[1], [0], [0], [1], [0, 0, 1, 1], [], []>} : vector<184x128xbf16>, vector<128x128xbf16>, vector<184x128xf32> -> vector<184x128xf32>
    %185 = arith.addf %179, %184 : vector<184x128xf32>
    %c8_132 = arith.constant 8 : index
    %c0_133 = arith.constant 0 : index
    %186 = vector.load %arg13[%c8_132, %c0_133] : memref<192x128xf32, #tpu.memory_space<vmem>>, vector<184x128xf32>
    %187 = arith.truncf %186 : vector<184x128xf32> to vector<184x128xbf16>
    %c5_134 = arith.constant 5 : index
    %c0_135 = arith.constant 0 : index
    %c0_136 = arith.constant 0 : index
    %188 = vector.load %arg4[%c5_134, %c0_135, %c0_136] : memref<24x128x128xbf16, #tpu.memory_space<vmem>>, vector<1x128x128xbf16>
    %189 = vector.shape_cast %188 : vector<1x128x128xbf16> to vector<128x128xbf16>
    %cst_137 = arith.constant dense<0.000000e+00> : vector<184x128xf32>
    %190 = tpu.matmul %187, %189, %cst_137 {dimension_numbers = #tpu.dot_dimension_numbers<[1], [0], [0], [1], [0, 0, 1, 1], [], []>} : vector<184x128xbf16>, vector<128x128xbf16>, vector<184x128xf32> -> vector<184x128xf32>
    %191 = arith.addf %185, %190 : vector<184x128xf32>
    %192 = vector.broadcast %174 : vector<1x128xf32> to vector<184x128xf32>
    %193 = arith.addf %191, %192 : vector<184x128xf32>
    %cst_138 = arith.constant 0.000000e+00 : f32
    %194 = vector.broadcast %cst_138 : f32 to vector<184x128xf32>
    %195 = arith.maximumf %193, %194 : vector<184x128xf32>
    %c8_139 = arith.constant 8 : index
    %c0_140 = arith.constant 0 : index
    %196 = vector.load %arg12[%c8_139, %c0_140] : memref<192x128xf32, #tpu.memory_space<vmem>>, vector<184x128xf32>
    %197 = arith.addf %195, %196 : vector<184x128xf32>
    %cst_141 = arith.constant 0.000000e+00 : f32
    %198 = vector.broadcast %cst_141 : f32 to vector<184x128xf32>
    %199 = arith.maximumf %197, %198 : vector<184x128xf32>
    %200 = vector.broadcast %79 : vector<184x1xf32> to vector<184x128xf32>
    %201 = arith.mulf %199, %200 : vector<184x128xf32>
    %c8_142 = arith.constant 8 : index
    %c0_143 = arith.constant 0 : index
    %202 = vector.load %arg12[%c8_142, %c0_143] : memref<192x128xf32, #tpu.memory_space<vmem>>, vector<184x128xf32>
    tpu.vector_store %arg12[%c8_142, %c0_143], %201 {strides = array<i32>} : memref<192x128xf32, #tpu.memory_space<vmem>>, vector<184x128xf32>,
    %c2_144 = arith.constant 2 : index
    %c0_145 = arith.constant 0 : index
    %c0_146 = arith.constant 0 : index
    %203 = vector.load %arg3[%c2_144, %c0_145, %c0_146] : memref<8x1x128xf32, #tpu.memory_space<vmem>>, vector<1x1x128xf32>
    %204 = vector.shape_cast %203 : vector<1x1x128xf32> to vector<1x128xf32>
    %c6_147 = arith.constant 6 : index
    %c0_148 = arith.constant 0 : index
    %205 = vector.load %arg12[%c6_147, %c0_148] : memref<192x128xf32, #tpu.memory_space<vmem>>, vector<184x128xf32>
    %206 = arith.truncf %205 : vector<184x128xf32> to vector<184x128xbf16>
    %c6_149 = arith.constant 6 : index
    %c0_150 = arith.constant 0 : index
    %c0_151 = arith.constant 0 : index
    %207 = vector.load %arg2[%c6_149, %c0_150, %c0_151] : memref<24x128x128xbf16, #tpu.memory_space<vmem>>, vector<1x128x128xbf16>
    %208 = vector.shape_cast %207 : vector<1x128x128xbf16> to vector<128x128xbf16>
    %cst_152 = arith.constant dense<0.000000e+00> : vector<184x128xf32>
    %209 = tpu.matmul %206, %208, %cst_152 {dimension_numbers = #tpu.dot_dimension_numbers<[1], [0], [0], [1], [0, 0, 1, 1], [], []>} : vector<184x128xbf16>, vector<128x128xbf16>, vector<184x128xf32> -> vector<184x128xf32>
    %c7_153 = arith.constant 7 : index
    %c0_154 = arith.constant 0 : index
    %210 = vector.load %arg12[%c7_153, %c0_154] : memref<192x128xf32, #tpu.memory_space<vmem>>, vector<184x128xf32>
    %211 = arith.truncf %210 : vector<184x128xf32> to vector<184x128xbf16>
    %c7_155 = arith.constant 7 : index
    %c0_156 = arith.constant 0 : index
    %c0_157 = arith.constant 0 : index
    %212 = vector.load %arg2[%c7_155, %c0_156, %c0_157] : memref<24x128x128xbf16, #tpu.memory_space<vmem>>, vector<1x128x128xbf16>
    %213 = vector.shape_cast %212 : vector<1x128x128xbf16> to vector<128x128xbf16>
    %cst_158 = arith.constant dense<0.000000e+00> : vector<184x128xf32>
    %214 = tpu.matmul %211, %213, %cst_158 {dimension_numbers = #tpu.dot_dimension_numbers<[1], [0], [0], [1], [0, 0, 1, 1], [], []>} : vector<184x128xbf16>, vector<128x128xbf16>, vector<184x128xf32> -> vector<184x128xf32>
    %215 = arith.addf %209, %214 : vector<184x128xf32>
    %c8_159 = arith.constant 8 : index
    %c0_160 = arith.constant 0 : index
    %216 = vector.load %arg12[%c8_159, %c0_160] : memref<192x128xf32, #tpu.memory_space<vmem>>, vector<184x128xf32>
    %217 = arith.truncf %216 : vector<184x128xf32> to vector<184x128xbf16>
    %c8_161 = arith.constant 8 : index
    %c0_162 = arith.constant 0 : index
    %c0_163 = arith.constant 0 : index
    %218 = vector.load %arg2[%c8_161, %c0_162, %c0_163] : memref<24x128x128xbf16, #tpu.memory_space<vmem>>, vector<1x128x128xbf16>
    %219 = vector.shape_cast %218 : vector<1x128x128xbf16> to vector<128x128xbf16>
    %cst_164 = arith.constant dense<0.000000e+00> : vector<184x128xf32>
    %220 = tpu.matmul %217, %219, %cst_164 {dimension_numbers = #tpu.dot_dimension_numbers<[1], [0], [0], [1], [0, 0, 1, 1], [], []>} : vector<184x128xbf16>, vector<128x128xbf16>, vector<184x128xf32> -> vector<184x128xf32>
    %221 = arith.addf %215, %220 : vector<184x128xf32>
    %222 = vector.broadcast %204 : vector<1x128xf32> to vector<184x128xf32>
    %223 = arith.addf %221, %222 : vector<184x128xf32>
    %cst_165 = arith.constant 0.000000e+00 : f32
    %224 = vector.broadcast %cst_165 : f32 to vector<184x128xf32>
    %225 = arith.maximumf %223, %224 : vector<184x128xf32>
    %226 = vector.broadcast %79 : vector<184x1xf32> to vector<184x128xf32>
    %227 = arith.mulf %225, %226 : vector<184x128xf32>
    %c8_166 = arith.constant 8 : index
    %c0_167 = arith.constant 0 : index
    %228 = vector.load %arg13[%c8_166, %c0_167] : memref<192x128xf32, #tpu.memory_space<vmem>>, vector<184x128xf32>
    tpu.vector_store %arg13[%c8_166, %c0_167], %227 {strides = array<i32>} : memref<192x128xf32, #tpu.memory_space<vmem>>, vector<184x128xf32>,
    %c2_168 = arith.constant 2 : index
    %c0_169 = arith.constant 0 : index
    %c0_170 = arith.constant 0 : index
    %229 = vector.load %arg5[%c2_168, %c0_169, %c0_170] : memref<8x1x128xf32, #tpu.memory_space<vmem>>, vector<1x1x128xf32>
    %230 = vector.shape_cast %229 : vector<1x1x128xf32> to vector<1x128xf32>
    %c6_171 = arith.constant 6 : index
    %c0_172 = arith.constant 0 : index
    %231 = vector.load %arg13[%c6_171, %c0_172] : memref<192x128xf32, #tpu.memory_space<vmem>>, vector<184x128xf32>
    %232 = arith.truncf %231 : vector<184x128xf32> to vector<184x128xbf16>
    %c6_173 = arith.constant 6 : index
    %c0_174 = arith.constant 0 : index
    %c0_175 = arith.constant 0 : index
    %233 = vector.load %arg4[%c6_173, %c0_174, %c0_175] : memref<24x128x128xbf16, #tpu.memory_space<vmem>>, vector<1x128x128xbf16>
    %234 = vector.shape_cast %233 : vector<1x128x128xbf16> to vector<128x128xbf16>
    %cst_176 = arith.constant dense<0.000000e+00> : vector<184x128xf32>
    %235 = tpu.matmul %232, %234, %cst_176 {dimension_numbers = #tpu.dot_dimension_numbers<[1], [0], [0], [1], [0, 0, 1, 1], [], []>} : vector<184x128xbf16>, vector<128x128xbf16>, vector<184x128xf32> -> vector<184x128xf32>
    %c7_177 = arith.constant 7 : index
    %c0_178 = arith.constant 0 : index
    %236 = vector.load %arg13[%c7_177, %c0_178] : memref<192x128xf32, #tpu.memory_space<vmem>>, vector<184x128xf32>
    %237 = arith.truncf %236 : vector<184x128xf32> to vector<184x128xbf16>
    %c7_179 = arith.constant 7 : index
    %c0_180 = arith.constant 0 : index
    %c0_181 = arith.constant 0 : index
    %238 = vector.load %arg4[%c7_179, %c0_180, %c0_181] : memref<24x128x128xbf16, #tpu.memory_space<vmem>>, vector<1x128x128xbf16>
    %239 = vector.shape_cast %238 : vector<1x128x128xbf16> to vector<128x128xbf16>
    %cst_182 = arith.constant dense<0.000000e+00> : vector<184x128xf32>
    %240 = tpu.matmul %237, %239, %cst_182 {dimension_numbers = #tpu.dot_dimension_numbers<[1], [0], [0], [1], [0, 0, 1, 1], [], []>} : vector<184x128xbf16>, vector<128x128xbf16>, vector<184x128xf32> -> vector<184x128xf32>
    %241 = arith.addf %235, %240 : vector<184x128xf32>
    %c8_183 = arith.constant 8 : index
    %c0_184 = arith.constant 0 : index
    %242 = vector.load %arg13[%c8_183, %c0_184] : memref<192x128xf32, #tpu.memory_space<vmem>>, vector<184x128xf32>
    %243 = arith.truncf %242 : vector<184x128xf32> to vector<184x128xbf16>
    %c8_185 = arith.constant 8 : index
    %c0_186 = arith.constant 0 : index
    %c0_187 = arith.constant 0 : index
    %244 = vector.load %arg4[%c8_185, %c0_186, %c0_187] : memref<24x128x128xbf16, #tpu.memory_space<vmem>>, vector<1x128x128xbf16>
    %245 = vector.shape_cast %244 : vector<1x128x128xbf16> to vector<128x128xbf16>
    %cst_188 = arith.constant dense<0.000000e+00> : vector<184x128xf32>
    %246 = tpu.matmul %243, %245, %cst_188 {dimension_numbers = #tpu.dot_dimension_numbers<[1], [0], [0], [1], [0, 0, 1, 1], [], []>} : vector<184x128xbf16>, vector<128x128xbf16>, vector<184x128xf32> -> vector<184x128xf32>
    %247 = arith.addf %241, %246 : vector<184x128xf32>
    %248 = vector.broadcast %230 : vector<1x128xf32> to vector<184x128xf32>
    %249 = arith.addf %247, %248 : vector<184x128xf32>
    %cst_189 = arith.constant 0.000000e+00 : f32
    %250 = vector.broadcast %cst_189 : f32 to vector<184x128xf32>
    %251 = arith.maximumf %249, %250 : vector<184x128xf32>
    %c8_190 = arith.constant 8 : index
    %c0_191 = arith.constant 0 : index
    %252 = vector.load %arg12[%c8_190, %c0_191] : memref<192x128xf32, #tpu.memory_space<vmem>>, vector<184x128xf32>
    %253 = arith.addf %251, %252 : vector<184x128xf32>
    %cst_192 = arith.constant 0.000000e+00 : f32
    %254 = vector.broadcast %cst_192 : f32 to vector<184x128xf32>
    %255 = arith.maximumf %253, %254 : vector<184x128xf32>
    %256 = vector.broadcast %79 : vector<184x1xf32> to vector<184x128xf32>
    %257 = arith.mulf %255, %256 : vector<184x128xf32>
    %c8_193 = arith.constant 8 : index
    %c0_194 = arith.constant 0 : index
    %258 = vector.load %arg12[%c8_193, %c0_194] : memref<192x128xf32, #tpu.memory_space<vmem>>, vector<184x128xf32>
    tpu.vector_store %arg12[%c8_193, %c0_194], %257 {strides = array<i32>} : memref<192x128xf32, #tpu.memory_space<vmem>>, vector<184x128xf32>,
    %c3_195 = arith.constant 3 : index
    %c0_196 = arith.constant 0 : index
    %c0_197 = arith.constant 0 : index
    %259 = vector.load %arg3[%c3_195, %c0_196, %c0_197] : memref<8x1x128xf32, #tpu.memory_space<vmem>>, vector<1x1x128xf32>
    %260 = vector.shape_cast %259 : vector<1x1x128xf32> to vector<1x128xf32>
    %c4_198 = arith.constant 4 : index
    %c0_199 = arith.constant 0 : index
    %261 = vector.load %arg12[%c4_198, %c0_199] : memref<192x128xf32, #tpu.memory_space<vmem>>, vector<184x128xf32>
    %262 = arith.truncf %261 : vector<184x128xf32> to vector<184x128xbf16>
    %c9 = arith.constant 9 : index
    %c0_200 = arith.constant 0 : index
    %c0_201 = arith.constant 0 : index
    %263 = vector.load %arg2[%c9, %c0_200, %c0_201] : memref<24x128x128xbf16, #tpu.memory_space<vmem>>, vector<1x128x128xbf16>
    %264 = vector.shape_cast %263 : vector<1x128x128xbf16> to vector<128x128xbf16>
    %cst_202 = arith.constant dense<0.000000e+00> : vector<184x128xf32>
    %265 = tpu.matmul %262, %264, %cst_202 {dimension_numbers = #tpu.dot_dimension_numbers<[1], [0], [0], [1], [0, 0, 1, 1], [], []>} : vector<184x128xbf16>, vector<128x128xbf16>, vector<184x128xf32> -> vector<184x128xf32>
    %c6_203 = arith.constant 6 : index
    %c0_204 = arith.constant 0 : index
    %266 = vector.load %arg12[%c6_203, %c0_204] : memref<192x128xf32, #tpu.memory_space<vmem>>, vector<184x128xf32>
    %267 = arith.truncf %266 : vector<184x128xf32> to vector<184x128xbf16>
    %c10 = arith.constant 10 : index
    %c0_205 = arith.constant 0 : index
    %c0_206 = arith.constant 0 : index
    %268 = vector.load %arg2[%c10, %c0_205, %c0_206] : memref<24x128x128xbf16, #tpu.memory_space<vmem>>, vector<1x128x128xbf16>
    %269 = vector.shape_cast %268 : vector<1x128x128xbf16> to vector<128x128xbf16>
    %cst_207 = arith.constant dense<0.000000e+00> : vector<184x128xf32>
    %270 = tpu.matmul %267, %269, %cst_207 {dimension_numbers = #tpu.dot_dimension_numbers<[1], [0], [0], [1], [0, 0, 1, 1], [], []>} : vector<184x128xbf16>, vector<128x128xbf16>, vector<184x128xf32> -> vector<184x128xf32>
    %271 = arith.addf %265, %270 : vector<184x128xf32>
    %c8_208 = arith.constant 8 : index
    %c0_209 = arith.constant 0 : index
    %272 = vector.load %arg12[%c8_208, %c0_209] : memref<192x128xf32, #tpu.memory_space<vmem>>, vector<184x128xf32>
    %273 = arith.truncf %272 : vector<184x128xf32> to vector<184x128xbf16>
    %c11 = arith.constant 11 : index
    %c0_210 = arith.constant 0 : index
    %c0_211 = arith.constant 0 : index
    %274 = vector.load %arg2[%c11, %c0_210, %c0_211] : memref<24x128x128xbf16, #tpu.memory_space<vmem>>, vector<1x128x128xbf16>
    %275 = vector.shape_cast %274 : vector<1x128x128xbf16> to vector<128x128xbf16>
    %cst_212 = arith.constant dense<0.000000e+00> : vector<184x128xf32>
    %276 = tpu.matmul %273, %275, %cst_212 {dimension_numbers = #tpu.dot_dimension_numbers<[1], [0], [0], [1], [0, 0, 1, 1], [], []>} : vector<184x128xbf16>, vector<128x128xbf16>, vector<184x128xf32> -> vector<184x128xf32>
    %277 = arith.addf %271, %276 : vector<184x128xf32>
    %278 = vector.broadcast %260 : vector<1x128xf32> to vector<184x128xf32>
    %279 = arith.addf %277, %278 : vector<184x128xf32>
    %cst_213 = arith.constant 0.000000e+00 : f32
    %280 = vector.broadcast %cst_213 : f32 to vector<184x128xf32>
    %281 = arith.maximumf %279, %280 : vector<184x128xf32>
    %282 = vector.broadcast %79 : vector<184x1xf32> to vector<184x128xf32>
    %283 = arith.mulf %281, %282 : vector<184x128xf32>
    %c8_214 = arith.constant 8 : index
    %c0_215 = arith.constant 0 : index
    %284 = vector.load %arg13[%c8_214, %c0_215] : memref<192x128xf32, #tpu.memory_space<vmem>>, vector<184x128xf32>
    tpu.vector_store %arg13[%c8_214, %c0_215], %283 {strides = array<i32>} : memref<192x128xf32, #tpu.memory_space<vmem>>, vector<184x128xf32>,
    %c3_216 = arith.constant 3 : index
    %c0_217 = arith.constant 0 : index
    %c0_218 = arith.constant 0 : index
    %285 = vector.load %arg5[%c3_216, %c0_217, %c0_218] : memref<8x1x128xf32, #tpu.memory_space<vmem>>, vector<1x1x128xf32>
    %286 = vector.shape_cast %285 : vector<1x1x128xf32> to vector<1x128xf32>
    %c4_219 = arith.constant 4 : index
    %c0_220 = arith.constant 0 : index
    %287 = vector.load %arg13[%c4_219, %c0_220] : memref<192x128xf32, #tpu.memory_space<vmem>>, vector<184x128xf32>
    %288 = arith.truncf %287 : vector<184x128xf32> to vector<184x128xbf16>
    %c9_221 = arith.constant 9 : index
    %c0_222 = arith.constant 0 : index
    %c0_223 = arith.constant 0 : index
    %289 = vector.load %arg4[%c9_221, %c0_222, %c0_223] : memref<24x128x128xbf16, #tpu.memory_space<vmem>>, vector<1x128x128xbf16>
    %290 = vector.shape_cast %289 : vector<1x128x128xbf16> to vector<128x128xbf16>
    %cst_224 = arith.constant dense<0.000000e+00> : vector<184x128xf32>
    %291 = tpu.matmul %288, %290, %cst_224 {dimension_numbers = #tpu.dot_dimension_numbers<[1], [0], [0], [1], [0, 0, 1, 1], [], []>} : vector<184x128xbf16>, vector<128x128xbf16>, vector<184x128xf32> -> vector<184x128xf32>
    %c6_225 = arith.constant 6 : index
    %c0_226 = arith.constant 0 : index
    %292 = vector.load %arg13[%c6_225, %c0_226] : memref<192x128xf32, #tpu.memory_space<vmem>>, vector<184x128xf32>
    %293 = arith.truncf %292 : vector<184x128xf32> to vector<184x128xbf16>
    %c10_227 = arith.constant 10 : index
    %c0_228 = arith.constant 0 : index
    %c0_229 = arith.constant 0 : index
    %294 = vector.load %arg4[%c10_227, %c0_228, %c0_229] : memref<24x128x128xbf16, #tpu.memory_space<vmem>>, vector<1x128x128xbf16>
    %295 = vector.shape_cast %294 : vector<1x128x128xbf16> to vector<128x128xbf16>
    %cst_230 = arith.constant dense<0.000000e+00> : vector<184x128xf32>
    %296 = tpu.matmul %293, %295, %cst_230 {dimension_numbers = #tpu.dot_dimension_numbers<[1], [0], [0], [1], [0, 0, 1, 1], [], []>} : vector<184x128xbf16>, vector<128x128xbf16>, vector<184x128xf32> -> vector<184x128xf32>
    %297 = arith.addf %291, %296 : vector<184x128xf32>
    %c8_231 = arith.constant 8 : index
    %c0_232 = arith.constant 0 : index
    %298 = vector.load %arg13[%c8_231, %c0_232] : memref<192x128xf32, #tpu.memory_space<vmem>>, vector<184x128xf32>
    %299 = arith.truncf %298 : vector<184x128xf32> to vector<184x128xbf16>
    %c11_233 = arith.constant 11 : index
    %c0_234 = arith.constant 0 : index
    %c0_235 = arith.constant 0 : index
    %300 = vector.load %arg4[%c11_233, %c0_234, %c0_235] : memref<24x128x128xbf16, #tpu.memory_space<vmem>>, vector<1x128x128xbf16>
    %301 = vector.shape_cast %300 : vector<1x128x128xbf16> to vector<128x128xbf16>
    %cst_236 = arith.constant dense<0.000000e+00> : vector<184x128xf32>
    %302 = tpu.matmul %299, %301, %cst_236 {dimension_numbers = #tpu.dot_dimension_numbers<[1], [0], [0], [1], [0, 0, 1, 1], [], []>} : vector<184x128xbf16>, vector<128x128xbf16>, vector<184x128xf32> -> vector<184x128xf32>
    %303 = arith.addf %297, %302 : vector<184x128xf32>
    %304 = vector.broadcast %286 : vector<1x128xf32> to vector<184x128xf32>
    %305 = arith.addf %303, %304 : vector<184x128xf32>
    %cst_237 = arith.constant 0.000000e+00 : f32
    %306 = vector.broadcast %cst_237 : f32 to vector<184x128xf32>
    %307 = arith.maximumf %305, %306 : vector<184x128xf32>
    %c8_238 = arith.constant 8 : index
    %c0_239 = arith.constant 0 : index
    %308 = vector.load %arg12[%c8_238, %c0_239] : memref<192x128xf32, #tpu.memory_space<vmem>>, vector<184x128xf32>
    %309 = arith.addf %307, %308 : vector<184x128xf32>
    %cst_240 = arith.constant 0.000000e+00 : f32
    %310 = vector.broadcast %cst_240 : f32 to vector<184x128xf32>
    %311 = arith.maximumf %309, %310 : vector<184x128xf32>
    %312 = vector.broadcast %79 : vector<184x1xf32> to vector<184x128xf32>
    %313 = arith.mulf %311, %312 : vector<184x128xf32>
    %c8_241 = arith.constant 8 : index
    %c0_242 = arith.constant 0 : index
    %314 = vector.load %arg12[%c8_241, %c0_242] : memref<192x128xf32, #tpu.memory_space<vmem>>, vector<184x128xf32>
    tpu.vector_store %arg12[%c8_241, %c0_242], %313 {strides = array<i32>} : memref<192x128xf32, #tpu.memory_space<vmem>>, vector<184x128xf32>,
    %c23 = arith.constant 23 : index
    %c0_243 = arith.constant 0 : index
    %315 = vector.load %arg12[%c23, %c0_243] : memref<192x128xf32, #tpu.memory_space<vmem>>, vector<1x128xf32>
    %c47 = arith.constant 47 : index
    %c0_244 = arith.constant 0 : index
    %316 = vector.load %arg12[%c47, %c0_244] : memref<192x128xf32, #tpu.memory_space<vmem>>, vector<1x128xf32>
    %c71 = arith.constant 71 : index
    %c0_245 = arith.constant 0 : index
    %317 = vector.load %arg12[%c71, %c0_245] : memref<192x128xf32, #tpu.memory_space<vmem>>, vector<1x128xf32>
    %c95 = arith.constant 95 : index
    %c0_246 = arith.constant 0 : index
    %318 = vector.load %arg12[%c95, %c0_246] : memref<192x128xf32, #tpu.memory_space<vmem>>, vector<1x128xf32>
    %c119 = arith.constant 119 : index
    %c0_247 = arith.constant 0 : index
    %319 = vector.load %arg12[%c119, %c0_247] : memref<192x128xf32, #tpu.memory_space<vmem>>, vector<1x128xf32>
    %c143 = arith.constant 143 : index
    %c0_248 = arith.constant 0 : index
    %320 = vector.load %arg12[%c143, %c0_248] : memref<192x128xf32, #tpu.memory_space<vmem>>, vector<1x128xf32>
    %c167 = arith.constant 167 : index
    %c0_249 = arith.constant 0 : index
    %321 = vector.load %arg12[%c167, %c0_249] : memref<192x128xf32, #tpu.memory_space<vmem>>, vector<1x128xf32>
    %c191 = arith.constant 191 : index
    %c0_250 = arith.constant 0 : index
    %322 = vector.load %arg12[%c191, %c0_250] : memref<192x128xf32, #tpu.memory_space<vmem>>, vector<1x128xf32>
    %323 = tpu.concatenate %315, %316, %317, %318, %319, %320, %321, %322 in 0 : vector<1x128xf32>, vector<1x128xf32>, vector<1x128xf32>, vector<1x128xf32>, vector<1x128xf32>, vector<1x128xf32>, vector<1x128xf32>, vector<1x128xf32> -> vector<8x128xf32>
    %324 = arith.addf %80, %323 : vector<8x128xf32>
    %c0_251 = arith.constant 0 : index
    %c0_252 = arith.constant 0 : index
    %325 = vector.load %arg11[%c0_251, %c0_252] : memref<192x128xf32, #tpu.memory_space<vmem>>, vector<192x128xf32>
    %c0_253 = arith.constant 0 : index
    %c0_254 = arith.constant 0 : index
    %326 = vector.load %arg12[%c0_253, %c0_254] : memref<192x128xf32, #tpu.memory_space<vmem>>, vector<192x128xf32>
    tpu.vector_store %arg12[%c0_253, %c0_254], %325 {strides = array<i32>} : memref<192x128xf32, #tpu.memory_space<vmem>>, vector<192x128xf32>,
    %c4_255 = arith.constant 4 : index
    %c0_256 = arith.constant 0 : index
    %c0_257 = arith.constant 0 : index
    %327 = vector.load %arg3[%c4_255, %c0_256, %c0_257] : memref<8x1x128xf32, #tpu.memory_space<vmem>>, vector<1x1x128xf32>
    %328 = vector.shape_cast %327 : vector<1x1x128xf32> to vector<1x128xf32>
    %c6_258 = arith.constant 6 : index
    %c0_259 = arith.constant 0 : index
    %329 = vector.load %arg12[%c6_258, %c0_259] : memref<192x128xf32, #tpu.memory_space<vmem>>, vector<184x128xf32>
    %330 = arith.truncf %329 : vector<184x128xf32> to vector<184x128xbf16>
    %c12 = arith.constant 12 : index
    %c0_260 = arith.constant 0 : index
    %c0_261 = arith.constant 0 : index
    %331 = vector.load %arg2[%c12, %c0_260, %c0_261] : memref<24x128x128xbf16, #tpu.memory_space<vmem>>, vector<1x128x128xbf16>
    %332 = vector.shape_cast %331 : vector<1x128x128xbf16> to vector<128x128xbf16>
    %cst_262 = arith.constant dense<0.000000e+00> : vector<184x128xf32>
    %333 = tpu.matmul %330, %332, %cst_262 {dimension_numbers = #tpu.dot_dimension_numbers<[1], [0], [0], [1], [0, 0, 1, 1], [], []>} : vector<184x128xbf16>, vector<128x128xbf16>, vector<184x128xf32> -> vector<184x128xf32>
    %c7_263 = arith.constant 7 : index
    %c0_264 = arith.constant 0 : index
    %334 = vector.load %arg12[%c7_263, %c0_264] : memref<192x128xf32, #tpu.memory_space<vmem>>, vector<184x128xf32>
    %335 = arith.truncf %334 : vector<184x128xf32> to vector<184x128xbf16>
    %c13 = arith.constant 13 : index
    %c0_265 = arith.constant 0 : index
    %c0_266 = arith.constant 0 : index
    %336 = vector.load %arg2[%c13, %c0_265, %c0_266] : memref<24x128x128xbf16, #tpu.memory_space<vmem>>, vector<1x128x128xbf16>
    %337 = vector.shape_cast %336 : vector<1x128x128xbf16> to vector<128x128xbf16>
    %cst_267 = arith.constant dense<0.000000e+00> : vector<184x128xf32>
    %338 = tpu.matmul %335, %337, %cst_267 {dimension_numbers = #tpu.dot_dimension_numbers<[1], [0], [0], [1], [0, 0, 1, 1], [], []>} : vector<184x128xbf16>, vector<128x128xbf16>, vector<184x128xf32> -> vector<184x128xf32>
    %339 = arith.addf %333, %338 : vector<184x128xf32>
    %c8_268 = arith.constant 8 : index
    %c0_269 = arith.constant 0 : index
    %340 = vector.load %arg12[%c8_268, %c0_269] : memref<192x128xf32, #tpu.memory_space<vmem>>, vector<184x128xf32>
    %341 = arith.truncf %340 : vector<184x128xf32> to vector<184x128xbf16>
    %c14 = arith.constant 14 : index
    %c0_270 = arith.constant 0 : index
    %c0_271 = arith.constant 0 : index
    %342 = vector.load %arg2[%c14, %c0_270, %c0_271] : memref<24x128x128xbf16, #tpu.memory_space<vmem>>, vector<1x128x128xbf16>
    %343 = vector.shape_cast %342 : vector<1x128x128xbf16> to vector<128x128xbf16>
    %cst_272 = arith.constant dense<0.000000e+00> : vector<184x128xf32>
    %344 = tpu.matmul %341, %343, %cst_272 {dimension_numbers = #tpu.dot_dimension_numbers<[1], [0], [0], [1], [0, 0, 1, 1], [], []>} : vector<184x128xbf16>, vector<128x128xbf16>, vector<184x128xf32> -> vector<184x128xf32>
    %345 = arith.addf %339, %344 : vector<184x128xf32>
    %346 = vector.broadcast %328 : vector<1x128xf32> to vector<184x128xf32>
    %347 = arith.addf %345, %346 : vector<184x128xf32>
    %cst_273 = arith.constant 0.000000e+00 : f32
    %348 = vector.broadcast %cst_273 : f32 to vector<184x128xf32>
    %349 = arith.maximumf %347, %348 : vector<184x128xf32>
    %350 = vector.broadcast %79 : vector<184x1xf32> to vector<184x128xf32>
    %351 = arith.mulf %349, %350 : vector<184x128xf32>
    %c8_274 = arith.constant 8 : index
    %c0_275 = arith.constant 0 : index
    %352 = vector.load %arg13[%c8_274, %c0_275] : memref<192x128xf32, #tpu.memory_space<vmem>>, vector<184x128xf32>
    tpu.vector_store %arg13[%c8_274, %c0_275], %351 {strides = array<i32>} : memref<192x128xf32, #tpu.memory_space<vmem>>, vector<184x128xf32>,
    %c4_276 = arith.constant 4 : index
    %c0_277 = arith.constant 0 : index
    %c0_278 = arith.constant 0 : index
    %353 = vector.load %arg5[%c4_276, %c0_277, %c0_278] : memref<8x1x128xf32, #tpu.memory_space<vmem>>, vector<1x1x128xf32>
    %354 = vector.shape_cast %353 : vector<1x1x128xf32> to vector<1x128xf32>
    %c6_279 = arith.constant 6 : index
    %c0_280 = arith.constant 0 : index
    %355 = vector.load %arg13[%c6_279, %c0_280] : memref<192x128xf32, #tpu.memory_space<vmem>>, vector<184x128xf32>
    %356 = arith.truncf %355 : vector<184x128xf32> to vector<184x128xbf16>
    %c12_281 = arith.constant 12 : index
    %c0_282 = arith.constant 0 : index
    %c0_283 = arith.constant 0 : index
    %357 = vector.load %arg4[%c12_281, %c0_282, %c0_283] : memref<24x128x128xbf16, #tpu.memory_space<vmem>>, vector<1x128x128xbf16>
    %358 = vector.shape_cast %357 : vector<1x128x128xbf16> to vector<128x128xbf16>
    %cst_284 = arith.constant dense<0.000000e+00> : vector<184x128xf32>
    %359 = tpu.matmul %356, %358, %cst_284 {dimension_numbers = #tpu.dot_dimension_numbers<[1], [0], [0], [1], [0, 0, 1, 1], [], []>} : vector<184x128xbf16>, vector<128x128xbf16>, vector<184x128xf32> -> vector<184x128xf32>
    %c7_285 = arith.constant 7 : index
    %c0_286 = arith.constant 0 : index
    %360 = vector.load %arg13[%c7_285, %c0_286] : memref<192x128xf32, #tpu.memory_space<vmem>>, vector<184x128xf32>
    %361 = arith.truncf %360 : vector<184x128xf32> to vector<184x128xbf16>
    %c13_287 = arith.constant 13 : index
    %c0_288 = arith.constant 0 : index
    %c0_289 = arith.constant 0 : index
    %362 = vector.load %arg4[%c13_287, %c0_288, %c0_289] : memref<24x128x128xbf16, #tpu.memory_space<vmem>>, vector<1x128x128xbf16>
    %363 = vector.shape_cast %362 : vector<1x128x128xbf16> to vector<128x128xbf16>
    %cst_290 = arith.constant dense<0.000000e+00> : vector<184x128xf32>
    %364 = tpu.matmul %361, %363, %cst_290 {dimension_numbers = #tpu.dot_dimension_numbers<[1], [0], [0], [1], [0, 0, 1, 1], [], []>} : vector<184x128xbf16>, vector<128x128xbf16>, vector<184x128xf32> -> vector<184x128xf32>
    %365 = arith.addf %359, %364 : vector<184x128xf32>
    %c8_291 = arith.constant 8 : index
    %c0_292 = arith.constant 0 : index
    %366 = vector.load %arg13[%c8_291, %c0_292] : memref<192x128xf32, #tpu.memory_space<vmem>>, vector<184x128xf32>
    %367 = arith.truncf %366 : vector<184x128xf32> to vector<184x128xbf16>
    %c14_293 = arith.constant 14 : index
    %c0_294 = arith.constant 0 : index
    %c0_295 = arith.constant 0 : index
    %368 = vector.load %arg4[%c14_293, %c0_294, %c0_295] : memref<24x128x128xbf16, #tpu.memory_space<vmem>>, vector<1x128x128xbf16>
    %369 = vector.shape_cast %368 : vector<1x128x128xbf16> to vector<128x128xbf16>
    %cst_296 = arith.constant dense<0.000000e+00> : vector<184x128xf32>
    %370 = tpu.matmul %367, %369, %cst_296 {dimension_numbers = #tpu.dot_dimension_numbers<[1], [0], [0], [1], [0, 0, 1, 1], [], []>} : vector<184x128xbf16>, vector<128x128xbf16>, vector<184x128xf32> -> vector<184x128xf32>
    %371 = arith.addf %365, %370 : vector<184x128xf32>
    %372 = vector.broadcast %354 : vector<1x128xf32> to vector<184x128xf32>
    %373 = arith.addf %371, %372 : vector<184x128xf32>
    %cst_297 = arith.constant 0.000000e+00 : f32
    %374 = vector.broadcast %cst_297 : f32 to vector<184x128xf32>
    %375 = arith.maximumf %373, %374 : vector<184x128xf32>
    %c8_298 = arith.constant 8 : index
    %c0_299 = arith.constant 0 : index
    %376 = vector.load %arg12[%c8_298, %c0_299] : memref<192x128xf32, #tpu.memory_space<vmem>>, vector<184x128xf32>
    %377 = arith.truncf %376 : vector<184x128xf32> to vector<184x128xbf16>
    %c1_300 = arith.constant 1 : index
    %c0_301 = arith.constant 0 : index
    %c0_302 = arith.constant 0 : index
    %378 = vector.load %arg6[%c1_300, %c0_301, %c0_302] : memref<2x128x128xbf16, #tpu.memory_space<vmem>>, vector<1x128x128xbf16>
    %379 = vector.shape_cast %378 : vector<1x128x128xbf16> to vector<128x128xbf16>
    %cst_303 = arith.constant dense<0.000000e+00> : vector<184x128xf32>
    %380 = tpu.matmul %377, %379, %cst_303 {dimension_numbers = #tpu.dot_dimension_numbers<[1], [0], [0], [1], [0, 0, 1, 1], [], []>} : vector<184x128xbf16>, vector<128x128xbf16>, vector<184x128xf32> -> vector<184x128xf32>
    %c1_304 = arith.constant 1 : index
    %c0_305 = arith.constant 0 : index
    %c0_306 = arith.constant 0 : index
    %381 = vector.load %arg7[%c1_304, %c0_305, %c0_306] : memref<2x1x128xf32, #tpu.memory_space<vmem>>, vector<1x1x128xf32>
    %382 = vector.shape_cast %381 : vector<1x1x128xf32> to vector<1x128xf32>
    %383 = vector.broadcast %382 : vector<1x128xf32> to vector<184x128xf32>
    %384 = arith.addf %380, %383 : vector<184x128xf32>
    %385 = arith.addf %375, %384 : vector<184x128xf32>
    %cst_307 = arith.constant 0.000000e+00 : f32
    %386 = vector.broadcast %cst_307 : f32 to vector<184x128xf32>
    %387 = arith.maximumf %385, %386 : vector<184x128xf32>
    %388 = vector.broadcast %79 : vector<184x1xf32> to vector<184x128xf32>
    %389 = arith.mulf %387, %388 : vector<184x128xf32>
    %c8_308 = arith.constant 8 : index
    %c0_309 = arith.constant 0 : index
    %390 = vector.load %arg12[%c8_308, %c0_309] : memref<192x128xf32, #tpu.memory_space<vmem>>, vector<184x128xf32>
    tpu.vector_store %arg12[%c8_308, %c0_309], %389 {strides = array<i32>} : memref<192x128xf32, #tpu.memory_space<vmem>>, vector<184x128xf32>,
    %c5_310 = arith.constant 5 : index
    %c0_311 = arith.constant 0 : index
    %c0_312 = arith.constant 0 : index
    %391 = vector.load %arg3[%c5_310, %c0_311, %c0_312] : memref<8x1x128xf32, #tpu.memory_space<vmem>>, vector<1x1x128xf32>
    %392 = vector.shape_cast %391 : vector<1x1x128xf32> to vector<1x128xf32>
    %c4_313 = arith.constant 4 : index
    %c0_314 = arith.constant 0 : index
    %393 = vector.load %arg12[%c4_313, %c0_314] : memref<192x128xf32, #tpu.memory_space<vmem>>, vector<184x128xf32>
    %394 = arith.truncf %393 : vector<184x128xf32> to vector<184x128xbf16>
    %c15 = arith.constant 15 : index
    %c0_315 = arith.constant 0 : index
    %c0_316 = arith.constant 0 : index
    %395 = vector.load %arg2[%c15, %c0_315, %c0_316] : memref<24x128x128xbf16, #tpu.memory_space<vmem>>, vector<1x128x128xbf16>
    %396 = vector.shape_cast %395 : vector<1x128x128xbf16> to vector<128x128xbf16>
    %cst_317 = arith.constant dense<0.000000e+00> : vector<184x128xf32>
    %397 = tpu.matmul %394, %396, %cst_317 {dimension_numbers = #tpu.dot_dimension_numbers<[1], [0], [0], [1], [0, 0, 1, 1], [], []>} : vector<184x128xbf16>, vector<128x128xbf16>, vector<184x128xf32> -> vector<184x128xf32>
    %c6_318 = arith.constant 6 : index
    %c0_319 = arith.constant 0 : index
    %398 = vector.load %arg12[%c6_318, %c0_319] : memref<192x128xf32, #tpu.memory_space<vmem>>, vector<184x128xf32>
    %399 = arith.truncf %398 : vector<184x128xf32> to vector<184x128xbf16>
    %c16 = arith.constant 16 : index
    %c0_320 = arith.constant 0 : index
    %c0_321 = arith.constant 0 : index
    %400 = vector.load %arg2[%c16, %c0_320, %c0_321] : memref<24x128x128xbf16, #tpu.memory_space<vmem>>, vector<1x128x128xbf16>
    %401 = vector.shape_cast %400 : vector<1x128x128xbf16> to vector<128x128xbf16>
    %cst_322 = arith.constant dense<0.000000e+00> : vector<184x128xf32>
    %402 = tpu.matmul %399, %401, %cst_322 {dimension_numbers = #tpu.dot_dimension_numbers<[1], [0], [0], [1], [0, 0, 1, 1], [], []>} : vector<184x128xbf16>, vector<128x128xbf16>, vector<184x128xf32> -> vector<184x128xf32>
    %403 = arith.addf %397, %402 : vector<184x128xf32>
    %c8_323 = arith.constant 8 : index
    %c0_324 = arith.constant 0 : index
    %404 = vector.load %arg12[%c8_323, %c0_324] : memref<192x128xf32, #tpu.memory_space<vmem>>, vector<184x128xf32>
    %405 = arith.truncf %404 : vector<184x128xf32> to vector<184x128xbf16>
    %c17 = arith.constant 17 : index
    %c0_325 = arith.constant 0 : index
    %c0_326 = arith.constant 0 : index
    %406 = vector.load %arg2[%c17, %c0_325, %c0_326] : memref<24x128x128xbf16, #tpu.memory_space<vmem>>, vector<1x128x128xbf16>
    %407 = vector.shape_cast %406 : vector<1x128x128xbf16> to vector<128x128xbf16>
    %cst_327 = arith.constant dense<0.000000e+00> : vector<184x128xf32>
    %408 = tpu.matmul %405, %407, %cst_327 {dimension_numbers = #tpu.dot_dimension_numbers<[1], [0], [0], [1], [0, 0, 1, 1], [], []>} : vector<184x128xbf16>, vector<128x128xbf16>, vector<184x128xf32> -> vector<184x128xf32>
    %409 = arith.addf %403, %408 : vector<184x128xf32>
    %410 = vector.broadcast %392 : vector<1x128xf32> to vector<184x128xf32>
    %411 = arith.addf %409, %410 : vector<184x128xf32>
    %cst_328 = arith.constant 0.000000e+00 : f32
    %412 = vector.broadcast %cst_328 : f32 to vector<184x128xf32>
    %413 = arith.maximumf %411, %412 : vector<184x128xf32>
    %414 = vector.broadcast %79 : vector<184x1xf32> to vector<184x128xf32>
    %415 = arith.mulf %413, %414 : vector<184x128xf32>
    %c8_329 = arith.constant 8 : index
    %c0_330 = arith.constant 0 : index
    %416 = vector.load %arg13[%c8_329, %c0_330] : memref<192x128xf32, #tpu.memory_space<vmem>>, vector<184x128xf32>
    tpu.vector_store %arg13[%c8_329, %c0_330], %415 {strides = array<i32>} : memref<192x128xf32, #tpu.memory_space<vmem>>, vector<184x128xf32>,
    %c5_331 = arith.constant 5 : index
    %c0_332 = arith.constant 0 : index
    %c0_333 = arith.constant 0 : index
    %417 = vector.load %arg5[%c5_331, %c0_332, %c0_333] : memref<8x1x128xf32, #tpu.memory_space<vmem>>, vector<1x1x128xf32>
    %418 = vector.shape_cast %417 : vector<1x1x128xf32> to vector<1x128xf32>
    %c4_334 = arith.constant 4 : index
    %c0_335 = arith.constant 0 : index
    %419 = vector.load %arg13[%c4_334, %c0_335] : memref<192x128xf32, #tpu.memory_space<vmem>>, vector<184x128xf32>
    %420 = arith.truncf %419 : vector<184x128xf32> to vector<184x128xbf16>
    %c15_336 = arith.constant 15 : index
    %c0_337 = arith.constant 0 : index
    %c0_338 = arith.constant 0 : index
    %421 = vector.load %arg4[%c15_336, %c0_337, %c0_338] : memref<24x128x128xbf16, #tpu.memory_space<vmem>>, vector<1x128x128xbf16>
    %422 = vector.shape_cast %421 : vector<1x128x128xbf16> to vector<128x128xbf16>
    %cst_339 = arith.constant dense<0.000000e+00> : vector<184x128xf32>
    %423 = tpu.matmul %420, %422, %cst_339 {dimension_numbers = #tpu.dot_dimension_numbers<[1], [0], [0], [1], [0, 0, 1, 1], [], []>} : vector<184x128xbf16>, vector<128x128xbf16>, vector<184x128xf32> -> vector<184x128xf32>
    %c6_340 = arith.constant 6 : index
    %c0_341 = arith.constant 0 : index
    %424 = vector.load %arg13[%c6_340, %c0_341] : memref<192x128xf32, #tpu.memory_space<vmem>>, vector<184x128xf32>
    %425 = arith.truncf %424 : vector<184x128xf32> to vector<184x128xbf16>
    %c16_342 = arith.constant 16 : index
    %c0_343 = arith.constant 0 : index
    %c0_344 = arith.constant 0 : index
    %426 = vector.load %arg4[%c16_342, %c0_343, %c0_344] : memref<24x128x128xbf16, #tpu.memory_space<vmem>>, vector<1x128x128xbf16>
    %427 = vector.shape_cast %426 : vector<1x128x128xbf16> to vector<128x128xbf16>
    %cst_345 = arith.constant dense<0.000000e+00> : vector<184x128xf32>
    %428 = tpu.matmul %425, %427, %cst_345 {dimension_numbers = #tpu.dot_dimension_numbers<[1], [0], [0], [1], [0, 0, 1, 1], [], []>} : vector<184x128xbf16>, vector<128x128xbf16>, vector<184x128xf32> -> vector<184x128xf32>
    %429 = arith.addf %423, %428 : vector<184x128xf32>
    %c8_346 = arith.constant 8 : index
    %c0_347 = arith.constant 0 : index
    %430 = vector.load %arg13[%c8_346, %c0_347] : memref<192x128xf32, #tpu.memory_space<vmem>>, vector<184x128xf32>
    %431 = arith.truncf %430 : vector<184x128xf32> to vector<184x128xbf16>
    %c17_348 = arith.constant 17 : index
    %c0_349 = arith.constant 0 : index
    %c0_350 = arith.constant 0 : index
    %432 = vector.load %arg4[%c17_348, %c0_349, %c0_350] : memref<24x128x128xbf16, #tpu.memory_space<vmem>>, vector<1x128x128xbf16>
    %433 = vector.shape_cast %432 : vector<1x128x128xbf16> to vector<128x128xbf16>
    %cst_351 = arith.constant dense<0.000000e+00> : vector<184x128xf32>
    %434 = tpu.matmul %431, %433, %cst_351 {dimension_numbers = #tpu.dot_dimension_numbers<[1], [0], [0], [1], [0, 0, 1, 1], [], []>} : vector<184x128xbf16>, vector<128x128xbf16>, vector<184x128xf32> -> vector<184x128xf32>
    %435 = arith.addf %429, %434 : vector<184x128xf32>
    %436 = vector.broadcast %418 : vector<1x128xf32> to vector<184x128xf32>
    %437 = arith.addf %435, %436 : vector<184x128xf32>
    %cst_352 = arith.constant 0.000000e+00 : f32
    %438 = vector.broadcast %cst_352 : f32 to vector<184x128xf32>
    %439 = arith.maximumf %437, %438 : vector<184x128xf32>
    %c8_353 = arith.constant 8 : index
    %c0_354 = arith.constant 0 : index
    %440 = vector.load %arg12[%c8_353, %c0_354] : memref<192x128xf32, #tpu.memory_space<vmem>>, vector<184x128xf32>
    %441 = arith.addf %439, %440 : vector<184x128xf32>
    %cst_355 = arith.constant 0.000000e+00 : f32
    %442 = vector.broadcast %cst_355 : f32 to vector<184x128xf32>
    %443 = arith.maximumf %441, %442 : vector<184x128xf32>
    %444 = vector.broadcast %79 : vector<184x1xf32> to vector<184x128xf32>
    %445 = arith.mulf %443, %444 : vector<184x128xf32>
    %c8_356 = arith.constant 8 : index
    %c0_357 = arith.constant 0 : index
    %446 = vector.load %arg12[%c8_356, %c0_357] : memref<192x128xf32, #tpu.memory_space<vmem>>, vector<184x128xf32>
    tpu.vector_store %arg12[%c8_356, %c0_357], %445 {strides = array<i32>} : memref<192x128xf32, #tpu.memory_space<vmem>>, vector<184x128xf32>,
    %c6_358 = arith.constant 6 : index
    %c0_359 = arith.constant 0 : index
    %c0_360 = arith.constant 0 : index
    %447 = vector.load %arg3[%c6_358, %c0_359, %c0_360] : memref<8x1x128xf32, #tpu.memory_space<vmem>>, vector<1x1x128xf32>
    %448 = vector.shape_cast %447 : vector<1x1x128xf32> to vector<1x128xf32>
    %c6_361 = arith.constant 6 : index
    %c0_362 = arith.constant 0 : index
    %449 = vector.load %arg12[%c6_361, %c0_362] : memref<192x128xf32, #tpu.memory_space<vmem>>, vector<184x128xf32>
    %450 = arith.truncf %449 : vector<184x128xf32> to vector<184x128xbf16>
    %c18 = arith.constant 18 : index
    %c0_363 = arith.constant 0 : index
    %c0_364 = arith.constant 0 : index
    %451 = vector.load %arg2[%c18, %c0_363, %c0_364] : memref<24x128x128xbf16, #tpu.memory_space<vmem>>, vector<1x128x128xbf16>
    %452 = vector.shape_cast %451 : vector<1x128x128xbf16> to vector<128x128xbf16>
    %cst_365 = arith.constant dense<0.000000e+00> : vector<184x128xf32>
    %453 = tpu.matmul %450, %452, %cst_365 {dimension_numbers = #tpu.dot_dimension_numbers<[1], [0], [0], [1], [0, 0, 1, 1], [], []>} : vector<184x128xbf16>, vector<128x128xbf16>, vector<184x128xf32> -> vector<184x128xf32>
    %c7_366 = arith.constant 7 : index
    %c0_367 = arith.constant 0 : index
    %454 = vector.load %arg12[%c7_366, %c0_367] : memref<192x128xf32, #tpu.memory_space<vmem>>, vector<184x128xf32>
    %455 = arith.truncf %454 : vector<184x128xf32> to vector<184x128xbf16>
    %c19 = arith.constant 19 : index
    %c0_368 = arith.constant 0 : index
    %c0_369 = arith.constant 0 : index
    %456 = vector.load %arg2[%c19, %c0_368, %c0_369] : memref<24x128x128xbf16, #tpu.memory_space<vmem>>, vector<1x128x128xbf16>
    %457 = vector.shape_cast %456 : vector<1x128x128xbf16> to vector<128x128xbf16>
    %cst_370 = arith.constant dense<0.000000e+00> : vector<184x128xf32>
    %458 = tpu.matmul %455, %457, %cst_370 {dimension_numbers = #tpu.dot_dimension_numbers<[1], [0], [0], [1], [0, 0, 1, 1], [], []>} : vector<184x128xbf16>, vector<128x128xbf16>, vector<184x128xf32> -> vector<184x128xf32>
    %459 = arith.addf %453, %458 : vector<184x128xf32>
    %c8_371 = arith.constant 8 : index
    %c0_372 = arith.constant 0 : index
    %460 = vector.load %arg12[%c8_371, %c0_372] : memref<192x128xf32, #tpu.memory_space<vmem>>, vector<184x128xf32>
    %461 = arith.truncf %460 : vector<184x128xf32> to vector<184x128xbf16>
    %c20 = arith.constant 20 : index
    %c0_373 = arith.constant 0 : index
    %c0_374 = arith.constant 0 : index
    %462 = vector.load %arg2[%c20, %c0_373, %c0_374] : memref<24x128x128xbf16, #tpu.memory_space<vmem>>, vector<1x128x128xbf16>
    %463 = vector.shape_cast %462 : vector<1x128x128xbf16> to vector<128x128xbf16>
    %cst_375 = arith.constant dense<0.000000e+00> : vector<184x128xf32>
    %464 = tpu.matmul %461, %463, %cst_375 {dimension_numbers = #tpu.dot_dimension_numbers<[1], [0], [0], [1], [0, 0, 1, 1], [], []>} : vector<184x128xbf16>, vector<128x128xbf16>, vector<184x128xf32> -> vector<184x128xf32>
    %465 = arith.addf %459, %464 : vector<184x128xf32>
    %466 = vector.broadcast %448 : vector<1x128xf32> to vector<184x128xf32>
    %467 = arith.addf %465, %466 : vector<184x128xf32>
    %cst_376 = arith.constant 0.000000e+00 : f32
    %468 = vector.broadcast %cst_376 : f32 to vector<184x128xf32>
    %469 = arith.maximumf %467, %468 : vector<184x128xf32>
    %470 = vector.broadcast %79 : vector<184x1xf32> to vector<184x128xf32>
    %471 = arith.mulf %469, %470 : vector<184x128xf32>
    %c8_377 = arith.constant 8 : index
    %c0_378 = arith.constant 0 : index
    %472 = vector.load %arg13[%c8_377, %c0_378] : memref<192x128xf32, #tpu.memory_space<vmem>>, vector<184x128xf32>
    tpu.vector_store %arg13[%c8_377, %c0_378], %471 {strides = array<i32>} : memref<192x128xf32, #tpu.memory_space<vmem>>, vector<184x128xf32>,
    %c6_379 = arith.constant 6 : index
    %c0_380 = arith.constant 0 : index
    %c0_381 = arith.constant 0 : index
    %473 = vector.load %arg5[%c6_379, %c0_380, %c0_381] : memref<8x1x128xf32, #tpu.memory_space<vmem>>, vector<1x1x128xf32>
    %474 = vector.shape_cast %473 : vector<1x1x128xf32> to vector<1x128xf32>
    %c6_382 = arith.constant 6 : index
    %c0_383 = arith.constant 0 : index
    %475 = vector.load %arg13[%c6_382, %c0_383] : memref<192x128xf32, #tpu.memory_space<vmem>>, vector<184x128xf32>
    %476 = arith.truncf %475 : vector<184x128xf32> to vector<184x128xbf16>
    %c18_384 = arith.constant 18 : index
    %c0_385 = arith.constant 0 : index
    %c0_386 = arith.constant 0 : index
    %477 = vector.load %arg4[%c18_384, %c0_385, %c0_386] : memref<24x128x128xbf16, #tpu.memory_space<vmem>>, vector<1x128x128xbf16>
    %478 = vector.shape_cast %477 : vector<1x128x128xbf16> to vector<128x128xbf16>
    %cst_387 = arith.constant dense<0.000000e+00> : vector<184x128xf32>
    %479 = tpu.matmul %476, %478, %cst_387 {dimension_numbers = #tpu.dot_dimension_numbers<[1], [0], [0], [1], [0, 0, 1, 1], [], []>} : vector<184x128xbf16>, vector<128x128xbf16>, vector<184x128xf32> -> vector<184x128xf32>
    %c7_388 = arith.constant 7 : index
    %c0_389 = arith.constant 0 : index
    %480 = vector.load %arg13[%c7_388, %c0_389] : memref<192x128xf32, #tpu.memory_space<vmem>>, vector<184x128xf32>
    %481 = arith.truncf %480 : vector<184x128xf32> to vector<184x128xbf16>
    %c19_390 = arith.constant 19 : index
    %c0_391 = arith.constant 0 : index
    %c0_392 = arith.constant 0 : index
    %482 = vector.load %arg4[%c19_390, %c0_391, %c0_392] : memref<24x128x128xbf16, #tpu.memory_space<vmem>>, vector<1x128x128xbf16>
    %483 = vector.shape_cast %482 : vector<1x128x128xbf16> to vector<128x128xbf16>
    %cst_393 = arith.constant dense<0.000000e+00> : vector<184x128xf32>
    %484 = tpu.matmul %481, %483, %cst_393 {dimension_numbers = #tpu.dot_dimension_numbers<[1], [0], [0], [1], [0, 0, 1, 1], [], []>} : vector<184x128xbf16>, vector<128x128xbf16>, vector<184x128xf32> -> vector<184x128xf32>
    %485 = arith.addf %479, %484 : vector<184x128xf32>
    %c8_394 = arith.constant 8 : index
    %c0_395 = arith.constant 0 : index
    %486 = vector.load %arg13[%c8_394, %c0_395] : memref<192x128xf32, #tpu.memory_space<vmem>>, vector<184x128xf32>
    %487 = arith.truncf %486 : vector<184x128xf32> to vector<184x128xbf16>
    %c20_396 = arith.constant 20 : index
    %c0_397 = arith.constant 0 : index
    %c0_398 = arith.constant 0 : index
    %488 = vector.load %arg4[%c20_396, %c0_397, %c0_398] : memref<24x128x128xbf16, #tpu.memory_space<vmem>>, vector<1x128x128xbf16>
    %489 = vector.shape_cast %488 : vector<1x128x128xbf16> to vector<128x128xbf16>
    %cst_399 = arith.constant dense<0.000000e+00> : vector<184x128xf32>
    %490 = tpu.matmul %487, %489, %cst_399 {dimension_numbers = #tpu.dot_dimension_numbers<[1], [0], [0], [1], [0, 0, 1, 1], [], []>} : vector<184x128xbf16>, vector<128x128xbf16>, vector<184x128xf32> -> vector<184x128xf32>
    %491 = arith.addf %485, %490 : vector<184x128xf32>
    %492 = vector.broadcast %474 : vector<1x128xf32> to vector<184x128xf32>
    %493 = arith.addf %491, %492 : vector<184x128xf32>
    %cst_400 = arith.constant 0.000000e+00 : f32
    %494 = vector.broadcast %cst_400 : f32 to vector<184x128xf32>
    %495 = arith.maximumf %493, %494 : vector<184x128xf32>
    %c8_401 = arith.constant 8 : index
    %c0_402 = arith.constant 0 : index
    %496 = vector.load %arg12[%c8_401, %c0_402] : memref<192x128xf32, #tpu.memory_space<vmem>>, vector<184x128xf32>
    %497 = arith.addf %495, %496 : vector<184x128xf32>
    %cst_403 = arith.constant 0.000000e+00 : f32
    %498 = vector.broadcast %cst_403 : f32 to vector<184x128xf32>
    %499 = arith.maximumf %497, %498 : vector<184x128xf32>
    %500 = vector.broadcast %79 : vector<184x1xf32> to vector<184x128xf32>
    %501 = arith.mulf %499, %500 : vector<184x128xf32>
    %c8_404 = arith.constant 8 : index
    %c0_405 = arith.constant 0 : index
    %502 = vector.load %arg12[%c8_404, %c0_405] : memref<192x128xf32, #tpu.memory_space<vmem>>, vector<184x128xf32>
    tpu.vector_store %arg12[%c8_404, %c0_405], %501 {strides = array<i32>} : memref<192x128xf32, #tpu.memory_space<vmem>>, vector<184x128xf32>,
    %c7_406 = arith.constant 7 : index
    %c0_407 = arith.constant 0 : index
    %c0_408 = arith.constant 0 : index
    %503 = vector.load %arg3[%c7_406, %c0_407, %c0_408] : memref<8x1x128xf32, #tpu.memory_space<vmem>>, vector<1x1x128xf32>
    %504 = vector.shape_cast %503 : vector<1x1x128xf32> to vector<1x128xf32>
    %c4_409 = arith.constant 4 : index
    %c0_410 = arith.constant 0 : index
    %505 = vector.load %arg12[%c4_409, %c0_410] : memref<192x128xf32, #tpu.memory_space<vmem>>, vector<184x128xf32>
    %506 = arith.truncf %505 : vector<184x128xf32> to vector<184x128xbf16>
    %c21 = arith.constant 21 : index
    %c0_411 = arith.constant 0 : index
    %c0_412 = arith.constant 0 : index
    %507 = vector.load %arg2[%c21, %c0_411, %c0_412] : memref<24x128x128xbf16, #tpu.memory_space<vmem>>, vector<1x128x128xbf16>
    %508 = vector.shape_cast %507 : vector<1x128x128xbf16> to vector<128x128xbf16>
    %cst_413 = arith.constant dense<0.000000e+00> : vector<184x128xf32>
    %509 = tpu.matmul %506, %508, %cst_413 {dimension_numbers = #tpu.dot_dimension_numbers<[1], [0], [0], [1], [0, 0, 1, 1], [], []>} : vector<184x128xbf16>, vector<128x128xbf16>, vector<184x128xf32> -> vector<184x128xf32>
    %c6_414 = arith.constant 6 : index
    %c0_415 = arith.constant 0 : index
    %510 = vector.load %arg12[%c6_414, %c0_415] : memref<192x128xf32, #tpu.memory_space<vmem>>, vector<184x128xf32>
    %511 = arith.truncf %510 : vector<184x128xf32> to vector<184x128xbf16>
    %c22 = arith.constant 22 : index
    %c0_416 = arith.constant 0 : index
    %c0_417 = arith.constant 0 : index
    %512 = vector.load %arg2[%c22, %c0_416, %c0_417] : memref<24x128x128xbf16, #tpu.memory_space<vmem>>, vector<1x128x128xbf16>
    %513 = vector.shape_cast %512 : vector<1x128x128xbf16> to vector<128x128xbf16>
    %cst_418 = arith.constant dense<0.000000e+00> : vector<184x128xf32>
    %514 = tpu.matmul %511, %513, %cst_418 {dimension_numbers = #tpu.dot_dimension_numbers<[1], [0], [0], [1], [0, 0, 1, 1], [], []>} : vector<184x128xbf16>, vector<128x128xbf16>, vector<184x128xf32> -> vector<184x128xf32>
    %515 = arith.addf %509, %514 : vector<184x128xf32>
    %c8_419 = arith.constant 8 : index
    %c0_420 = arith.constant 0 : index
    %516 = vector.load %arg12[%c8_419, %c0_420] : memref<192x128xf32, #tpu.memory_space<vmem>>, vector<184x128xf32>
    %517 = arith.truncf %516 : vector<184x128xf32> to vector<184x128xbf16>
    %c23_421 = arith.constant 23 : index
    %c0_422 = arith.constant 0 : index
    %c0_423 = arith.constant 0 : index
    %518 = vector.load %arg2[%c23_421, %c0_422, %c0_423] : memref<24x128x128xbf16, #tpu.memory_space<vmem>>, vector<1x128x128xbf16>
    %519 = vector.shape_cast %518 : vector<1x128x128xbf16> to vector<128x128xbf16>
    %cst_424 = arith.constant dense<0.000000e+00> : vector<184x128xf32>
    %520 = tpu.matmul %517, %519, %cst_424 {dimension_numbers = #tpu.dot_dimension_numbers<[1], [0], [0], [1], [0, 0, 1, 1], [], []>} : vector<184x128xbf16>, vector<128x128xbf16>, vector<184x128xf32> -> vector<184x128xf32>
    %521 = arith.addf %515, %520 : vector<184x128xf32>
    %522 = vector.broadcast %504 : vector<1x128xf32> to vector<184x128xf32>
    %523 = arith.addf %521, %522 : vector<184x128xf32>
    %cst_425 = arith.constant 0.000000e+00 : f32
    %524 = vector.broadcast %cst_425 : f32 to vector<184x128xf32>
    %525 = arith.maximumf %523, %524 : vector<184x128xf32>
    %526 = vector.broadcast %79 : vector<184x1xf32> to vector<184x128xf32>
    %527 = arith.mulf %525, %526 : vector<184x128xf32>
    %c8_426 = arith.constant 8 : index
    %c0_427 = arith.constant 0 : index
    %528 = vector.load %arg13[%c8_426, %c0_427] : memref<192x128xf32, #tpu.memory_space<vmem>>, vector<184x128xf32>
    tpu.vector_store %arg13[%c8_426, %c0_427], %527 {strides = array<i32>} : memref<192x128xf32, #tpu.memory_space<vmem>>, vector<184x128xf32>,
    %c7_428 = arith.constant 7 : index
    %c0_429 = arith.constant 0 : index
    %c0_430 = arith.constant 0 : index
    %529 = vector.load %arg5[%c7_428, %c0_429, %c0_430] : memref<8x1x128xf32, #tpu.memory_space<vmem>>, vector<1x1x128xf32>
    %530 = vector.shape_cast %529 : vector<1x1x128xf32> to vector<1x128xf32>
    %c4_431 = arith.constant 4 : index
    %c0_432 = arith.constant 0 : index
    %531 = vector.load %arg13[%c4_431, %c0_432] : memref<192x128xf32, #tpu.memory_space<vmem>>, vector<184x128xf32>
    %532 = arith.truncf %531 : vector<184x128xf32> to vector<184x128xbf16>
    %c21_433 = arith.constant 21 : index
    %c0_434 = arith.constant 0 : index
    %c0_435 = arith.constant 0 : index
    %533 = vector.load %arg4[%c21_433, %c0_434, %c0_435] : memref<24x128x128xbf16, #tpu.memory_space<vmem>>, vector<1x128x128xbf16>
    %534 = vector.shape_cast %533 : vector<1x128x128xbf16> to vector<128x128xbf16>
    %cst_436 = arith.constant dense<0.000000e+00> : vector<184x128xf32>
    %535 = tpu.matmul %532, %534, %cst_436 {dimension_numbers = #tpu.dot_dimension_numbers<[1], [0], [0], [1], [0, 0, 1, 1], [], []>} : vector<184x128xbf16>, vector<128x128xbf16>, vector<184x128xf32> -> vector<184x128xf32>
    %c6_437 = arith.constant 6 : index
    %c0_438 = arith.constant 0 : index
    %536 = vector.load %arg13[%c6_437, %c0_438] : memref<192x128xf32, #tpu.memory_space<vmem>>, vector<184x128xf32>
    %537 = arith.truncf %536 : vector<184x128xf32> to vector<184x128xbf16>
    %c22_439 = arith.constant 22 : index
    %c0_440 = arith.constant 0 : index
    %c0_441 = arith.constant 0 : index
    %538 = vector.load %arg4[%c22_439, %c0_440, %c0_441] : memref<24x128x128xbf16, #tpu.memory_space<vmem>>, vector<1x128x128xbf16>
    %539 = vector.shape_cast %538 : vector<1x128x128xbf16> to vector<128x128xbf16>
    %cst_442 = arith.constant dense<0.000000e+00> : vector<184x128xf32>
    %540 = tpu.matmul %537, %539, %cst_442 {dimension_numbers = #tpu.dot_dimension_numbers<[1], [0], [0], [1], [0, 0, 1, 1], [], []>} : vector<184x128xbf16>, vector<128x128xbf16>, vector<184x128xf32> -> vector<184x128xf32>
    %541 = arith.addf %535, %540 : vector<184x128xf32>
    %c8_443 = arith.constant 8 : index
    %c0_444 = arith.constant 0 : index
    %542 = vector.load %arg13[%c8_443, %c0_444] : memref<192x128xf32, #tpu.memory_space<vmem>>, vector<184x128xf32>
    %543 = arith.truncf %542 : vector<184x128xf32> to vector<184x128xbf16>
    %c23_445 = arith.constant 23 : index
    %c0_446 = arith.constant 0 : index
    %c0_447 = arith.constant 0 : index
    %544 = vector.load %arg4[%c23_445, %c0_446, %c0_447] : memref<24x128x128xbf16, #tpu.memory_space<vmem>>, vector<1x128x128xbf16>
    %545 = vector.shape_cast %544 : vector<1x128x128xbf16> to vector<128x128xbf16>
    %cst_448 = arith.constant dense<0.000000e+00> : vector<184x128xf32>
    %546 = tpu.matmul %543, %545, %cst_448 {dimension_numbers = #tpu.dot_dimension_numbers<[1], [0], [0], [1], [0, 0, 1, 1], [], []>} : vector<184x128xbf16>, vector<128x128xbf16>, vector<184x128xf32> -> vector<184x128xf32>
    %547 = arith.addf %541, %546 : vector<184x128xf32>
    %548 = vector.broadcast %530 : vector<1x128xf32> to vector<184x128xf32>
    %549 = arith.addf %547, %548 : vector<184x128xf32>
    %cst_449 = arith.constant 0.000000e+00 : f32
    %550 = vector.broadcast %cst_449 : f32 to vector<184x128xf32>
    %551 = arith.maximumf %549, %550 : vector<184x128xf32>
    %c8_450 = arith.constant 8 : index
    %c0_451 = arith.constant 0 : index
    %552 = vector.load %arg12[%c8_450, %c0_451] : memref<192x128xf32, #tpu.memory_space<vmem>>, vector<184x128xf32>
    %553 = arith.addf %551, %552 : vector<184x128xf32>
    %cst_452 = arith.constant 0.000000e+00 : f32
    %554 = vector.broadcast %cst_452 : f32 to vector<184x128xf32>
    %555 = arith.maximumf %553, %554 : vector<184x128xf32>
    %556 = vector.broadcast %79 : vector<184x1xf32> to vector<184x128xf32>
    %557 = arith.mulf %555, %556 : vector<184x128xf32>
    %c8_453 = arith.constant 8 : index
    %c0_454 = arith.constant 0 : index
    %558 = vector.load %arg12[%c8_453, %c0_454] : memref<192x128xf32, #tpu.memory_space<vmem>>, vector<184x128xf32>
    tpu.vector_store %arg12[%c8_453, %c0_454], %557 {strides = array<i32>} : memref<192x128xf32, #tpu.memory_space<vmem>>, vector<184x128xf32>,
    %c23_455 = arith.constant 23 : index
    %c0_456 = arith.constant 0 : index
    %559 = vector.load %arg12[%c23_455, %c0_456] : memref<192x128xf32, #tpu.memory_space<vmem>>, vector<1x128xf32>
    %c47_457 = arith.constant 47 : index
    %c0_458 = arith.constant 0 : index
    %560 = vector.load %arg12[%c47_457, %c0_458] : memref<192x128xf32, #tpu.memory_space<vmem>>, vector<1x128xf32>
    %c71_459 = arith.constant 71 : index
    %c0_460 = arith.constant 0 : index
    %561 = vector.load %arg12[%c71_459, %c0_460] : memref<192x128xf32, #tpu.memory_space<vmem>>, vector<1x128xf32>
    %c95_461 = arith.constant 95 : index
    %c0_462 = arith.constant 0 : index
    %562 = vector.load %arg12[%c95_461, %c0_462] : memref<192x128xf32, #tpu.memory_space<vmem>>, vector<1x128xf32>
    %c119_463 = arith.constant 119 : index
    %c0_464 = arith.constant 0 : index
    %563 = vector.load %arg12[%c119_463, %c0_464] : memref<192x128xf32, #tpu.memory_space<vmem>>, vector<1x128xf32>
    %c143_465 = arith.constant 143 : index
    %c0_466 = arith.constant 0 : index
    %564 = vector.load %arg12[%c143_465, %c0_466] : memref<192x128xf32, #tpu.memory_space<vmem>>, vector<1x128xf32>
    %c167_467 = arith.constant 167 : index
    %c0_468 = arith.constant 0 : index
    %565 = vector.load %arg12[%c167_467, %c0_468] : memref<192x128xf32, #tpu.memory_space<vmem>>, vector<1x128xf32>
    %c191_469 = arith.constant 191 : index
    %c0_470 = arith.constant 0 : index
    %566 = vector.load %arg12[%c191_469, %c0_470] : memref<192x128xf32, #tpu.memory_space<vmem>>, vector<1x128xf32>
    %567 = tpu.concatenate %559, %560, %561, %562, %563, %564, %565, %566 in 0 : vector<1x128xf32>, vector<1x128xf32>, vector<1x128xf32>, vector<1x128xf32>, vector<1x128xf32>, vector<1x128xf32>, vector<1x128xf32>, vector<1x128xf32> -> vector<8x128xf32>
    %568 = arith.addf %324, %567 : vector<8x128xf32>
    %cst_471 = arith.constant 0.707106769 : f32
    %569 = vector.broadcast %cst_471 : f32 to vector<8x128xf32>
    %570 = arith.mulf %568, %569 : vector<8x128xf32>
    %571 = arith.truncf %570 : vector<8x128xf32> to vector<8x128xbf16>
    %c0_472 = arith.constant 0 : index
    %c0_473 = arith.constant 0 : index
    %572 = vector.load %arg8[%c0_472, %c0_473] : memref<128x128xbf16, #tpu.memory_space<vmem>>, vector<128x128xbf16>
    %cst_474 = arith.constant dense<0.000000e+00> : vector<8x128xf32>
    %573 = tpu.matmul %571, %572, %cst_474 {dimension_numbers = #tpu.dot_dimension_numbers<[1], [0], [0], [1], [0, 0, 1, 1], [], []>} : vector<8x128xbf16>, vector<128x128xbf16>, vector<8x128xf32> -> vector<8x128xf32>
    %c0_475 = arith.constant 0 : index
    %c0_476 = arith.constant 0 : index
    %574 = vector.load %arg9[%c0_475, %c0_476] : memref<1x128xf32, #tpu.memory_space<vmem>>, vector<1x128xf32>
    %575 = vector.broadcast %574 : vector<1x128xf32> to vector<8x128xf32>
    %576 = arith.addf %573, %575 : vector<8x128xf32>
    %c0_477 = arith.constant 0 : index
    %c0_478 = arith.constant 0 : index
    %577 = vector.load %arg10[%c0_477, %c0_478] : memref<8x128xf32, #tpu.memory_space<vmem>>, vector<8x128xf32>
    tpu.vector_store %arg10[%c0_477, %c0_478], %576 {strides = array<i32>} : memref<8x128xf32, #tpu.memory_space<vmem>>, vector<8x128xf32>,
    return
  }
  func.func @transform_0(%arg0: i32) -> (i32, i32, i32) {
    %c0_i32 = arith.constant 0 : i32
    %c0_i32_0 = arith.constant 0 : i32
    %c0_i32_1 = arith.constant 0 : i32
    return %arg0, %c0_i32, %c0_i32_0 : i32, i32, i32
  }
  func.func @transform_1(%arg0: i32) -> (i32, i32, i32) {
    %c0_i32 = arith.constant 0 : i32
    %c0_i32_0 = arith.constant 0 : i32
    %c0_i32_1 = arith.constant 0 : i32
    %c0_i32_2 = arith.constant 0 : i32
    return %c0_i32, %c0_i32_0, %c0_i32_1 : i32, i32, i32
  }
  func.func @transform_2(%arg0: i32) -> (i32, i32, i32) {
    %c0_i32 = arith.constant 0 : i32
    %c0_i32_0 = arith.constant 0 : i32
    %c0_i32_1 = arith.constant 0 : i32
    %c0_i32_2 = arith.constant 0 : i32
    return %c0_i32, %c0_i32_0, %c0_i32_1 : i32, i32, i32
  }
  func.func @transform_3(%arg0: i32) -> (i32, i32, i32) {
    %c0_i32 = arith.constant 0 : i32
    %c0_i32_0 = arith.constant 0 : i32
    %c0_i32_1 = arith.constant 0 : i32
    %c0_i32_2 = arith.constant 0 : i32
    return %c0_i32, %c0_i32_0, %c0_i32_1 : i32, i32, i32
  }
  func.func @transform_4(%arg0: i32) -> (i32, i32, i32) {
    %c0_i32 = arith.constant 0 : i32
    %c0_i32_0 = arith.constant 0 : i32
    %c0_i32_1 = arith.constant 0 : i32
    %c0_i32_2 = arith.constant 0 : i32
    return %c0_i32, %c0_i32_0, %c0_i32_1 : i32, i32, i32
  }
  func.func @transform_5(%arg0: i32) -> (i32, i32, i32) {
    %c0_i32 = arith.constant 0 : i32
    %c0_i32_0 = arith.constant 0 : i32
    %c0_i32_1 = arith.constant 0 : i32
    %c0_i32_2 = arith.constant 0 : i32
    return %c0_i32, %c0_i32_0, %c0_i32_1 : i32, i32, i32
  }
  func.func @transform_6(%arg0: i32) -> (i32, i32, i32) {
    %c0_i32 = arith.constant 0 : i32
    %c0_i32_0 = arith.constant 0 : i32
    %c0_i32_1 = arith.constant 0 : i32
    %c0_i32_2 = arith.constant 0 : i32
    return %c0_i32, %c0_i32_0, %c0_i32_1 : i32, i32, i32
  }
  func.func @transform_7(%arg0: i32) -> (i32, i32) {
    %c0_i32 = arith.constant 0 : i32
    %c0_i32_0 = arith.constant 0 : i32
    %c0_i32_1 = arith.constant 0 : i32
    return %c0_i32, %c0_i32_0 : i32, i32
  }
  func.func @transform_8(%arg0: i32) -> (i32, i32) {
    %c0_i32 = arith.constant 0 : i32
    %c0_i32_0 = arith.constant 0 : i32
    %c0_i32_1 = arith.constant 0 : i32
    return %c0_i32, %c0_i32_0 : i32, i32
  }
  func.func @transform_9(%arg0: i32) -> (i32, i32) {
    %c0_i32 = arith.constant 0 : i32
    %c0_i32_0 = arith.constant 0 : i32
    return %arg0, %c0_i32 : i32, i32
  }
}

</mosaic_0001>

<bundles_post_ra>
// kernel: _lambda_.1
= control target key start
LH: loop header
LB: loop body
LE: loop exit
PB: predicated region body
PF: predicated region fallthrough
CT: control target
= control target key end

     0   :  { %14 = vsyncpa [#allocation6], 0  ;;  %s22020_s0 = inlined_call_operand.vmem [shape: f32[16,16,4], index: 0, kind: input, shape index: {}]   ;;  %s22021_s1 = inlined_call_operand.hbm [shape: bf16[24,128,128], index: 1, kind: input, shape index: {}]   ;;  %s22022_s2 = inlined_call_operand.vmem [shape: f32[8,1,128], index: 2, kind: input, shape index: {}]   ;;  %s22023_s3 = inlined_call_operand.hbm [shape: bf16[24,128,128], index: 3, kind: input, shape index: {}]   ;;  %s22024_s4 = inlined_call_operand.vmem [shape: f32[8,1,128], index: 4, kind: input, shape index: {}]   ;;  %s22025_s5 = inlined_call_operand.vmem [shape: bf16[2,128,128], index: 5, kind: input, shape index: {}]   ;;  %s22026_s6 = inlined_call_operand.vmem [shape: f32[2,1,128], index: 6, kind: input, shape index: {}]   ;;  %s22027_s7 = inlined_call_operand.vmem [shape: bf16[128,128], index: 7, kind: input, shape index: {}]   ;;  %s22028_s8 = inlined_call_operand.vmem [shape: f32[1,128], index: 8, kind: input, shape index: {}]   ;;  %s22029_s9 = inlined_call_operand.vmem [shape: f32[16,128], index: 9, kind: output, shape index: {}]  }
   0x1   :  { %15 = vsyncpa [#allocation8], 0  ;;  %s20220_s30 = smov 0  }
   0x2 LB: > { %s20226_s10 = sadd.s32 4294967295, %s20162_s30   ;;  %p15489_p0 = scmp.ge.s32.totalorder %s20162_s30, 1  ;;  %s20162_s30 = sphi %s20220_s30, %s21_s30  }
   0x3   : > { %p246_p1 = scmp.lt.s32.totalorder %s20162_s30, 3  ;;  %s20164_s11 = smov [#allocation5]  }
   0x4   : > { %s258_s12 = sshll.u32 %s20164_s11, 4  ;;  %p22030_p3 = scmp.eq.s32.totalorder %s20226_s10, 0  ;;  %s259_s12 = int_to_ptr.vmem [resolvable:$true] %s258_s12 }
   0x5   : > { %p20230_p2 = pnand %p15489_p0, %p246_p1  ;;  %s20165_s14 = smov [#allocation7]  }
   0x6   : > { %s274_s15 = sshll.u32 %s20165_s14, 4  ;;  %s20092_s19 = scalar_lea.hbm %s22021_s1, 24576  ;;  %s20243_s15 = int_to_ptr.vmem [resolvable:$true] %s274_s15 }
   0x7   : > { %s22032_s13 = scalar_select %p20230_p2, 1, 0 }
   0x8   : > { %p19652_p4 = pneg %p20230_p2  ;;  %p20093_p6 = scmp.ne.s32.totalorder %s22021_s1, %s20092_s19 }
   0x9   : > { %p20099_p10 = scmp.lt.u32.totalorder %s20092_s19, %s22021_s1 }
   0xa   : > { %p20239_p5 = pnand %p22030_p3, %p19652_p4 }
   0xc   : > { %p20094_p7 = pneg %p20239_p5 }
   0xe   : > { %p20095_p8 = pnand %p20094_p7, %p20093_p6 }
  0x10   : > { %p20096_p9 = pneg %p20095_p8 }
  0x12   : > { %p20101_p11 = pnand %p20099_p10, %p20096_p9 }
  0x14   : > { %20104 = shalt.err (!%p20101_p11)
}
  0x15   : > { %s20105_s24 = scalar_lea.vmem %s259_s12, 24576  ;;  %p20113_p1 = scmp.lt.s32.totalorder %s259_s12, %s259_s12 }
  0x16   : > { %p20106_p12 = scmp.ne.s32.totalorder %s259_s12, %s20105_s24  ;;  %p20114_p4 = scmp.lt.s32.totalorder %s20105_s24, %s20105_s24 }
  0x18   : > { %p20108_p13 = pnand %p20106_p12, %p20094_p7  ;;  %p20115_p3 = por %p20114_p4, %p20113_p1 }
  0x1a   : > { %p20109_p0 = pneg %p20108_p13 }
  0x1c   : > { %p20116_p2 = pnand %p20115_p3, %p20109_p0 }
  0x1e   : > { %20119 = shalt.err (!%p20116_p2)
}
  0x1f   : > { %s20166_s25 = smov 64   ;;  %s20167_s26 = smov 4  }
  0x20   : > { %19655 = dma.hbm_to_vmem [thread:$0]  (!%p20239_p5), %s22021_s1, 24576, %s259_s12, [#allocation6], %s20166_s25, %s20166_s25, %s20167_s26  }
  0x21   : > { %s20120_s14 = scalar_lea.hbm %s22023_s3, 24576 }
  0x22   : > { %p20121_p6 = scmp.ne.s32.totalorder %s22023_s3, %s20120_s14  ;;  %p20127_p8 = scmp.lt.u32.totalorder %s20120_s14, %s22023_s3 }
  0x24   : > { %p20123_p2 = pnand %p20121_p6, %p20094_p7 }
  0x26   : > { %p20124_p3 = pneg %p20123_p2 }
  0x28   : > { %p20129_p9 = pnand %p20127_p8, %p20124_p3 }
  0x2a   : > { %20132 = shalt.err (!%p20129_p9)
}
  0x2b   : > { %s20133_s12 = scalar_lea.vmem %s20243_s15, 24576  ;;  %p20141_p13 = scmp.lt.s32.totalorder %s20243_s15, %s20243_s15 }
  0x2c   : > { %p20134_p10 = scmp.ne.s32.totalorder %s20243_s15, %s20133_s12  ;;  %p20142_p0 = scmp.lt.s32.totalorder %s20133_s12, %s20133_s12 }
  0x2e   : > { %p20136_p11 = pnand %p20134_p10, %p20094_p7  ;;  %p20143_p1 = por %p20142_p0, %p20141_p13 }
  0x30   : > { %p20137_p12 = pneg %p20136_p11 }
  0x32   : > { %p20144_p4 = pnand %p20143_p1, %p20137_p12 }
  0x34   : > { %20147 = shalt.err (!%p20144_p4)
}
  0x35   : > { %19658 = dma.hbm_to_vmem [thread:$0]  (!%p20239_p5), %s22023_s3, 24576, %s20243_s15, [#allocation8], %s20166_s25, %s20166_s25, %s20167_s26  }
  0x36   : > { %p22034_p6 = scmp.ne.s32.totalorder %s22032_s13, 0 }
  0x37   : > { %p22035_p2 = scmp.eq.s32.totalorder (!%p22034_p6), %s20226_s10, 0 }
  0x38   : > { %315 = sbr.rel (%p22034_p6) target bundleno = 5645 (0x160d), region = 56 }
  0x3f   : > { %20153 = dma.done.wait (%p22035_p2), [#allocation6], 24576   ;;  %p22036_p7 = pmov %p22035_p2 }
  0x40   : > { %p22037_p3 = pmov %p22035_p2 }
  0x41   : > { %20155 = vsyncadd (%p22036_p7), [#allocation6], 4294942720 }
  0x42   : > { %20157 = dma.done.wait (%p22037_p3), [#allocation8], 24576   ;;  %p22038_p8 = pmov %p22035_p2 }
  0x43   : > { %s15496_s16 = sshll.u32 %s20226_s10, 3  ;;  %v20168_v0 = vmov 0.0   ;;  %v19677_v1 = vld [vmem:[#allocation5 + $0x40] sm:$0xff]   ;;  %v19678_v2 = vld [vmem:[#allocation5 + $0x48] sm:$0xff]   ;;  %v19679_v3 = vld [vmem:[#allocation5 + $0x50] sm:$0xff]   ;;  %vm394_vm0 = vcmask 31744  }
  0x44   : > { %20159 = vsyncadd (%p22038_p8), [#allocation8], 4294942720  ;;  %p20303_p9 = scmp.lt.s32.totalorder %s15496_s16, 15  ;;  %367 = vst [vmem:[#allocation2] sm:$0xff] %v20168_v0  ;;  %16984 = vmatprep.subr.bf16.mxu0 %v19677_v1  ;;  %v19680_v4 = vld [vmem:[#allocation5 + $0x58] sm:$0xff]   ;;  %v19681_v11 = vld [vmem:[#allocation5 + $0x60] sm:$0xff]  }
  0x45   : > { %368 = vst [vmem:[#allocation2 + $0x8] sm:$0xff] %v20168_v0  ;;  %369 = vst [vmem:[#allocation2 + $0x10] sm:$0xff] %v20168_v0  ;;  %16985 = vmatpush3.bf16.msra.mxu0 %v19677_v1  ;;  %v19682_v14 = vld [vmem:[#allocation5 + $0x68] sm:$0xff]   ;;  %v19683_v21 = vld [vmem:[#allocation5 + $0x70] sm:$0xff]   ;;  %vm20169_vm1 = vmmov 0   ;;  %vm8253_vm2 = vcmask 1040384  }
  0x46   : > { %1261 = vst [vmem:[#allocation3] sm:$0xff] %v20168_v0  ;;  %371 = vst [vmem:[#allocation2 + $0x20] sm:$0xff] %v20168_v0  ;;  %s22041_s16 = smov (!%p20303_p9, %s15496_s16), 15  ;;  %16986 = vmatprep.subr.bf16.mxu0 %v19678_v2  ;;  %v19684_v36 = vld [vmem:[#allocation5 + $0x78] sm:$0xff]   ;;  %v19685_v44 = vld [vmem:[#allocation5] sm:$0xff]   ;;  %vm8255_vm3 = vcmask 1041408  }
  0x47   : > { %372 = vst [vmem:[#allocation2 + $0x28] sm:$0xff] %v20168_v0  ;;  %374 = vst [vmem:[#allocation2 + $0x38] sm:$0xff] %v20168_v0  ;;  %s15974_s13 = sshll.u32 %s22041_s16, 4  ;;  %v19686_v53 = vld [vmem:[#allocation5 + $0x8] sm:$0xff]   ;;  %v19687_v57 = vld [vmem:[#allocation5 + $0x10] sm:$0xff]   ;;  %vm8257_vm4 = vcmask 1042432  }
  0x48   : > { %375 = vst [vmem:[#allocation2 + $0x40] sm:$0xff] %v20168_v0  ;;  %377 = vst [vmem:[#allocation2 + $0x50] sm:$0xff] %v20168_v0  ;;  %s20312_s25 = scalar_lea.vmem %s22020_s0, %s15974_s13  ;;  %v19688_v62 = vld [vmem:[#allocation5 + $0x18] sm:$0xff]   ;;  %vm8259_vm5 = vcmask 1043456   ;;  %vm8261_vm6 = vcmask 1044480   ;;  %vm8263_vm7 = vcmask 1045504  }
  0x49   : > { %378 = vst [vmem:[#allocation2 + $0x58] sm:$0xff] %v20168_v0  ;;  %380 = vst [vmem:[#allocation2 + $0x68] sm:$0xff] %v20168_v0  ;;  %16987 = vmatpush3.bf16.msra.mxu0 %v19678_v2  ;;  %v392_v5 = vld [vmem:[%s20312_s25] sm:$0xff]  ;;  %v393_v6 = vld [vmem:[%s20312_s25 + $0x8] sm:$0xff]  ;;  %vm8265_vm8 = vcmask 1046528   ;;  %p362_p5 = scmp.lt.s32.totalorder %s20226_s10, 1 }
  0x4a   : > { %381 = vst [vmem:[#allocation2 + $0x70] sm:$0xff] %v20168_v0  ;;  %383 = vst [vmem:[#allocation2 + $0x80] sm:$0xff] %v20168_v0  ;;  %16988 = vmatprep.subr.bf16.mxu0 %v19679_v3  ;;  %v15500_v7 = vld [vmem:[%s20312_s25 + $0x10] sm:$0xff]  ;;  %v15501_v8 = vld [vmem:[%s20312_s25 + $0x18] sm:$0xff] }
  0x4b   : > { %384 = vst [vmem:[#allocation2 + $0x88] sm:$0xff] %v20168_v0  ;;  %386 = vst [vmem:[#allocation2 + $0x98] sm:$0xff] %v20168_v0  ;;  %v15502_v9 = vld [vmem:[%s20312_s25 + $0x20] sm:$0xff]  ;;  %v15503_v10 = vld [vmem:[%s20312_s25 + $0x28] sm:$0xff]  ;;  %s22043_s10 = smov (!%p362_p5, %s20226_s10), 1 }
  0x4c   : > { %387 = vst [vmem:[#allocation2 + $0xa0] sm:$0xff] %v20168_v0  ;;  %389 = vst [vmem:[#allocation2 + $0xb0] sm:$0xff] %v20168_v0  ;;  %v15504_v12 = vld [vmem:[%s20312_s25 + $0x30] sm:$0xff]  ;;  %v15505_v13 = vld [vmem:[%s20312_s25 + $0x38] sm:$0xff]  ;;  %s15499_s19 = sshll.u32 %s22043_s10, 3 }
  0x4d   : > { %390 = vst [vmem:[#allocation2 + $0xb8] sm:$0xff] %v20168_v0  ;;  %391 = vst [vmem:[#allocation4] sm:$0xff] %v20168_v0  ;;  %16989 = vmatpush3.bf16.msra.mxu0 %v19679_v3  ;;  %v15506_v15 = vld [vmem:[%s20312_s25 + $0x40] sm:$0xff]  ;;  %v15507_v16 = vld [vmem:[%s20312_s25 + $0x48] sm:$0xff]  ;;  %s365_s16 = scalar_lea.vmem %s22029_s9, %s15499_s19 }
  0x4e   : > { %1264 = vst [vmem:[#allocation3 + $0x18] sm:$0xff] %v20168_v0  ;;  %1267 = vst [vmem:[#allocation3 + $0x30] sm:$0xff] %v20168_v0  ;;  %16990 = vmatprep.subr.bf16.mxu0 %v19680_v4  ;;  %v15508_v17 = vld [vmem:[%s20312_s25 + $0x50] sm:$0xff]  ;;  %v15509_v22 = vld [vmem:[%s20312_s25 + $0x58] sm:$0xff] }
  0x4f   : > { %1270 = vst [vmem:[#allocation3 + $0x48] sm:$0xff] %v20168_v0  ;;  %1273 = vst [vmem:[#allocation3 + $0x60] sm:$0xff] %v20168_v0  ;;  %v15510_v26 = vld [vmem:[%s20312_s25 + $0x60] sm:$0xff]  ;;  %v15511_v27 = vld [vmem:[%s20312_s25 + $0x68] sm:$0xff] }
  0x50   : > { %1276 = vst [vmem:[#allocation3 + $0x78] sm:$0xff] %v20168_v0  ;;  %1279 = vst [vmem:[#allocation3 + $0x90] sm:$0xff] %v20168_v0  ;;  %v15512_v32 = vld [vmem:[%s20312_s25 + $0x70] sm:$0xff]  ;;  %v15513_v35 = vld [vmem:[%s20312_s25 + $0x78] sm:$0xff] }
  0x51   : > { %1282 = vst [vmem:[#allocation3 + $0xa8] sm:$0xff] %v20168_v0  ;;  %395 = vst.msk [vmem:[#allocation2 + $0x8] sm:$0xff] %vm394_vm0, %v392_v5  ;;  %16991 = vmatpush3.bf16.msra.mxu0 %v19680_v4  ;;  %v19689_v0 = vld [vmem:[#allocation5 + $0x20] sm:$0xff]  }
  0x52   : > { %396 = vst.msk [vmem:[#allocation2 + $0x10] sm:$0xff] %vm394_vm0, %v393_v6  ;;  %400 = vst.msk [vmem:[#allocation2 + $0x20] sm:$0xff] %vm394_vm0, %v15500_v7  ;;  %16992 = vmatprep.subr.bf16.mxu0 %v19681_v11  ;;  %v19690_v6 = vld [vmem:[#allocation5 + $0x28] sm:$0xff]  }
  0x53   : > { %401 = vst.msk [vmem:[#allocation2 + $0x28] sm:$0xff] %vm394_vm0, %v15501_v8  ;;  %405 = vst.msk [vmem:[#allocation2 + $0x38] sm:$0xff] %vm394_vm0, %v15502_v9 }
  0x54   : > { %406 = vst.msk [vmem:[#allocation2 + $0x40] sm:$0xff] %vm394_vm0, %v15503_v10  ;;  %410 = vst.msk [vmem:[#allocation2 + $0x50] sm:$0xff] %vm394_vm0, %v15504_v12 }
  0x55   : > { %411 = vst.msk [vmem:[#allocation2 + $0x58] sm:$0xff] %vm394_vm0, %v15505_v13  ;;  %415 = vst.msk [vmem:[#allocation2 + $0x68] sm:$0xff] %vm394_vm0, %v15506_v15  ;;  %16993 = vmatpush3.bf16.msra.mxu0 %v19681_v11  ;;  %v19691_v11 = vld [vmem:[#allocation5 + $0x30] sm:$0xff]   ;;  %v19692_v13 = vld [vmem:[#allocation5 + $0x38] sm:$0xff]  }
  0x56   : > { %416 = vst.msk [vmem:[#allocation2 + $0x70] sm:$0xff] %vm394_vm0, %v15507_v16  ;;  %420 = vst.msk [vmem:[#allocation2 + $0x80] sm:$0xff] %vm394_vm0, %v15508_v17  ;;  %16994 = vmatprep.subr.bf16.mxu0 %v19682_v14 }
  0x57   : > { %421 = vst.msk [vmem:[#allocation2 + $0x88] sm:$0xff] %vm394_vm0, %v15509_v22  ;;  %425 = vst.msk [vmem:[#allocation2 + $0x98] sm:$0xff] %vm394_vm0, %v15510_v26  ;;  %v19693_v22 = vld [vmem:[#allocation5 + $0x80] sm:$0xff]  }
  0x58   : > { %v20334_v18 = vld [vmem:[#allocation2 + $0x8] sm:$0xff]  ;;  %426 = vst.msk [vmem:[#allocation2 + $0xa0] sm:$0xff] %vm394_vm0, %v15511_v27  ;;  %430 = vst.msk [vmem:[#allocation2 + $0xb0] sm:$0xff] %vm394_vm0, %v15512_v32 }
  0x59   : > { %v20336_v19 = vld [vmem:[#allocation2 + $0x10] sm:$0xff]  ;;  %v20338_v20 = vld [vmem:[#allocation2 + $0x20] sm:$0xff]  ;;  %1262 = vst [vmem:[#allocation3 + $0x8] sm:$0xff] %v20334_v18  ;;  %16995 = vmatpush3.bf16.msra.mxu0 %v19682_v14  ;;  %431 = vst.msk [vmem:[#allocation2 + $0xb8] sm:$0xff] %vm394_vm0, %v15513_v35 }
  0x5a   : > { %1263 = vst [vmem:[#allocation3 + $0x10] sm:$0xff] %v20336_v19  ;;  %1265 = vst [vmem:[#allocation3 + $0x20] sm:$0xff] %v20338_v20  ;;  %v20346_v23 = vld [vmem:[#allocation2 + $0x28] sm:$0xff]  ;;  %v20348_v24 = vld [vmem:[#allocation2 + $0x38] sm:$0xff]  ;;  %16996 = vmatprep.subr.bf16.mxu0 %v19683_v21 }
  0x5b   : > { %v20350_v25 = vld [vmem:[#allocation2 + $0x40] sm:$0xff]  ;;  %1266 = vst [vmem:[#allocation3 + $0x28] sm:$0xff] %v20346_v23  ;;  %1268 = vst [vmem:[#allocation3 + $0x38] sm:$0xff] %v20348_v24  ;;  %v20360_v29 = vld [vmem:[#allocation2 + $0x50] sm:$0xff] }
  0x5c   : > { %1269 = vst [vmem:[#allocation3 + $0x40] sm:$0xff] %v20350_v25  ;;  %v1767_v28 = vpack.c.bf16 %v20350_v25, %v20348_v24  ;;  %v20362_v30 = vld [vmem:[#allocation2 + $0x58] sm:$0xff]  ;;  %1271 = vst [vmem:[#allocation3 + $0x50] sm:$0xff] %v20360_v29  ;;  %v20368_v31 = vld [vmem:[#allocation2 + $0x68] sm:$0xff] }
  0x5d   : > { %1272 = vst [vmem:[#allocation3 + $0x58] sm:$0xff] %v20362_v30  ;;  %v20371_v33 = vld [vmem:[#allocation2 + $0x70] sm:$0xff]  ;;  %1274 = vst [vmem:[#allocation3 + $0x68] sm:$0xff] %v20368_v31  ;;  %v20374_v34 = vld [vmem:[#allocation2 + $0x80] sm:$0xff]  ;;  %16997 = vmatpush3.bf16.msra.mxu0 %v19683_v21 }
  0x5e   : > { %1275 = vst [vmem:[#allocation3 + $0x70] sm:$0xff] %v20371_v33  ;;  %1277 = vst [vmem:[#allocation3 + $0x80] sm:$0xff] %v20374_v34  ;;  %v1770_v39 = vpack.c.bf16 %v20371_v33, %v20368_v31  ;;  %v20383_v41 = vld [vmem:[#allocation2 + $0x88] sm:$0xff]  ;;  %16998 = vmatprep.subr.bf16.mxu0 %v19684_v36  ;;  %v20386_v47 = vld [vmem:[#allocation2 + $0x98] sm:$0xff] }
  0x5f   : > { %1278 = vst [vmem:[#allocation3 + $0x88] sm:$0xff] %v20383_v41  ;;  %1280 = vst [vmem:[#allocation3 + $0x98] sm:$0xff] %v20386_v47  ;;  %v20389_v49 = vld [vmem:[#allocation2 + $0xa0] sm:$0xff]  ;;  %v20391_v50 = vld [vmem:[#allocation2 + $0xb0] sm:$0xff] }
  0x60   : > { %v1337_v37 = vld [vmem:[#allocation3 + $0x7] sm:$0xff]  ;;  %1281 = vst [vmem:[#allocation3 + $0xa0] sm:$0xff] %v20389_v49  ;;  %1283 = vst [vmem:[#allocation3 + $0xb0] sm:$0xff] %v20391_v50  ;;  %v1773_v52 = vpack.c.bf16 %v20389_v49, %v20386_v47  ;;  %v1260_v54 = vld [vmem:[#allocation2 + $0xb8] sm:$0xff] }
  0x61   : > { %v1338_v38 = vld [vmem:[#allocation3 + $0xf] sm:$0xff]  ;;  %v1339_v42 = vld [vmem:[#allocation3 + $0x17] sm:$0xff]  ;;  %v1340_v43 = vld [vmem:[#allocation3 + $0x1f] sm:$0xff]  ;;  %16999 = vmatpush3.bf16.msra.mxu0 %v19684_v36  ;;  %1284 = vst [vmem:[#allocation3 + $0xb8] sm:$0xff] %v1260_v54 }
  0x62   : > { %v1360_v40 = vpack.c.bf16 %v1338_v38, %v1337_v37  ;;  %v1341_v45 = vld [vmem:[#allocation3 + $0x27] sm:$0xff]  ;;  %v1342_v46 = vld [vmem:[#allocation3 + $0x2f] sm:$0xff]  ;;  %v1361_v48 = vpack.c.bf16 %v1340_v43, %v1339_v42  ;;  %17024 = vmatprep.subr.bf16.mxu0 %v19685_v44  ;;  %v1343_v55 = vld [vmem:[#allocation3 + $0x37] sm:$0xff] }
  0x63   : > { %v1362_v51 = vpack.c.bf16 %v1342_v46, %v1341_v45  ;;  %v1344_v56 = vld [vmem:[#allocation3 + $0x3f] sm:$0xff]  ;;  %v1345_v58 = vld [vmem:[#allocation3 + $0x47] sm:$0xff]  ;;  %v1346_v59 = vld [vmem:[#allocation3 + $0x4f] sm:$0xff] }
  0x64   : > { %17000 = vmatprep.mubr.bf16.mxu0 %v1360_v40  ;;  %v1363_v60 = vpack.c.bf16 %v1344_v56, %v1343_v55  ;;  %v1364_v61 = vpack.c.bf16 %v1346_v59, %v1345_v58  ;;  %v1347_v63 = vld [vmem:[#allocation3 + $0x57] sm:$0xff]  ;;  %v1348_v1 = vld [vmem:[#allocation3 + $0x5f] sm:$0xff]  ;;  %v1349_v2 = vld [vmem:[#allocation3 + $0x67] sm:$0xff] }
  0x65   : > { %17001 = vmatmul.mubr.bf16.vlgmr.msra.gmra.mrb[0].mxu0 %v1361_v48  ;;  %v1350_v3 = vld [vmem:[#allocation3 + $0x6f] sm:$0xff]  ;;  %v1365_v4 = vpack.c.bf16 %v1348_v1, %v1347_v63  ;;  %v1351_v7 = vld [vmem:[#allocation3 + $0x77] sm:$0xff]  ;;  %v1352_v8 = vld [vmem:[#allocation3 + $0x7f] sm:$0xff] }
  0x66   : > { %17025 = vmatpush3.bf16.msra.mxu0 %v19685_v44  ;;  %17004 = vmatprep.mubr.bf16.mxu0 %v1362_v51  ;;  %v1366_v5 = vpack.c.bf16 %v1350_v3, %v1349_v2  ;;  %v1353_v9 = vld [vmem:[#allocation3 + $0x87] sm:$0xff]  ;;  %v1354_v10 = vld [vmem:[#allocation3 + $0x8f] sm:$0xff]  ;;  %v1367_v12 = vpack.c.bf16 %v1352_v8, %v1351_v7  ;;  %v1355_v15 = vld [vmem:[#allocation3 + $0x97] sm:$0xff] }
  0x67   : > { %17026 = vmatprep.subr.bf16.mxu0 %v19686_v53  ;;  %v1368_v14 = vpack.c.bf16 %v1354_v10, %v1353_v9  ;;  %v1356_v16 = vld [vmem:[#allocation3 + $0x9f] sm:$0xff]  ;;  %v1357_v17 = vld [vmem:[#allocation3 + $0xa7] sm:$0xff]  ;;  %v1358_v21 = vld [vmem:[#allocation3 + $0xaf] sm:$0xff] }
  0x68   : > { %v1369_v26 = vpack.c.bf16 %v1356_v16, %v1355_v15  ;;  %v1370_v27 = vpack.c.bf16 %v1358_v21, %v1357_v17  ;;  %v1359_v32 = vld [vmem:[#allocation3 + $0xb7] sm:$0xff]  ;;  %v1286_v35 = vld [vmem:[#allocation3 + $0x6] sm:$0xff]  ;;  %v1287_v36 = vld [vmem:[#allocation3 + $0xe] sm:$0xff] }
  0x69   : > { %v1371_v37 = vpack.c.bf16 %v1359_v32, %v1359_v32  ;;  %v1309_v38 = vpack.c.bf16 %v1287_v36, %v1286_v35  ;;  %v1288_v40 = vld [vmem:[#allocation3 + $0x16] sm:$0xff]  ;;  %v1289_v42 = vld [vmem:[#allocation3 + $0x1e] sm:$0xff]  ;;  %v1290_v43 = vld [vmem:[#allocation3 + $0x26] sm:$0xff] }
  0x6a   : > { %17027 = vmatpush3.bf16.msra.mxu0 %v19686_v53  ;;  %v1291_v44 = vld [vmem:[#allocation3 + $0x2e] sm:$0xff]  ;;  %v1310_v45 = vpack.c.bf16 %v1289_v42, %v1288_v40  ;;  %v1292_v51 = vld [vmem:[#allocation3 + $0x36] sm:$0xff]  ;;  %v1293_v53 = vld [vmem:[#allocation3 + $0x3e] sm:$0xff] }
  0x6b   : > { %17028 = vmatprep.subr.bf16.mxu0 %v19687_v57  ;;  %v19694_v46 = vld [vmem:[#allocation5 + $0x88] sm:$0xff]   ;;  %v1311_v48 = vpack.c.bf16 %v1291_v44, %v1290_v43  ;;  %v19695_v54 = vld [vmem:[#allocation5 + $0x90] sm:$0xff]   ;;  %v19696_v58 = vld [vmem:[#allocation5 + $0x98] sm:$0xff]  }
  0x6c   : > { %v1294_v55 = vld [vmem:[#allocation3 + $0x46] sm:$0xff]  ;;  %v1295_v56 = vld [vmem:[#allocation3 + $0x4e] sm:$0xff]  ;;  %v19700_v10 = vld [vmem:[#allocation5 + $0xb8] sm:$0xff]  }
  0x6d   : > { %17005 = vmatmul.mubr.bf16.gmra.mrb[4].mxu0 %v1363_v60  ;;  %v1313_v59 = vpack.c.bf16 %v1295_v56, %v1294_v55  ;;  %v1296_v60 = vld [vmem:[#allocation3 + $0x56] sm:$0xff]  ;;  %v1299_v63 = vld [vmem:[#allocation3 + $0x6e] sm:$0xff]  ;;  %v19705_v31 = vld [vmem:[#allocation7 + $0x60] sm:$0xff]  }
  0x6e   : > { %17029 = vmatpush3.bf16.msra.mxu0 %v19687_v57  ;;  %17008 = vmatprep.mubr.bf16.mxu0 %v1364_v61  ;;  %v1312_v57 = vpack.c.bf16 %v1293_v53, %v1292_v51  ;;  %v1297_v61 = vld [vmem:[#allocation3 + $0x5e] sm:$0xff]  ;;  %v19698_v2 = vld [vmem:[#allocation5 + $0xa8] sm:$0xff]   ;;  %v19699_v8 = vld [vmem:[#allocation5 + $0xb0] sm:$0xff]  }
  0x6f   : > { %17030 = vmatprep.subr.bf16.mxu0 %v19688_v62  ;;  %v1314_v1 = vpack.c.bf16 %v1297_v61, %v1296_v60  ;;  %v1303_v7 = vld [vmem:[#allocation3 + $0x8e] sm:$0xff]  ;;  %v1308_v21 = vld [vmem:[#allocation3 + $0xb6] sm:$0xff]  ;;  %v19718_v47 = vld [vmem:[%s22025_s5] sm:$0xff]  }
  0x70   : > { %v1307_v15 = vld [vmem:[#allocation3 + $0xae] sm:$0xff]  ;;  %v20086_v24 = vld [vmem:[#allocation3 + $0xb8] sm:$0xff]  ;;  %v2852_v56 = vld [vmem:[#allocation3 + $0x20] sm:$0xff] }
  0x71   : > { %v1775_v25 = vpack.c.bf16 %v20086_v24, %v20086_v24  ;;  %v19706_v33 = vld [vmem:[#allocation7 + $0x68] sm:$0xff]   ;;  %v19722_v43 = vld [vmem:[%s22025_s5 + $0x10] sm:$0xff]   ;;  %v19724_v44 = vld [vmem:[%s22025_s5 + $0x18] sm:$0xff]  }
  0x72   : > { %17031 = vmatpush3.bf16.msra.mxu0 %v19688_v62  ;;  %v1298_v62 = vld [vmem:[#allocation3 + $0x66] sm:$0xff]  ;;  %v19732_v51 = vld [vmem:[%s22025_s5 + $0x38] sm:$0xff]  }
  0x73   : > { %17032 = vmatprep.subr.bf16.mxu0 %v19689_v0  ;;  %v1315_v3 = vpack.c.bf16 %v1299_v63, %v1298_v62  ;;  %v19720_v42 = vld [vmem:[%s22025_s5 + $0x8] sm:$0xff]  }
  0x74   : > { %v2849_v53 = vld [vmem:[#allocation3 + $0x8] sm:$0xff] }
  0x75   : > { %17009 = vmatmul.mubr.bf16.gmra.mrb[8].mxu0 %v1365_v4  ;;  %v1300_v4 = vld [vmem:[#allocation3 + $0x76] sm:$0xff] }
  0x76   : > { %17012 = vmatprep.mubr.bf16.mxu0 %v1366_v5  ;;  %17033 = vmatpush3.bf16.msra.mxu0 %v19689_v0  ;;  %v19697_v0 = vld [vmem:[#allocation5 + $0xa0] sm:$0xff]  }
  0x77   : > { %17034 = vmatprep.subr.bf16.mxu0 %v19690_v6  ;;  %v1301_v5 = vld [vmem:[#allocation3 + $0x7e] sm:$0xff] }
  0x78   : > { %v1316_v9 = vpack.c.bf16 %v1301_v5, %v1300_v4  ;;  %v2856_v4 = vld [vmem:[#allocation3 + $0x40] sm:$0xff] }
  0x7a   : > { %17035 = vmatpush3.bf16.msra.mxu0 %v19690_v6  ;;  %v1302_v6 = vld [vmem:[#allocation3 + $0x86] sm:$0xff] }
  0x7b   : > { %17036 = vmatprep.subr.bf16.mxu0 %v19691_v11 }
  0x7d   : > { %17013 = vmatmul.mubr.bf16.gmra.mrb[12].mxu0 %v1367_v12  ;;  %v1304_v12 = vld [vmem:[#allocation3 + $0x96] sm:$0xff] }
  0x7e   : > { %17016 = vmatprep.mubr.bf16.mxu0 %v1368_v14  ;;  %17037 = vmatpush3.bf16.msra.mxu0 %v19691_v11  ;;  %v1317_v11 = vpack.c.bf16 %v1303_v7, %v1302_v6  ;;  %v1306_v14 = vld [vmem:[#allocation3 + $0xa6] sm:$0xff]  ;;  %v20455_v7 = vld [vmem:[%s22022_s2] ss:$0 sm:$0xff] }
  0x7f   : > { %17038 = vmatprep.subr.bf16.mxu0 %v19692_v13  ;;  %v1319_v17 = vpack.c.bf16 %v1307_v15, %v1306_v14 }
  0x82   : > { %17039 = vmatpush3.bf16.msra.mxu0 %v19692_v13  ;;  %v1305_v13 = vld [vmem:[#allocation3 + $0x9e] sm:$0xff] }
  0x83   : > { %17064 = vmatprep.subr.bf16.mxu0 %v19693_v22  ;;  %v1318_v16 = vpack.c.bf16 %v1305_v13, %v1304_v12 }
  0x85   : > { %17017 = vmatmul.mubr.bf16.gmra.mrb[16].mxu0 %v1369_v26  ;;  %v1764_v26 = vpack.c.bf16 %v20336_v19, %v20334_v18 }
  0x86   : > { %17020 = vmatprep.mubr.bf16.mxu0 %v1370_v27  ;;  %v20085_v27 = vld [vmem:[#allocation2] sm:$0xff] }
  0x87   : > { %v1765_v32 = vpack.c.bf16 %v20338_v20, %v20085_v27  ;;  %v1766_v35 = vpack.c.bf16 %v20085_v27, %v20346_v23  ;;  %v1768_v36 = vpack.c.bf16 %v20360_v29, %v20085_v27  ;;  %v1771_v19 = vpack.c.bf16 %v20374_v34, %v20085_v27  ;;  %v19701_v29 = vld [vmem:[#allocation7 + $0x40] sm:$0xff]   ;;  %v19707_v34 = vld [vmem:[#allocation7 + $0x70] sm:$0xff]  }
  0x88   : > { %v1772_v20 = vpack.c.bf16 %v20085_v27, %v20383_v41  ;;  %v1774_v23 = vpack.c.bf16 %v20391_v50, %v20085_v27  ;;  %17104 = vmatprep.subr.bf16.mxu1 %v19701_v29  ;;  %v20415_v41 = vld [vmem:[#allocation7] sm:$0xff]  }
  0x89   : > { %17105 = vmatpush3.bf16.msra.mxu1 %v19701_v29 }
  0x8d   : > { %17021 = vmatmul.mubr.bf16.gmra.mrb[20].mxu0 %v1371_v37  ;;  %v1769_v37 = vpack.c.bf16 %v20085_v27, %v20362_v30  ;;  %v19704_v30 = vld [vmem:[#allocation7 + $0x58] sm:$0xff]  }
  0x8e   : > { %17040 = vmatprep.mubr.bf16.mxu0 %v1309_v38  ;;  %v19702_v38 = vld [vmem:[#allocation7 + $0x48] sm:$0xff]  }
  0x8f   : > { %17106 = vmatprep.subr.bf16.mxu1 %v19702_v38 }
  0x90   : > { %17107 = vmatpush3.bf16.msra.mxu1 %v19702_v38 }
  0x95   : > { %17041 = vmatmul.mubr.bf16.vlgmr.msra.gmra.mrb[0].mxu0 %v1310_v45  ;;  %v19726_v45 = vld [vmem:[%s22025_s5 + $0x20] sm:$0xff]  }
  0x96   : > { %17065 = vmatpush3.bf16.msra.mxu0 %v19693_v22  ;;  %17044 = vmatprep.mubr.bf16.mxu0 %v1311_v48  ;;  %v1320_v22 = vpack.c.bf16 %v1308_v21, %v1308_v21  ;;  %v19730_v48 = vld [vmem:[%s22025_s5 + $0x30] sm:$0xff]   ;;  %v2859_v21 = vld [vmem:[#allocation3 + $0x58] sm:$0xff] }
  0x97   : > { %17066 = vmatprep.subr.bf16.mxu0 %v19694_v46 }
  0x9a   : > { %17067 = vmatpush3.bf16.msra.mxu0 %v19694_v46  ;;  %v19728_v46 = vld [vmem:[%s22025_s5 + $0x28] sm:$0xff]  }
  0x9b   : > { %17068 = vmatprep.subr.bf16.mxu0 %v19695_v54 }
  0x9d   : > { %17045 = vmatmul.mubr.bf16.gmra.mrb[4].mxu0 %v1312_v57  ;;  %v20442_v57 = vld [vmem:[#allocation2] sm:$0xff] }
  0x9e   : > { %17069 = vmatpush3.bf16.msra.mxu0 %v19695_v54  ;;  %17048 = vmatprep.mubr.bf16.mxu0 %v1313_v59  ;;  %v2850_v54 = vld [vmem:[#allocation3 + $0x10] sm:$0xff]  ;;  %v2853_v59 = vld [vmem:[#allocation3 + $0x28] sm:$0xff]  ;;  %v2877_v27 = vpack.c.bf16 %v20442_v57, %v2859_v21 }
  0x9f   : > { %17070 = vmatprep.subr.bf16.mxu0 %v19696_v58  ;;  %v2872_v55 = vpack.c.bf16 %v2850_v54, %v2849_v53  ;;  %v2874_v61 = vpack.c.bf16 %v20442_v57, %v2853_v59  ;;  %v2865_v54 = vld [vmem:[#allocation3 + $0x88] sm:$0xff] }
  0xa0   : > { %v19710_v59 = vld [vmem:[#allocation7 + $0x8] sm:$0xff]  }
  0xa2   : > { %17071 = vmatpush3.bf16.msra.mxu0 %v19696_v58  ;;  %v2873_v58 = vpack.c.bf16 %v2852_v56, %v20442_v57 }
  0xa3   : > { %17072 = vmatprep.subr.bf16.mxu0 %v19697_v0 }
  0xa5   : > { %17049 = vmatmul.mubr.bf16.gmra.mrb[8].mxu0 %v1314_v1 }
  0xa6   : > { %17052 = vmatprep.mubr.bf16.mxu0 %v1315_v3  ;;  %17073 = vmatpush3.bf16.msra.mxu0 %v19697_v0  ;;  %v2855_v3 = vld [vmem:[#allocation3 + $0x38] sm:$0xff] }
  0xa7   : > { %17074 = vmatprep.subr.bf16.mxu0 %v19698_v2  ;;  %v2875_v6 = vpack.c.bf16 %v2856_v4, %v2855_v3 }
  0xaa   : > { %17075 = vmatpush3.bf16.msra.mxu0 %v19698_v2 }
  0xab   : > { %17076 = vmatprep.subr.bf16.mxu0 %v19699_v8 }
  0xad   : > { %17053 = vmatmul.mubr.bf16.gmra.mrb[12].mxu0 %v1316_v9 }
  0xae   : > { %17056 = vmatprep.mubr.bf16.mxu0 %v1317_v11  ;;  %17077 = vmatpush3.bf16.msra.mxu0 %v19699_v8  ;;  %v2858_v8 = vld [vmem:[#allocation3 + $0x50] sm:$0xff] }
  0xaf   : > { %17078 = vmatprep.subr.bf16.mxu0 %v19700_v10 }
  0xb2   : > { %17079 = vmatpush3.bf16.msra.mxu0 %v19700_v10  ;;  %v2876_v10 = vpack.c.bf16 %v2858_v8, %v20442_v57  ;;  %v2868_v8 = vld [vmem:[#allocation3 + $0xa0] sm:$0xff] }
  0xb3   : > { %17224 = vmatprep.subr.bf16.mxu0 %v19718_v47 }
  0xb5   : > { %17057 = vmatmul.mubr.bf16.gmra.mrb[16].mxu0 %v1318_v16 }
  0xb6   : > { %17060 = vmatprep.mubr.bf16.mxu0 %v1319_v17 }
  0xbd   : > { %17061 = vmatmul.mubr.bf16.gmra.mrb[24].mxu0 %v1320_v22 }
  0xbe   : > { %17080 = vmatprep.mubr.bf16.mxu0 %v1764_v26 }
  0xc5   : > { %17081 = vmatmul.mubr.bf16.vlgmr.msra.gmra.mrb[0].mxu0 %v1765_v32 }
  0xc6   : > { %17084 = vmatprep.mubr.bf16.mxu0 %v1766_v35  ;;  %17225 = vmatpush3.bf16.msra.mxu0 %v19718_v47 }
  0xc7   : > { %17226 = vmatprep.subr.bf16.mxu0 %v19720_v42 }
  0xca   : > { %17227 = vmatpush3.bf16.msra.mxu0 %v19720_v42 }
  0xcb   : > { %17228 = vmatprep.subr.bf16.mxu0 %v19722_v43 }
  0xcd   : > { %17085 = vmatmul.mubr.bf16.gmra.mrb[4].mxu0 %v1767_v28  ;;  %v19703_v28 = vld [vmem:[#allocation7 + $0x50] sm:$0xff]  }
  0xce   : > { %17088 = vmatprep.mubr.bf16.mxu0 %v1768_v36  ;;  %17108 = vmatprep.subr.bf16.mxu1 %v19703_v28 }
  0xcf   : > { %17109 = vmatpush3.bf16.msra.mxu1 %v19703_v28  ;;  %17229 = vmatpush3.bf16.msra.mxu0 %v19722_v43 }
  0xd0   : > { %17110 = vmatprep.subr.bf16.mxu1 %v19704_v30  ;;  %17230 = vmatprep.subr.bf16.mxu0 %v19724_v44 }
  0xd3   : > { %17111 = vmatpush3.bf16.msra.mxu1 %v19704_v30  ;;  %17231 = vmatpush3.bf16.msra.mxu0 %v19724_v44 }
  0xd4   : > { %17112 = vmatprep.subr.bf16.mxu1 %v19705_v31  ;;  %17232 = vmatprep.subr.bf16.mxu0 %v19726_v45 }
  0xd5   : > { %17089 = vmatmul.mubr.bf16.gmra.mrb[8].mxu0 %v1769_v37 }
  0xd6   : > { %17092 = vmatprep.mubr.bf16.mxu0 %v1770_v39  ;;  %v19708_v39 = vld [vmem:[#allocation7 + $0x78] sm:$0xff]  }
  0xd7   : > { %17113 = vmatpush3.bf16.msra.mxu1 %v19705_v31  ;;  %17233 = vmatpush3.bf16.msra.mxu0 %v19726_v45 }
  0xd8   : > { %17114 = vmatprep.subr.bf16.mxu1 %v19706_v33  ;;  %17234 = vmatprep.subr.bf16.mxu0 %v19728_v46 }
  0xdb   : > { %17115 = vmatpush3.bf16.msra.mxu1 %v19706_v33  ;;  %17235 = vmatpush3.bf16.msra.mxu0 %v19728_v46 }
  0xdc   : > { %17116 = vmatprep.subr.bf16.mxu1 %v19707_v34  ;;  %17236 = vmatprep.subr.bf16.mxu0 %v19730_v48 }
  0xdd   : > { %17093 = vmatmul.mubr.bf16.gmra.mrb[12].mxu0 %v1771_v19  ;;  %v2861_v19 = vld [vmem:[#allocation3 + $0x68] sm:$0xff] }
  0xde   : > { %17096 = vmatprep.mubr.bf16.mxu0 %v1772_v20  ;;  %v2862_v20 = vld [vmem:[#allocation3 + $0x70] sm:$0xff] }
  0xdf   : > { %17117 = vmatpush3.bf16.msra.mxu1 %v19707_v34  ;;  %17237 = vmatpush3.bf16.msra.mxu0 %v19730_v48  ;;  %v2878_v38 = vpack.c.bf16 %v2862_v20, %v2861_v19 }
  0xe0   : > { %17118 = vmatprep.subr.bf16.mxu1 %v19708_v39  ;;  %17238 = vmatprep.subr.bf16.mxu0 %v19732_v51 }
  0xe3   : > { %17119 = vmatpush3.bf16.msra.mxu1 %v19708_v39  ;;  %17239 = vmatpush3.bf16.msra.mxu0 %v19732_v51  ;;  %v2864_v39 = vld [vmem:[#allocation3 + $0x80] sm:$0xff] }
  0xe4   : > { %17144 = vmatprep.subr.bf16.mxu1 %v20415_v41 }
  0xe5   : > { %17097 = vmatmul.mubr.bf16.gmra.mrb[16].mxu0 %v1773_v52 }
  0xe6   : > { %17100 = vmatprep.mubr.bf16.mxu0 %v1774_v23 }
  0xed   : > { %17101 = vmatmul.mubr.bf16.gmra.mrb[28].mxu0 %v1775_v25 }
  0xee   : > { %17240 = vmatprep.mubr.bf16.mxu0 %v2872_v55 }
  0xf5   : > { %17241 = vmatmul.mubr.bf16.vlgmr.msra.gmra.mrb[32].mxu0 %v2873_v58 }
  0xf6   : > { %17244 = vmatprep.mubr.bf16.mxu0 %v2874_v61 }
  0xfd   : > { %17245 = vmatmul.mubr.bf16.gmra.mrb[36].mxu0 %v2875_v6  ;;  %v2867_v6 = vld [vmem:[#allocation3 + $0x98] sm:$0xff] }
  0xfe   : > { %17248 = vmatprep.mubr.bf16.mxu0 %v2876_v10 }
 0x105   : > { %17249 = vmatmul.mubr.bf16.gmra.mrb[40].mxu0 %v2877_v27 }
 0x106   : > { %17252 = vmatprep.mubr.bf16.mxu0 %v2878_v38 }
 0x160   : > { %v17022_v49 = vpop.f32.mrb[20].mxu0 }
 0x161   : > { %v1551_v50 = vpop.f32.mrb[21].mxu0 }
 0x162   : > { %v17023_v52 = vpop.f32.mrb[22].mxu0 }
 0x163   : > { %v1554_v40 = vpop.f32.mrb[23].mxu0 }
 0x190   : > { %v17062_v60 = vpop.f32.mrb[24].mxu0 }
 0x191   : > { %v1727_v62 = vpop.f32.mrb[25].mxu0  ;;  %v20446_v63 = vadd.f32 %v17062_v60, %v17022_v49  ;;  %v2880_v60 = vpack.c.bf16 %v20442_v57, %v2865_v54 }
 0x192   : > { %v17063_v0 = vpop.f32.mrb[26].mxu0  ;;  %v20448_v1 = vadd.f32 %v1727_v62, %v1551_v50  ;;  %v2879_v50 = vpack.c.bf16 %v2864_v39, %v20442_v57 }
 0x193   : > { %v1730_v2 = vpop.f32.mrb[27].mxu0 }
 0x194   : > { %v20450_v5 = vadd.f32 %v1730_v2, %v1554_v40  ;;  %17253 = vmatmul.mubr.bf16.gmra.mrb[44].mxu0 %v2879_v50 }
 0x195   : > { %17256 = vmatprep.mubr.bf16.mxu0 %v2880_v60 }
 0x198   : > { %v17082_v9 = vpop.f32.mrb[0].mxu0 }
 0x199   : > { %v2000_v11 = vadd.f32 %v17082_v9, %v20455_v7  ;;  %v1875_v12 = vpop.f32.mrb[1].mxu0 }
 0x19a   : > { %v1998_v13 = vadd.f32 %v20455_v7, %v1875_v12  ;;  %v17083_v14 = vpop.f32.mrb[2].mxu0 }
 0x19b   : > { %v2023_v15 = vmax.f32 %v2000_v11, 0.0  ;;  %v2001_v16 = vadd.f32 %v17083_v14, %v20455_v7  ;;  %v1878_v17 = vpop.f32.mrb[3].mxu0  ;;  %v2881_v11 = vpack.c.bf16 %v2868_v8, %v2867_v6 }
 0x19c   : > { %v2021_v22 = vmax.f32 %v1998_v13, 0.0  ;;  %v1999_v26 = vadd.f32 %v20455_v7, %v1878_v17  ;;  %v19711_v13 = vld [vmem:[#allocation7 + $0x10] sm:$0xff]  }
 0x19d   : > { %v2046_v32 = vmul.f32 0.0, %v2023_v15  ;;  %v2024_v35 = vmax.f32 %v2001_v16, 0.0  ;;  %17257 = vmatmul.mubr.bf16.gmra.mrb[48].mxu0 %v2881_v11 }
 0x19e   : > { %2067 = vst [vmem:[#allocation4 + $0x8] sm:$0xff] %v2021_v22  ;;  %v2022_v36 = vmax.f32 %v1999_v26, 0.0 }
 0x19f   : > { %2069 = vst [vmem:[#allocation4 + $0x18] sm:$0xff] %v2046_v32  ;;  %2070 = vst [vmem:[#allocation4 + $0x20] sm:$0xff] %v2024_v35  ;;  %v20463_v37 = vpack.c.bf16 %v2024_v35, %v2046_v32  ;;  %v19712_v32 = vld [vmem:[#allocation7 + $0x18] sm:$0xff]  }
 0x1a0   : > { %2068 = vst [vmem:[#allocation4 + $0x10] sm:$0xff] %v2022_v36  ;;  %v17086_v23 = vpop.f32.mrb[4].mxu0  ;;  %v20465_v29 = vpack.c.bf16 %v2022_v36, %v2021_v22 }
 0x1a1   : > { %v2004_v24 = vadd.f32 %v17086_v23, %v20455_v7  ;;  %v1891_v25 = vpop.f32.mrb[5].mxu0 }
 0x1a2   : > { %v2002_v28 = vadd.f32 %v20455_v7, %v1891_v25  ;;  %v17087_v30 = vpop.f32.mrb[6].mxu0 }
 0x1a3   : > { %v2027_v31 = vmax.f32 %v2004_v24, 0.0  ;;  %v2005_v33 = vadd.f32 %v17087_v30, %v20455_v7  ;;  %v1894_v34 = vpop.f32.mrb[7].mxu0 }
 0x1a4   : > { %v2025_v47 = vmax.f32 %v2002_v28, 0.0  ;;  %v2003_v49 = vadd.f32 %v20455_v7, %v1894_v34  ;;  %v2870_v34 = vld [vmem:[#allocation3 + $0xb0] sm:$0xff] }
 0x1a5   : > { %2073 = vst [vmem:[#allocation4 + $0x38] sm:$0xff] %v2027_v31  ;;  %v2028_v52 = vmax.f32 %v2005_v33, 0.0  ;;  %v2142_v44 = vld [vmem:[#allocation4 + $0x7] sm:$0xff]  ;;  %v2882_v50 = vpack.c.bf16 %v2870_v34, %v20442_v57 }
 0x1a6   : > { %v2145_v40 = vld [vmem:[#allocation4 + $0x1f] sm:$0xff]  ;;  %2071 = vst [vmem:[#allocation4 + $0x28] sm:$0xff] %v2025_v47  ;;  %v2026_v42 = vmax.f32 %v2003_v49, 0.0 }
 0x1a7   : > { %v2143_v43 = vld [vmem:[#allocation4 + $0xf] sm:$0xff]  ;;  %2074 = vst [vmem:[#allocation4 + $0x40] sm:$0xff] %v2028_v52  ;;  %v20472_v45 = vpack.c.bf16 %v2028_v52, %v2027_v31  ;;  %v2144_v46 = vld [vmem:[#allocation4 + $0x17] sm:$0xff]  ;;  %v19713_v49 = vld [vmem:[#allocation7 + $0x20] sm:$0xff]   ;;  %17260 = vmatprep.mubr.bf16.mxu0 %v2882_v50 }
 0x1a8   : > { %v2049_v48 = vmul.f32 0.0, %v2026_v42  ;;  %v17090_v51 = vpop.f32.mrb[8].mxu0  ;;  %v2165_v53 = vpack.c.bf16 %v2143_v43, %v2142_v44  ;;  %v2166_v58 = vpack.c.bf16 %v2145_v40, %v2144_v46  ;;  %v2871_v52 = vld [vmem:[#allocation3 + $0xb8] sm:$0xff] }
 0x1a9   : > { %v2008_v55 = vadd.f32 %v17090_v51, %v20455_v7  ;;  %v1907_v56 = vpop.f32.mrb[9].mxu0  ;;  %v2883_v42 = vpack.c.bf16 %v2871_v52, %v2871_v52 }
 0x1aa   : > { %2072 = vst [vmem:[#allocation4 + $0x30] sm:$0xff] %v2049_v48  ;;  %v2006_v61 = vadd.f32 %v20455_v7, %v1907_v56  ;;  %v17091_v62 = vpop.f32.mrb[10].mxu0  ;;  %17120 = vmatprep.mubr.bf16.mxu1 %v2165_v53  ;;  %v20477_v0 = vpack.c.bf16 %v2049_v48, %v2025_v47  ;;  %v19714_v56 = vld [vmem:[#allocation7 + $0x28] sm:$0xff]  }
 0x1ab   : > { %v2031_v2 = vmax.f32 %v2008_v55, 0.0  ;;  %v2009_v3 = vadd.f32 %v17091_v62, %v20455_v7  ;;  %v1910_v4 = vpop.f32.mrb[11].mxu0  ;;  %17121 = vmatmul.mubr.bf16.vlgmr.msra.gmra.mrb[0].mxu1 %v2166_v58  ;;  %17261 = vmatmul.mubr.bf16.gmra.mrb[52].mxu0 %v2883_v42 }
 0x1ac   : > { %v2029_v9 = vmax.f32 %v2006_v61, 0.0  ;;  %v2007_v10 = vadd.f32 %v20455_v7, %v1910_v4  ;;  %17145 = vmatpush3.bf16.msra.mxu1 %v20415_v41 }
 0x1ad   : > { %2077 = vst [vmem:[#allocation4 + $0x58] sm:$0xff] %v2031_v2  ;;  %v2032_v12 = vmax.f32 %v2009_v3, 0.0  ;;  %17146 = vmatprep.subr.bf16.mxu1 %v19710_v59  ;;  %v2146_v22 = vld [vmem:[#allocation4 + $0x27] sm:$0xff] }
 0x1ae   : > { %v2052_v14 = vmul.f32 0.0, %v2029_v9  ;;  %v2030_v15 = vmax.f32 %v2007_v10, 0.0  ;;  %v2149_v36 = vld [vmem:[#allocation4 + $0x3f] sm:$0xff]  ;;  %v19715_v9 = vld [vmem:[#allocation7 + $0x30] sm:$0xff]  }
 0x1af   : > { %v2055_v16 = vmul.f32 0.0, %v2032_v12 }
 0x1b0   : > { %2075 = vst [vmem:[#allocation4 + $0x48] sm:$0xff] %v2052_v14  ;;  %2076 = vst [vmem:[#allocation4 + $0x50] sm:$0xff] %v2030_v15  ;;  %v17094_v17 = vpop.f32.mrb[12].mxu0  ;;  %17147 = vmatpush3.bf16.msra.mxu1 %v19710_v59  ;;  %v20482_v21 = vpack.c.bf16 %v2030_v15, %v2052_v14 }
 0x1b1   : > { %v2147_v26 = vld [vmem:[#allocation4 + $0x2f] sm:$0xff]  ;;  %2078 = vst [vmem:[#allocation4 + $0x60] sm:$0xff] %v2055_v16  ;;  %v2012_v41 = vadd.f32 %v17094_v17, %v20455_v7  ;;  %v1923_v27 = vpop.f32.mrb[13].mxu0  ;;  %17148 = vmatprep.subr.bf16.mxu1 %v19711_v13  ;;  %v20485_v35 = vpack.c.bf16 %v2055_v16, %v2031_v2  ;;  %v2148_v19 = vld [vmem:[#allocation4 + $0x37] sm:$0xff] }
 0x1b2   : > { %v2010_v20 = vadd.f32 %v20455_v7, %v1923_v27  ;;  %v17095_v23 = vpop.f32.mrb[14].mxu0  ;;  %v2167_v38 = vpack.c.bf16 %v2147_v26, %v2146_v22  ;;  %v2168_v30 = vpack.c.bf16 %v2149_v36, %v2148_v19  ;;  %v19716_v27 = vld [vmem:[#allocation7 + $0x38] sm:$0xff]  }
 0x1b3   : > { %v2035_v24 = vmax.f32 %v2012_v41, 0.0  ;;  %v2013_v25 = vadd.f32 %v17095_v23, %v20455_v7  ;;  %v1926_v28 = vpop.f32.mrb[15].mxu0 }
 0x1b4   : > { %v2033_v31 = vmax.f32 %v2010_v20, 0.0  ;;  %v2011_v33 = vadd.f32 %v20455_v7, %v1926_v28  ;;  %17124 = vmatprep.mubr.bf16.mxu1 %v2167_v38  ;;  %17149 = vmatpush3.bf16.msra.mxu1 %v19711_v13  ;;  %v19717_v28 = vld [vmem:[#allocation7 + $0x80] sm:$0xff]  }
 0x1b5   : > { %v2058_v39 = vmul.f32 0.0, %v2035_v24  ;;  %v2036_v47 = vmax.f32 %v2013_v25, 0.0  ;;  %17125 = vmatmul.mubr.bf16.gmra.mrb[4].mxu1 %v2168_v30  ;;  %17150 = vmatprep.subr.bf16.mxu1 %v19712_v32 }
 0x1b6   : > { %2079 = vst [vmem:[#allocation4 + $0x68] sm:$0xff] %v2033_v31  ;;  %v2034_v40 = vmax.f32 %v2011_v33, 0.0 }
 0x1b7   : > { %v2150_v43 = vld [vmem:[#allocation4 + $0x47] sm:$0xff]  ;;  %2081 = vst [vmem:[#allocation4 + $0x78] sm:$0xff] %v2058_v39  ;;  %2082 = vst [vmem:[#allocation4 + $0x80] sm:$0xff] %v2036_v47  ;;  %v20491_v44 = vpack.c.bf16 %v2036_v47, %v2058_v39  ;;  %v2151_v53 = vld [vmem:[#allocation4 + $0x4f] sm:$0xff] }
 0x1b8   : > { %v2153_v46 = vld [vmem:[#allocation4 + $0x5f] sm:$0xff]  ;;  %2080 = vst [vmem:[#allocation4 + $0x70] sm:$0xff] %v2034_v40  ;;  %v17098_v48 = vpop.f32.mrb[16].mxu0  ;;  %17151 = vmatpush3.bf16.msra.mxu1 %v19712_v32  ;;  %v20493_v51 = vpack.c.bf16 %v2034_v40, %v2033_v31  ;;  %v2152_v54 = vld [vmem:[#allocation4 + $0x57] sm:$0xff]  ;;  %v2169_v60 = vpack.c.bf16 %v2151_v53, %v2150_v43 }
 0x1b9   : > { %v2016_v57 = vadd.f32 %v17098_v48, %v20455_v7  ;;  %v1939_v55 = vpop.f32.mrb[17].mxu0  ;;  %17152 = vmatprep.subr.bf16.mxu1 %v19713_v49  ;;  %v2170_v3 = vpack.c.bf16 %v2153_v46, %v2152_v54  ;;  %v2091_v53 = vld [vmem:[#allocation4 + $0x6] sm:$0xff] }
 0x1ba   : > { %v2014_v58 = vadd.f32 %v20455_v7, %v1939_v55  ;;  %v17099_v59 = vpop.f32.mrb[18].mxu0  ;;  %17128 = vmatprep.mubr.bf16.mxu1 %v2169_v60  ;;  %v2093_v55 = vld [vmem:[#allocation4 + $0x16] sm:$0xff]  ;;  %v19719_v60 = vld [vmem:[#allocation7 + $0x88] sm:$0xff]  }
 0x1bb   : > { %v2039_v61 = vmax.f32 %v2016_v57, 0.0  ;;  %v2017_v62 = vadd.f32 %v17099_v59, %v20455_v7  ;;  %v1942_v2 = vpop.f32.mrb[19].mxu0  ;;  %v2094_v57 = vld [vmem:[#allocation4 + $0x1e] sm:$0xff] }
 0x1bc   : > { %v2037_v4 = vmax.f32 %v2014_v58, 0.0  ;;  %v2015_v6 = vadd.f32 %v20455_v7, %v1942_v2  ;;  %17153 = vmatpush3.bf16.msra.mxu1 %v19713_v49  ;;  %v2095_v58 = vld [vmem:[#allocation4 + $0x26] sm:$0xff]  ;;  %v2115_v59 = vpack.c.bf16 %v2094_v57, %v2093_v55  ;;  %v2097_v2 = vld [vmem:[#allocation4 + $0x36] sm:$0xff] }
 0x1bd   : > { %2085 = vst [vmem:[#allocation4 + $0x98] sm:$0xff] %v2039_v61  ;;  %v2040_v8 = vmax.f32 %v2017_v62, 0.0  ;;  %17129 = vmatmul.mubr.bf16.gmra.mrb[8].mxu1 %v2170_v3  ;;  %17154 = vmatprep.subr.bf16.mxu1 %v19714_v56  ;;  %v2154_v11 = vld [vmem:[#allocation4 + $0x67] sm:$0xff]  ;;  %v19721_v62 = vld [vmem:[#allocation7 + $0x90] sm:$0xff]  }
 0x1be   : > { %2083 = vst [vmem:[#allocation4 + $0x88] sm:$0xff] %v2037_v4  ;;  %v2038_v10 = vmax.f32 %v2015_v6, 0.0  ;;  %v2157_v14 = vld [vmem:[#allocation4 + $0x7f] sm:$0xff] }
 0x1bf   : > { %v2155_v12 = vld [vmem:[#allocation4 + $0x6f] sm:$0xff]  ;;  %2086 = vst [vmem:[#allocation4 + $0xa0] sm:$0xff] %v2040_v8  ;;  %v20499_v13 = vpack.c.bf16 %v2040_v8, %v2039_v61  ;;  %v2156_v15 = vld [vmem:[#allocation4 + $0x77] sm:$0xff]  ;;  %v2099_v3 = vld [vmem:[#allocation4 + $0x46] sm:$0xff] }
 0x1c0   : > { %v2061_v16 = vmul.f32 0.0, %v2038_v10  ;;  %v17102_v17 = vpop.f32.mrb[28].mxu0  ;;  %v2171_v22 = vpack.c.bf16 %v2155_v12, %v2154_v11  ;;  %17155 = vmatpush3.bf16.msra.mxu1 %v19714_v56  ;;  %v2172_v38 = vpack.c.bf16 %v2157_v14, %v2156_v15  ;;  %v2096_v56 = vld [vmem:[#allocation4 + $0x2e] sm:$0xff]  ;;  %v2098_v6 = vld [vmem:[#allocation4 + $0x3e] sm:$0xff]  ;;  %v2101_v14 = vld [vmem:[#allocation4 + $0x56] sm:$0xff] }
 0x1c1   : > { %v1991_v26 = vadd.f32 %v17102_v17, %v20446_v63  ;;  %v1955_v41 = vpop.f32.mrb[29].mxu0  ;;  %17156 = vmatprep.subr.bf16.mxu1 %v19715_v9  ;;  %v2116_v61 = vpack.c.bf16 %v2096_v56, %v2095_v58  ;;  %v2117_v8 = vpack.c.bf16 %v2098_v6, %v2097_v2  ;;  %v19725_v11 = vld [vmem:[#allocation7 + $0xa0] sm:$0xff]   ;;  %v2104_v15 = vld [vmem:[#allocation4 + $0x6e] sm:$0xff] }
 0x1c2   : > { %2084 = vst [vmem:[#allocation4 + $0x90] sm:$0xff] %v2061_v16  ;;  %v1989_v32 = vadd.f32 %v1955_v41, %v20448_v1  ;;  %v17103_v36 = vpop.f32.mrb[30].mxu0  ;;  %17132 = vmatprep.mubr.bf16.mxu1 %v2171_v22  ;;  %v20503_v19 = vpack.c.bf16 %v2061_v16, %v2037_v4  ;;  %v2100_v4 = vld [vmem:[#allocation4 + $0x4e] sm:$0xff]  ;;  %v2102_v12 = vld [vmem:[#allocation4 + $0x5e] sm:$0xff]  ;;  %v2103_v16 = vld [vmem:[#allocation4 + $0x66] sm:$0xff] }
 0x1c3   : > { %v2020_v20 = vadd.f32 %v20455_v7, %v1991_v26  ;;  %v1958_v23 = vpop.f32.mrb[31].mxu0  ;;  %v2118_v10 = vpack.c.bf16 %v2100_v4, %v2099_v3  ;;  %v2119_v17 = vpack.c.bf16 %v2102_v12, %v2101_v14  ;;  %v19727_v22 = vld [vmem:[#allocation7 + $0xa8] sm:$0xff]   ;;  %v2120_v26 = vpack.c.bf16 %v2104_v15, %v2103_v16  ;;  %v19729_v41 = vld [vmem:[#allocation7 + $0xb0] sm:$0xff]  }
 0x1c4   : > { %v2018_v24 = vadd.f32 %v20455_v7, %v1989_v32  ;;  %v1990_v25 = vadd.f32 %v1958_v23, %v20450_v5  ;;  %17157 = vmatpush3.bf16.msra.mxu1 %v19715_v9  ;;  %v19723_v9 = vld [vmem:[#allocation7 + $0x98] sm:$0xff]  }
 0x1c5   : > { %v20508_v63 = vmax.f32 %v2020_v20, 0.0  ;;  %17133 = vmatmul.mubr.bf16.gmra.mrb[12].mxu1 %v2172_v38  ;;  %17158 = vmatprep.subr.bf16.mxu1 %v19716_v27  ;;  %v2158_v34 = vld [vmem:[#allocation4 + $0x87] sm:$0xff]  ;;  %v2105_v32 = vld [vmem:[#allocation4 + $0x76] sm:$0xff] }
 0x1c6   : > { %v2041_v30 = vmax.f32 %v2018_v24, 0.0  ;;  %v2019_v1 = vadd.f32 %v20455_v7, %v1990_v25  ;;  %v2161_v47 = vld [vmem:[#allocation4 + $0x9f] sm:$0xff]  ;;  %v2092_v7 = vld [vmem:[#allocation4 + $0xe] sm:$0xff] }
 0x1c7   : > { %2089 = vst [vmem:[#allocation4 + $0xb8] sm:$0xff] %v20508_v63  ;;  %v2114_v54 = vpack.c.bf16 %v2092_v7, %v2091_v53  ;;  %v2107_v20 = vld [vmem:[#allocation4 + $0x86] sm:$0xff]  ;;  %v19731_v38 = vld [vmem:[#allocation7 + $0xb8] sm:$0xff]  }
 0x1c8   : > { %v2064_v31 = vmul.f32 0.0, %v2041_v30  ;;  %v2042_v33 = vmax.f32 %v2019_v1, 0.0  ;;  %17159 = vmatpush3.bf16.msra.mxu1 %v19716_v27  ;;  %v2106_v27 = vld [vmem:[#allocation4 + $0x7e] sm:$0xff] }
 0x1c9   : > { %v2159_v39 = vld [vmem:[#allocation4 + $0x8f] sm:$0xff]  ;;  %17184 = vmatprep.subr.bf16.mxu1 %v19717_v28  ;;  %v2160_v49 = vld [vmem:[#allocation4 + $0x97] sm:$0xff]  ;;  %v2121_v23 = vpack.c.bf16 %v2106_v27, %v2105_v32 }
 0x1ca   : > { %2087 = vst [vmem:[#allocation4 + $0xa8] sm:$0xff] %v2064_v31  ;;  %2088 = vst [vmem:[#allocation4 + $0xb0] sm:$0xff] %v2042_v33  ;;  %v2173_v5 = vpack.c.bf16 %v2159_v39, %v2158_v34  ;;  %v20512_v50 = vpack.c.bf16 %v2042_v33, %v2064_v31  ;;  %v2174_v52 = vpack.c.bf16 %v2161_v47, %v2160_v49  ;;  %v2108_v36 = vld [vmem:[#allocation4 + $0x8e] sm:$0xff]  ;;  %v2109_v25 = vld [vmem:[#allocation4 + $0x96] sm:$0xff] }
 0x1cb   : > { %v2122_v24 = vpack.c.bf16 %v2108_v36, %v2107_v20  ;;  %v2110_v1 = vld [vmem:[#allocation4 + $0x9e] sm:$0xff]  ;;  %v19734_v49 = vld [vmem:[#allocation5 + $0x108] sm:$0xff]  }
 0x1cc   : > { %17136 = vmatprep.mubr.bf16.mxu1 %v2173_v5  ;;  %v2123_v31 = vpack.c.bf16 %v2110_v1, %v2109_v25  ;;  %v19733_v47 = vld [vmem:[#allocation5 + $0x100] sm:$0xff]  }
 0x1cd   : > { %17137 = vmatmul.mubr.bf16.gmra.mrb[16].mxu1 %v2174_v52  ;;  %v19739_v52 = vld [vmem:[#allocation5 + $0x130] sm:$0xff]  }
 0x1d1   : > { %v2162_v40 = vld [vmem:[#allocation4 + $0xa7] sm:$0xff]  ;;  %v2163_v42 = vld [vmem:[#allocation4 + $0xaf] sm:$0xff]  ;;  %v2164_v43 = vld [vmem:[#allocation4 + $0xb7] sm:$0xff] }
 0x1d2   : > { %v2175_v46 = vpack.c.bf16 %v2163_v42, %v2162_v40  ;;  %v2176_v48 = vpack.c.bf16 %v2164_v43, %v2164_v43  ;;  %v2112_v30 = vld [vmem:[#allocation4 + $0xae] sm:$0xff]  ;;  %v2113_v34 = vld [vmem:[#allocation4 + $0xb6] sm:$0xff] }
 0x1d3   : > { %v2125_v39 = vpack.c.bf16 %v2113_v34, %v2113_v34 }
 0x1d4   : > { %17140 = vmatprep.mubr.bf16.mxu1 %v2175_v46  ;;  %v19740_v46 = vld [vmem:[#allocation5 + $0x138] sm:$0xff]  }
 0x1d5   : > { %17141 = vmatmul.mubr.bf16.gmra.mrb[20].mxu1 %v2176_v48 }
 0x1d6   : > { %17160 = vmatprep.mubr.bf16.mxu1 %v2114_v54 }
 0x1dd   : > { %17161 = vmatmul.mubr.bf16.vlgmr.msra.gmra.mrb[0].mxu1 %v2115_v59 }
 0x1de   : > { %17164 = vmatprep.mubr.bf16.mxu1 %v2116_v61  ;;  %17185 = vmatpush3.bf16.msra.mxu1 %v19717_v28  ;;  %v2111_v28 = vld [vmem:[#allocation4 + $0xa6] sm:$0xff] }
 0x1df   : > { %17186 = vmatprep.subr.bf16.mxu1 %v19719_v60  ;;  %v2124_v33 = vpack.c.bf16 %v2112_v30, %v2111_v28 }
 0x1e2   : > { %17187 = vmatpush3.bf16.msra.mxu1 %v19719_v60  ;;  %v20563_v60 = vld [vmem:[#allocation5 + $0xc0] sm:$0xff]  }
 0x1e3   : > { %17188 = vmatprep.subr.bf16.mxu1 %v19721_v62 }
 0x1e5   : > { %17165 = vmatmul.mubr.bf16.gmra.mrb[4].mxu1 %v2117_v8 }
 0x1e6   : > { %17168 = vmatprep.mubr.bf16.mxu1 %v2118_v10  ;;  %17189 = vmatpush3.bf16.msra.mxu1 %v19721_v62 }
 0x1e7   : > { %17190 = vmatprep.subr.bf16.mxu1 %v19723_v9 }
 0x1ea   : > { %17191 = vmatpush3.bf16.msra.mxu1 %v19723_v9 }
 0x1eb   : > { %17192 = vmatprep.subr.bf16.mxu1 %v19725_v11 }
 0x1ed   : > { %17169 = vmatmul.mubr.bf16.gmra.mrb[8].mxu1 %v2119_v17 }
 0x1ee   : > { %17172 = vmatprep.mubr.bf16.mxu1 %v2120_v26  ;;  %17193 = vmatpush3.bf16.msra.mxu1 %v19725_v11  ;;  %v20586_v26 = vld [vmem:[%s22026_s6] ss:$0 sm:$0xff] }
 0x1ef   : > { %17194 = vmatprep.subr.bf16.mxu1 %v19727_v22 }
 0x1f2   : > { %17195 = vmatpush3.bf16.msra.mxu1 %v19727_v22  ;;  %v20581_v22 = vld [vmem:[%s22024_s4] ss:$0 sm:$0xff] }
 0x1f3   : > { %17196 = vmatprep.subr.bf16.mxu1 %v19729_v41 }
 0x1f5   : > { %17173 = vmatmul.mubr.bf16.gmra.mrb[12].mxu1 %v2121_v23 }
 0x1f6   : > { %17176 = vmatprep.mubr.bf16.mxu1 %v2122_v24  ;;  %17197 = vmatpush3.bf16.msra.mxu1 %v19729_v41 }
 0x1f7   : > { %17198 = vmatprep.subr.bf16.mxu1 %v19731_v38 }
 0x1fa   : > { %17199 = vmatpush3.bf16.msra.mxu1 %v19731_v38 }
 0x1fb   : > { %17264 = vmatprep.subr.bf16.mxu1 %v19733_v47 }
 0x1fd   : > { %17177 = vmatmul.mubr.bf16.gmra.mrb[16].mxu1 %v2123_v31 }
 0x1fe   : > { %17180 = vmatprep.mubr.bf16.mxu1 %v2124_v33 }
 0x205   : > { %17181 = vmatmul.mubr.bf16.gmra.mrb[24].mxu1 %v2125_v39 }
 0x206   : > { %17200 = vmatprep.mubr.bf16.mxu1 %v20465_v29  ;;  %v2580_v29 = vpack.c.bf16 %v20508_v63, %v20508_v63  ;;  %v19738_v63 = vld [vmem:[#allocation5 + $0x128] sm:$0xff]  }
 0x20d   : > { %17201 = vmatmul.mubr.bf16.vlgmr.msra.gmra.mrb[0].mxu1 %v20463_v37  ;;  %v19735_v37 = vld [vmem:[#allocation5 + $0x110] sm:$0xff]  }
 0x20e   : > { %17204 = vmatprep.mubr.bf16.mxu1 %v20477_v0  ;;  %17265 = vmatpush3.bf16.msra.mxu1 %v19733_v47  ;;  %v17242_v0 = vpop.f32.mrb[32].mxu0 }
 0x20f   : > { %17266 = vmatprep.subr.bf16.mxu1 %v19734_v49  ;;  %v2998_v32 = vadd.f32 %v17242_v0, %v20586_v26 }
 0x212   : > { %17267 = vmatpush3.bf16.msra.mxu1 %v19734_v49 }
 0x213   : > { %17268 = vmatprep.subr.bf16.mxu1 %v19735_v37 }
 0x215   : > { %17205 = vmatmul.mubr.bf16.gmra.mrb[4].mxu1 %v20472_v45  ;;  %v19736_v45 = vld [vmem:[#allocation5 + $0x118] sm:$0xff]  }
 0x216   : > { %17208 = vmatprep.mubr.bf16.mxu1 %v20482_v21  ;;  %17269 = vmatpush3.bf16.msra.mxu1 %v19735_v37  ;;  %v2989_v21 = vpop.f32.mrb[33].mxu0 }
 0x217   : > { %17270 = vmatprep.subr.bf16.mxu1 %v19736_v45  ;;  %v2990_v23 = vadd.f32 %v20586_v26, %v2989_v21 }
 0x21a   : > { %17271 = vmatpush3.bf16.msra.mxu1 %v19736_v45 }
 0x21d   : > { %17209 = vmatmul.mubr.bf16.gmra.mrb[8].mxu1 %v20485_v35  ;;  %v20527_v35 = vpop.f32.mrb[34].mxu0 }
 0x21e   : > { %17212 = vmatprep.mubr.bf16.mxu1 %v20493_v51  ;;  %v19737_v51 = vld [vmem:[#allocation5 + $0x120] sm:$0xff]   ;;  %v3001_v34 = vadd.f32 %v20527_v35, %v20586_v26 }
 0x21f   : > { %17272 = vmatprep.subr.bf16.mxu1 %v19737_v51 }
 0x220   : > { %17273 = vmatpush3.bf16.msra.mxu1 %v19737_v51 }
 0x221   : > { %17274 = vmatprep.subr.bf16.mxu1 %v19738_v63 }
 0x224   : > { %17275 = vmatpush3.bf16.msra.mxu1 %v19738_v63 }
 0x225   : > { %17213 = vmatmul.mubr.bf16.gmra.mrb[12].mxu1 %v20491_v44  ;;  %v20529_v44 = vpop.f32.mrb[35].mxu0  ;;  %17276 = vmatprep.subr.bf16.mxu1 %v19739_v52 }
 0x226   : > { %17216 = vmatprep.mubr.bf16.mxu1 %v20503_v19  ;;  %v2993_v49 = vadd.f32 %v20586_v26, %v20529_v44 }
 0x228   : > { %17277 = vmatpush3.bf16.msra.mxu1 %v19739_v52 }
 0x229   : > { %17278 = vmatprep.subr.bf16.mxu1 %v19740_v46 }
 0x22c   : > { %17279 = vmatpush3.bf16.msra.mxu1 %v19740_v46 }
 0x22d   : > { %17217 = vmatmul.mubr.bf16.gmra.mrb[16].mxu1 %v20499_v13  ;;  %v20531_v13 = vpop.f32.mrb[36].mxu0  ;;  %17304 = vmatprep.subr.bf16.mxu1 %v20563_v60 }
 0x22e   : > { %17220 = vmatprep.mubr.bf16.mxu1 %v20512_v50  ;;  %v20533_v19 = vpop.f32.mrb[37].mxu0  ;;  %v3014_v46 = vadd.f32 %v20531_v13, %v20586_v26 }
 0x22f   : > { %v20535_v5 = vpop.f32.mrb[38].mxu0  ;;  %v3006_v44 = vadd.f32 %v20586_v26, %v20533_v19 }
 0x230   : > { %v20537_v50 = vpop.f32.mrb[39].mxu0  ;;  %v3017_v19 = vadd.f32 %v20535_v5, %v20586_v26 }
 0x231   : > { %v20539_v40 = vpop.f32.mrb[40].mxu0 }
 0x232   : > { %v20541_v7 = vpop.f32.mrb[41].mxu0 }
 0x233   : > { %v20543_v42 = vpop.f32.mrb[42].mxu0 }
 0x234   : > { %v20545_v43 = vpop.f32.mrb[43].mxu0 }
 0x235   : > { %17221 = vmatmul.mubr.bf16.gmra.mrb[28].mxu1 %v2580_v29 }
 0x267   : > { %v20547_v48 = vpop.f32.mrb[44].mxu0 }
 0x268   : > { %v20549_v53 = vpop.f32.mrb[45].mxu0 }
 0x269   : > { %v20551_v54 = vpop.f32.mrb[46].mxu0 }
 0x26a   : > { %v20553_v57 = vpop.f32.mrb[47].mxu0 }
 0x270   : > { %v20555_v55 = vpop.f32.mrb[48].mxu0 }
 0x271   : > { %v20557_v56 = vpop.f32.mrb[49].mxu0 }
 0x272   : > { %v20559_v58 = vpop.f32.mrb[50].mxu0 }
 0x273   : > { %v20561_v59 = vpop.f32.mrb[51].mxu0 }
 0x27e   : > { %v20566_v61 = vpop.f32.mrb[52].mxu0 }
 0x27f   : > { %v20568_v62 = vpop.f32.mrb[53].mxu0 }
 0x280   : > { %v17263_v2 = vpop.f32.mrb[54].mxu0 }
 0x281   : > { %v20570_v3 = vpop.f32.mrb[55].mxu0 }
 0x2a8   : > { %v17142_v4 = vpop.f32.mrb[20].mxu1 }
 0x2a9   : > { %v2356_v6 = vpop.f32.mrb[21].mxu1 }
 0x2aa   : > { %v17143_v8 = vpop.f32.mrb[22].mxu1 }
 0x2ab   : > { %v2359_v9 = vpop.f32.mrb[23].mxu1 }
 0x2d8   : > { %v17182_v10 = vpop.f32.mrb[24].mxu1 }
 0x2d9   : > { %v2532_v11 = vpop.f32.mrb[25].mxu1  ;;  %v20572_v12 = vadd.f32 %v17182_v10, %v17142_v4 }
 0x2da   : > { %v17183_v14 = vpop.f32.mrb[26].mxu1  ;;  %v20574_v15 = vadd.f32 %v2532_v11, %v2356_v6 }
 0x2db   : > { %v2535_v16 = vpop.f32.mrb[27].mxu1 }
 0x2dc   : > { %v20576_v17 = vadd.f32 %v2535_v16, %v2359_v9 }
 0x2e0   : > { %v17202_v41 = vpop.f32.mrb[0].mxu1 }
 0x2e1   : > { %v2805_v27 = vadd.f32 %v17202_v41, %v20581_v22  ;;  %v2680_v36 = vpop.f32.mrb[1].mxu1 }
 0x2e2   : > { %v2803_v20 = vadd.f32 %v20581_v22, %v2680_v36  ;;  %v17203_v38 = vpop.f32.mrb[2].mxu1 }
 0x2e3   : > { %v2828_v24 = vmax.f32 %v2805_v27, 0.0  ;;  %v2806_v25 = vadd.f32 %v17203_v38, %v20581_v22  ;;  %v2683_v28 = vpop.f32.mrb[3].mxu1 }
 0x2e4   : > { %v2826_v30 = vmax.f32 %v2803_v20, 0.0  ;;  %v2804_v1 = vadd.f32 %v20581_v22, %v2683_v28  ;;  %v3009_v20 = vadd.f32 %v20586_v26, %v20537_v50  ;;  %v3022_v50 = vadd.f32 %v20586_v26, %v20541_v7 }
 0x2e5   : > { %v3085_v31 = vadd.f32 %v2998_v32, %v2828_v24  ;;  %v2829_v33 = vmax.f32 %v2806_v25, 0.0  ;;  %v3033_v7 = vadd.f32 %v20543_v42, %v20586_v26 }
 0x2e6   : > { %v3083_v39 = vadd.f32 %v2990_v23, %v2826_v30  ;;  %v2827_v47 = vmax.f32 %v2804_v1, 0.0 }
 0x2e7   : > { %v3108_v37 = vmax.f32 %v3085_v31, 0.0  ;;  %v3086_v29 = vadd.f32 %v3001_v34, %v2829_v33  ;;  %v3030_v31 = vadd.f32 %v20539_v40, %v20586_v26 }
 0x2e8   : > { %v3106_v45 = vmax.f32 %v3083_v39, 0.0  ;;  %v3084_v0 = vadd.f32 %v2993_v49, %v2827_v47  ;;  %v17206_v21 = vpop.f32.mrb[4].mxu1 }
 0x2e9   : > { %v3131_v51 = vmul.f32 0.0, %v3108_v37  ;;  %v3109_v63 = vmax.f32 %v3086_v29, 0.0  ;;  %v2809_v52 = vadd.f32 %v17206_v21, %v20581_v22  ;;  %v2696_v2 = vpop.f32.mrb[5].mxu1 }
 0x2ea   : > { %3152 = vst [vmem:[#allocation3 + $0x8] sm:$0xff] %v3106_v45  ;;  %v3107_v35 = vmax.f32 %v3084_v0, 0.0  ;;  %v2807_v4 = vadd.f32 %v20581_v22, %v2696_v2  ;;  %v17207_v6 = vpop.f32.mrb[6].mxu1 }
 0x2eb   : > { %3154 = vst [vmem:[#allocation3 + $0x18] sm:$0xff] %v3131_v51  ;;  %3155 = vst [vmem:[#allocation3 + $0x20] sm:$0xff] %v3109_v63  ;;  %v2832_v8 = vmax.f32 %v2809_v52, 0.0  ;;  %v2810_v9 = vadd.f32 %v17207_v6, %v20581_v22  ;;  %v2699_v10 = vpop.f32.mrb[7].mxu1  ;;  %v20605_v11 = vpack.c.bf16 %v3109_v63, %v3131_v51 }
 0x2ec   : > { %3153 = vst [vmem:[#allocation3 + $0x10] sm:$0xff] %v3107_v35  ;;  %v2830_v14 = vmax.f32 %v2807_v4, 0.0  ;;  %v2808_v13 = vadd.f32 %v20581_v22, %v2699_v10  ;;  %v20608_v16 = vpack.c.bf16 %v3107_v35, %v3106_v45 }
 0x2ed   : > { %v3089_v41 = vadd.f32 %v3014_v46, %v2832_v8  ;;  %v2833_v27 = vmax.f32 %v2810_v9, 0.0  ;;  %v3025_v9 = vadd.f32 %v20586_v26, %v20545_v43  ;;  %v19743_v43 = vld [vmem:[#allocation5 + $0xd0] sm:$0xff]  }
 0x2ee   : > { %v3087_v32 = vadd.f32 %v3006_v44, %v2830_v14  ;;  %v2831_v36 = vmax.f32 %v2808_v13, 0.0  ;;  %v19742_v44 = vld [vmem:[#allocation5 + $0xc8] sm:$0xff]  }
 0x2ef   : > { %v3112_v23 = vmax.f32 %v3089_v41, 0.0  ;;  %v3090_v38 = vadd.f32 %v3017_v19, %v2833_v27 }
 0x2f0   : > { %v3110_v24 = vmax.f32 %v3087_v32, 0.0  ;;  %v3088_v25 = vadd.f32 %v3009_v20, %v2831_v36  ;;  %v17210_v28 = vpop.f32.mrb[8].mxu1  ;;  %v3046_v36 = vadd.f32 %v20547_v48, %v20586_v26 }
 0x2f1   : > { %3158 = vst [vmem:[#allocation3 + $0x38] sm:$0xff] %v3112_v23  ;;  %v3113_v30 = vmax.f32 %v3090_v38, 0.0  ;;  %v2813_v1 = vadd.f32 %v17210_v28, %v20581_v22  ;;  %v2712_v33 = vpop.f32.mrb[9].mxu1  ;;  %v3229_v0 = vld [vmem:[#allocation3 + $0x6] sm:$0xff] }
 0x2f2   : > { %v3232_v34 = vld [vmem:[#allocation3 + $0x1e] sm:$0xff]  ;;  %3156 = vst [vmem:[#allocation3 + $0x28] sm:$0xff] %v3110_v24  ;;  %v3111_v5 = vmax.f32 %v3088_v25, 0.0  ;;  %v2811_v39 = vadd.f32 %v20581_v22, %v2712_v33  ;;  %v17211_v47 = vpop.f32.mrb[10].mxu1  ;;  %v3038_v25 = vadd.f32 %v20586_v26, %v20549_v53  ;;  %v3049_v53 = vadd.f32 %v20551_v54, %v20586_v26 }
 0x2f3   : > { %v3230_v49 = vld [vmem:[#allocation3 + $0xe] sm:$0xff]  ;;  %3159 = vst [vmem:[#allocation3 + $0x40] sm:$0xff] %v3113_v30  ;;  %v2836_v37 = vmax.f32 %v2813_v1, 0.0  ;;  %v2814_v29 = vadd.f32 %v17211_v47, %v20581_v22  ;;  %v2715_v45 = vpop.f32.mrb[11].mxu1  ;;  %v20621_v21 = vpack.c.bf16 %v3113_v30, %v3112_v23  ;;  %v3231_v40 = vld [vmem:[#allocation3 + $0x16] sm:$0xff] }
 0x2f4   : > { %v3134_v51 = vmul.f32 0.0, %v3111_v5  ;;  %v2834_v63 = vmax.f32 %v2811_v39, 0.0  ;;  %v2812_v52 = vadd.f32 %v20581_v22, %v2715_v45  ;;  %v3252_v46 = vpack.c.bf16 %v3230_v49, %v3229_v0  ;;  %v19744_v49 = vld [vmem:[#allocation5 + $0xd8] sm:$0xff]  }
 0x2f5   : > { %v3093_v2 = vadd.f32 %v3030_v31, %v2836_v37  ;;  %v2837_v35 = vmax.f32 %v2814_v29, 0.0  ;;  %v3253_v4 = vpack.c.bf16 %v3232_v34, %v3231_v40 }
 0x2f6   : > { %3157 = vst [vmem:[#allocation3 + $0x30] sm:$0xff] %v3134_v51  ;;  %v3091_v6 = vadd.f32 %v3022_v50, %v2834_v63  ;;  %v2835_v8 = vmax.f32 %v2812_v52, 0.0  ;;  %17280 = vmatprep.mubr.bf16.mxu1 %v3252_v46  ;;  %v20628_v10 = vpack.c.bf16 %v3134_v51, %v3110_v24  ;;  %v3041_v51 = vadd.f32 %v20586_v26, %v20553_v57  ;;  %v19745_v57 = vld [vmem:[#allocation5 + $0xe0] sm:$0xff]  }
 0x2f7   : > { %v3116_v14 = vmax.f32 %v3093_v2, 0.0  ;;  %v3094_v13 = vadd.f32 %v3033_v7, %v2837_v35  ;;  %17281 = vmatmul.mubr.bf16.vlgmr.msra.gmra.mrb[32].mxu1 %v3253_v4 }
 0x2f8   : > { %v3114_v41 = vmax.f32 %v3091_v6, 0.0  ;;  %v3092_v27 = vadd.f32 %v3025_v9, %v2835_v8  ;;  %v17214_v19 = vpop.f32.mrb[12].mxu1  ;;  %17305 = vmatpush3.bf16.msra.mxu1 %v20563_v60  ;;  %v3062_v8 = vadd.f32 %v20555_v55, %v20586_v26 }
 0x2f9   : > { %3162 = vst [vmem:[#allocation3 + $0x58] sm:$0xff] %v3116_v14  ;;  %v3117_v42 = vmax.f32 %v3094_v13, 0.0  ;;  %v2817_v32 = vadd.f32 %v17214_v19, %v20581_v22  ;;  %v2728_v20 = vpop.f32.mrb[13].mxu1  ;;  %17306 = vmatprep.subr.bf16.mxu1 %v19742_v44  ;;  %v3233_v5 = vld [vmem:[#allocation3 + $0x26] sm:$0xff] }
 0x2fa   : > { %v3137_v23 = vmul.f32 0.0, %v3114_v41  ;;  %v3115_v38 = vmax.f32 %v3092_v27, 0.0  ;;  %v2815_v24 = vadd.f32 %v20581_v22, %v2728_v20  ;;  %v17215_v28 = vpop.f32.mrb[14].mxu1  ;;  %v3236_v29 = vld [vmem:[#allocation3 + $0x3e] sm:$0xff]  ;;  %v3054_v41 = vadd.f32 %v20586_v26, %v20557_v56 }
 0x2fb   : > { %v3140_v30 = vmul.f32 0.0, %v3117_v42  ;;  %v2840_v60 = vmax.f32 %v2817_v32, 0.0  ;;  %v2818_v1 = vadd.f32 %v17215_v28, %v20581_v22  ;;  %v2731_v31 = vpop.f32.mrb[15].mxu1 }
 0x2fc   : > { %3160 = vst [vmem:[#allocation3 + $0x48] sm:$0xff] %v3137_v23  ;;  %3161 = vst [vmem:[#allocation3 + $0x50] sm:$0xff] %v3115_v38  ;;  %v2838_v33 = vmax.f32 %v2815_v24, 0.0  ;;  %v2816_v48 = vadd.f32 %v20581_v22, %v2731_v31  ;;  %17307 = vmatpush3.bf16.msra.mxu1 %v19742_v44  ;;  %v20639_v34 = vpack.c.bf16 %v3115_v38, %v3137_v23 }
 0x2fd   : > { %v3234_v39 = vld [vmem:[#allocation3 + $0x2e] sm:$0xff]  ;;  %3163 = vst [vmem:[#allocation3 + $0x60] sm:$0xff] %v3140_v30  ;;  %v3097_v50 = vadd.f32 %v3046_v36, %v2840_v60  ;;  %v2841_v47 = vmax.f32 %v2818_v1, 0.0  ;;  %17308 = vmatprep.subr.bf16.mxu1 %v19743_v43  ;;  %v20643_v37 = vpack.c.bf16 %v3140_v30, %v3116_v14  ;;  %v3235_v45 = vld [vmem:[#allocation3 + $0x36] sm:$0xff]  ;;  %v3065_v30 = vadd.f32 %v20559_v58, %v20586_v26 }
 0x2fe   : > { %v3095_v0 = vadd.f32 %v3038_v25, %v2838_v33  ;;  %v2839_v40 = vmax.f32 %v2816_v48, 0.0  ;;  %v3254_v63 = vpack.c.bf16 %v3234_v39, %v3233_v5  ;;  %v3255_v2 = vpack.c.bf16 %v3236_v29, %v3235_v45  ;;  %v19746_v60 = vld [vmem:[#allocation5 + $0xe8] sm:$0xff]  }
 0x2ff   : > { %v3120_v52 = vmax.f32 %v3097_v50, 0.0  ;;  %v3098_v46 = vadd.f32 %v3049_v53, %v2841_v47  ;;  %v3057_v33 = vadd.f32 %v20586_v26, %v20561_v59 }
 0x300   : > { %v3118_v35 = vmax.f32 %v3095_v0, 0.0  ;;  %v3096_v7 = vadd.f32 %v3041_v51, %v2839_v40  ;;  %v17218_v4 = vpop.f32.mrb[16].mxu1  ;;  %17284 = vmatprep.mubr.bf16.mxu1 %v3254_v63  ;;  %17309 = vmatpush3.bf16.msra.mxu1 %v19743_v43  ;;  %v19747_v0 = vld [vmem:[#allocation5 + $0xf0] sm:$0xff]  }
 0x301   : > { %v3143_v54 = vmul.f32 0.0, %v3120_v52  ;;  %v3121_v44 = vmax.f32 %v3098_v46, 0.0  ;;  %v2821_v6 = vadd.f32 %v17218_v4, %v20581_v22  ;;  %v2744_v9 = vpop.f32.mrb[17].mxu1  ;;  %17285 = vmatmul.mubr.bf16.gmra.mrb[36].mxu1 %v3255_v2  ;;  %17310 = vmatprep.subr.bf16.mxu1 %v19744_v49  ;;  %v3078_v2 = vadd.f32 %v20566_v61, %v20586_v26 }
 0x302   : > { %3164 = vst [vmem:[#allocation3 + $0x68] sm:$0xff] %v3118_v35  ;;  %v3119_v14 = vmax.f32 %v3096_v7, 0.0  ;;  %v2819_v13 = vadd.f32 %v20581_v22, %v2744_v9  ;;  %v17219_v27 = vpop.f32.mrb[18].mxu1 }
 0x303   : > { %v3237_v19 = vld [vmem:[#allocation3 + $0x46] sm:$0xff]  ;;  %3166 = vst [vmem:[#allocation3 + $0x78] sm:$0xff] %v3143_v54  ;;  %3167 = vst [vmem:[#allocation3 + $0x80] sm:$0xff] %v3121_v44  ;;  %v2844_v42 = vmax.f32 %v2821_v6, 0.0  ;;  %v2822_v32 = vadd.f32 %v17219_v27, %v20581_v22  ;;  %v2747_v36 = vpop.f32.mrb[19].mxu1  ;;  %v20654_v55 = vpack.c.bf16 %v3121_v44, %v3143_v54  ;;  %v3238_v24 = vld [vmem:[#allocation3 + $0x4e] sm:$0xff] }
 0x304   : > { %v3240_v20 = vld [vmem:[#allocation3 + $0x5e] sm:$0xff]  ;;  %3165 = vst [vmem:[#allocation3 + $0x70] sm:$0xff] %v3119_v14  ;;  %v2842_v43 = vmax.f32 %v2819_v13, 0.0  ;;  %v2820_v23 = vadd.f32 %v20581_v22, %v2747_v36  ;;  %17311 = vmatpush3.bf16.msra.mxu1 %v19744_v49  ;;  %v20657_v38 = vpack.c.bf16 %v3119_v14, %v3118_v35  ;;  %v3239_v56 = vld [vmem:[#allocation3 + $0x56] sm:$0xff]  ;;  %v3256_v48 = vpack.c.bf16 %v3238_v24, %v3237_v19 }
 0x305   : > { %v3101_v25 = vadd.f32 %v3062_v8, %v2844_v42  ;;  %v2845_v28 = vmax.f32 %v2822_v32, 0.0  ;;  %17312 = vmatprep.subr.bf16.mxu1 %v19745_v57  ;;  %v3257_v50 = vpack.c.bf16 %v3240_v20, %v3239_v56  ;;  %v3073_v42 = vadd.f32 %v20586_v26, %v20570_v3  ;;  %v19749_v32 = vld [vmem:[#allocation5 + $0x140] sm:$0xff]  }
 0x306   : > { %v3099_v1 = vadd.f32 %v3054_v41, %v2842_v43  ;;  %v2843_v31 = vmax.f32 %v2820_v23, 0.0  ;;  %17288 = vmatprep.mubr.bf16.mxu1 %v3256_v48 }
 0x307   : > { %v3124_v5 = vmax.f32 %v3101_v25, 0.0  ;;  %v3102_v39 = vadd.f32 %v3065_v30, %v2845_v28 }
 0x308   : > { %v3122_v47 = vmax.f32 %v3099_v1, 0.0  ;;  %v3100_v53 = vadd.f32 %v3057_v33, %v2843_v31  ;;  %v17222_v49 = vpop.f32.mrb[28].mxu1  ;;  %17313 = vmatpush3.bf16.msra.mxu1 %v19745_v57  ;;  %v19748_v57 = vld [vmem:[#allocation5 + $0xf8] sm:$0xff]  }
 0x309   : > { %3170 = vst [vmem:[#allocation3 + $0x98] sm:$0xff] %v3124_v5  ;;  %v3125_v29 = vmax.f32 %v3102_v39, 0.0  ;;  %v2796_v58 = vadd.f32 %v17222_v49, %v20572_v12  ;;  %v2760_v45 = vpop.f32.mrb[29].mxu1  ;;  %17289 = vmatmul.mubr.bf16.gmra.mrb[40].mxu1 %v3257_v50  ;;  %17314 = vmatprep.subr.bf16.mxu1 %v19746_v60  ;;  %v3241_v63 = vld [vmem:[#allocation3 + $0x66] sm:$0xff]  ;;  %v3070_v12 = vadd.f32 %v20586_v26, %v20568_v62  ;;  %v3180_v50 = vld [vmem:[#allocation3 + $0x1c] sm:$0xff] }
 0x30a   : > { %3168 = vst [vmem:[#allocation3 + $0x88] sm:$0xff] %v3122_v47  ;;  %v3123_v40 = vmax.f32 %v3100_v53, 0.0  ;;  %v2794_v59 = vadd.f32 %v2760_v45, %v20574_v15  ;;  %v17223_v51 = vpop.f32.mrb[30].mxu1  ;;  %v3244_v4 = vld [vmem:[#allocation3 + $0x7e] sm:$0xff]  ;;  %v3182_v53 = vld [vmem:[#allocation3 + $0x2c] sm:$0xff] }
 0x30b   : > { %v3242_v52 = vld [vmem:[#allocation3 + $0x6e] sm:$0xff]  ;;  %3171 = vst [vmem:[#allocation3 + $0xa0] sm:$0xff] %v3125_v29  ;;  %v2825_v46 = vadd.f32 %v20581_v22, %v2796_v58  ;;  %v2763_v35 = vpop.f32.mrb[31].mxu1  ;;  %v20670_v7 = vpack.c.bf16 %v3125_v29, %v3124_v5  ;;  %v3243_v54 = vld [vmem:[#allocation3 + $0x76] sm:$0xff]  ;;  %v3177_v5 = vld [vmem:[#allocation3 + $0x4] sm:$0xff] }
 0x30c   : > { %v3146_v44 = vmul.f32 0.0, %v3123_v40  ;;  %v2823_v15 = vadd.f32 %v20581_v22, %v2794_v59  ;;  %v2795_v6 = vadd.f32 %v2763_v35, %v20576_v17  ;;  %v3258_v8 = vpack.c.bf16 %v3242_v52, %v3241_v63  ;;  %17315 = vmatpush3.bf16.msra.mxu1 %v19746_v60  ;;  %v3178_v60 = vld [vmem:[#allocation3 + $0xc] sm:$0xff]  ;;  %v3181_v49 = vld [vmem:[#allocation3 + $0x24] sm:$0xff]  ;;  %v3183_v40 = vld [vmem:[#allocation3 + $0x34] sm:$0xff] }
 0x30d   : > { %v2848_v9 = vmax.f32 %v2825_v46, 0.0  ;;  %17316 = vmatprep.subr.bf16.mxu1 %v19747_v0  ;;  %v3259_v41 = vpack.c.bf16 %v3244_v4, %v3243_v54  ;;  %v3200_v39 = vpack.c.bf16 %v3178_v60, %v3177_v5  ;;  %v19750_v58 = vld [vmem:[#allocation5 + $0x148] sm:$0xff]   ;;  %v3202_v45 = vpack.c.bf16 %v3182_v53, %v3181_v49  ;;  %v3184_v63 = vld [vmem:[#allocation3 + $0x3c] sm:$0xff]  ;;  %v3187_v4 = vld [vmem:[#allocation3 + $0x54] sm:$0xff] }
 0x30e   : > { %3169 = vst [vmem:[#allocation3 + $0x90] sm:$0xff] %v3146_v44  ;;  %v2846_v61 = vmax.f32 %v2823_v15, 0.0  ;;  %v2824_v14 = vadd.f32 %v20581_v22, %v2795_v6  ;;  %17292 = vmatprep.mubr.bf16.mxu1 %v3258_v8  ;;  %v20675_v62 = vpack.c.bf16 %v3146_v44, %v3122_v47  ;;  %v3179_v47 = vld [vmem:[#allocation3 + $0x14] sm:$0xff]  ;;  %v3185_v59 = vld [vmem:[#allocation3 + $0x44] sm:$0xff]  ;;  %v3186_v51 = vld [vmem:[#allocation3 + $0x4c] sm:$0xff]  ;;  %v3203_v52 = vpack.c.bf16 %v3184_v63, %v3183_v40 }
 0x30f   : > { %v3105_v13 = vadd.f32 %v3078_v2, %v2848_v9  ;;  %v3201_v29 = vpack.c.bf16 %v3180_v50, %v3179_v47  ;;  %v19752_v46 = vld [vmem:[#allocation5 + $0x158] sm:$0xff]   ;;  %v3204_v2 = vpack.c.bf16 %v3186_v51, %v3185_v59  ;;  %v19753_v35 = vld [vmem:[#allocation5 + $0x160] sm:$0xff]   ;;  %v3190_v54 = vld [vmem:[#allocation3 + $0x6c] sm:$0xff] }
 0x310   : > { %v2847_v27 = vmax.f32 %v2824_v14, 0.0  ;;  %v3103_v19 = vadd.f32 %v3070_v12, %v2846_v61  ;;  %17317 = vmatpush3.bf16.msra.mxu1 %v19747_v0  ;;  %v19751_v0 = vld [vmem:[#allocation5 + $0x150] sm:$0xff]   ;;  %v3188_v12 = vld [vmem:[#allocation3 + $0x5c] sm:$0xff]  ;;  %v3189_v44 = vld [vmem:[#allocation3 + $0x64] sm:$0xff] }
 0x311   : > { %v20679_v17 = vmax.f32 %v3105_v13, 0.0  ;;  %17293 = vmatmul.mubr.bf16.gmra.mrb[44].mxu1 %v3259_v41  ;;  %17318 = vmatprep.subr.bf16.mxu1 %v19748_v57  ;;  %v3245_v23 = vld [vmem:[#allocation3 + $0x86] sm:$0xff]  ;;  %v3205_v15 = vpack.c.bf16 %v3188_v12, %v3187_v4  ;;  %v3206_v8 = vpack.c.bf16 %v3190_v54, %v3189_v44  ;;  %v19755_v9 = vld [vmem:[#allocation5 + $0x170] sm:$0xff]  }
 0x312   : > { %v3126_v36 = vmax.f32 %v3103_v19, 0.0  ;;  %v3104_v20 = vadd.f32 %v3073_v42, %v2847_v27  ;;  %v3248_v56 = vld [vmem:[#allocation3 + $0x9e] sm:$0xff]  ;;  %v19754_v6 = vld [vmem:[#allocation5 + $0x168] sm:$0xff]   ;;  %v3191_v61 = vld [vmem:[#allocation3 + $0x74] sm:$0xff] }
 0x313   : > { %3174 = vst [vmem:[#allocation3 + $0xb8] sm:$0xff] %v20679_v17  ;;  %v3193_v13 = vld [vmem:[#allocation3 + $0x84] sm:$0xff]  ;;  %v19756_v27 = vld [vmem:[#allocation5 + $0x178] sm:$0xff]  }
 0x314   : > { %v3149_v22 = vmul.f32 0.0, %v3126_v36  ;;  %v3127_v43 = vmax.f32 %v3104_v20, 0.0  ;;  %17319 = vmatpush3.bf16.msra.mxu1 %v19748_v57  ;;  %v3192_v57 = vld [vmem:[#allocation3 + $0x7c] sm:$0xff] }
 0x315   : > { %v3246_v24 = vld [vmem:[#allocation3 + $0x8e] sm:$0xff]  ;;  %17344 = vmatprep.subr.bf16.mxu1 %v19749_v32  ;;  %v3247_v25 = vld [vmem:[#allocation3 + $0x96] sm:$0xff]  ;;  %v3207_v41 = vpack.c.bf16 %v3192_v57, %v3191_v61 }
 0x316   : > { %3172 = vst [vmem:[#allocation3 + $0xa8] sm:$0xff] %v3149_v22  ;;  %3173 = vst [vmem:[#allocation3 + $0xb0] sm:$0xff] %v3127_v43  ;;  %v3260_v3 = vpack.c.bf16 %v3246_v24, %v3245_v23  ;;  %v20682_v26 = vpack.c.bf16 %v3127_v43, %v3149_v22  ;;  %v3261_v28 = vpack.c.bf16 %v3248_v56, %v3247_v25  ;;  %v3194_v14 = vld [vmem:[#allocation3 + $0x8c] sm:$0xff]  ;;  %v3195_v42 = vld [vmem:[#allocation3 + $0x94] sm:$0xff] }
 0x317   : > { %v3208_v19 = vpack.c.bf16 %v3194_v14, %v3193_v13  ;;  %v3196_v20 = vld [vmem:[#allocation3 + $0x9c] sm:$0xff]  ;;  %v19758_v25 = vld [vmem:[#allocation7 + $0x108] sm:$0xff]  }
 0x318   : > { %17296 = vmatprep.mubr.bf16.mxu1 %v3260_v3  ;;  %v3209_v22 = vpack.c.bf16 %v3196_v20, %v3195_v42  ;;  %v19757_v56 = vld [vmem:[#allocation7 + $0x100] sm:$0xff]  }
 0x319   : > { %17297 = vmatmul.mubr.bf16.gmra.mrb[48].mxu1 %v3261_v28  ;;  %17384 = vmatprep.subr.bf16.mxu0 %v19757_v56 }
 0x31a   : > { %17385 = vmatpush3.bf16.msra.mxu0 %v19757_v56 }
 0x31b   : > { %17386 = vmatprep.subr.bf16.mxu0 %v19758_v25 }
 0x31d   : > { %v3249_v30 = vld [vmem:[#allocation3 + $0xa6] sm:$0xff]  ;;  %v3250_v1 = vld [vmem:[#allocation3 + $0xae] sm:$0xff]  ;;  %v3251_v31 = vld [vmem:[#allocation3 + $0xb6] sm:$0xff] }
 0x31e   : > { %v3262_v33 = vpack.c.bf16 %v3250_v1, %v3249_v30  ;;  %v3263_v48 = vpack.c.bf16 %v3251_v31, %v3251_v31  ;;  %v3198_v36 = vld [vmem:[#allocation3 + $0xac] sm:$0xff]  ;;  %v3199_v23 = vld [vmem:[#allocation3 + $0xb4] sm:$0xff]  ;;  %17387 = vmatpush3.bf16.msra.mxu0 %v19758_v25 }
 0x31f   : > { %v3211_v24 = vpack.c.bf16 %v3199_v23, %v3199_v23 }
 0x320   : > { %17300 = vmatprep.mubr.bf16.mxu1 %v3262_v33 }
 0x321   : > { %17301 = vmatmul.mubr.bf16.gmra.mrb[52].mxu1 %v3263_v48  ;;  %v20709_v48 = vld [vmem:[%s22022_s2 + $0x1] ss:$0 sm:$0xff] }
 0x322   : > { %17320 = vmatprep.mubr.bf16.mxu1 %v3200_v39 }
 0x329   : > { %17321 = vmatmul.mubr.bf16.vlgmr.msra.gmra.mrb[32].mxu1 %v3201_v29 }
 0x32a   : > { %17324 = vmatprep.mubr.bf16.mxu1 %v3202_v45  ;;  %17345 = vmatpush3.bf16.msra.mxu1 %v19749_v32  ;;  %v3197_v32 = vld [vmem:[#allocation3 + $0xa4] sm:$0xff] }
 0x32b   : > { %17346 = vmatprep.subr.bf16.mxu1 %v19750_v58  ;;  %v3210_v43 = vpack.c.bf16 %v3198_v36, %v3197_v32 }
 0x32e   : > { %17347 = vmatpush3.bf16.msra.mxu1 %v19750_v58 }
 0x32f   : > { %17348 = vmatprep.subr.bf16.mxu1 %v19751_v0 }
 0x331   : > { %17325 = vmatmul.mubr.bf16.gmra.mrb[36].mxu1 %v3203_v52 }
 0x332   : > { %17328 = vmatprep.mubr.bf16.mxu1 %v3204_v2  ;;  %17349 = vmatpush3.bf16.msra.mxu1 %v19751_v0 }
 0x333   : > { %17350 = vmatprep.subr.bf16.mxu1 %v19752_v46 }
 0x336   : > { %17351 = vmatpush3.bf16.msra.mxu1 %v19752_v46 }
 0x337   : > { %17352 = vmatprep.subr.bf16.mxu1 %v19753_v35 }
 0x339   : > { %17329 = vmatmul.mubr.bf16.gmra.mrb[40].mxu1 %v3205_v15 }
 0x33a   : > { %17332 = vmatprep.mubr.bf16.mxu1 %v3206_v8  ;;  %17353 = vmatpush3.bf16.msra.mxu1 %v19753_v35 }
 0x33b   : > { %17354 = vmatprep.subr.bf16.mxu1 %v19754_v6 }
 0x33e   : > { %17355 = vmatpush3.bf16.msra.mxu1 %v19754_v6 }
 0x33f   : > { %17356 = vmatprep.subr.bf16.mxu1 %v19755_v9 }
 0x341   : > { %17333 = vmatmul.mubr.bf16.gmra.mrb[44].mxu1 %v3207_v41 }
 0x342   : > { %17336 = vmatprep.mubr.bf16.mxu1 %v3208_v19  ;;  %17357 = vmatpush3.bf16.msra.mxu1 %v19755_v9 }
 0x343   : > { %17358 = vmatprep.subr.bf16.mxu1 %v19756_v27 }
 0x346   : > { %17359 = vmatpush3.bf16.msra.mxu1 %v19756_v27 }
 0x349   : > { %17337 = vmatmul.mubr.bf16.gmra.mrb[48].mxu1 %v3209_v22 }
 0x34a   : > { %17340 = vmatprep.mubr.bf16.mxu1 %v3210_v43  ;;  %v19766_v43 = vld [vmem:[#allocation7 + $0xc8] sm:$0xff]  }
 0x351   : > { %17341 = vmatmul.mubr.bf16.gmra.mrb[56].mxu1 %v3211_v24 }
 0x352   : > { %17360 = vmatprep.mubr.bf16.mxu1 %v20608_v16  ;;  %v3667_v16 = vpack.c.bf16 %v20679_v17, %v20679_v17 }
 0x359   : > { %17361 = vmatmul.mubr.bf16.vlgmr.msra.gmra.mrb[32].mxu1 %v20605_v11  ;;  %v19759_v11 = vld [vmem:[#allocation7 + $0x110] sm:$0xff]  }
 0x35a   : > { %17364 = vmatprep.mubr.bf16.mxu1 %v20628_v10  ;;  %17388 = vmatprep.subr.bf16.mxu0 %v19759_v11  ;;  %v19761_v10 = vld [vmem:[#allocation7 + $0x120] sm:$0xff]  }
 0x35b   : > { %17389 = vmatpush3.bf16.msra.mxu0 %v19759_v11 }
 0x361   : > { %17365 = vmatmul.mubr.bf16.gmra.mrb[36].mxu1 %v20621_v21  ;;  %v19760_v21 = vld [vmem:[#allocation7 + $0x118] sm:$0xff]  }
 0x362   : > { %17368 = vmatprep.mubr.bf16.mxu1 %v20639_v34  ;;  %17390 = vmatprep.subr.bf16.mxu0 %v19760_v21  ;;  %v19762_v34 = vld [vmem:[#allocation7 + $0x128] sm:$0xff]  }
 0x363   : > { %17391 = vmatpush3.bf16.msra.mxu0 %v19760_v21 }
 0x364   : > { %17392 = vmatprep.subr.bf16.mxu0 %v19761_v10 }
 0x367   : > { %17393 = vmatpush3.bf16.msra.mxu0 %v19761_v10 }
 0x368   : > { %17394 = vmatprep.subr.bf16.mxu0 %v19762_v34 }
 0x369   : > { %17369 = vmatmul.mubr.bf16.gmra.mrb[40].mxu1 %v20643_v37  ;;  %v19763_v37 = vld [vmem:[#allocation7 + $0x130] sm:$0xff]  }
 0x36a   : > { %17372 = vmatprep.mubr.bf16.mxu1 %v20657_v38  ;;  %v20697_v38 = vld [vmem:[#allocation7 + $0xc0] sm:$0xff]  }
 0x36b   : > { %17395 = vmatpush3.bf16.msra.mxu0 %v19762_v34 }
 0x36c   : > { %17396 = vmatprep.subr.bf16.mxu0 %v19763_v37 }
 0x36f   : > { %17397 = vmatpush3.bf16.msra.mxu0 %v19763_v37  ;;  %v19767_v37 = vld [vmem:[#allocation7 + $0xd0] sm:$0xff]  }
 0x371   : > { %17373 = vmatmul.mubr.bf16.gmra.mrb[44].mxu1 %v20654_v55  ;;  %v19764_v55 = vld [vmem:[#allocation7 + $0x138] sm:$0xff]  }
 0x372   : > { %17376 = vmatprep.mubr.bf16.mxu1 %v20675_v62  ;;  %17398 = vmatprep.subr.bf16.mxu0 %v19764_v55 }
 0x373   : > { %17399 = vmatpush3.bf16.msra.mxu0 %v19764_v55 }
 0x374   : > { %17424 = vmatprep.subr.bf16.mxu0 %v20697_v38 }
 0x379   : > { %17377 = vmatmul.mubr.bf16.gmra.mrb[48].mxu1 %v20670_v7 }
 0x37a   : > { %17380 = vmatprep.mubr.bf16.mxu1 %v20682_v26 }
 0x381   : > { %17381 = vmatmul.mubr.bf16.gmra.mrb[60].mxu1 %v3667_v16 }
 0x3f4   : > { %v17302_v7 = vpop.f32.mrb[52].mxu1 }
 0x3f5   : > { %v3443_v62 = vpop.f32.mrb[53].mxu1 }
 0x3f6   : > { %v17303_v17 = vpop.f32.mrb[54].mxu1 }
 0x3f7   : > { %v3446_v3 = vpop.f32.mrb[55].mxu1 }
 0x424   : > { %v17342_v26 = vpop.f32.mrb[56].mxu1 }
 0x425   : > { %v20700_v28 = vadd.f32 %v17342_v26, %v17302_v7  ;;  %v3619_v30 = vpop.f32.mrb[57].mxu1  ;;  %v19768_v26 = vld [vmem:[#allocation7 + $0xd8] sm:$0xff]  }
 0x426   : > { %v20702_v60 = vadd.f32 %v3619_v30, %v3443_v62  ;;  %v17343_v1 = vpop.f32.mrb[58].mxu1 }
 0x427   : > { %v3622_v31 = vpop.f32.mrb[59].mxu1 }
 0x428   : > { %v20704_v33 = vadd.f32 %v3622_v31, %v3446_v3 }
 0x42c   : > { %v17362_v5 = vpop.f32.mrb[32].mxu1 }
 0x42d   : > { %v3892_v39 = vadd.f32 %v17362_v5, %v20709_v48  ;;  %v3767_v50 = vpop.f32.mrb[33].mxu1 }
 0x42e   : > { %v3890_v47 = vadd.f32 %v20709_v48, %v3767_v50  ;;  %v17363_v53 = vpop.f32.mrb[34].mxu1 }
 0x42f   : > { %v3915_v49 = vmax.f32 %v3892_v39, 0.0  ;;  %v3893_v29 = vadd.f32 %v17363_v53, %v20709_v48  ;;  %v3770_v58 = vpop.f32.mrb[35].mxu1 }
 0x430   : > { %v3913_v45 = vmax.f32 %v3890_v47, 0.0  ;;  %v3891_v0 = vadd.f32 %v20709_v48, %v3770_v58 }
 0x431   : > { %v3938_v40 = vmul.f32 0.0, %v3915_v49  ;;  %v3916_v59 = vmax.f32 %v3893_v29, 0.0 }
 0x432   : > { %3959 = vst [vmem:[#allocation4 + $0x8] sm:$0xff] %v3913_v45  ;;  %v3914_v51 = vmax.f32 %v3891_v0, 0.0 }
 0x433   : > { %3961 = vst [vmem:[#allocation4 + $0x18] sm:$0xff] %v3938_v40  ;;  %3962 = vst [vmem:[#allocation4 + $0x20] sm:$0xff] %v3916_v59  ;;  %v20715_v63 = vpack.c.bf16 %v3916_v59, %v3938_v40 }
 0x434   : > { %3960 = vst [vmem:[#allocation4 + $0x10] sm:$0xff] %v3914_v51  ;;  %v17366_v52 = vpop.f32.mrb[36].mxu1  ;;  %v20717_v46 = vpack.c.bf16 %v3914_v51, %v3913_v45 }
 0x435   : > { %v3896_v2 = vadd.f32 %v17366_v52, %v20709_v48  ;;  %v3783_v35 = vpop.f32.mrb[37].mxu1 }
 0x436   : > { %v3894_v12 = vadd.f32 %v20709_v48, %v3783_v35  ;;  %v17367_v4 = vpop.f32.mrb[38].mxu1 }
 0x437   : > { %v3919_v54 = vmax.f32 %v3896_v2, 0.0  ;;  %v3897_v44 = vadd.f32 %v17367_v4, %v20709_v48  ;;  %v3786_v15 = vpop.f32.mrb[39].mxu1  ;;  %v19769_v2 = vld [vmem:[#allocation7 + $0xe0] sm:$0xff]  }
 0x438   : > { %v3917_v6 = vmax.f32 %v3894_v12, 0.0  ;;  %v3895_v8 = vadd.f32 %v20709_v48, %v3786_v15 }
 0x439   : > { %3965 = vst [vmem:[#allocation4 + $0x38] sm:$0xff] %v3919_v54  ;;  %v3920_v9 = vmax.f32 %v3897_v44, 0.0  ;;  %v4036_v14 = vld [vmem:[#allocation4 + $0x6] sm:$0xff] }
 0x43a   : > { %3963 = vst [vmem:[#allocation4 + $0x28] sm:$0xff] %v3917_v6  ;;  %v3918_v57 = vmax.f32 %v3895_v8, 0.0  ;;  %v4039_v61 = vld [vmem:[#allocation4 + $0x1e] sm:$0xff] }
 0x43b   : > { %3966 = vst [vmem:[#allocation4 + $0x40] sm:$0xff] %v3920_v9  ;;  %v4037_v13 = vld [vmem:[#allocation4 + $0xe] sm:$0xff]  ;;  %v4038_v41 = vld [vmem:[#allocation4 + $0x16] sm:$0xff]  ;;  %v20723_v27 = vpack.c.bf16 %v3920_v9, %v3919_v54 }
 0x43c   : > { %v3941_v19 = vmul.f32 0.0, %v3918_v57  ;;  %v17370_v42 = vpop.f32.mrb[40].mxu1  ;;  %v4059_v32 = vpack.c.bf16 %v4037_v13, %v4036_v14  ;;  %v4060_v36 = vpack.c.bf16 %v4039_v61, %v4038_v41  ;;  %v19770_v14 = vld [vmem:[#allocation7 + $0xe8] sm:$0xff]  }
 0x43d   : > { %v3900_v20 = vadd.f32 %v17370_v42, %v20709_v48  ;;  %v3799_v22 = vpop.f32.mrb[41].mxu1 }
 0x43e   : > { %3964 = vst [vmem:[#allocation4 + $0x30] sm:$0xff] %v3941_v19  ;;  %v3898_v23 = vadd.f32 %v20709_v48, %v3799_v22  ;;  %v17371_v24 = vpop.f32.mrb[42].mxu1  ;;  %17400 = vmatprep.mubr.bf16.mxu0 %v4059_v32  ;;  %v20727_v56 = vpack.c.bf16 %v3941_v19, %v3917_v6 }
 0x43f   : > { %v3923_v25 = vmax.f32 %v3900_v20, 0.0  ;;  %v3901_v11 = vadd.f32 %v17371_v24, %v20709_v48  ;;  %v3802_v16 = vpop.f32.mrb[43].mxu1  ;;  %17401 = vmatmul.mubr.bf16.vlgmr.msra.gmra.mrb[56].mxu0 %v4060_v36 }
 0x440   : > { %v3921_v21 = vmax.f32 %v3898_v23, 0.0  ;;  %v3899_v10 = vadd.f32 %v20709_v48, %v3802_v16  ;;  %17425 = vmatpush3.bf16.msra.mxu0 %v20697_v38  ;;  %v19771_v23 = vld [vmem:[#allocation7 + $0xf0] sm:$0xff]  }
 0x441   : > { %3969 = vst [vmem:[#allocation4 + $0x58] sm:$0xff] %v3923_v25  ;;  %v3924_v34 = vmax.f32 %v3901_v11, 0.0  ;;  %17426 = vmatprep.subr.bf16.mxu0 %v19766_v43  ;;  %v4040_v3 = vld [vmem:[#allocation4 + $0x26] sm:$0xff] }
 0x442   : > { %v3944_v55 = vmul.f32 0.0, %v3921_v21  ;;  %v3922_v7 = vmax.f32 %v3899_v10, 0.0  ;;  %v4043_v39 = vld [vmem:[#allocation4 + $0x3e] sm:$0xff] }
 0x443   : > { %v3947_v62 = vmul.f32 0.0, %v3924_v34 }
 0x444   : > { %3967 = vst [vmem:[#allocation4 + $0x48] sm:$0xff] %v3944_v55  ;;  %3968 = vst [vmem:[#allocation4 + $0x50] sm:$0xff] %v3922_v7  ;;  %v17374_v17 = vpop.f32.mrb[44].mxu1  ;;  %17427 = vmatpush3.bf16.msra.mxu0 %v19766_v43  ;;  %v20732_v30 = vpack.c.bf16 %v3922_v7, %v3944_v55 }
 0x445   : > { %3970 = vst [vmem:[#allocation4 + $0x60] sm:$0xff] %v3947_v62  ;;  %v3904_v1 = vadd.f32 %v17374_v17, %v20709_v48  ;;  %v3815_v31 = vpop.f32.mrb[45].mxu1  ;;  %v4041_v38 = vld [vmem:[#allocation4 + $0x2e] sm:$0xff]  ;;  %v4042_v5 = vld [vmem:[#allocation4 + $0x36] sm:$0xff]  ;;  %17428 = vmatprep.subr.bf16.mxu0 %v19767_v37  ;;  %v20735_v50 = vpack.c.bf16 %v3947_v62, %v3923_v25 }
 0x446   : > { %v3902_v47 = vadd.f32 %v20709_v48, %v3815_v31  ;;  %v17375_v53 = vpop.f32.mrb[46].mxu1  ;;  %v4061_v49 = vpack.c.bf16 %v4041_v38, %v4040_v3  ;;  %v4062_v29 = vpack.c.bf16 %v4043_v39, %v4042_v5  ;;  %v19772_v17 = vld [vmem:[#allocation7 + $0xf8] sm:$0xff]  }
 0x447   : > { %v3927_v58 = vmax.f32 %v3904_v1, 0.0  ;;  %v3905_v45 = vadd.f32 %v17375_v53, %v20709_v48  ;;  %v3818_v0 = vpop.f32.mrb[47].mxu1  ;;  %v19773_v53 = vld [vmem:[#allocation7 + $0x140] sm:$0xff]  }
 0x448   : > { %v3925_v40 = vmax.f32 %v3902_v47, 0.0  ;;  %v3903_v59 = vadd.f32 %v20709_v48, %v3818_v0  ;;  %17404 = vmatprep.mubr.bf16.mxu0 %v4061_v49  ;;  %17429 = vmatpush3.bf16.msra.mxu0 %v19767_v37 }
 0x449   : > { %v3950_v51 = vmul.f32 0.0, %v3927_v58  ;;  %v3928_v52 = vmax.f32 %v3905_v45, 0.0  ;;  %17405 = vmatmul.mubr.bf16.gmra.mrb[60].mxu0 %v4062_v29  ;;  %17430 = vmatprep.subr.bf16.mxu0 %v19768_v26 }
 0x44a   : > { %3971 = vst [vmem:[#allocation4 + $0x68] sm:$0xff] %v3925_v40  ;;  %v3926_v35 = vmax.f32 %v3903_v59, 0.0 }
 0x44b   : > { %3973 = vst [vmem:[#allocation4 + $0x78] sm:$0xff] %v3950_v51  ;;  %3974 = vst [vmem:[#allocation4 + $0x80] sm:$0xff] %v3928_v52  ;;  %v4044_v12 = vld [vmem:[#allocation4 + $0x46] sm:$0xff]  ;;  %v4045_v4 = vld [vmem:[#allocation4 + $0x4e] sm:$0xff]  ;;  %v20740_v54 = vpack.c.bf16 %v3928_v52, %v3950_v51 }
 0x44c   : > { %3972 = vst [vmem:[#allocation4 + $0x70] sm:$0xff] %v3926_v35  ;;  %v17378_v44 = vpop.f32.mrb[48].mxu1  ;;  %v4063_v15 = vpack.c.bf16 %v4045_v4, %v4044_v12  ;;  %v4046_v6 = vld [vmem:[#allocation4 + $0x56] sm:$0xff]  ;;  %v4047_v8 = vld [vmem:[#allocation4 + $0x5e] sm:$0xff]  ;;  %17431 = vmatpush3.bf16.msra.mxu0 %v19768_v26  ;;  %v20742_v9 = vpack.c.bf16 %v3926_v35, %v3925_v40 }
 0x44d   : > { %v3908_v57 = vadd.f32 %v17378_v44, %v20709_v48  ;;  %v3831_v61 = vpop.f32.mrb[49].mxu1  ;;  %17432 = vmatprep.subr.bf16.mxu0 %v19769_v2  ;;  %v4064_v36 = vpack.c.bf16 %v4047_v8, %v4046_v6  ;;  %v3986_v8 = vld [vmem:[#allocation4 + $0x14] sm:$0xff] }
 0x44e   : > { %v3906_v13 = vadd.f32 %v20709_v48, %v3831_v61  ;;  %v17379_v41 = vpop.f32.mrb[50].mxu1  ;;  %17408 = vmatprep.mubr.bf16.mxu0 %v4063_v15  ;;  %v3984_v15 = vld [vmem:[#allocation4 + $0x4] sm:$0xff]  ;;  %v3989_v61 = vld [vmem:[#allocation4 + $0x2c] sm:$0xff] }
 0x44f   : > { %v3931_v19 = vmax.f32 %v3908_v57, 0.0  ;;  %v3909_v42 = vadd.f32 %v17379_v41, %v20709_v48  ;;  %v3834_v32 = vpop.f32.mrb[51].mxu1  ;;  %v3987_v57 = vld [vmem:[#allocation4 + $0x1c] sm:$0xff]  ;;  %v19774_v41 = vld [vmem:[#allocation7 + $0x148] sm:$0xff]  }
 0x450   : > { %v3929_v20 = vmax.f32 %v3906_v13, 0.0  ;;  %v3907_v22 = vadd.f32 %v20709_v48, %v3834_v32  ;;  %17433 = vmatpush3.bf16.msra.mxu0 %v19769_v2  ;;  %v3985_v2 = vld [vmem:[#allocation4 + $0xc] sm:$0xff]  ;;  %v3988_v13 = vld [vmem:[#allocation4 + $0x24] sm:$0xff]  ;;  %v3990_v32 = vld [vmem:[#allocation4 + $0x34] sm:$0xff] }
 0x451   : > { %3977 = vst [vmem:[#allocation4 + $0x98] sm:$0xff] %v3931_v19  ;;  %v3932_v43 = vmax.f32 %v3909_v42, 0.0  ;;  %17409 = vmatmul.mubr.bf16.gmra.mrb[64].mxu0 %v4064_v36  ;;  %17434 = vmatprep.subr.bf16.mxu0 %v19770_v14  ;;  %v4048_v25 = vld [vmem:[#allocation4 + $0x66] sm:$0xff]  ;;  %v4007_v6 = vpack.c.bf16 %v3985_v2, %v3984_v15  ;;  %v19775_v42 = vld [vmem:[#allocation7 + $0x150] sm:$0xff]  }
 0x452   : > { %3975 = vst [vmem:[#allocation4 + $0x88] sm:$0xff] %v3929_v20  ;;  %v3930_v24 = vmax.f32 %v3907_v22, 0.0  ;;  %v4051_v55 = vld [vmem:[#allocation4 + $0x7e] sm:$0xff] }
 0x453   : > { %3978 = vst [vmem:[#allocation4 + $0xa0] sm:$0xff] %v3932_v43  ;;  %v4049_v11 = vld [vmem:[#allocation4 + $0x6e] sm:$0xff]  ;;  %v20748_v16 = vpack.c.bf16 %v3932_v43, %v3931_v19  ;;  %v4050_v37 = vld [vmem:[#allocation4 + $0x76] sm:$0xff]  ;;  %v4009_v19 = vpack.c.bf16 %v3989_v61, %v3988_v13  ;;  %v3992_v36 = vld [vmem:[#allocation4 + $0x44] sm:$0xff] }
 0x454   : > { %v3953_v21 = vmul.f32 0.0, %v3930_v24  ;;  %v17382_v10 = vpop.f32.mrb[60].mxu1  ;;  %v4065_v34 = vpack.c.bf16 %v4049_v11, %v4048_v25  ;;  %17435 = vmatpush3.bf16.msra.mxu0 %v19770_v14  ;;  %v4066_v5 = vpack.c.bf16 %v4051_v55, %v4050_v37  ;;  %v4008_v14 = vpack.c.bf16 %v3987_v57, %v3986_v8  ;;  %v3991_v22 = vld [vmem:[#allocation4 + $0x3c] sm:$0xff]  ;;  %v3994_v11 = vld [vmem:[#allocation4 + $0x54] sm:$0xff]  ;;  %v3996_v37 = vld [vmem:[#allocation4 + $0x64] sm:$0xff] }
 0x455   : > { %v3883_v7 = vadd.f32 %v17382_v10, %v20700_v28  ;;  %v3847_v62 = vpop.f32.mrb[61].mxu1  ;;  %17436 = vmatprep.subr.bf16.mxu0 %v19771_v23  ;;  %v4010_v43 = vpack.c.bf16 %v3991_v22, %v3990_v32  ;;  %v19777_v25 = vld [vmem:[#allocation7 + $0x160] sm:$0xff]   ;;  %v3997_v10 = vld [vmem:[#allocation4 + $0x6c] sm:$0xff] }
 0x456   : > { %3976 = vst [vmem:[#allocation4 + $0x90] sm:$0xff] %v3953_v21  ;;  %v3881_v3 = vadd.f32 %v3847_v62, %v20702_v60  ;;  %v17383_v26 = vpop.f32.mrb[62].mxu1  ;;  %17412 = vmatprep.mubr.bf16.mxu0 %v4065_v34  ;;  %v20752_v1 = vpack.c.bf16 %v3953_v21, %v3929_v20  ;;  %v3993_v20 = vld [vmem:[#allocation4 + $0x4c] sm:$0xff]  ;;  %v3995_v21 = vld [vmem:[#allocation4 + $0x5c] sm:$0xff] }
 0x457   : > { %v3912_v31 = vadd.f32 %v20709_v48, %v3883_v7  ;;  %v3850_v38 = vpop.f32.mrb[63].mxu1  ;;  %v4011_v24 = vpack.c.bf16 %v3993_v20, %v3992_v36  ;;  %v4012_v34 = vpack.c.bf16 %v3995_v21, %v3994_v11  ;;  %v19778_v55 = vld [vmem:[#allocation7 + $0x168] sm:$0xff]   ;;  %v4013_v7 = vpack.c.bf16 %v3997_v10, %v3996_v37  ;;  %v19779_v62 = vld [vmem:[#allocation7 + $0x170] sm:$0xff]  }
 0x458   : > { %v3910_v39 = vadd.f32 %v20709_v48, %v3881_v3  ;;  %v3882_v47 = vadd.f32 %v3850_v38, %v20704_v33  ;;  %17437 = vmatpush3.bf16.msra.mxu0 %v19771_v23  ;;  %v19776_v23 = vld [vmem:[#allocation7 + $0x158] sm:$0xff]   ;;  %v4743_v20 = vld [vmem:[#allocation3 + $0x8] sm:$0xff]  ;;  %v4744_v21 = vld [vmem:[#allocation3 + $0x10] sm:$0xff] }
 0x459   : > { %v20757_v28 = vmax.f32 %v3912_v31, 0.0  ;;  %17413 = vmatmul.mubr.bf16.gmra.mrb[68].mxu0 %v4066_v5  ;;  %17438 = vmatprep.subr.bf16.mxu0 %v19772_v17  ;;  %v4052_v45 = vld [vmem:[#allocation4 + $0x86] sm:$0xff]  ;;  %v3999_v3 = vld [vmem:[#allocation4 + $0x7c] sm:$0xff] }
 0x45a   : > { %v3933_v49 = vmax.f32 %v3910_v39, 0.0  ;;  %v3911_v60 = vadd.f32 %v20709_v48, %v3882_v47  ;;  %v4055_v59 = vld [vmem:[#allocation4 + $0x9e] sm:$0xff] }
 0x45b   : > { %3981 = vst [vmem:[#allocation4 + $0xb8] sm:$0xff] %v20757_v28  ;;  %v4000_v38 = vld [vmem:[#allocation4 + $0x84] sm:$0xff]  ;;  %v19780_v5 = vld [vmem:[#allocation7 + $0x178] sm:$0xff]  }
 0x45c   : > { %v3956_v29 = vmul.f32 0.0, %v3933_v49  ;;  %v3934_v58 = vmax.f32 %v3911_v60, 0.0  ;;  %17439 = vmatpush3.bf16.msra.mxu0 %v19772_v17  ;;  %v3998_v17 = vld [vmem:[#allocation4 + $0x74] sm:$0xff]  ;;  %v4003_v60 = vld [vmem:[#allocation4 + $0x9c] sm:$0xff] }
 0x45d   : > { %v4053_v0 = vld [vmem:[#allocation4 + $0x8e] sm:$0xff]  ;;  %v4054_v40 = vld [vmem:[#allocation4 + $0x96] sm:$0xff]  ;;  %17464 = vmatprep.subr.bf16.mxu0 %v19773_v53  ;;  %v4014_v31 = vpack.c.bf16 %v3999_v3, %v3998_v17 }
 0x45e   : > { %3979 = vst [vmem:[#allocation4 + $0xa8] sm:$0xff] %v3956_v29  ;;  %3980 = vst [vmem:[#allocation4 + $0xb0] sm:$0xff] %v3934_v58  ;;  %v4067_v33 = vpack.c.bf16 %v4053_v0, %v4052_v45  ;;  %v4068_v51 = vpack.c.bf16 %v4055_v59, %v4054_v40  ;;  %v20761_v52 = vpack.c.bf16 %v3934_v58, %v3956_v29  ;;  %v4001_v26 = vld [vmem:[#allocation4 + $0x8c] sm:$0xff]  ;;  %v4002_v47 = vld [vmem:[#allocation4 + $0x94] sm:$0xff] }
 0x45f   : > { %v4015_v39 = vpack.c.bf16 %v4001_v26, %v4000_v38  ;;  %v4016_v29 = vpack.c.bf16 %v4003_v60, %v4002_v47  ;;  %v19781_v40 = vld [vmem:[#allocation5 + $0x1c0] sm:$0xff]   ;;  %v19782_v59 = vld [vmem:[#allocation5 + $0x1c8] sm:$0xff]  }
 0x460   : > { %17416 = vmatprep.mubr.bf16.mxu0 %v4067_v33  ;;  %17504 = vmatprep.subr.bf16.mxu1 %v19781_v40 }
 0x461   : > { %17417 = vmatmul.mubr.bf16.gmra.mrb[72].mxu0 %v4068_v51  ;;  %17505 = vmatpush3.bf16.msra.mxu1 %v19781_v40 }
 0x462   : > { %17506 = vmatprep.subr.bf16.mxu1 %v19782_v59 }
 0x465   : > { %v4056_v48 = vld [vmem:[#allocation4 + $0xa6] sm:$0xff]  ;;  %v4057_v35 = vld [vmem:[#allocation4 + $0xae] sm:$0xff]  ;;  %v4058_v12 = vld [vmem:[#allocation4 + $0xb6] sm:$0xff]  ;;  %17507 = vmatpush3.bf16.msra.mxu1 %v19782_v59 }
 0x466   : > { %v4069_v4 = vpack.c.bf16 %v4057_v35, %v4056_v48  ;;  %v4070_v44 = vpack.c.bf16 %v4058_v12, %v4058_v12  ;;  %v4005_v49 = vld [vmem:[#allocation4 + $0xac] sm:$0xff]  ;;  %v4006_v45 = vld [vmem:[#allocation4 + $0xb4] sm:$0xff]  ;;  %v4750_v59 = vld [vmem:[#allocation3 + $0x40] sm:$0xff] }
 0x467   : > { %v4018_v0 = vpack.c.bf16 %v4006_v45, %v4006_v45  ;;  %v4747_v45 = vld [vmem:[#allocation3 + $0x28] sm:$0xff] }
 0x468   : > { %17420 = vmatprep.mubr.bf16.mxu0 %v4069_v4 }
 0x469   : > { %17421 = vmatmul.mubr.bf16.gmra.mrb[76].mxu0 %v4070_v44  ;;  %v20788_v44 = vld [vmem:[%s22024_s4 + $0x1] ss:$0 sm:$0xff] }
 0x46a   : > { %17440 = vmatprep.mubr.bf16.mxu0 %v4007_v6 }
 0x471   : > { %17441 = vmatmul.mubr.bf16.vlgmr.msra.gmra.mrb[56].mxu0 %v4008_v14 }
 0x472   : > { %17444 = vmatprep.mubr.bf16.mxu0 %v4009_v19  ;;  %17465 = vmatpush3.bf16.msra.mxu0 %v19773_v53  ;;  %v4004_v53 = vld [vmem:[#allocation4 + $0xa4] sm:$0xff]  ;;  %v4745_v19 = vld [vmem:[#allocation3 + $0x18] sm:$0xff] }
 0x473   : > { %17466 = vmatprep.subr.bf16.mxu0 %v19774_v41  ;;  %v4017_v58 = vpack.c.bf16 %v4005_v49, %v4004_v53  ;;  %v4749_v53 = vld [vmem:[#allocation3 + $0x38] sm:$0xff] }
 0x476   : > { %17467 = vmatpush3.bf16.msra.mxu0 %v19774_v41 }
 0x477   : > { %17468 = vmatprep.subr.bf16.mxu0 %v19775_v42 }
 0x479   : > { %17445 = vmatmul.mubr.bf16.gmra.mrb[60].mxu0 %v4010_v43 }
 0x47a   : > { %17448 = vmatprep.mubr.bf16.mxu0 %v4011_v24  ;;  %17469 = vmatpush3.bf16.msra.mxu0 %v19775_v42 }
 0x47b   : > { %17470 = vmatprep.subr.bf16.mxu0 %v19776_v23 }
 0x47e   : > { %17471 = vmatpush3.bf16.msra.mxu0 %v19776_v23  ;;  %v4746_v23 = vld [vmem:[#allocation3 + $0x20] sm:$0xff] }
 0x47f   : > { %17472 = vmatprep.subr.bf16.mxu0 %v19777_v25 }
 0x481   : > { %17449 = vmatmul.mubr.bf16.gmra.mrb[64].mxu0 %v4012_v34 }
 0x482   : > { %17452 = vmatprep.mubr.bf16.mxu0 %v4013_v7  ;;  %17473 = vmatpush3.bf16.msra.mxu0 %v19777_v25 }
 0x483   : > { %17474 = vmatprep.subr.bf16.mxu0 %v19778_v55 }
 0x486   : > { %17475 = vmatpush3.bf16.msra.mxu0 %v19778_v55 }
 0x487   : > { %17476 = vmatprep.subr.bf16.mxu0 %v19779_v62 }
 0x489   : > { %17453 = vmatmul.mubr.bf16.gmra.mrb[68].mxu0 %v4014_v31 }
 0x48a   : > { %17456 = vmatprep.mubr.bf16.mxu0 %v4015_v39  ;;  %17477 = vmatpush3.bf16.msra.mxu0 %v19779_v62 }
 0x48b   : > { %17478 = vmatprep.subr.bf16.mxu0 %v19780_v5 }
 0x48e   : > { %17479 = vmatpush3.bf16.msra.mxu0 %v19780_v5 }
 0x491   : > { %17457 = vmatmul.mubr.bf16.gmra.mrb[72].mxu0 %v4016_v29 }
 0x492   : > { %17460 = vmatprep.mubr.bf16.mxu0 %v4017_v58 }
 0x499   : > { %17461 = vmatmul.mubr.bf16.gmra.mrb[80].mxu0 %v4018_v0 }
 0x49a   : > { %17480 = vmatprep.mubr.bf16.mxu0 %v20717_v46  ;;  %v4474_v46 = vpack.c.bf16 %v20757_v28, %v20757_v28 }
 0x4a1   : > { %17481 = vmatmul.mubr.bf16.vlgmr.msra.gmra.mrb[56].mxu0 %v20715_v63  ;;  %v19783_v63 = vld [vmem:[#allocation5 + $0x1d0] sm:$0xff]  }
 0x4a2   : > { %17484 = vmatprep.mubr.bf16.mxu0 %v20727_v56  ;;  %17508 = vmatprep.subr.bf16.mxu1 %v19783_v63  ;;  %v19785_v56 = vld [vmem:[#allocation5 + $0x1e0] sm:$0xff]  }
 0x4a3   : > { %17509 = vmatpush3.bf16.msra.mxu1 %v19783_v63 }
 0x4a9   : > { %17485 = vmatmul.mubr.bf16.gmra.mrb[60].mxu0 %v20723_v27  ;;  %v19784_v27 = vld [vmem:[#allocation5 + $0x1d8] sm:$0xff]  }
 0x4aa   : > { %17488 = vmatprep.mubr.bf16.mxu0 %v20732_v30  ;;  %17510 = vmatprep.subr.bf16.mxu1 %v19784_v27  ;;  %v19786_v30 = vld [vmem:[#allocation5 + $0x1e8] sm:$0xff]  }
 0x4ab   : > { %17511 = vmatpush3.bf16.msra.mxu1 %v19784_v27 }
 0x4ac   : > { %17512 = vmatprep.subr.bf16.mxu1 %v19785_v56 }
 0x4af   : > { %17513 = vmatpush3.bf16.msra.mxu1 %v19785_v56  ;;  %v4748_v56 = vld [vmem:[#allocation3 + $0x30] sm:$0xff] }
 0x4b0   : > { %17514 = vmatprep.subr.bf16.mxu1 %v19786_v30 }
 0x4b1   : > { %17489 = vmatmul.mubr.bf16.gmra.mrb[64].mxu0 %v20735_v50  ;;  %v19787_v50 = vld [vmem:[#allocation5 + $0x1f0] sm:$0xff]  }
 0x4b2   : > { %17492 = vmatprep.mubr.bf16.mxu0 %v20742_v9  ;;  %v20776_v9 = vld [vmem:[#allocation5 + $0x180] sm:$0xff]  }
 0x4b3   : > { %17515 = vmatpush3.bf16.msra.mxu1 %v19786_v30 }
 0x4b4   : > { %17516 = vmatprep.subr.bf16.mxu1 %v19787_v50 }
 0x4b7   : > { %17517 = vmatpush3.bf16.msra.mxu1 %v19787_v50 }
 0x4b9   : > { %17493 = vmatmul.mubr.bf16.gmra.mrb[68].mxu0 %v20740_v54  ;;  %v19788_v54 = vld [vmem:[#allocation5 + $0x1f8] sm:$0xff]  }
 0x4ba   : > { %17496 = vmatprep.mubr.bf16.mxu0 %v20752_v1  ;;  %17518 = vmatprep.subr.bf16.mxu1 %v19788_v54 }
 0x4bb   : > { %17519 = vmatpush3.bf16.msra.mxu1 %v19788_v54 }
 0x4bc   : > { %17544 = vmatprep.subr.bf16.mxu1 %v20776_v9 }
 0x4c1   : > { %17497 = vmatmul.mubr.bf16.gmra.mrb[72].mxu0 %v20748_v16 }
 0x4c2   : > { %17500 = vmatprep.mubr.bf16.mxu0 %v20761_v52 }
 0x4c9   : > { %17501 = vmatmul.mubr.bf16.gmra.mrb[84].mxu0 %v4474_v46 }
 0x53c   : > { %v17422_v16 = vpop.f32.mrb[76].mxu0 }
 0x53d   : > { %v4250_v1 = vpop.f32.mrb[77].mxu0 }
 0x53e   : > { %v17423_v28 = vpop.f32.mrb[78].mxu0 }
 0x53f   : > { %v4253_v33 = vpop.f32.mrb[79].mxu0 }
 0x56c   : > { %v17462_v51 = vpop.f32.mrb[80].mxu0 }
 0x56d   : > { %v20779_v52 = vadd.f32 %v17462_v51, %v17422_v16  ;;  %v4426_v2 = vpop.f32.mrb[81].mxu0 }
 0x56e   : > { %v20781_v48 = vadd.f32 %v4426_v2, %v4250_v1  ;;  %v17463_v35 = vpop.f32.mrb[82].mxu0 }
 0x56f   : > { %v4429_v12 = vpop.f32.mrb[83].mxu0 }
 0x570   : > { %v20783_v4 = vadd.f32 %v4429_v12, %v4253_v33 }
 0x574   : > { %v17482_v15 = vpop.f32.mrb[56].mxu0 }
 0x575   : > { %v4699_v6 = vadd.f32 %v17482_v15, %v20788_v44  ;;  %v4574_v8 = vpop.f32.mrb[57].mxu0 }
 0x576   : > { %v4697_v57 = vadd.f32 %v20788_v44, %v4574_v8  ;;  %v17483_v61 = vpop.f32.mrb[58].mxu0 }
 0x577   : > { %v4722_v14 = vmax.f32 %v4699_v6, 0.0  ;;  %v4700_v13 = vadd.f32 %v17483_v61, %v20788_v44  ;;  %v4577_v41 = vpop.f32.mrb[59].mxu0 }
 0x578   : > { %v4720_v42 = vmax.f32 %v4697_v57, 0.0  ;;  %v4698_v32 = vadd.f32 %v20788_v44, %v4577_v41  ;;  %v4753_v41 = vld [vmem:[#allocation3 + $0x58] sm:$0xff] }
 0x579   : > { %v4768_v36 = vadd.f32 %v4745_v19, %v4722_v14  ;;  %v4723_v22 = vmax.f32 %v4700_v13, 0.0 }
 0x57a   : > { %v4766_v43 = vadd.f32 %v4743_v20, %v4720_v42  ;;  %v4721_v24 = vmax.f32 %v4698_v32, 0.0  ;;  %v4751_v20 = vld [vmem:[#allocation3 + $0x48] sm:$0xff] }
 0x57b   : > { %v4791_v25 = vmax.f32 %v4768_v36, 0.0  ;;  %v4769_v11 = vadd.f32 %v4746_v23, %v4723_v22  ;;  %v19790_v23 = vld [vmem:[#allocation5 + $0x188] sm:$0xff]  }
 0x57c   : > { %v4789_v10 = vmax.f32 %v4766_v43, 0.0  ;;  %v4767_v34 = vadd.f32 %v4744_v21, %v4721_v24  ;;  %v17486_v37 = vpop.f32.mrb[60].mxu0 }
 0x57d   : > { %v4814_v55 = vmul.f32 0.0, %v4791_v25  ;;  %v4792_v7 = vmax.f32 %v4769_v11, 0.0  ;;  %v4703_v62 = vadd.f32 %v17486_v37, %v20788_v44  ;;  %v4590_v17 = vpop.f32.mrb[61].mxu0  ;;  %v4754_v25 = vld [vmem:[#allocation3 + $0x60] sm:$0xff]  ;;  %v4752_v37 = vld [vmem:[#allocation3 + $0x50] sm:$0xff] }
 0x57e   : > { %4835 = vst [vmem:[#allocation3 + $0x8] sm:$0xff] %v4789_v10  ;;  %v4790_v3 = vmax.f32 %v4767_v34, 0.0  ;;  %v4701_v26 = vadd.f32 %v20788_v44, %v4590_v17  ;;  %v17487_v31 = vpop.f32.mrb[62].mxu0 }
 0x57f   : > { %4837 = vst [vmem:[#allocation3 + $0x18] sm:$0xff] %v4814_v55  ;;  %4838 = vst [vmem:[#allocation3 + $0x20] sm:$0xff] %v4792_v7  ;;  %v4726_v38 = vmax.f32 %v4703_v62, 0.0  ;;  %v4704_v5 = vadd.f32 %v17487_v31, %v20788_v44  ;;  %v4593_v39 = vpop.f32.mrb[63].mxu0  ;;  %v20797_v47 = vpack.c.bf16 %v4792_v7, %v4814_v55  ;;  %v19791_v31 = vld [vmem:[#allocation5 + $0x190] sm:$0xff]  }
 0x580   : > { %4836 = vst [vmem:[#allocation3 + $0x10] sm:$0xff] %v4790_v3  ;;  %v4724_v49 = vmax.f32 %v4701_v26, 0.0  ;;  %v4702_v60 = vadd.f32 %v20788_v44, %v4593_v39  ;;  %v20800_v29 = vpack.c.bf16 %v4790_v3, %v4789_v10 }
 0x581   : > { %v4772_v58 = vadd.f32 %v4749_v53, %v4726_v38  ;;  %v4727_v0 = vmax.f32 %v4704_v5, 0.0 }
 0x582   : > { %v4770_v40 = vadd.f32 %v4747_v45, %v4724_v49  ;;  %v4725_v63 = vmax.f32 %v4702_v60, 0.0 }
 0x583   : > { %v4795_v46 = vmax.f32 %v4772_v58, 0.0  ;;  %v4773_v27 = vadd.f32 %v4750_v59, %v4727_v0  ;;  %v4755_v58 = vld [vmem:[#allocation3 + $0x68] sm:$0xff] }
 0x584   : > { %v4793_v30 = vmax.f32 %v4770_v40, 0.0  ;;  %v4771_v50 = vadd.f32 %v4748_v56, %v4725_v63  ;;  %v17490_v54 = vpop.f32.mrb[64].mxu0 }
 0x585   : > { %4841 = vst [vmem:[#allocation3 + $0x38] sm:$0xff] %v4795_v46  ;;  %v4796_v16 = vmax.f32 %v4773_v27, 0.0  ;;  %v4707_v1 = vadd.f32 %v17490_v54, %v20788_v44  ;;  %v4606_v28 = vpop.f32.mrb[65].mxu0  ;;  %v4912_v8 = vld [vmem:[#allocation3 + $0x7] sm:$0xff] }
 0x586   : > { %4839 = vst [vmem:[#allocation3 + $0x28] sm:$0xff] %v4793_v30  ;;  %v4794_v33 = vmax.f32 %v4771_v50, 0.0  ;;  %v4705_v51 = vadd.f32 %v20788_v44, %v4606_v28  ;;  %v17491_v2 = vpop.f32.mrb[66].mxu0  ;;  %v4915_v35 = vld [vmem:[#allocation3 + $0x1f] sm:$0xff] }
 0x587   : > { %4842 = vst [vmem:[#allocation3 + $0x40] sm:$0xff] %v4796_v16  ;;  %v4730_v12 = vmax.f32 %v4707_v1, 0.0  ;;  %v4708_v15 = vadd.f32 %v17491_v2, %v20788_v44  ;;  %v4609_v6 = vpop.f32.mrb[67].mxu0  ;;  %v4913_v57 = vld [vmem:[#allocation3 + $0xf] sm:$0xff]  ;;  %v4914_v61 = vld [vmem:[#allocation3 + $0x17] sm:$0xff]  ;;  %v20805_v14 = vpack.c.bf16 %v4796_v16, %v4795_v46 }
 0x588   : > { %v4817_v13 = vmul.f32 0.0, %v4794_v33  ;;  %v4728_v19 = vmax.f32 %v4705_v51, 0.0  ;;  %v4706_v42 = vadd.f32 %v20788_v44, %v4609_v6  ;;  %v4935_v32 = vpack.c.bf16 %v4913_v57, %v4912_v8  ;;  %v19792_v46 = vld [vmem:[#allocation5 + $0x198] sm:$0xff]   ;;  %v4758_v33 = vld [vmem:[#allocation3 + $0x80] sm:$0xff]  ;;  %v4756_v6 = vld [vmem:[#allocation3 + $0x70] sm:$0xff] }
 0x589   : > { %v4776_v36 = vadd.f32 %v4753_v41, %v4730_v12  ;;  %v4731_v22 = vmax.f32 %v4708_v15, 0.0  ;;  %v4936_v43 = vpack.c.bf16 %v4915_v35, %v4914_v61 }
 0x58a   : > { %4840 = vst [vmem:[#allocation3 + $0x30] sm:$0xff] %v4817_v13  ;;  %v4774_v24 = vadd.f32 %v4751_v20, %v4728_v19  ;;  %v4729_v11 = vmax.f32 %v4706_v42, 0.0  ;;  %17520 = vmatprep.mubr.bf16.mxu1 %v4935_v32  ;;  %v20808_v21 = vpack.c.bf16 %v4817_v13, %v4793_v30  ;;  %v19793_v32 = vld [vmem:[#allocation5 + $0x1a0] sm:$0xff]  }
 0x58b   : > { %v4799_v10 = vmax.f32 %v4776_v36, 0.0  ;;  %v4777_v34 = vadd.f32 %v4754_v25, %v4731_v22  ;;  %17521 = vmatmul.mubr.bf16.vlgmr.msra.gmra.mrb[64].mxu1 %v4936_v43 }
 0x58c   : > { %v4797_v55 = vmax.f32 %v4774_v24, 0.0  ;;  %v4775_v7 = vadd.f32 %v4752_v37, %v4729_v11  ;;  %v17494_v62 = vpop.f32.mrb[68].mxu0  ;;  %17545 = vmatpush3.bf16.msra.mxu1 %v20776_v9  ;;  %v4757_v9 = vld [vmem:[#allocation3 + $0x78] sm:$0xff] }
 0x58d   : > { %4845 = vst [vmem:[#allocation3 + $0x58] sm:$0xff] %v4799_v10  ;;  %v4800_v17 = vmax.f32 %v4777_v34, 0.0  ;;  %v4711_v3 = vadd.f32 %v17494_v62, %v20788_v44  ;;  %v4622_v26 = vpop.f32.mrb[69].mxu0  ;;  %17546 = vmatprep.subr.bf16.mxu1 %v19790_v23  ;;  %v4916_v63 = vld [vmem:[#allocation3 + $0x27] sm:$0xff]  ;;  %v4761_v34 = vld [vmem:[#allocation3 + $0x98] sm:$0xff] }
 0x58e   : > { %v4820_v38 = vmul.f32 0.0, %v4797_v55  ;;  %v4798_v5 = vmax.f32 %v4775_v7, 0.0  ;;  %v4709_v39 = vadd.f32 %v20788_v44, %v4622_v26  ;;  %v17495_v53 = vpop.f32.mrb[70].mxu0  ;;  %v4919_v16 = vld [vmem:[#allocation3 + $0x3f] sm:$0xff] }
 0x58f   : > { %v4823_v49 = vmul.f32 0.0, %v4800_v17  ;;  %v4734_v60 = vmax.f32 %v4711_v3, 0.0  ;;  %v4712_v45 = vadd.f32 %v17495_v53, %v20788_v44  ;;  %v4625_v0 = vpop.f32.mrb[71].mxu0  ;;  %v4762_v53 = vld [vmem:[#allocation3 + $0xa0] sm:$0xff] }
 0x590   : > { %4843 = vst [vmem:[#allocation3 + $0x48] sm:$0xff] %v4820_v38  ;;  %4844 = vst [vmem:[#allocation3 + $0x50] sm:$0xff] %v4798_v5  ;;  %v4732_v40 = vmax.f32 %v4709_v39, 0.0  ;;  %v4710_v59 = vadd.f32 %v20788_v44, %v4625_v0  ;;  %17547 = vmatpush3.bf16.msra.mxu1 %v19790_v23  ;;  %v20815_v27 = vpack.c.bf16 %v4798_v5, %v4820_v38  ;;  %v19794_v5 = vld [vmem:[#allocation5 + $0x1a8] sm:$0xff]  }
 0x591   : > { %4846 = vst [vmem:[#allocation3 + $0x60] sm:$0xff] %v4823_v49  ;;  %v4780_v56 = vadd.f32 %v4757_v9, %v4734_v60  ;;  %v4735_v30 = vmax.f32 %v4712_v45, 0.0  ;;  %v4917_v50 = vld [vmem:[#allocation3 + $0x2f] sm:$0xff]  ;;  %v4918_v54 = vld [vmem:[#allocation3 + $0x37] sm:$0xff]  ;;  %17548 = vmatprep.subr.bf16.mxu1 %v19791_v31  ;;  %v20817_v1 = vpack.c.bf16 %v4823_v49, %v4799_v10 }
 0x592   : > { %v4778_v28 = vadd.f32 %v4755_v58, %v4732_v40  ;;  %v4733_v51 = vmax.f32 %v4710_v59, 0.0  ;;  %v4937_v2 = vpack.c.bf16 %v4917_v50, %v4916_v63  ;;  %v4938_v35 = vpack.c.bf16 %v4919_v16, %v4918_v54  ;;  %v4760_v45 = vld [vmem:[#allocation3 + $0x90] sm:$0xff] }
 0x593   : > { %v4803_v12 = vmax.f32 %v4780_v56, 0.0  ;;  %v4781_v15 = vadd.f32 %v4758_v33, %v4735_v30  ;;  %v19795_v30 = vld [vmem:[#allocation5 + $0x1b0] sm:$0xff]  }
 0x594   : > { %v4801_v8 = vmax.f32 %v4778_v28, 0.0  ;;  %v4779_v57 = vadd.f32 %v4756_v6, %v4733_v51  ;;  %v17498_v61 = vpop.f32.mrb[72].mxu0  ;;  %17524 = vmatprep.mubr.bf16.mxu1 %v4937_v2  ;;  %17549 = vmatpush3.bf16.msra.mxu1 %v19791_v31  ;;  %v4759_v31 = vld [vmem:[#allocation3 + $0x88] sm:$0xff] }
 0x595   : > { %v4826_v13 = vmul.f32 0.0, %v4803_v12  ;;  %v4804_v41 = vmax.f32 %v4781_v15, 0.0  ;;  %v4715_v19 = vadd.f32 %v17498_v61, %v20788_v44  ;;  %v4638_v42 = vpop.f32.mrb[73].mxu0  ;;  %17525 = vmatmul.mubr.bf16.gmra.mrb[68].mxu1 %v4938_v35  ;;  %17550 = vmatprep.subr.bf16.mxu1 %v19792_v46 }
 0x596   : > { %4847 = vst [vmem:[#allocation3 + $0x68] sm:$0xff] %v4801_v8  ;;  %v4802_v36 = vmax.f32 %v4779_v57, 0.0  ;;  %v4713_v20 = vadd.f32 %v20788_v44, %v4638_v42  ;;  %v17499_v22 = vpop.f32.mrb[74].mxu0 }
 0x597   : > { %4849 = vst [vmem:[#allocation3 + $0x78] sm:$0xff] %v4826_v13  ;;  %4850 = vst [vmem:[#allocation3 + $0x80] sm:$0xff] %v4804_v41  ;;  %v4738_v43 = vmax.f32 %v4715_v19, 0.0  ;;  %v4716_v23 = vadd.f32 %v17499_v22, %v20788_v44  ;;  %v4641_v24 = vpop.f32.mrb[75].mxu0  ;;  %v4920_v25 = vld [vmem:[#allocation3 + $0x47] sm:$0xff]  ;;  %v4921_v11 = vld [vmem:[#allocation3 + $0x4f] sm:$0xff]  ;;  %v20822_v10 = vpack.c.bf16 %v4804_v41, %v4826_v13 }
 0x598   : > { %4848 = vst [vmem:[#allocation3 + $0x70] sm:$0xff] %v4802_v36  ;;  %v4736_v37 = vmax.f32 %v4713_v20, 0.0  ;;  %v4714_v55 = vadd.f32 %v20788_v44, %v4641_v24  ;;  %v4939_v7 = vpack.c.bf16 %v4921_v11, %v4920_v25  ;;  %v4922_v62 = vld [vmem:[#allocation3 + $0x57] sm:$0xff]  ;;  %v4923_v17 = vld [vmem:[#allocation3 + $0x5f] sm:$0xff]  ;;  %17551 = vmatpush3.bf16.msra.mxu1 %v19792_v46  ;;  %v20825_v3 = vpack.c.bf16 %v4802_v36, %v4801_v8  ;;  %v4763_v36 = vld [vmem:[#allocation3 + $0xa8] sm:$0xff] }
 0x599   : > { %v4784_v26 = vadd.f32 %v4761_v34, %v4738_v43  ;;  %v4739_v38 = vmax.f32 %v4716_v23, 0.0  ;;  %17552 = vmatprep.subr.bf16.mxu1 %v19793_v32  ;;  %v4940_v0 = vpack.c.bf16 %v4923_v17, %v4922_v62  ;;  %v4765_v13 = vld [vmem:[#allocation3 + $0xb8] sm:$0xff]  ;;  %v4764_v23 = vld [vmem:[#allocation3 + $0xb0] sm:$0xff]  ;;  %v19797_v24 = vld [vmem:[#allocation5 + $0x200] sm:$0xff]  }
 0x59a   : > { %v4782_v39 = vadd.f32 %v4759_v31, %v4736_v37  ;;  %v4737_v49 = vmax.f32 %v4714_v55, 0.0  ;;  %17528 = vmatprep.mubr.bf16.mxu1 %v4939_v7 }
 0x59b   : > { %v4807_v60 = vmax.f32 %v4784_v26, 0.0  ;;  %v4785_v58 = vadd.f32 %v4762_v53, %v4739_v38  ;;  %v4861_v38 = vld [vmem:[#allocation3 + $0xe] sm:$0xff] }
 0x59c   : > { %v4805_v9 = vmax.f32 %v4782_v39, 0.0  ;;  %v4783_v40 = vadd.f32 %v4760_v45, %v4737_v49  ;;  %v17502_v59 = vpop.f32.mrb[84].mxu0  ;;  %17553 = vmatpush3.bf16.msra.mxu1 %v19793_v32 }
 0x59d   : > { %4853 = vst [vmem:[#allocation3 + $0x98] sm:$0xff] %v4807_v60  ;;  %v4808_v63 = vmax.f32 %v4785_v58, 0.0  ;;  %v4690_v46 = vadd.f32 %v17502_v59, %v20779_v52  ;;  %v4654_v56 = vpop.f32.mrb[85].mxu0  ;;  %17529 = vmatmul.mubr.bf16.gmra.mrb[72].mxu1 %v4940_v0  ;;  %17554 = vmatprep.subr.bf16.mxu1 %v19794_v5  ;;  %v4924_v51 = vld [vmem:[#allocation3 + $0x67] sm:$0xff]  ;;  %v4862_v0 = vld [vmem:[#allocation3 + $0x16] sm:$0xff] }
 0x59e   : > { %4851 = vst [vmem:[#allocation3 + $0x88] sm:$0xff] %v4805_v9  ;;  %v4806_v50 = vmax.f32 %v4783_v40, 0.0  ;;  %v4688_v54 = vadd.f32 %v4654_v56, %v20781_v48  ;;  %v17503_v16 = vpop.f32.mrb[86].mxu0  ;;  %v4927_v57 = vld [vmem:[#allocation3 + $0x7f] sm:$0xff]  ;;  %v4865_v40 = vld [vmem:[#allocation3 + $0x2e] sm:$0xff] }
 0x59f   : > { %4854 = vst [vmem:[#allocation3 + $0xa0] sm:$0xff] %v4808_v63  ;;  %v4719_v28 = vadd.f32 %v20788_v44, %v4690_v46  ;;  %v4657_v33 = vpop.f32.mrb[87].mxu0  ;;  %v4925_v2 = vld [vmem:[#allocation3 + $0x6f] sm:$0xff]  ;;  %v20830_v35 = vpack.c.bf16 %v4808_v63, %v4807_v60  ;;  %v4926_v8 = vld [vmem:[#allocation3 + $0x77] sm:$0xff]  ;;  %v4860_v58 = vld [vmem:[#allocation3 + $0x6] sm:$0xff] }
 0x5a0   : > { %v4829_v12 = vmul.f32 0.0, %v4806_v50  ;;  %v4717_v52 = vadd.f32 %v20788_v44, %v4688_v54  ;;  %v4689_v15 = vadd.f32 %v4657_v33, %v20783_v4  ;;  %v4941_v6 = vpack.c.bf16 %v4925_v2, %v4924_v51  ;;  %17555 = vmatpush3.bf16.msra.mxu1 %v19794_v5  ;;  %v19796_v48 = vld [vmem:[#allocation5 + $0x1b8] sm:$0xff]   ;;  %v4864_v63 = vld [vmem:[#allocation3 + $0x26] sm:$0xff]  ;;  %v4869_v16 = vld [vmem:[#allocation3 + $0x4e] sm:$0xff] }
 0x5a1   : > { %v4742_v61 = vmax.f32 %v4719_v28, 0.0  ;;  %17556 = vmatprep.subr.bf16.mxu1 %v19795_v30  ;;  %v4942_v20 = vpack.c.bf16 %v4927_v57, %v4926_v8  ;;  %v4883_v45 = vpack.c.bf16 %v4861_v38, %v4860_v58  ;;  %v19798_v46 = vld [vmem:[#allocation5 + $0x208] sm:$0xff]   ;;  %v4885_v56 = vpack.c.bf16 %v4865_v40, %v4864_v63  ;;  %v4866_v50 = vld [vmem:[#allocation3 + $0x36] sm:$0xff]  ;;  %v4867_v28 = vld [vmem:[#allocation3 + $0x3e] sm:$0xff] }
 0x5a2   : > { %4852 = vst [vmem:[#allocation3 + $0x90] sm:$0xff] %v4829_v12  ;;  %v4740_v41 = vmax.f32 %v4717_v52, 0.0  ;;  %v4718_v19 = vadd.f32 %v20788_v44, %v4689_v15  ;;  %17532 = vmatprep.mubr.bf16.mxu1 %v4941_v6  ;;  %v20835_v42 = vpack.c.bf16 %v4829_v12, %v4805_v9  ;;  %v4863_v9 = vld [vmem:[#allocation3 + $0x1e] sm:$0xff]  ;;  %v4868_v54 = vld [vmem:[#allocation3 + $0x46] sm:$0xff]  ;;  %v4886_v33 = vpack.c.bf16 %v4867_v28, %v4866_v50  ;;  %v4870_v52 = vld [vmem:[#allocation3 + $0x56] sm:$0xff] }
 0x5a3   : > { %v4788_v32 = vadd.f32 %v4765_v13, %v4742_v61  ;;  %v4884_v59 = vpack.c.bf16 %v4863_v9, %v4862_v0  ;;  %v19800_v51 = vld [vmem:[#allocation5 + $0x218] sm:$0xff]   ;;  %v4887_v2 = vpack.c.bf16 %v4869_v16, %v4868_v54  ;;  %v19801_v12 = vld [vmem:[#allocation5 + $0x220] sm:$0xff]   ;;  %v4873_v6 = vld [vmem:[#allocation3 + $0x6e] sm:$0xff] }
 0x5a4   : > { %v4786_v22 = vadd.f32 %v4763_v36, %v4740_v41  ;;  %v4741_v4 = vmax.f32 %v4718_v19, 0.0  ;;  %17557 = vmatpush3.bf16.msra.mxu1 %v19795_v30  ;;  %v19799_v30 = vld [vmem:[#allocation5 + $0x210] sm:$0xff]   ;;  %v4871_v15 = vld [vmem:[#allocation3 + $0x5e] sm:$0xff]  ;;  %v4872_v57 = vld [vmem:[#allocation3 + $0x66] sm:$0xff] }
 0x5a5   : > { %v20837_v43 = vmax.f32 %v4788_v32, 0.0  ;;  %17533 = vmatmul.mubr.bf16.gmra.mrb[76].mxu1 %v4942_v20  ;;  %17558 = vmatprep.subr.bf16.mxu1 %v19796_v48  ;;  %v4928_v37 = vld [vmem:[#allocation3 + $0x87] sm:$0xff]  ;;  %v4888_v8 = vpack.c.bf16 %v4871_v15, %v4870_v52  ;;  %v19803_v13 = vld [vmem:[#allocation5 + $0x230] sm:$0xff]   ;;  %v4875_v19 = vld [vmem:[#allocation3 + $0x7e] sm:$0xff] }
 0x5a6   : > { %v4809_v25 = vmax.f32 %v4786_v22, 0.0  ;;  %v4787_v11 = vadd.f32 %v4764_v23, %v4741_v4  ;;  %v4931_v62 = vld [vmem:[#allocation3 + $0x9f] sm:$0xff]  ;;  %v19802_v61 = vld [vmem:[#allocation5 + $0x228] sm:$0xff]   ;;  %v4874_v41 = vld [vmem:[#allocation3 + $0x76] sm:$0xff] }
 0x5a7   : > { %4857 = vst [vmem:[#allocation3 + $0xb8] sm:$0xff] %v20837_v43  ;;  %v4890_v36 = vpack.c.bf16 %v4875_v19, %v4874_v41  ;;  %v4876_v20 = vld [vmem:[#allocation3 + $0x86] sm:$0xff]  ;;  %v19804_v22 = vld [vmem:[#allocation5 + $0x238] sm:$0xff]  }
 0x5a8   : > { %v4832_v44 = vmul.f32 0.0, %v4809_v25  ;;  %v4810_v34 = vmax.f32 %v4787_v11, 0.0  ;;  %17559 = vmatpush3.bf16.msra.mxu1 %v19796_v48  ;;  %v4889_v48 = vpack.c.bf16 %v4873_v6, %v4872_v57  ;;  %v4879_v11 = vld [vmem:[#allocation3 + $0x9e] sm:$0xff] }
 0x5a9   : > { %v4929_v55 = vld [vmem:[#allocation3 + $0x8f] sm:$0xff]  ;;  %v4930_v7 = vld [vmem:[#allocation3 + $0x97] sm:$0xff]  ;;  %17584 = vmatprep.subr.bf16.mxu1 %v19797_v24 }
 0x5aa   : > { %4855 = vst [vmem:[#allocation3 + $0xa8] sm:$0xff] %v4832_v44  ;;  %4856 = vst [vmem:[#allocation3 + $0xb0] sm:$0xff] %v4810_v34  ;;  %v4943_v17 = vpack.c.bf16 %v4929_v55, %v4928_v37  ;;  %v4944_v26 = vpack.c.bf16 %v4931_v62, %v4930_v7  ;;  %v20840_v31 = vpack.c.bf16 %v4810_v34, %v4832_v44  ;;  %v4877_v32 = vld [vmem:[#allocation3 + $0x8e] sm:$0xff]  ;;  %v4878_v23 = vld [vmem:[#allocation3 + $0x96] sm:$0xff] }
 0x5ab   : > { %v4891_v4 = vpack.c.bf16 %v4877_v32, %v4876_v20  ;;  %v4892_v44 = vpack.c.bf16 %v4879_v11, %v4878_v23  ;;  %v19805_v7 = vld [vmem:[#allocation7 + $0x1c0] sm:$0xff]   ;;  %v19806_v62 = vld [vmem:[#allocation7 + $0x1c8] sm:$0xff]  }
 0x5ac   : > { %17536 = vmatprep.mubr.bf16.mxu1 %v4943_v17  ;;  %17624 = vmatprep.subr.bf16.mxu0 %v19805_v7 }
 0x5ad   : > { %17537 = vmatmul.mubr.bf16.gmra.mrb[80].mxu1 %v4944_v26  ;;  %17625 = vmatpush3.bf16.msra.mxu0 %v19805_v7 }
 0x5ae   : > { %17626 = vmatprep.subr.bf16.mxu0 %v19806_v62 }
 0x5b1   : > { %v4932_v5 = vld [vmem:[#allocation3 + $0xa7] sm:$0xff]  ;;  %v4933_v39 = vld [vmem:[#allocation3 + $0xaf] sm:$0xff]  ;;  %v4934_v53 = vld [vmem:[#allocation3 + $0xb7] sm:$0xff]  ;;  %17627 = vmatpush3.bf16.msra.mxu0 %v19806_v62 }
 0x5b2   : > { %v4945_v49 = vpack.c.bf16 %v4933_v39, %v4932_v5  ;;  %v4946_v60 = vpack.c.bf16 %v4934_v53, %v4934_v53  ;;  %v4881_v25 = vld [vmem:[#allocation3 + $0xae] sm:$0xff]  ;;  %v4882_v37 = vld [vmem:[#allocation3 + $0xb6] sm:$0xff] }
 0x5b3   : > { %v4894_v55 = vpack.c.bf16 %v4882_v37, %v4882_v37 }
 0x5b4   : > { %17540 = vmatprep.mubr.bf16.mxu1 %v4945_v49 }
 0x5b5   : > { %17541 = vmatmul.mubr.bf16.gmra.mrb[84].mxu1 %v4946_v60  ;;  %v20867_v60 = vld [vmem:[%s22022_s2 + $0x2] ss:$0 sm:$0xff] }
 0x5b6   : > { %17560 = vmatprep.mubr.bf16.mxu1 %v4883_v45 }
 0x5bd   : > { %17561 = vmatmul.mubr.bf16.vlgmr.msra.gmra.mrb[64].mxu1 %v4884_v59 }
 0x5be   : > { %17564 = vmatprep.mubr.bf16.mxu1 %v4885_v56  ;;  %17585 = vmatpush3.bf16.msra.mxu1 %v19797_v24  ;;  %v4880_v24 = vld [vmem:[#allocation3 + $0xa6] sm:$0xff] }
 0x5bf   : > { %17586 = vmatprep.subr.bf16.mxu1 %v19798_v46  ;;  %v4893_v34 = vpack.c.bf16 %v4881_v25, %v4880_v24 }
 0x5c2   : > { %17587 = vmatpush3.bf16.msra.mxu1 %v19798_v46 }
 0x5c3   : > { %17588 = vmatprep.subr.bf16.mxu1 %v19799_v30 }
 0x5c5   : > { %17565 = vmatmul.mubr.bf16.gmra.mrb[68].mxu1 %v4886_v33 }
 0x5c6   : > { %17568 = vmatprep.mubr.bf16.mxu1 %v4887_v2  ;;  %17589 = vmatpush3.bf16.msra.mxu1 %v19799_v30 }
 0x5c7   : > { %17590 = vmatprep.subr.bf16.mxu1 %v19800_v51 }
 0x5ca   : > { %17591 = vmatpush3.bf16.msra.mxu1 %v19800_v51 }
 0x5cb   : > { %17592 = vmatprep.subr.bf16.mxu1 %v19801_v12 }
 0x5cd   : > { %17569 = vmatmul.mubr.bf16.gmra.mrb[72].mxu1 %v4888_v8 }
 0x5ce   : > { %17572 = vmatprep.mubr.bf16.mxu1 %v4889_v48  ;;  %17593 = vmatpush3.bf16.msra.mxu1 %v19801_v12 }
 0x5cf   : > { %17594 = vmatprep.subr.bf16.mxu1 %v19802_v61 }
 0x5d2   : > { %17595 = vmatpush3.bf16.msra.mxu1 %v19802_v61 }
 0x5d3   : > { %17596 = vmatprep.subr.bf16.mxu1 %v19803_v13 }
 0x5d5   : > { %17573 = vmatmul.mubr.bf16.gmra.mrb[76].mxu1 %v4890_v36 }
 0x5d6   : > { %17576 = vmatprep.mubr.bf16.mxu1 %v4891_v4  ;;  %17597 = vmatpush3.bf16.msra.mxu1 %v19803_v13 }
 0x5d7   : > { %17598 = vmatprep.subr.bf16.mxu1 %v19804_v22 }
 0x5da   : > { %17599 = vmatpush3.bf16.msra.mxu1 %v19804_v22 }
 0x5dd   : > { %17577 = vmatmul.mubr.bf16.gmra.mrb[80].mxu1 %v4892_v44 }
 0x5de   : > { %17580 = vmatprep.mubr.bf16.mxu1 %v4893_v34  ;;  %v19814_v34 = vld [vmem:[#allocation7 + $0x188] sm:$0xff]  }
 0x5e5   : > { %17581 = vmatmul.mubr.bf16.gmra.mrb[88].mxu1 %v4894_v55 }
 0x5e6   : > { %17600 = vmatprep.mubr.bf16.mxu1 %v20800_v29  ;;  %v5350_v29 = vpack.c.bf16 %v20837_v43, %v20837_v43 }
 0x5ed   : > { %17601 = vmatmul.mubr.bf16.vlgmr.msra.gmra.mrb[64].mxu1 %v20797_v47  ;;  %v19807_v47 = vld [vmem:[#allocation7 + $0x1d0] sm:$0xff]  }
 0x5ee   : > { %17604 = vmatprep.mubr.bf16.mxu1 %v20808_v21  ;;  %17628 = vmatprep.subr.bf16.mxu0 %v19807_v47  ;;  %v19809_v21 = vld [vmem:[#allocation7 + $0x1e0] sm:$0xff]  }
 0x5ef   : > { %17629 = vmatpush3.bf16.msra.mxu0 %v19807_v47 }
 0x5f5   : > { %17605 = vmatmul.mubr.bf16.gmra.mrb[68].mxu1 %v20805_v14  ;;  %v19808_v14 = vld [vmem:[#allocation7 + $0x1d8] sm:$0xff]  }
 0x5f6   : > { %17608 = vmatprep.mubr.bf16.mxu1 %v20815_v27  ;;  %17630 = vmatprep.subr.bf16.mxu0 %v19808_v14  ;;  %v19810_v27 = vld [vmem:[#allocation7 + $0x1e8] sm:$0xff]  }
 0x5f7   : > { %17631 = vmatpush3.bf16.msra.mxu0 %v19808_v14 }
 0x5f8   : > { %17632 = vmatprep.subr.bf16.mxu0 %v19809_v21 }
 0x5fb   : > { %17633 = vmatpush3.bf16.msra.mxu0 %v19809_v21 }
 0x5fc   : > { %17634 = vmatprep.subr.bf16.mxu0 %v19810_v27 }
 0x5fd   : > { %17609 = vmatmul.mubr.bf16.gmra.mrb[72].mxu1 %v20817_v1  ;;  %v19811_v1 = vld [vmem:[#allocation7 + $0x1f0] sm:$0xff]  }
 0x5fe   : > { %17612 = vmatprep.mubr.bf16.mxu1 %v20825_v3  ;;  %v20855_v3 = vld [vmem:[#allocation7 + $0x180] sm:$0xff]  }
 0x5ff   : > { %17635 = vmatpush3.bf16.msra.mxu0 %v19810_v27 }
 0x600   : > { %17636 = vmatprep.subr.bf16.mxu0 %v19811_v1 }
 0x603   : > { %17637 = vmatpush3.bf16.msra.mxu0 %v19811_v1  ;;  %v19815_v1 = vld [vmem:[#allocation7 + $0x190] sm:$0xff]  }
 0x605   : > { %17613 = vmatmul.mubr.bf16.gmra.mrb[76].mxu1 %v20822_v10  ;;  %v19812_v10 = vld [vmem:[#allocation7 + $0x1f8] sm:$0xff]  }
 0x606   : > { %17616 = vmatprep.mubr.bf16.mxu1 %v20835_v42  ;;  %17638 = vmatprep.subr.bf16.mxu0 %v19812_v10 }
 0x607   : > { %17639 = vmatpush3.bf16.msra.mxu0 %v19812_v10 }
 0x608   : > { %17664 = vmatprep.subr.bf16.mxu0 %v20855_v3 }
 0x60d   : > { %17617 = vmatmul.mubr.bf16.gmra.mrb[80].mxu1 %v20830_v35 }
 0x60e   : > { %17620 = vmatprep.mubr.bf16.mxu1 %v20840_v31 }
 0x615   : > { %17621 = vmatmul.mubr.bf16.gmra.mrb[92].mxu1 %v5350_v29 }
 0x688   : > { %v17542_v35 = vpop.f32.mrb[84].mxu1 }
 0x689   : > { %v5126_v42 = vpop.f32.mrb[85].mxu1 }
 0x68a   : > { %v17543_v43 = vpop.f32.mrb[86].mxu1 }
 0x68b   : > { %v5129_v17 = vpop.f32.mrb[87].mxu1 }
 0x6b8   : > { %v17582_v26 = vpop.f32.mrb[88].mxu1 }
 0x6b9   : > { %v20858_v31 = vadd.f32 %v17582_v26, %v17542_v35  ;;  %v5302_v38 = vpop.f32.mrb[89].mxu1  ;;  %v19816_v26 = vld [vmem:[#allocation7 + $0x198] sm:$0xff]  }
 0x6ba   : > { %v20860_v5 = vadd.f32 %v5302_v38, %v5126_v42  ;;  %v17583_v39 = vpop.f32.mrb[90].mxu1 }
 0x6bb   : > { %v5305_v53 = vpop.f32.mrb[91].mxu1 }
 0x6bc   : > { %v20862_v49 = vadd.f32 %v5305_v53, %v5129_v17 }
 0x6c0   : > { %v17602_v58 = vpop.f32.mrb[64].mxu1 }
 0x6c1   : > { %v5575_v45 = vadd.f32 %v17602_v58, %v20867_v60  ;;  %v5450_v0 = vpop.f32.mrb[65].mxu1 }
 0x6c2   : > { %v5573_v9 = vadd.f32 %v20867_v60, %v5450_v0  ;;  %v17603_v40 = vpop.f32.mrb[66].mxu1 }
 0x6c3   : > { %v5598_v59 = vmax.f32 %v5575_v45, 0.0  ;;  %v5576_v63 = vadd.f32 %v17603_v40, %v20867_v60  ;;  %v5453_v46 = vpop.f32.mrb[67].mxu1 }
 0x6c4   : > { %v5596_v56 = vmax.f32 %v5573_v9, 0.0  ;;  %v5574_v30 = vadd.f32 %v20867_v60, %v5453_v46 }
 0x6c5   : > { %v5621_v50 = vmul.f32 0.0, %v5598_v59  ;;  %v5599_v54 = vmax.f32 %v5576_v63, 0.0 }
 0x6c6   : > { %5642 = vst [vmem:[#allocation4 + $0x8] sm:$0xff] %v5596_v56  ;;  %v5597_v16 = vmax.f32 %v5574_v30, 0.0 }
 0x6c7   : > { %5644 = vst [vmem:[#allocation4 + $0x18] sm:$0xff] %v5621_v50  ;;  %5645 = vst [vmem:[#allocation4 + $0x20] sm:$0xff] %v5599_v54  ;;  %v20873_v28 = vpack.c.bf16 %v5599_v54, %v5621_v50 }
 0x6c8   : > { %5643 = vst [vmem:[#allocation4 + $0x10] sm:$0xff] %v5597_v16  ;;  %v17606_v33 = vpop.f32.mrb[68].mxu1  ;;  %v20875_v51 = vpack.c.bf16 %v5597_v16, %v5596_v56 }
 0x6c9   : > { %v5579_v2 = vadd.f32 %v17606_v33, %v20867_v60  ;;  %v5466_v12 = vpop.f32.mrb[69].mxu1 }
 0x6ca   : > { %v5577_v52 = vadd.f32 %v20867_v60, %v5466_v12  ;;  %v17607_v15 = vpop.f32.mrb[70].mxu1 }
 0x6cb   : > { %v5602_v6 = vmax.f32 %v5579_v2, 0.0  ;;  %v5580_v8 = vadd.f32 %v17607_v15, %v20867_v60  ;;  %v5469_v57 = vpop.f32.mrb[71].mxu1  ;;  %v19817_v2 = vld [vmem:[#allocation7 + $0x1a0] sm:$0xff]  }
 0x6cc   : > { %v5600_v61 = vmax.f32 %v5577_v52, 0.0  ;;  %v5578_v48 = vadd.f32 %v20867_v60, %v5469_v57 }
 0x6cd   : > { %5648 = vst [vmem:[#allocation4 + $0x38] sm:$0xff] %v5602_v6  ;;  %v5603_v13 = vmax.f32 %v5580_v8, 0.0  ;;  %v5719_v32 = vld [vmem:[#allocation4 + $0x7] sm:$0xff] }
 0x6ce   : > { %5646 = vst [vmem:[#allocation4 + $0x28] sm:$0xff] %v5600_v61  ;;  %v5601_v41 = vmax.f32 %v5578_v48, 0.0  ;;  %v5722_v19 = vld [vmem:[#allocation4 + $0x1f] sm:$0xff] }
 0x6cf   : > { %5649 = vst [vmem:[#allocation4 + $0x40] sm:$0xff] %v5603_v13  ;;  %v5720_v36 = vld [vmem:[#allocation4 + $0xf] sm:$0xff]  ;;  %v5721_v20 = vld [vmem:[#allocation4 + $0x17] sm:$0xff]  ;;  %v20881_v22 = vpack.c.bf16 %v5603_v13, %v5602_v6 }
 0x6d0   : > { %v5624_v4 = vmul.f32 0.0, %v5601_v41  ;;  %v17610_v23 = vpop.f32.mrb[72].mxu1  ;;  %v5742_v24 = vpack.c.bf16 %v5720_v36, %v5719_v32  ;;  %v5743_v25 = vpack.c.bf16 %v5722_v19, %v5721_v20  ;;  %v19818_v32 = vld [vmem:[#allocation7 + $0x1a8] sm:$0xff]  }
 0x6d1   : > { %v5583_v11 = vadd.f32 %v17610_v23, %v20867_v60  ;;  %v5482_v44 = vpop.f32.mrb[73].mxu1 }
 0x6d2   : > { %5647 = vst [vmem:[#allocation4 + $0x30] sm:$0xff] %v5624_v4  ;;  %v5581_v37 = vadd.f32 %v20867_v60, %v5482_v44  ;;  %v17611_v55 = vpop.f32.mrb[74].mxu1  ;;  %17640 = vmatprep.mubr.bf16.mxu0 %v5742_v24  ;;  %v20885_v7 = vpack.c.bf16 %v5624_v4, %v5600_v61 }
 0x6d3   : > { %v5606_v62 = vmax.f32 %v5583_v11, 0.0  ;;  %v5584_v47 = vadd.f32 %v17611_v55, %v20867_v60  ;;  %v5485_v29 = vpop.f32.mrb[75].mxu1  ;;  %17641 = vmatmul.mubr.bf16.vlgmr.msra.gmra.mrb[88].mxu0 %v5743_v25 }
 0x6d4   : > { %v5604_v14 = vmax.f32 %v5581_v37, 0.0  ;;  %v5582_v21 = vadd.f32 %v20867_v60, %v5485_v29  ;;  %17665 = vmatpush3.bf16.msra.mxu0 %v20855_v3  ;;  %v19819_v37 = vld [vmem:[#allocation7 + $0x1b0] sm:$0xff]  }
 0x6d5   : > { %5652 = vst [vmem:[#allocation4 + $0x58] sm:$0xff] %v5606_v62  ;;  %v5607_v27 = vmax.f32 %v5584_v47, 0.0  ;;  %17666 = vmatprep.subr.bf16.mxu0 %v19814_v34  ;;  %v5723_v17 = vld [vmem:[#allocation4 + $0x27] sm:$0xff] }
 0x6d6   : > { %v5627_v10 = vmul.f32 0.0, %v5604_v14  ;;  %v5605_v35 = vmax.f32 %v5582_v21, 0.0  ;;  %v5726_v45 = vld [vmem:[#allocation4 + $0x3f] sm:$0xff] }
 0x6d7   : > { %v5630_v42 = vmul.f32 0.0, %v5607_v27 }
 0x6d8   : > { %5650 = vst [vmem:[#allocation4 + $0x48] sm:$0xff] %v5627_v10  ;;  %5651 = vst [vmem:[#allocation4 + $0x50] sm:$0xff] %v5605_v35  ;;  %v17614_v43 = vpop.f32.mrb[76].mxu1  ;;  %17667 = vmatpush3.bf16.msra.mxu0 %v19814_v34  ;;  %v20890_v38 = vpack.c.bf16 %v5605_v35, %v5627_v10 }
 0x6d9   : > { %5653 = vst [vmem:[#allocation4 + $0x60] sm:$0xff] %v5630_v42  ;;  %v5587_v39 = vadd.f32 %v17614_v43, %v20867_v60  ;;  %v5498_v53 = vpop.f32.mrb[77].mxu1  ;;  %v5724_v3 = vld [vmem:[#allocation4 + $0x2f] sm:$0xff]  ;;  %v5725_v58 = vld [vmem:[#allocation4 + $0x37] sm:$0xff]  ;;  %17668 = vmatprep.subr.bf16.mxu0 %v19815_v1  ;;  %v20893_v0 = vpack.c.bf16 %v5630_v42, %v5606_v62 }
 0x6da   : > { %v5585_v9 = vadd.f32 %v20867_v60, %v5498_v53  ;;  %v17615_v40 = vpop.f32.mrb[78].mxu1  ;;  %v5744_v59 = vpack.c.bf16 %v5724_v3, %v5723_v17  ;;  %v5745_v63 = vpack.c.bf16 %v5726_v45, %v5725_v58  ;;  %v19820_v43 = vld [vmem:[#allocation7 + $0x1b8] sm:$0xff]  }
 0x6db   : > { %v5610_v46 = vmax.f32 %v5587_v39, 0.0  ;;  %v5588_v56 = vadd.f32 %v17615_v40, %v20867_v60  ;;  %v5501_v30 = vpop.f32.mrb[79].mxu1  ;;  %v19821_v40 = vld [vmem:[#allocation7 + $0x200] sm:$0xff]  }
 0x6dc   : > { %v5608_v50 = vmax.f32 %v5585_v9, 0.0  ;;  %v5586_v54 = vadd.f32 %v20867_v60, %v5501_v30  ;;  %17644 = vmatprep.mubr.bf16.mxu0 %v5744_v59  ;;  %17669 = vmatpush3.bf16.msra.mxu0 %v19815_v1 }
 0x6dd   : > { %v5633_v16 = vmul.f32 0.0, %v5610_v46  ;;  %v5611_v33 = vmax.f32 %v5588_v56, 0.0  ;;  %17645 = vmatmul.mubr.bf16.gmra.mrb[92].mxu0 %v5745_v63  ;;  %17670 = vmatprep.subr.bf16.mxu0 %v19816_v26 }
 0x6de   : > { %5654 = vst [vmem:[#allocation4 + $0x68] sm:$0xff] %v5608_v50  ;;  %v5609_v12 = vmax.f32 %v5586_v54, 0.0 }
 0x6df   : > { %5656 = vst [vmem:[#allocation4 + $0x78] sm:$0xff] %v5633_v16  ;;  %5657 = vst [vmem:[#allocation4 + $0x80] sm:$0xff] %v5611_v33  ;;  %v5727_v52 = vld [vmem:[#allocation4 + $0x47] sm:$0xff]  ;;  %v5728_v15 = vld [vmem:[#allocation4 + $0x4f] sm:$0xff]  ;;  %v20898_v6 = vpack.c.bf16 %v5611_v33, %v5633_v16 }
 0x6e0   : > { %5655 = vst [vmem:[#allocation4 + $0x70] sm:$0xff] %v5609_v12  ;;  %v17618_v8 = vpop.f32.mrb[80].mxu1  ;;  %v5746_v57 = vpack.c.bf16 %v5728_v15, %v5727_v52  ;;  %v5729_v61 = vld [vmem:[#allocation4 + $0x57] sm:$0xff]  ;;  %v5730_v48 = vld [vmem:[#allocation4 + $0x5f] sm:$0xff]  ;;  %17671 = vmatpush3.bf16.msra.mxu0 %v19816_v26  ;;  %v20900_v13 = vpack.c.bf16 %v5609_v12, %v5608_v50 }
 0x6e1   : > { %v5591_v41 = vadd.f32 %v17618_v8, %v20867_v60  ;;  %v5514_v19 = vpop.f32.mrb[81].mxu1  ;;  %17672 = vmatprep.subr.bf16.mxu0 %v19817_v2  ;;  %v5747_v25 = vpack.c.bf16 %v5730_v48, %v5729_v61  ;;  %v5669_v48 = vld [vmem:[#allocation4 + $0x16] sm:$0xff] }
 0x6e2   : > { %v5589_v36 = vadd.f32 %v20867_v60, %v5514_v19  ;;  %v17619_v20 = vpop.f32.mrb[82].mxu1  ;;  %17648 = vmatprep.mubr.bf16.mxu0 %v5746_v57  ;;  %v5667_v57 = vld [vmem:[#allocation4 + $0x6] sm:$0xff]  ;;  %v5672_v19 = vld [vmem:[#allocation4 + $0x2e] sm:$0xff] }
 0x6e3   : > { %v5614_v4 = vmax.f32 %v5591_v41, 0.0  ;;  %v5592_v23 = vadd.f32 %v17619_v20, %v20867_v60  ;;  %v5517_v24 = vpop.f32.mrb[83].mxu1  ;;  %v5670_v41 = vld [vmem:[#allocation4 + $0x1e] sm:$0xff]  ;;  %v19822_v20 = vld [vmem:[#allocation7 + $0x208] sm:$0xff]  }
 0x6e4   : > { %v5612_v11 = vmax.f32 %v5589_v36, 0.0  ;;  %v5590_v44 = vadd.f32 %v20867_v60, %v5517_v24  ;;  %17673 = vmatpush3.bf16.msra.mxu0 %v19817_v2  ;;  %v5668_v2 = vld [vmem:[#allocation4 + $0xe] sm:$0xff]  ;;  %v5671_v36 = vld [vmem:[#allocation4 + $0x26] sm:$0xff]  ;;  %v5673_v24 = vld [vmem:[#allocation4 + $0x36] sm:$0xff] }
 0x6e5   : > { %5660 = vst [vmem:[#allocation4 + $0x98] sm:$0xff] %v5614_v4  ;;  %v5615_v34 = vmax.f32 %v5592_v23, 0.0  ;;  %17649 = vmatmul.mubr.bf16.gmra.mrb[96].mxu0 %v5747_v25  ;;  %17674 = vmatprep.subr.bf16.mxu0 %v19818_v32  ;;  %v5731_v62 = vld [vmem:[#allocation4 + $0x67] sm:$0xff]  ;;  %v5690_v61 = vpack.c.bf16 %v5668_v2, %v5667_v57  ;;  %v19823_v23 = vld [vmem:[#allocation7 + $0x210] sm:$0xff]  }
 0x6e6   : > { %5658 = vst [vmem:[#allocation4 + $0x88] sm:$0xff] %v5612_v11  ;;  %v5613_v55 = vmax.f32 %v5590_v44, 0.0  ;;  %v5734_v10 = vld [vmem:[#allocation4 + $0x7f] sm:$0xff] }
 0x6e7   : > { %5661 = vst [vmem:[#allocation4 + $0xa0] sm:$0xff] %v5615_v34  ;;  %v5732_v47 = vld [vmem:[#allocation4 + $0x6f] sm:$0xff]  ;;  %v20906_v29 = vpack.c.bf16 %v5615_v34, %v5614_v4  ;;  %v5733_v1 = vld [vmem:[#allocation4 + $0x77] sm:$0xff]  ;;  %v5692_v4 = vpack.c.bf16 %v5672_v19, %v5671_v36  ;;  %v5675_v25 = vld [vmem:[#allocation4 + $0x46] sm:$0xff] }
 0x6e8   : > { %v5636_v14 = vmul.f32 0.0, %v5613_v55  ;;  %v17622_v21 = vpop.f32.mrb[92].mxu1  ;;  %v5748_v27 = vpack.c.bf16 %v5732_v47, %v5731_v62  ;;  %17675 = vmatpush3.bf16.msra.mxu0 %v19818_v32  ;;  %v5749_v58 = vpack.c.bf16 %v5734_v10, %v5733_v1  ;;  %v5691_v32 = vpack.c.bf16 %v5670_v41, %v5669_v48  ;;  %v5674_v44 = vld [vmem:[#allocation4 + $0x3e] sm:$0xff]  ;;  %v5677_v47 = vld [vmem:[#allocation4 + $0x56] sm:$0xff]  ;;  %v5679_v1 = vld [vmem:[#allocation4 + $0x66] sm:$0xff] }
 0x6e9   : > { %v5566_v35 = vadd.f32 %v17622_v21, %v20858_v31  ;;  %v5530_v42 = vpop.f32.mrb[93].mxu1  ;;  %17676 = vmatprep.subr.bf16.mxu0 %v19819_v37  ;;  %v5693_v34 = vpack.c.bf16 %v5674_v44, %v5673_v24  ;;  %v19825_v62 = vld [vmem:[#allocation7 + $0x220] sm:$0xff]   ;;  %v5680_v21 = vld [vmem:[#allocation4 + $0x6e] sm:$0xff] }
 0x6ea   : > { %5659 = vst [vmem:[#allocation4 + $0x90] sm:$0xff] %v5636_v14  ;;  %v5564_v17 = vadd.f32 %v5530_v42, %v20860_v5  ;;  %v17623_v26 = vpop.f32.mrb[94].mxu1  ;;  %17652 = vmatprep.mubr.bf16.mxu0 %v5748_v27  ;;  %v20910_v39 = vpack.c.bf16 %v5636_v14, %v5612_v11  ;;  %v5676_v11 = vld [vmem:[#allocation4 + $0x4e] sm:$0xff]  ;;  %v5678_v14 = vld [vmem:[#allocation4 + $0x5e] sm:$0xff] }
 0x6eb   : > { %v5595_v53 = vadd.f32 %v20867_v60, %v5566_v35  ;;  %v5533_v3 = vpop.f32.mrb[95].mxu1  ;;  %v5694_v55 = vpack.c.bf16 %v5676_v11, %v5675_v25  ;;  %v5695_v27 = vpack.c.bf16 %v5678_v14, %v5677_v47  ;;  %v19826_v10 = vld [vmem:[#allocation7 + $0x228] sm:$0xff]   ;;  %v5696_v35 = vpack.c.bf16 %v5680_v21, %v5679_v1  ;;  %v19827_v42 = vld [vmem:[#allocation7 + $0x230] sm:$0xff]  }
 0x6ec   : > { %v5593_v45 = vadd.f32 %v20867_v60, %v5564_v17  ;;  %v5565_v9 = vadd.f32 %v5533_v3, %v20862_v49  ;;  %17677 = vmatpush3.bf16.msra.mxu0 %v19819_v37  ;;  %v19824_v37 = vld [vmem:[#allocation7 + $0x218] sm:$0xff]   ;;  %v6426_v11 = vld [vmem:[#allocation3 + $0x8] sm:$0xff]  ;;  %v6427_v14 = vld [vmem:[#allocation3 + $0x10] sm:$0xff] }
 0x6ed   : > { %v20915_v31 = vmax.f32 %v5595_v53, 0.0  ;;  %17653 = vmatmul.mubr.bf16.gmra.mrb[100].mxu0 %v5749_v58  ;;  %17678 = vmatprep.subr.bf16.mxu0 %v19820_v43  ;;  %v5735_v56 = vld [vmem:[#allocation4 + $0x87] sm:$0xff]  ;;  %v5682_v17 = vld [vmem:[#allocation4 + $0x7e] sm:$0xff] }
 0x6ee   : > { %v5616_v59 = vmax.f32 %v5593_v45, 0.0  ;;  %v5594_v5 = vadd.f32 %v20867_v60, %v5565_v9  ;;  %v5738_v54 = vld [vmem:[#allocation4 + $0x9f] sm:$0xff] }
 0x6ef   : > { %5664 = vst [vmem:[#allocation4 + $0xb8] sm:$0xff] %v20915_v31  ;;  %v5683_v3 = vld [vmem:[#allocation4 + $0x86] sm:$0xff]  ;;  %v19828_v58 = vld [vmem:[#allocation7 + $0x238] sm:$0xff]  }
 0x6f0   : > { %v5639_v63 = vmul.f32 0.0, %v5616_v59  ;;  %v5617_v46 = vmax.f32 %v5594_v5, 0.0  ;;  %17679 = vmatpush3.bf16.msra.mxu0 %v19820_v43  ;;  %v5681_v43 = vld [vmem:[#allocation4 + $0x76] sm:$0xff]  ;;  %v5686_v5 = vld [vmem:[#allocation4 + $0x9e] sm:$0xff] }
 0x6f1   : > { %v5736_v30 = vld [vmem:[#allocation4 + $0x8f] sm:$0xff]  ;;  %v5737_v50 = vld [vmem:[#allocation4 + $0x97] sm:$0xff]  ;;  %17704 = vmatprep.subr.bf16.mxu0 %v19821_v40  ;;  %v5697_v53 = vpack.c.bf16 %v5682_v17, %v5681_v43 }
 0x6f2   : > { %5662 = vst [vmem:[#allocation4 + $0xa8] sm:$0xff] %v5639_v63  ;;  %5663 = vst [vmem:[#allocation4 + $0xb0] sm:$0xff] %v5617_v46  ;;  %v5750_v49 = vpack.c.bf16 %v5736_v30, %v5735_v56  ;;  %v5751_v16 = vpack.c.bf16 %v5738_v54, %v5737_v50  ;;  %v20919_v33 = vpack.c.bf16 %v5617_v46, %v5639_v63  ;;  %v5684_v26 = vld [vmem:[#allocation4 + $0x8e] sm:$0xff]  ;;  %v5685_v9 = vld [vmem:[#allocation4 + $0x96] sm:$0xff] }
 0x6f3   : > { %v5698_v45 = vpack.c.bf16 %v5684_v26, %v5683_v3  ;;  %v5699_v63 = vpack.c.bf16 %v5686_v5, %v5685_v9  ;;  %v19829_v50 = vld [vmem:[#allocation5 + $0x280] sm:$0xff]   ;;  %v19830_v54 = vld [vmem:[#allocation5 + $0x288] sm:$0xff]  }
 0x6f4   : > { %17656 = vmatprep.mubr.bf16.mxu0 %v5750_v49  ;;  %17744 = vmatprep.subr.bf16.mxu1 %v19829_v50 }
 0x6f5   : > { %17657 = vmatmul.mubr.bf16.gmra.mrb[104].mxu0 %v5751_v16  ;;  %17745 = vmatpush3.bf16.msra.mxu1 %v19829_v50 }
 0x6f6   : > { %17746 = vmatprep.subr.bf16.mxu1 %v19830_v54 }
 0x6f9   : > { %v5739_v60 = vld [vmem:[#allocation4 + $0xa7] sm:$0xff]  ;;  %v5740_v12 = vld [vmem:[#allocation4 + $0xaf] sm:$0xff]  ;;  %v5741_v52 = vld [vmem:[#allocation4 + $0xb7] sm:$0xff]  ;;  %17747 = vmatpush3.bf16.msra.mxu1 %v19830_v54 }
 0x6fa   : > { %v5752_v15 = vpack.c.bf16 %v5740_v12, %v5739_v60  ;;  %v5753_v8 = vpack.c.bf16 %v5741_v52, %v5741_v52  ;;  %v5688_v59 = vld [vmem:[#allocation4 + $0xae] sm:$0xff]  ;;  %v5689_v56 = vld [vmem:[#allocation4 + $0xb6] sm:$0xff]  ;;  %v6433_v54 = vld [vmem:[#allocation3 + $0x40] sm:$0xff] }
 0x6fb   : > { %v5701_v30 = vpack.c.bf16 %v5689_v56, %v5689_v56  ;;  %v6430_v56 = vld [vmem:[#allocation3 + $0x28] sm:$0xff] }
 0x6fc   : > { %17660 = vmatprep.mubr.bf16.mxu0 %v5752_v15 }
 0x6fd   : > { %17661 = vmatmul.mubr.bf16.gmra.mrb[108].mxu0 %v5753_v8  ;;  %v20946_v8 = vld [vmem:[%s22024_s4 + $0x2] ss:$0 sm:$0xff] }
 0x6fe   : > { %17680 = vmatprep.mubr.bf16.mxu0 %v5690_v61 }
 0x705   : > { %17681 = vmatmul.mubr.bf16.vlgmr.msra.gmra.mrb[88].mxu0 %v5691_v32 }
 0x706   : > { %17684 = vmatprep.mubr.bf16.mxu0 %v5692_v4  ;;  %17705 = vmatpush3.bf16.msra.mxu0 %v19821_v40  ;;  %v5687_v40 = vld [vmem:[#allocation4 + $0xa6] sm:$0xff]  ;;  %v6428_v4 = vld [vmem:[#allocation3 + $0x18] sm:$0xff] }
 0x707   : > { %17706 = vmatprep.subr.bf16.mxu0 %v19822_v20  ;;  %v5700_v46 = vpack.c.bf16 %v5688_v59, %v5687_v40  ;;  %v6432_v40 = vld [vmem:[#allocation3 + $0x38] sm:$0xff] }
 0x70a   : > { %17707 = vmatpush3.bf16.msra.mxu0 %v19822_v20 }
 0x70b   : > { %17708 = vmatprep.subr.bf16.mxu0 %v19823_v23 }
 0x70d   : > { %17685 = vmatmul.mubr.bf16.gmra.mrb[92].mxu0 %v5693_v34 }
 0x70e   : > { %17688 = vmatprep.mubr.bf16.mxu0 %v5694_v55  ;;  %17709 = vmatpush3.bf16.msra.mxu0 %v19823_v23 }
 0x70f   : > { %17710 = vmatprep.subr.bf16.mxu0 %v19824_v37 }
 0x712   : > { %17711 = vmatpush3.bf16.msra.mxu0 %v19824_v37  ;;  %v6429_v37 = vld [vmem:[#allocation3 + $0x20] sm:$0xff] }
 0x713   : > { %17712 = vmatprep.subr.bf16.mxu0 %v19825_v62 }
 0x715   : > { %17689 = vmatmul.mubr.bf16.gmra.mrb[96].mxu0 %v5695_v27 }
 0x716   : > { %17692 = vmatprep.mubr.bf16.mxu0 %v5696_v35  ;;  %17713 = vmatpush3.bf16.msra.mxu0 %v19825_v62 }
 0x717   : > { %17714 = vmatprep.subr.bf16.mxu0 %v19826_v10 }
 0x71a   : > { %17715 = vmatpush3.bf16.msra.mxu0 %v19826_v10 }
 0x71b   : > { %17716 = vmatprep.subr.bf16.mxu0 %v19827_v42 }
 0x71d   : > { %17693 = vmatmul.mubr.bf16.gmra.mrb[100].mxu0 %v5697_v53 }
 0x71e   : > { %17696 = vmatprep.mubr.bf16.mxu0 %v5698_v45  ;;  %17717 = vmatpush3.bf16.msra.mxu0 %v19827_v42 }
 0x71f   : > { %17718 = vmatprep.subr.bf16.mxu0 %v19828_v58 }
 0x722   : > { %17719 = vmatpush3.bf16.msra.mxu0 %v19828_v58 }
 0x725   : > { %17697 = vmatmul.mubr.bf16.gmra.mrb[104].mxu0 %v5699_v63 }
 0x726   : > { %17700 = vmatprep.mubr.bf16.mxu0 %v5700_v46 }
 0x72d   : > { %17701 = vmatmul.mubr.bf16.gmra.mrb[112].mxu0 %v5701_v30 }
 0x72e   : > { %17720 = vmatprep.mubr.bf16.mxu0 %v20875_v51  ;;  %v6157_v51 = vpack.c.bf16 %v20915_v31, %v20915_v31 }
 0x735   : > { %17721 = vmatmul.mubr.bf16.vlgmr.msra.gmra.mrb[88].mxu0 %v20873_v28  ;;  %v19831_v28 = vld [vmem:[#allocation5 + $0x290] sm:$0xff]  }
 0x736   : > { %17724 = vmatprep.mubr.bf16.mxu0 %v20885_v7  ;;  %17748 = vmatprep.subr.bf16.mxu1 %v19831_v28  ;;  %v19833_v7 = vld [vmem:[#allocation5 + $0x2a0] sm:$0xff]  }
 0x737   : > { %17749 = vmatpush3.bf16.msra.mxu1 %v19831_v28 }
 0x73d   : > { %17725 = vmatmul.mubr.bf16.gmra.mrb[92].mxu0 %v20881_v22  ;;  %v19832_v22 = vld [vmem:[#allocation5 + $0x298] sm:$0xff]  }
 0x73e   : > { %17728 = vmatprep.mubr.bf16.mxu0 %v20890_v38  ;;  %17750 = vmatprep.subr.bf16.mxu1 %v19832_v22  ;;  %v19834_v38 = vld [vmem:[#allocation5 + $0x2a8] sm:$0xff]  }
 0x73f   : > { %17751 = vmatpush3.bf16.msra.mxu1 %v19832_v22 }
 0x740   : > { %17752 = vmatprep.subr.bf16.mxu1 %v19833_v7 }
 0x743   : > { %17753 = vmatpush3.bf16.msra.mxu1 %v19833_v7  ;;  %v6431_v7 = vld [vmem:[#allocation3 + $0x30] sm:$0xff] }
 0x744   : > { %17754 = vmatprep.subr.bf16.mxu1 %v19834_v38 }
 0x745   : > { %17729 = vmatmul.mubr.bf16.gmra.mrb[96].mxu0 %v20893_v0  ;;  %v19835_v0 = vld [vmem:[#allocation5 + $0x2b0] sm:$0xff]  }
 0x746   : > { %17732 = vmatprep.mubr.bf16.mxu0 %v20900_v13  ;;  %v20934_v13 = vld [vmem:[#allocation5 + $0x240] sm:$0xff]  }
 0x747   : > { %17755 = vmatpush3.bf16.msra.mxu1 %v19834_v38 }
 0x748   : > { %17756 = vmatprep.subr.bf16.mxu1 %v19835_v0 }
 0x74b   : > { %17757 = vmatpush3.bf16.msra.mxu1 %v19835_v0 }
 0x74d   : > { %17733 = vmatmul.mubr.bf16.gmra.mrb[100].mxu0 %v20898_v6  ;;  %v19836_v6 = vld [vmem:[#allocation5 + $0x2b8] sm:$0xff]  }
 0x74e   : > { %17736 = vmatprep.mubr.bf16.mxu0 %v20910_v39  ;;  %17758 = vmatprep.subr.bf16.mxu1 %v19836_v6 }
 0x74f   : > { %17759 = vmatpush3.bf16.msra.mxu1 %v19836_v6 }
 0x750   : > { %17784 = vmatprep.subr.bf16.mxu1 %v20934_v13 }
 0x755   : > { %17737 = vmatmul.mubr.bf16.gmra.mrb[104].mxu0 %v20906_v29 }
 0x756   : > { %17740 = vmatprep.mubr.bf16.mxu0 %v20919_v33 }
 0x75d   : > { %17741 = vmatmul.mubr.bf16.gmra.mrb[116].mxu0 %v6157_v51 }
 0x7d0   : > { %v17662_v29 = vpop.f32.mrb[108].mxu0 }
 0x7d1   : > { %v5933_v39 = vpop.f32.mrb[109].mxu0 }
 0x7d2   : > { %v17663_v31 = vpop.f32.mrb[110].mxu0 }
 0x7d3   : > { %v5936_v49 = vpop.f32.mrb[111].mxu0 }
 0x800   : > { %v17702_v16 = vpop.f32.mrb[112].mxu0 }
 0x801   : > { %v20937_v33 = vadd.f32 %v17702_v16, %v17662_v29  ;;  %v6109_v2 = vpop.f32.mrb[113].mxu0 }
 0x802   : > { %v20939_v60 = vadd.f32 %v6109_v2, %v5933_v39  ;;  %v17703_v12 = vpop.f32.mrb[114].mxu0 }
 0x803   : > { %v6112_v52 = vpop.f32.mrb[115].mxu0 }
 0x804   : > { %v20941_v15 = vadd.f32 %v6112_v52, %v5936_v49 }
 0x808   : > { %v17722_v57 = vpop.f32.mrb[88].mxu0 }
 0x809   : > { %v6382_v61 = vadd.f32 %v17722_v57, %v20946_v8  ;;  %v6257_v48 = vpop.f32.mrb[89].mxu0 }
 0x80a   : > { %v6380_v41 = vadd.f32 %v20946_v8, %v6257_v48  ;;  %v17723_v19 = vpop.f32.mrb[90].mxu0 }
 0x80b   : > { %v6405_v32 = vmax.f32 %v6382_v61, 0.0  ;;  %v6383_v36 = vadd.f32 %v17723_v19, %v20946_v8  ;;  %v6260_v20 = vpop.f32.mrb[91].mxu0  ;;  %v20964_v61 = vld [vmem:[#allocation2] sm:$0xff] }
 0x80c   : > { %v6403_v23 = vmax.f32 %v6380_v41, 0.0  ;;  %v6381_v24 = vadd.f32 %v20946_v8, %v6260_v20 }
 0x80d   : > { %v6451_v25 = vadd.f32 %v6428_v4, %v6405_v32  ;;  %v6406_v44 = vmax.f32 %v6383_v36, 0.0 }
 0x80e   : > { %v6449_v34 = vadd.f32 %v6426_v11, %v6403_v23  ;;  %v6404_v55 = vmax.f32 %v6381_v24, 0.0  ;;  %v6436_v24 = vld [vmem:[#allocation3 + $0x58] sm:$0xff] }
 0x80f   : > { %v6474_v62 = vmax.f32 %v6451_v25, 0.0  ;;  %v6452_v47 = vadd.f32 %v6429_v37, %v6406_v44 }
 0x810   : > { %v6472_v21 = vmax.f32 %v6449_v34, 0.0  ;;  %v6450_v27 = vadd.f32 %v6427_v14, %v6404_v55  ;;  %v17726_v1 = vpop.f32.mrb[92].mxu0 }
 0x811   : > { %v6497_v10 = vmul.f32 0.0, %v6474_v62  ;;  %v6475_v35 = vmax.f32 %v6452_v47, 0.0  ;;  %v6386_v42 = vadd.f32 %v17726_v1, %v20946_v8  ;;  %v6273_v43 = vpop.f32.mrb[93].mxu0  ;;  %v6434_v62 = vld [vmem:[#allocation3 + $0x48] sm:$0xff]  ;;  %v6437_v1 = vld [vmem:[#allocation3 + $0x60] sm:$0xff] }
 0x812   : > { %6518 = vst [vmem:[#allocation3 + $0x8] sm:$0xff] %v6472_v21  ;;  %v6473_v17 = vmax.f32 %v6450_v27, 0.0  ;;  %v6384_v26 = vadd.f32 %v20946_v8, %v6273_v43  ;;  %v17727_v53 = vpop.f32.mrb[94].mxu0 }
 0x813   : > { %6520 = vst [vmem:[#allocation3 + $0x18] sm:$0xff] %v6497_v10  ;;  %6521 = vst [vmem:[#allocation3 + $0x20] sm:$0xff] %v6475_v35  ;;  %v6409_v3 = vmax.f32 %v6386_v42, 0.0  ;;  %v6387_v58 = vadd.f32 %v17727_v53, %v20946_v8  ;;  %v6276_v45 = vpop.f32.mrb[95].mxu0  ;;  %v20955_v9 = vpack.c.bf16 %v6475_v35, %v6497_v10 }
 0x814   : > { %6519 = vst [vmem:[#allocation3 + $0x10] sm:$0xff] %v6473_v17  ;;  %v6407_v59 = vmax.f32 %v6384_v26, 0.0  ;;  %v6385_v5 = vadd.f32 %v20946_v8, %v6276_v45  ;;  %v20958_v63 = vpack.c.bf16 %v6473_v17, %v6472_v21  ;;  %v19838_v21 = vld [vmem:[#allocation5 + $0x248] sm:$0xff]   ;;  %v6435_v17 = vld [vmem:[#allocation3 + $0x50] sm:$0xff] }
 0x815   : > { %v6455_v46 = vadd.f32 %v6432_v40, %v6409_v3  ;;  %v6410_v30 = vmax.f32 %v6387_v58, 0.0  ;;  %v19839_v40 = vld [vmem:[#allocation5 + $0x250] sm:$0xff]  }
 0x816   : > { %v6453_v50 = vadd.f32 %v6430_v56, %v6407_v59  ;;  %v6408_v28 = vmax.f32 %v6385_v5, 0.0 }
 0x817   : > { %v6478_v51 = vmax.f32 %v6455_v46, 0.0  ;;  %v6456_v22 = vadd.f32 %v6433_v54, %v6410_v30  ;;  %v6438_v54 = vld [vmem:[#allocation3 + $0x68] sm:$0xff] }
 0x818   : > { %v6476_v38 = vmax.f32 %v6453_v50, 0.0  ;;  %v6454_v0 = vadd.f32 %v6431_v7, %v6408_v28  ;;  %v17730_v6 = vpop.f32.mrb[96].mxu0 }
 0x819   : > { %6524 = vst [vmem:[#allocation3 + $0x38] sm:$0xff] %v6478_v51  ;;  %v6479_v29 = vmax.f32 %v6456_v22, 0.0  ;;  %v6390_v39 = vadd.f32 %v17730_v6, %v20946_v8  ;;  %v6289_v31 = vpop.f32.mrb[97].mxu0  ;;  %v6595_v49 = vld [vmem:[#allocation3 + $0x6] sm:$0xff] }
 0x81a   : > { %v20961_v16 = vld [vmem:[#allocation3 + $0x4] sm:$0xff]  ;;  %6522 = vst [vmem:[#allocation3 + $0x28] sm:$0xff] %v6476_v38  ;;  %v6477_v2 = vmax.f32 %v6454_v0, 0.0  ;;  %v6388_v12 = vadd.f32 %v20946_v8, %v6289_v31  ;;  %v17731_v52 = vpop.f32.mrb[98].mxu0  ;;  %v20975_v37 = vld [vmem:[#allocation3 + $0x1c] sm:$0xff] }
 0x81b   : > { %v6598_v57 = vld [vmem:[#allocation3 + $0x1e] sm:$0xff]  ;;  %8292 = vst [vmem:[#allocation3] sm:$0xff] %v20964_v61  ;;  %6525 = vst [vmem:[#allocation3 + $0x40] sm:$0xff] %v6479_v29  ;;  %v6413_v48 = vmax.f32 %v6390_v39, 0.0  ;;  %v6391_v41 = vadd.f32 %v17731_v52, %v20946_v8  ;;  %v6292_v19 = vpop.f32.mrb[99].mxu0  ;;  %v6596_v32 = vld [vmem:[#allocation3 + $0xe] sm:$0xff]  ;;  %v20970_v4 = vpack.c.bf16 %v6479_v29, %v6478_v51 }
 0x81c   : > { %v6597_v36 = vld [vmem:[#allocation3 + $0x16] sm:$0xff]  ;;  %v20968_v20 = vld [vmem:[#allocation3 + $0xc] sm:$0xff]  ;;  %v6500_v23 = vmul.f32 0.0, %v6477_v2  ;;  %v6411_v25 = vmax.f32 %v6388_v12, 0.0  ;;  %v6389_v11 = vadd.f32 %v20946_v8, %v6292_v19  ;;  %v6618_v44 = vpack.c.bf16 %v6596_v32, %v6595_v49 }
 0x81d   : > { %v20973_v34 = vld [vmem:[#allocation3 + $0x14] sm:$0xff]  ;;  %8293 = vst [vmem:[#allocation3 + $0x8] sm:$0xff] %v20334_v18  ;;  %v6459_v55 = vadd.f32 %v6436_v24, %v6413_v48  ;;  %v6414_v47 = vmax.f32 %v6391_v41, 0.0  ;;  %v6619_v14 = vpack.c.bf16 %v6598_v57, %v6597_v36  ;;  %v6441_v57 = vld [vmem:[#allocation3 + $0x80] sm:$0xff] }
 0x81e   : > { %8295 = vst [vmem:[#allocation3 + $0x18] sm:$0xff] %v20964_v61  ;;  %6523 = vst [vmem:[#allocation3 + $0x30] sm:$0xff] %v6500_v23  ;;  %v6457_v27 = vadd.f32 %v6434_v62, %v6411_v25  ;;  %v6412_v10 = vmax.f32 %v6389_v11, 0.0  ;;  %17760 = vmatprep.mubr.bf16.mxu1 %v6618_v44  ;;  %v20979_v35 = vpack.c.bf16 %v6500_v23, %v6476_v38  ;;  %v19840_v0 = vld [vmem:[#allocation5 + $0x258] sm:$0xff]   ;;  %v6439_v25 = vld [vmem:[#allocation3 + $0x70] sm:$0xff] }
 0x81f   : > { %v6482_v42 = vmax.f32 %v6459_v55, 0.0  ;;  %v6460_v43 = vadd.f32 %v6437_v1, %v6414_v47  ;;  %17761 = vmatmul.mubr.bf16.vlgmr.msra.gmra.mrb[96].mxu1 %v6619_v14 }
 0x820   : > { %v6480_v26 = vmax.f32 %v6457_v27, 0.0  ;;  %v6458_v18 = vadd.f32 %v6435_v17, %v6412_v10  ;;  %v17734_v53 = vpop.f32.mrb[100].mxu0  ;;  %17785 = vmatpush3.bf16.msra.mxu1 %v20934_v13  ;;  %v6440_v13 = vld [vmem:[#allocation3 + $0x78] sm:$0xff]  ;;  %v19841_v27 = vld [vmem:[#allocation5 + $0x260] sm:$0xff]  }
 0x821   : > { %6528 = vst [vmem:[#allocation3 + $0x58] sm:$0xff] %v6482_v42  ;;  %v6483_v3 = vmax.f32 %v6460_v43, 0.0  ;;  %v6394_v58 = vadd.f32 %v17734_v53, %v20946_v8  ;;  %v6305_v45 = vpop.f32.mrb[101].mxu0  ;;  %17786 = vmatprep.subr.bf16.mxu1 %v19838_v21  ;;  %v6599_v38 = vld [vmem:[#allocation3 + $0x26] sm:$0xff]  ;;  %v6444_v10 = vld [vmem:[#allocation3 + $0x98] sm:$0xff] }
 0x822   : > { %v6503_v59 = vmul.f32 0.0, %v6480_v26  ;;  %v6481_v5 = vmax.f32 %v6458_v18, 0.0  ;;  %v6392_v46 = vadd.f32 %v20946_v8, %v6305_v45  ;;  %v17735_v56 = vpop.f32.mrb[102].mxu0  ;;  %v6602_v2 = vld [vmem:[#allocation3 + $0x3e] sm:$0xff] }
 0x823   : > { %v6506_v30 = vmul.f32 0.0, %v6483_v3  ;;  %v6417_v50 = vmax.f32 %v6394_v58, 0.0  ;;  %v6395_v28 = vadd.f32 %v17735_v56, %v20946_v8  ;;  %v6308_v51 = vpop.f32.mrb[103].mxu0 }
 0x824   : > { %6526 = vst [vmem:[#allocation3 + $0x48] sm:$0xff] %v6503_v59  ;;  %6527 = vst [vmem:[#allocation3 + $0x50] sm:$0xff] %v6481_v5  ;;  %v6415_v22 = vmax.f32 %v6392_v46, 0.0  ;;  %v6393_v7 = vadd.f32 %v20946_v8, %v6308_v51  ;;  %17787 = vmatpush3.bf16.msra.mxu1 %v19838_v21  ;;  %v20986_v6 = vpack.c.bf16 %v6481_v5, %v6503_v59 }
 0x825   : > { %6529 = vst [vmem:[#allocation3 + $0x60] sm:$0xff] %v6506_v30  ;;  %v6463_v29 = vadd.f32 %v6440_v13, %v6417_v50  ;;  %v6418_v39 = vmax.f32 %v6395_v28, 0.0  ;;  %v6600_v31 = vld [vmem:[#allocation3 + $0x2e] sm:$0xff]  ;;  %v6601_v49 = vld [vmem:[#allocation3 + $0x36] sm:$0xff]  ;;  %17788 = vmatprep.subr.bf16.mxu1 %v19839_v40  ;;  %v20988_v12 = vpack.c.bf16 %v6506_v30, %v6482_v42 }
 0x826   : > { %v6461_v52 = vadd.f32 %v6438_v54, %v6415_v22  ;;  %v6416_v48 = vmax.f32 %v6393_v7, 0.0  ;;  %v6620_v41 = vpack.c.bf16 %v6600_v31, %v6599_v38  ;;  %v6621_v19 = vpack.c.bf16 %v6602_v2, %v6601_v49  ;;  %v20990_v32 = vld [vmem:[#allocation3 + $0x2c] sm:$0xff]  ;;  %v20992_v36 = vld [vmem:[#allocation3 + $0x34] sm:$0xff]  ;;  %v6445_v7 = vld [vmem:[#allocation3 + $0xa0] sm:$0xff] }
 0x827   : > { %v6486_v23 = vmax.f32 %v6463_v29, 0.0  ;;  %v6464_v24 = vadd.f32 %v6441_v57, %v6418_v39  ;;  %8298 = vst [vmem:[#allocation3 + $0x30] sm:$0xff] %v20964_v61  ;;  %v6442_v28 = vld [vmem:[#allocation3 + $0x88] sm:$0xff]  ;;  %v19843_v57 = vld [vmem:[#allocation5 + $0x270] sm:$0xff]  }
 0x828   : > { %v6484_v11 = vmax.f32 %v6461_v52, 0.0  ;;  %v6462_v44 = vadd.f32 %v6439_v25, %v6416_v48  ;;  %v17738_v55 = vpop.f32.mrb[104].mxu0  ;;  %17764 = vmatprep.mubr.bf16.mxu1 %v6620_v41  ;;  %17789 = vmatpush3.bf16.msra.mxu1 %v19839_v40  ;;  %v19842_v13 = vld [vmem:[#allocation5 + $0x268] sm:$0xff]  }
 0x829   : > { %v6509_v62 = vmul.f32 0.0, %v6486_v23  ;;  %v6487_v47 = vmax.f32 %v6464_v24, 0.0  ;;  %v6398_v14 = vadd.f32 %v17738_v55, %v20946_v8  ;;  %v6321_v21 = vpop.f32.mrb[105].mxu0  ;;  %17765 = vmatmul.mubr.bf16.gmra.mrb[100].mxu1 %v6621_v19  ;;  %17790 = vmatprep.subr.bf16.mxu1 %v19840_v0 }
 0x82a   : > { %6530 = vst [vmem:[#allocation3 + $0x68] sm:$0xff] %v6484_v11  ;;  %v6485_v1 = vmax.f32 %v6462_v44, 0.0  ;;  %v6396_v42 = vadd.f32 %v20946_v8, %v6321_v21  ;;  %v17739_v43 = vpop.f32.mrb[106].mxu0 }
 0x82b   : > { %6532 = vst [vmem:[#allocation3 + $0x78] sm:$0xff] %v6509_v62  ;;  %6533 = vst [vmem:[#allocation3 + $0x80] sm:$0xff] %v6487_v47  ;;  %v6421_v17 = vmax.f32 %v6398_v14, 0.0  ;;  %v6399_v26 = vadd.f32 %v17739_v43, %v20946_v8  ;;  %v6324_v18 = vpop.f32.mrb[107].mxu0  ;;  %v6603_v53 = vld [vmem:[#allocation3 + $0x46] sm:$0xff]  ;;  %v6604_v3 = vld [vmem:[#allocation3 + $0x4e] sm:$0xff]  ;;  %v20998_v45 = vpack.c.bf16 %v6487_v47, %v6509_v62 }
 0x82c   : > { %v6605_v58 = vld [vmem:[#allocation3 + $0x56] sm:$0xff]  ;;  %6531 = vst [vmem:[#allocation3 + $0x70] sm:$0xff] %v6485_v1  ;;  %v6419_v40 = vmax.f32 %v6396_v42, 0.0  ;;  %v6397_v59 = vadd.f32 %v20946_v8, %v6324_v18  ;;  %v6622_v5 = vpack.c.bf16 %v6604_v3, %v6603_v53  ;;  %v6606_v46 = vld [vmem:[#allocation3 + $0x5e] sm:$0xff]  ;;  %17791 = vmatpush3.bf16.msra.mxu1 %v19840_v0  ;;  %v21003_v30 = vld [vmem:[#allocation3 + $0x4c] sm:$0xff]  ;;  %v21005_v50 = vpack.c.bf16 %v6485_v1, %v6484_v11 }
 0x82d   : > { %v21001_v56 = vld [vmem:[#allocation3 + $0x44] sm:$0xff]  ;;  %v6467_v54 = vadd.f32 %v6444_v10, %v6421_v17  ;;  %v6422_v51 = vmax.f32 %v6399_v26, 0.0  ;;  %17792 = vmatprep.subr.bf16.mxu1 %v19841_v27  ;;  %v6443_v0 = vld [vmem:[#allocation3 + $0x90] sm:$0xff]  ;;  %v6623_v31 = vpack.c.bf16 %v6606_v46, %v6605_v58  ;;  %v21009_v24 = vld [vmem:[#allocation3 + $0x5c] sm:$0xff] }
 0x82e   : > { %8301 = vst [vmem:[#allocation3 + $0x48] sm:$0xff] %v20964_v61  ;;  %v6465_v22 = vadd.f32 %v6442_v28, %v6419_v40  ;;  %v6420_v38 = vmax.f32 %v6397_v59, 0.0  ;;  %17768 = vmatprep.mubr.bf16.mxu1 %v6622_v5  ;;  %v19844_v18 = vld [vmem:[#allocation5 + $0x278] sm:$0xff]   ;;  %v6446_v59 = vld [vmem:[#allocation3 + $0xa8] sm:$0xff] }
 0x82f   : > { %v6490_v29 = vmax.f32 %v6467_v54, 0.0  ;;  %v6468_v39 = vadd.f32 %v6445_v7, %v6422_v51  ;;  %v6448_v53 = vld [vmem:[#allocation3 + $0xb8] sm:$0xff]  ;;  %v6447_v51 = vld [vmem:[#allocation3 + $0xb0] sm:$0xff] }
 0x830   : > { %v6488_v49 = vmax.f32 %v6465_v22, 0.0  ;;  %v6466_v2 = vadd.f32 %v6443_v0, %v6420_v38  ;;  %v17742_v52 = vpop.f32.mrb[116].mxu0  ;;  %17793 = vmatpush3.bf16.msra.mxu1 %v19841_v27 }
 0x831   : > { %6536 = vst [vmem:[#allocation3 + $0x98] sm:$0xff] %v6490_v29  ;;  %v6491_v48 = vmax.f32 %v6468_v39, 0.0  ;;  %v6373_v41 = vadd.f32 %v17742_v52, %v20937_v33  ;;  %v6337_v19 = vpop.f32.mrb[117].mxu0  ;;  %17769 = vmatmul.mubr.bf16.gmra.mrb[104].mxu1 %v6623_v31  ;;  %v6607_v23 = vld [vmem:[#allocation3 + $0x66] sm:$0xff]  ;;  %17794 = vmatprep.subr.bf16.mxu1 %v19842_v13 }
 0x832   : > { %v21011_v25 = vld [vmem:[#allocation3 + $0x64] sm:$0xff]  ;;  %6534 = vst [vmem:[#allocation3 + $0x88] sm:$0xff] %v6488_v49  ;;  %v6489_v11 = vmax.f32 %v6466_v2, 0.0  ;;  %v6371_v44 = vadd.f32 %v6337_v19, %v20939_v60  ;;  %v17743_v55 = vpop.f32.mrb[118].mxu0  ;;  %v21022_v17 = vld [vmem:[#allocation3 + $0x7c] sm:$0xff] }
 0x833   : > { %8304 = vst [vmem:[#allocation3 + $0x60] sm:$0xff] %v20964_v61  ;;  %6537 = vst [vmem:[#allocation3 + $0xa0] sm:$0xff] %v6491_v48  ;;  %v6402_v62 = vadd.f32 %v20946_v8, %v6373_v41  ;;  %v6340_v47 = vpop.f32.mrb[119].mxu0  ;;  %v6608_v33 = vld [vmem:[#allocation3 + $0x6e] sm:$0xff]  ;;  %v6610_v14 = vld [vmem:[#allocation3 + $0x7e] sm:$0xff]  ;;  %v21016_v21 = vpack.c.bf16 %v6491_v48, %v6490_v29 }
 0x834   : > { %v6512_v27 = vmul.f32 0.0, %v6489_v11  ;;  %v6400_v1 = vadd.f32 %v20946_v8, %v6371_v44  ;;  %v6372_v10 = vadd.f32 %v6340_v47, %v20941_v15  ;;  %v6624_v42 = vpack.c.bf16 %v6608_v33, %v6607_v23  ;;  %v6609_v43 = vld [vmem:[#allocation3 + $0x76] sm:$0xff]  ;;  %17795 = vmatpush3.bf16.msra.mxu1 %v19842_v13  ;;  %v19845_v13 = vld [vmem:[#allocation5 + $0x2c0] sm:$0xff]  }
 0x835   : > { %v21020_v60 = vld [vmem:[#allocation3 + $0x74] sm:$0xff]  ;;  %v6425_v26 = vmax.f32 %v6402_v62, 0.0  ;;  %17796 = vmatprep.subr.bf16.mxu1 %v19843_v57  ;;  %v6625_v5 = vpack.c.bf16 %v6610_v14, %v6609_v43  ;;  %v6566_v47 = vpack.c.bf16 %v20968_v20, %v20961_v16  ;;  %v6567_v33 = vpack.c.bf16 %v20975_v37, %v20973_v34  ;;  %v6547_v14 = vld [vmem:[#allocation3 + $0x24] sm:$0xff] }
 0x836   : > { %8307 = vst [vmem:[#allocation3 + $0x78] sm:$0xff] %v20964_v61  ;;  %6535 = vst [vmem:[#allocation3 + $0x90] sm:$0xff] %v6512_v27  ;;  %v6423_v3 = vmax.f32 %v6400_v1, 0.0  ;;  %v6401_v58 = vadd.f32 %v20946_v8, %v6372_v10  ;;  %17772 = vmatprep.mubr.bf16.mxu1 %v6624_v42  ;;  %v21026_v40 = vpack.c.bf16 %v6512_v27, %v6488_v49  ;;  %v19846_v27 = vld [vmem:[#allocation5 + $0x2c8] sm:$0xff]   ;;  %v19847_v10 = vld [vmem:[#allocation5 + $0x2d0] sm:$0xff]  }
 0x837   : > { %v6471_v15 = vadd.f32 %v6448_v53, %v6425_v26  ;;  %v6568_v1 = vpack.c.bf16 %v20990_v32, %v6547_v14  ;;  %v19848_v16 = vld [vmem:[#allocation5 + $0x2d8] sm:$0xff]   ;;  %v6570_v20 = vpack.c.bf16 %v21003_v30, %v21001_v56  ;;  %v19849_v34 = vld [vmem:[#allocation5 + $0x2e0] sm:$0xff]   ;;  %v6556_v32 = vld [vmem:[#allocation3 + $0x6c] sm:$0xff]  ;;  %v6573_v56 = vpack.c.bf16 %v21022_v17, %v21020_v60 }
 0x838   : > { %v6469_v46 = vadd.f32 %v6446_v59, %v6423_v3  ;;  %v6424_v54 = vmax.f32 %v6401_v58, 0.0  ;;  %17797 = vmatpush3.bf16.msra.mxu1 %v19843_v57  ;;  %v6553_v37 = vld [vmem:[#allocation3 + $0x54] sm:$0xff]  ;;  %v19850_v26 = vld [vmem:[#allocation5 + $0x2e8] sm:$0xff]   ;;  %v19853_v60 = vld [vmem:[#allocation7 + $0x280] sm:$0xff]  }
 0x839   : > { %v21028_v28 = vmax.f32 %v6471_v15, 0.0  ;;  %17773 = vmatmul.mubr.bf16.gmra.mrb[108].mxu1 %v6625_v5  ;;  %17798 = vmatprep.subr.bf16.mxu1 %v19844_v18  ;;  %v6611_v29 = vld [vmem:[#allocation3 + $0x86] sm:$0xff]  ;;  %v6571_v43 = vpack.c.bf16 %v21009_v24, %v6553_v37  ;;  %v19852_v53 = vld [vmem:[#allocation5 + $0x2f8] sm:$0xff]  }
 0x83a   : > { %v6492_v22 = vmax.f32 %v6469_v46, 0.0  ;;  %v6470_v7 = vadd.f32 %v6447_v51, %v6424_v54  ;;  %v6614_v31 = vld [vmem:[#allocation3 + $0x9e] sm:$0xff]  ;;  %v19854_v17 = vld [vmem:[#allocation7 + $0x288] sm:$0xff]   ;;  %17864 = vmatprep.subr.bf16.mxu0 %v19853_v60 }
 0x83b   : > { %6540 = vst [vmem:[#allocation3 + $0xb8] sm:$0xff] %v21028_v28  ;;  %v6559_v30 = vld [vmem:[#allocation3 + $0x84] sm:$0xff]  ;;  %v6562_v24 = vld [vmem:[#allocation3 + $0x9c] sm:$0xff]  ;;  %17865 = vmatpush3.bf16.msra.mxu0 %v19853_v60 }
 0x83c   : > { %v6515_v8 = vmul.f32 0.0, %v6492_v22  ;;  %v6493_v38 = vmax.f32 %v6470_v7, 0.0  ;;  %17799 = vmatpush3.bf16.msra.mxu1 %v19844_v18  ;;  %v6572_v18 = vpack.c.bf16 %v6556_v32, %v21011_v25  ;;  %17866 = vmatprep.subr.bf16.mxu0 %v19854_v17 }
 0x83d   : > { %v6612_v39 = vld [vmem:[#allocation3 + $0x8e] sm:$0xff]  ;;  %v6613_v0 = vld [vmem:[#allocation3 + $0x96] sm:$0xff]  ;;  %17824 = vmatprep.subr.bf16.mxu1 %v19845_v13 }
 0x83e   : > { %6538 = vst [vmem:[#allocation3 + $0xa8] sm:$0xff] %v6515_v8  ;;  %6539 = vst [vmem:[#allocation3 + $0xb0] sm:$0xff] %v6493_v38  ;;  %v6626_v49 = vpack.c.bf16 %v6612_v39, %v6611_v29  ;;  %v6627_v2 = vpack.c.bf16 %v6614_v31, %v6613_v0  ;;  %v6560_v52 = vld [vmem:[#allocation3 + $0x8c] sm:$0xff]  ;;  %v21031_v57 = vld [vmem:[#allocation3 + $0x94] sm:$0xff]  ;;  %v21033_v48 = vpack.c.bf16 %v6493_v38, %v6515_v8 }
 0x83f   : > { %8310 = vst [vmem:[#allocation3 + $0x90] sm:$0xff] %v20964_v61  ;;  %v6574_v3 = vpack.c.bf16 %v6560_v52, %v6559_v30  ;;  %v6575_v25 = vpack.c.bf16 %v6562_v24, %v21031_v57  ;;  %17867 = vmatpush3.bf16.msra.mxu0 %v19854_v17  ;;  %v21075_v38 = vld [vmem:[%s22022_s2 + $0x3] ss:$0 sm:$0xff] }
 0x840   : > { %17776 = vmatprep.mubr.bf16.mxu1 %v6626_v49 }
 0x841   : > { %17777 = vmatmul.mubr.bf16.gmra.mrb[112].mxu1 %v6627_v2 }
 0x845   : > { %v6615_v41 = vld [vmem:[#allocation3 + $0xa6] sm:$0xff]  ;;  %v6616_v19 = vld [vmem:[#allocation3 + $0xae] sm:$0xff]  ;;  %v6617_v23 = vld [vmem:[#allocation3 + $0xb6] sm:$0xff] }
 0x846   : > { %v6628_v11 = vpack.c.bf16 %v6616_v19, %v6615_v41  ;;  %v6629_v44 = vpack.c.bf16 %v6617_v23, %v6617_v23  ;;  %v6563_v55 = vld [vmem:[#allocation3 + $0xa4] sm:$0xff]  ;;  %v6564_v62 = vld [vmem:[#allocation3 + $0xac] sm:$0xff]  ;;  %v6565_v15 = vld [vmem:[#allocation3 + $0xb4] sm:$0xff] }
 0x847   : > { %8313 = vst [vmem:[#allocation3 + $0xa8] sm:$0xff] %v20964_v61  ;;  %v6550_v61 = vld [vmem:[#allocation3 + $0x3c] sm:$0xff]  ;;  %v6576_v58 = vpack.c.bf16 %v6564_v62, %v6563_v55  ;;  %v6577_v59 = vpack.c.bf16 %v6565_v15, %v6565_v15 }
 0x848   : > { %17780 = vmatprep.mubr.bf16.mxu1 %v6628_v11  ;;  %v6569_v42 = vpack.c.bf16 %v6550_v61, %v20992_v36  ;;  %v19851_v36 = vld [vmem:[#allocation5 + $0x2f0] sm:$0xff]  }
 0x849   : > { %17781 = vmatmul.mubr.bf16.gmra.mrb[116].mxu1 %v6629_v44 }
 0x84a   : > { %17800 = vmatprep.mubr.bf16.mxu1 %v6566_v47 }
 0x851   : > { %17801 = vmatmul.mubr.bf16.vlgmr.msra.gmra.mrb[96].mxu1 %v6567_v33 }
 0x852   : > { %17804 = vmatprep.mubr.bf16.mxu1 %v6568_v1  ;;  %17825 = vmatpush3.bf16.msra.mxu1 %v19845_v13 }
 0x853   : > { %17826 = vmatprep.subr.bf16.mxu1 %v19846_v27 }
 0x856   : > { %17827 = vmatpush3.bf16.msra.mxu1 %v19846_v27 }
 0x857   : > { %17828 = vmatprep.subr.bf16.mxu1 %v19847_v10 }
 0x859   : > { %17805 = vmatmul.mubr.bf16.gmra.mrb[100].mxu1 %v6569_v42 }
 0x85a   : > { %17808 = vmatprep.mubr.bf16.mxu1 %v6570_v20  ;;  %17829 = vmatpush3.bf16.msra.mxu1 %v19847_v10 }
 0x85b   : > { %17830 = vmatprep.subr.bf16.mxu1 %v19848_v16 }
 0x85e   : > { %17831 = vmatpush3.bf16.msra.mxu1 %v19848_v16 }
 0x85f   : > { %17832 = vmatprep.subr.bf16.mxu1 %v19849_v34 }
 0x861   : > { %17809 = vmatmul.mubr.bf16.gmra.mrb[104].mxu1 %v6571_v43 }
 0x862   : > { %17812 = vmatprep.mubr.bf16.mxu1 %v6572_v18  ;;  %17833 = vmatpush3.bf16.msra.mxu1 %v19849_v34 }
 0x863   : > { %17834 = vmatprep.subr.bf16.mxu1 %v19850_v26 }
 0x866   : > { %17835 = vmatpush3.bf16.msra.mxu1 %v19850_v26 }
 0x867   : > { %17836 = vmatprep.subr.bf16.mxu1 %v19851_v36 }
 0x869   : > { %17813 = vmatmul.mubr.bf16.gmra.mrb[108].mxu1 %v6573_v56 }
 0x86a   : > { %17816 = vmatprep.mubr.bf16.mxu1 %v6574_v3  ;;  %17837 = vmatpush3.bf16.msra.mxu1 %v19851_v36 }
 0x86b   : > { %17838 = vmatprep.subr.bf16.mxu1 %v19852_v53 }
 0x86e   : > { %17839 = vmatpush3.bf16.msra.mxu1 %v19852_v53 }
 0x871   : > { %17817 = vmatmul.mubr.bf16.gmra.mrb[112].mxu1 %v6575_v25  ;;  %v19862_v25 = vld [vmem:[#allocation7 + $0x248] sm:$0xff]  }
 0x872   : > { %17820 = vmatprep.mubr.bf16.mxu1 %v6576_v58 }
 0x879   : > { %17821 = vmatmul.mubr.bf16.gmra.mrb[120].mxu1 %v6577_v59 }
 0x87a   : > { %17840 = vmatprep.mubr.bf16.mxu1 %v20958_v63  ;;  %v7033_v63 = vpack.c.bf16 %v21028_v28, %v21028_v28 }
 0x881   : > { %17841 = vmatmul.mubr.bf16.vlgmr.msra.gmra.mrb[96].mxu1 %v20955_v9  ;;  %v19855_v9 = vld [vmem:[#allocation7 + $0x290] sm:$0xff]  }
 0x882   : > { %17844 = vmatprep.mubr.bf16.mxu1 %v20979_v35  ;;  %17868 = vmatprep.subr.bf16.mxu0 %v19855_v9  ;;  %v19857_v35 = vld [vmem:[#allocation7 + $0x2a0] sm:$0xff]  }
 0x883   : > { %17869 = vmatpush3.bf16.msra.mxu0 %v19855_v9 }
 0x889   : > { %17845 = vmatmul.mubr.bf16.gmra.mrb[100].mxu1 %v20970_v4  ;;  %v19856_v4 = vld [vmem:[#allocation7 + $0x298] sm:$0xff]  }
 0x88a   : > { %17848 = vmatprep.mubr.bf16.mxu1 %v20986_v6  ;;  %17870 = vmatprep.subr.bf16.mxu0 %v19856_v4  ;;  %v19858_v6 = vld [vmem:[#allocation7 + $0x2a8] sm:$0xff]  }
 0x88b   : > { %17871 = vmatpush3.bf16.msra.mxu0 %v19856_v4 }
 0x88c   : > { %17872 = vmatprep.subr.bf16.mxu0 %v19857_v35 }
 0x88f   : > { %17873 = vmatpush3.bf16.msra.mxu0 %v19857_v35 }
 0x890   : > { %17874 = vmatprep.subr.bf16.mxu0 %v19858_v6 }
 0x891   : > { %17849 = vmatmul.mubr.bf16.gmra.mrb[104].mxu1 %v20988_v12  ;;  %v19859_v12 = vld [vmem:[#allocation7 + $0x2b0] sm:$0xff]  }
 0x892   : > { %17852 = vmatprep.mubr.bf16.mxu1 %v21005_v50  ;;  %v21063_v50 = vld [vmem:[#allocation7 + $0x240] sm:$0xff]  }
 0x893   : > { %17875 = vmatpush3.bf16.msra.mxu0 %v19858_v6  ;;  %v19863_v6 = vld [vmem:[#allocation7 + $0x250] sm:$0xff]  }
 0x894   : > { %17876 = vmatprep.subr.bf16.mxu0 %v19859_v12 }
 0x897   : > { %17877 = vmatpush3.bf16.msra.mxu0 %v19859_v12 }
 0x899   : > { %17853 = vmatmul.mubr.bf16.gmra.mrb[108].mxu1 %v20998_v45  ;;  %v19860_v45 = vld [vmem:[#allocation7 + $0x2b8] sm:$0xff]  }
 0x89a   : > { %17856 = vmatprep.mubr.bf16.mxu1 %v21026_v40  ;;  %17878 = vmatprep.subr.bf16.mxu0 %v19860_v45 }
 0x89b   : > { %17879 = vmatpush3.bf16.msra.mxu0 %v19860_v45 }
 0x89c   : > { %17904 = vmatprep.subr.bf16.mxu0 %v21063_v50 }
 0x8a1   : > { %17857 = vmatmul.mubr.bf16.gmra.mrb[112].mxu1 %v21016_v21 }
 0x8a2   : > { %17860 = vmatprep.mubr.bf16.mxu1 %v21033_v48 }
 0x8a9   : > { %17861 = vmatmul.mubr.bf16.gmra.mrb[124].mxu1 %v7033_v63 }
 0x91c   : > { %v17782_v21 = vpop.f32.mrb[116].mxu1 }
 0x91d   : > { %v6809_v40 = vpop.f32.mrb[117].mxu1 }
 0x91e   : > { %v17783_v5 = vpop.f32.mrb[118].mxu1 }
 0x91f   : > { %v6812_v46 = vpop.f32.mrb[119].mxu1 }
 0x94c   : > { %v17822_v54 = vpop.f32.mrb[120].mxu1 }
 0x94d   : > { %v21066_v28 = vadd.f32 %v17822_v54, %v17782_v21  ;;  %v6985_v51 = vpop.f32.mrb[121].mxu1 }
 0x94e   : > { %v21068_v13 = vadd.f32 %v6985_v51, %v6809_v40  ;;  %v17823_v22 = vpop.f32.mrb[122].mxu1 }
 0x94f   : > { %v6988_v7 = vpop.f32.mrb[123].mxu1 }
 0x950   : > { %v21070_v8 = vadd.f32 %v6988_v7, %v6812_v46  ;;  %v19864_v46 = vld [vmem:[#allocation7 + $0x258] sm:$0xff]  }
 0x954   : > { %v17842_v29 = vpop.f32.mrb[96].mxu1 }
 0x955   : > { %v7258_v39 = vadd.f32 %v17842_v29, %v21075_v38  ;;  %v7133_v0 = vpop.f32.mrb[97].mxu1 }
 0x956   : > { %v7256_v31 = vadd.f32 %v21075_v38, %v7133_v0  ;;  %v17843_v49 = vpop.f32.mrb[98].mxu1 }
 0x957   : > { %v7281_v2 = vmax.f32 %v7258_v39, 0.0  ;;  %v7259_v52 = vadd.f32 %v17843_v49, %v21075_v38  ;;  %v7136_v57 = vpop.f32.mrb[99].mxu1 }
 0x958   : > { %v7279_v48 = vmax.f32 %v7256_v31, 0.0  ;;  %v7257_v41 = vadd.f32 %v21075_v38, %v7136_v57 }
 0x959   : > { %v7304_v19 = vmul.f32 0.0, %v7281_v2  ;;  %v7282_v23 = vmax.f32 %v7259_v52, 0.0 }
 0x95a   : > { %7325 = vst [vmem:[#allocation4 + $0x8] sm:$0xff] %v7279_v48  ;;  %v7280_v11 = vmax.f32 %v7257_v41, 0.0 }
 0x95b   : > { %7327 = vst [vmem:[#allocation4 + $0x18] sm:$0xff] %v7304_v19  ;;  %7328 = vst [vmem:[#allocation4 + $0x20] sm:$0xff] %v7282_v23  ;;  %v21081_v44 = vpack.c.bf16 %v7282_v23, %v7304_v19 }
 0x95c   : > { %7326 = vst [vmem:[#allocation4 + $0x10] sm:$0xff] %v7280_v11  ;;  %v17846_v55 = vpop.f32.mrb[100].mxu1  ;;  %v21083_v62 = vpack.c.bf16 %v7280_v11, %v7279_v48 }
 0x95d   : > { %v7262_v47 = vadd.f32 %v17846_v55, %v21075_v38  ;;  %v7149_v33 = vpop.f32.mrb[101].mxu1  ;;  %v19865_v55 = vld [vmem:[#allocation7 + $0x260] sm:$0xff]  }
 0x95e   : > { %v7260_v14 = vadd.f32 %v21075_v38, %v7149_v33  ;;  %v17847_v27 = vpop.f32.mrb[102].mxu1 }
 0x95f   : > { %v7285_v1 = vmax.f32 %v7262_v47, 0.0  ;;  %v7263_v10 = vadd.f32 %v17847_v27, %v21075_v38  ;;  %v7152_v61 = vpop.f32.mrb[103].mxu1 }
 0x960   : > { %v7283_v42 = vmax.f32 %v7260_v14, 0.0  ;;  %v7261_v16 = vadd.f32 %v21075_v38, %v7152_v61 }
 0x961   : > { %7331 = vst [vmem:[#allocation4 + $0x38] sm:$0xff] %v7285_v1  ;;  %v7286_v20 = vmax.f32 %v7263_v10, 0.0  ;;  %v7402_v32 = vld [vmem:[#allocation4 + $0x6] sm:$0xff] }
 0x962   : > { %7329 = vst [vmem:[#allocation4 + $0x28] sm:$0xff] %v7283_v42  ;;  %v7284_v34 = vmax.f32 %v7261_v16, 0.0  ;;  %v7405_v37 = vld [vmem:[#allocation4 + $0x1e] sm:$0xff] }
 0x963   : > { %7332 = vst [vmem:[#allocation4 + $0x40] sm:$0xff] %v7286_v20  ;;  %v7403_v43 = vld [vmem:[#allocation4 + $0xe] sm:$0xff]  ;;  %v7404_v26 = vld [vmem:[#allocation4 + $0x16] sm:$0xff]  ;;  %v21089_v18 = vpack.c.bf16 %v7286_v20, %v7285_v1 }
 0x964   : > { %v7307_v36 = vmul.f32 0.0, %v7284_v34  ;;  %v17850_v56 = vpop.f32.mrb[104].mxu1  ;;  %v7425_v30 = vpack.c.bf16 %v7403_v43, %v7402_v32  ;;  %v7426_v53 = vpack.c.bf16 %v7405_v37, %v7404_v26  ;;  %v19866_v37 = vld [vmem:[#allocation7 + $0x268] sm:$0xff]  }
 0x965   : > { %v7266_v3 = vadd.f32 %v17850_v56, %v21075_v38  ;;  %v7165_v24 = vpop.f32.mrb[105].mxu1 }
 0x966   : > { %7330 = vst [vmem:[#allocation4 + $0x30] sm:$0xff] %v7307_v36  ;;  %v7264_v58 = vadd.f32 %v21075_v38, %v7165_v24  ;;  %v17851_v15 = vpop.f32.mrb[106].mxu1  ;;  %17880 = vmatprep.mubr.bf16.mxu0 %v7425_v30  ;;  %v21093_v59 = vpack.c.bf16 %v7307_v36, %v7283_v42 }
 0x967   : > { %v7289_v60 = vmax.f32 %v7266_v3, 0.0  ;;  %v7267_v17 = vadd.f32 %v17851_v15, %v21075_v38  ;;  %v7168_v9 = vpop.f32.mrb[107].mxu1  ;;  %17881 = vmatmul.mubr.bf16.vlgmr.msra.gmra.mrb[120].mxu0 %v7426_v53 }
 0x968   : > { %v7287_v63 = vmax.f32 %v7264_v58, 0.0  ;;  %v7265_v4 = vadd.f32 %v21075_v38, %v7168_v9  ;;  %17905 = vmatpush3.bf16.msra.mxu0 %v21063_v50 }
 0x969   : > { %7335 = vst [vmem:[#allocation4 + $0x58] sm:$0xff] %v7289_v60  ;;  %v7290_v35 = vmax.f32 %v7267_v17, 0.0  ;;  %17906 = vmatprep.subr.bf16.mxu0 %v19862_v25  ;;  %v7406_v5 = vld [vmem:[#allocation4 + $0x26] sm:$0xff] }
 0x96a   : > { %v7310_v12 = vmul.f32 0.0, %v7287_v63  ;;  %v7288_v45 = vmax.f32 %v7265_v4, 0.0  ;;  %v7409_v29 = vld [vmem:[#allocation4 + $0x3e] sm:$0xff] }
 0x96b   : > { %v7313_v21 = vmul.f32 0.0, %v7290_v35 }
 0x96c   : > { %7333 = vst [vmem:[#allocation4 + $0x48] sm:$0xff] %v7310_v12  ;;  %7334 = vst [vmem:[#allocation4 + $0x50] sm:$0xff] %v7288_v45  ;;  %v17854_v40 = vpop.f32.mrb[108].mxu1  ;;  %17907 = vmatpush3.bf16.msra.mxu0 %v19862_v25  ;;  %v21098_v54 = vpack.c.bf16 %v7288_v45, %v7310_v12  ;;  %v19867_v25 = vld [vmem:[#allocation7 + $0x270] sm:$0xff]  }
 0x96d   : > { %7336 = vst [vmem:[#allocation4 + $0x60] sm:$0xff] %v7313_v21  ;;  %v7270_v51 = vadd.f32 %v17854_v40, %v21075_v38  ;;  %v7181_v22 = vpop.f32.mrb[109].mxu1  ;;  %v7407_v50 = vld [vmem:[#allocation4 + $0x2e] sm:$0xff]  ;;  %v7408_v7 = vld [vmem:[#allocation4 + $0x36] sm:$0xff]  ;;  %17908 = vmatprep.subr.bf16.mxu0 %v19863_v6  ;;  %v21101_v39 = vpack.c.bf16 %v7313_v21, %v7289_v60 }
 0x96e   : > { %v7268_v0 = vadd.f32 %v21075_v38, %v7181_v22  ;;  %v17855_v31 = vpop.f32.mrb[110].mxu1  ;;  %v7427_v49 = vpack.c.bf16 %v7407_v50, %v7406_v5  ;;  %v7428_v2 = vpack.c.bf16 %v7409_v29, %v7408_v7  ;;  %v19868_v21 = vld [vmem:[#allocation7 + $0x278] sm:$0xff]  }
 0x96f   : > { %v7293_v52 = vmax.f32 %v7270_v51, 0.0  ;;  %v7271_v57 = vadd.f32 %v17855_v31, %v21075_v38  ;;  %v7184_v48 = vpop.f32.mrb[111].mxu1 }
 0x970   : > { %v7291_v41 = vmax.f32 %v7268_v0, 0.0  ;;  %v7269_v19 = vadd.f32 %v21075_v38, %v7184_v48  ;;  %17884 = vmatprep.mubr.bf16.mxu0 %v7427_v49  ;;  %17909 = vmatpush3.bf16.msra.mxu0 %v19863_v6  ;;  %v19869_v0 = vld [vmem:[#allocation7 + $0x2c0] sm:$0xff]  }
 0x971   : > { %v7316_v23 = vmul.f32 0.0, %v7293_v52  ;;  %v7294_v11 = vmax.f32 %v7271_v57, 0.0  ;;  %17885 = vmatmul.mubr.bf16.gmra.mrb[124].mxu0 %v7428_v2  ;;  %17910 = vmatprep.subr.bf16.mxu0 %v19864_v46 }
 0x972   : > { %7337 = vst [vmem:[#allocation4 + $0x68] sm:$0xff] %v7291_v41  ;;  %v7292_v47 = vmax.f32 %v7269_v19, 0.0 }
 0x973   : > { %7339 = vst [vmem:[#allocation4 + $0x78] sm:$0xff] %v7316_v23  ;;  %7340 = vst [vmem:[#allocation4 + $0x80] sm:$0xff] %v7294_v11  ;;  %v7410_v33 = vld [vmem:[#allocation4 + $0x46] sm:$0xff]  ;;  %v7411_v14 = vld [vmem:[#allocation4 + $0x4e] sm:$0xff]  ;;  %v21106_v27 = vpack.c.bf16 %v7294_v11, %v7316_v23 }
 0x974   : > { %7338 = vst [vmem:[#allocation4 + $0x70] sm:$0xff] %v7292_v47  ;;  %v17858_v1 = vpop.f32.mrb[112].mxu1  ;;  %v7429_v10 = vpack.c.bf16 %v7411_v14, %v7410_v33  ;;  %v7412_v61 = vld [vmem:[#allocation4 + $0x56] sm:$0xff]  ;;  %v7413_v42 = vld [vmem:[#allocation4 + $0x5e] sm:$0xff]  ;;  %17911 = vmatpush3.bf16.msra.mxu0 %v19864_v46  ;;  %v21108_v16 = vpack.c.bf16 %v7292_v47, %v7291_v41  ;;  %v7351_v11 = vld [vmem:[#allocation4 + $0xc] sm:$0xff] }
 0x975   : > { %v7274_v20 = vadd.f32 %v17858_v1, %v21075_v38  ;;  %v7197_v34 = vpop.f32.mrb[113].mxu1  ;;  %17912 = vmatprep.subr.bf16.mxu0 %v19865_v55  ;;  %v7430_v30 = vpack.c.bf16 %v7413_v42, %v7412_v61  ;;  %v7350_v1 = vld [vmem:[#allocation4 + $0x4] sm:$0xff]  ;;  %v7352_v61 = vld [vmem:[#allocation4 + $0x14] sm:$0xff]  ;;  %v7353_v42 = vld [vmem:[#allocation4 + $0x1c] sm:$0xff] }
 0x976   : > { %v7272_v32 = vadd.f32 %v21075_v38, %v7197_v34  ;;  %v17859_v43 = vpop.f32.mrb[114].mxu1  ;;  %17888 = vmatprep.mubr.bf16.mxu0 %v7429_v10  ;;  %v7373_v10 = vpack.c.bf16 %v7351_v11, %v7350_v1  ;;  %v7374_v34 = vpack.c.bf16 %v7353_v42, %v7352_v61 }
 0x977   : > { %v7297_v26 = vmax.f32 %v7274_v20, 0.0  ;;  %v7275_v36 = vadd.f32 %v17859_v43, %v21075_v38  ;;  %v7200_v56 = vpop.f32.mrb[115].mxu1  ;;  %v7355_v20 = vld [vmem:[#allocation4 + $0x2c] sm:$0xff] }
 0x978   : > { %v7295_v53 = vmax.f32 %v7272_v32, 0.0  ;;  %v7273_v3 = vadd.f32 %v21075_v38, %v7200_v56  ;;  %17913 = vmatpush3.bf16.msra.mxu0 %v19865_v55  ;;  %v19870_v32 = vld [vmem:[#allocation7 + $0x2c8] sm:$0xff]  }
 0x979   : > { %7343 = vst [vmem:[#allocation4 + $0x98] sm:$0xff] %v7297_v26  ;;  %v7298_v24 = vmax.f32 %v7275_v36, 0.0  ;;  %17889 = vmatmul.mubr.bf16.gmra.mrb[128].mxu0 %v7430_v30  ;;  %17914 = vmatprep.subr.bf16.mxu0 %v19866_v37  ;;  %v7414_v15 = vld [vmem:[#allocation4 + $0x66] sm:$0xff]  ;;  %v7356_v36 = vld [vmem:[#allocation4 + $0x34] sm:$0xff] }
 0x97a   : > { %7341 = vst [vmem:[#allocation4 + $0x88] sm:$0xff] %v7295_v53  ;;  %v7296_v58 = vmax.f32 %v7273_v3, 0.0  ;;  %v7417_v6 = vld [vmem:[#allocation4 + $0x7e] sm:$0xff]  ;;  %v7359_v30 = vld [vmem:[#allocation4 + $0x4c] sm:$0xff] }
 0x97b   : > { %7344 = vst [vmem:[#allocation4 + $0xa0] sm:$0xff] %v7298_v24  ;;  %v7415_v60 = vld [vmem:[#allocation4 + $0x6e] sm:$0xff]  ;;  %v21114_v17 = vpack.c.bf16 %v7298_v24, %v7297_v26  ;;  %v7416_v35 = vld [vmem:[#allocation4 + $0x76] sm:$0xff]  ;;  %v7358_v56 = vld [vmem:[#allocation4 + $0x44] sm:$0xff] }
 0x97c   : > { %v7319_v9 = vmul.f32 0.0, %v7296_v58  ;;  %v17862_v63 = vpop.f32.mrb[124].mxu1  ;;  %v7431_v4 = vpack.c.bf16 %v7415_v60, %v7414_v15  ;;  %17915 = vmatpush3.bf16.msra.mxu0 %v19866_v37  ;;  %v7432_v50 = vpack.c.bf16 %v7417_v6, %v7416_v35  ;;  %v7354_v37 = vld [vmem:[#allocation4 + $0x24] sm:$0xff]  ;;  %v19871_v26 = vld [vmem:[#allocation7 + $0x2d0] sm:$0xff]   ;;  %v19872_v24 = vld [vmem:[#allocation7 + $0x2d8] sm:$0xff]  }
 0x97d   : > { %v7249_v12 = vadd.f32 %v17862_v63, %v21066_v28  ;;  %v7213_v45 = vpop.f32.mrb[125].mxu1  ;;  %17916 = vmatprep.subr.bf16.mxu0 %v19867_v25  ;;  %v7375_v43 = vpack.c.bf16 %v7355_v20, %v7354_v37  ;;  %v19873_v58 = vld [vmem:[#allocation7 + $0x2e0] sm:$0xff]   ;;  %v7360_v15 = vld [vmem:[#allocation4 + $0x54] sm:$0xff]  ;;  %v19874_v35 = vld [vmem:[#allocation7 + $0x2e8] sm:$0xff]  }
 0x97e   : > { %7342 = vst [vmem:[#allocation4 + $0x90] sm:$0xff] %v7319_v9  ;;  %v7247_v40 = vadd.f32 %v7213_v45, %v21068_v13  ;;  %v17863_v5 = vpop.f32.mrb[126].mxu1  ;;  %17892 = vmatprep.mubr.bf16.mxu0 %v7431_v4  ;;  %v21118_v46 = vpack.c.bf16 %v7319_v9, %v7295_v53  ;;  %v7357_v53 = vld [vmem:[#allocation4 + $0x3c] sm:$0xff]  ;;  %v7363_v9 = vld [vmem:[#allocation4 + $0x6c] sm:$0xff]  ;;  %v7362_v4 = vld [vmem:[#allocation4 + $0x64] sm:$0xff] }
 0x97f   : > { %v7278_v51 = vadd.f32 %v21075_v38, %v7249_v12  ;;  %v7216_v22 = vpop.f32.mrb[127].mxu1  ;;  %v7376_v3 = vpack.c.bf16 %v7357_v53, %v7356_v36  ;;  %v7361_v60 = vld [vmem:[#allocation4 + $0x5c] sm:$0xff]  ;;  %v7379_v6 = vpack.c.bf16 %v7363_v9, %v7362_v4  ;;  %v19875_v12 = vld [vmem:[#allocation7 + $0x2f0] sm:$0xff]   ;;  %v8113_v9 = vld [vmem:[#allocation3 + $0x28] sm:$0xff] }
 0x980   : > { %v7276_v7 = vadd.f32 %v21075_v38, %v7247_v40  ;;  %v7248_v29 = vadd.f32 %v7216_v22, %v21070_v8  ;;  %17917 = vmatpush3.bf16.msra.mxu0 %v19867_v25  ;;  %v7377_v25 = vpack.c.bf16 %v7359_v30, %v7358_v56  ;;  %v7378_v63 = vpack.c.bf16 %v7361_v60, %v7360_v15  ;;  %v7364_v45 = vld [vmem:[#allocation4 + $0x74] sm:$0xff]  ;;  %v21171_v20 = vld [vmem:[%s22024_s4 + $0x3] ss:$0 sm:$0xff] }
 0x981   : > { %v21123_v28 = vmax.f32 %v7278_v51, 0.0  ;;  %17893 = vmatmul.mubr.bf16.gmra.mrb[132].mxu0 %v7432_v50  ;;  %17918 = vmatprep.subr.bf16.mxu0 %v19868_v21  ;;  %v7418_v52 = vld [vmem:[#allocation4 + $0x86] sm:$0xff]  ;;  %v19876_v22 = vld [vmem:[#allocation7 + $0x2f8] sm:$0xff]   ;;  %v8110_v36 = vld [vmem:[#allocation3 + $0x10] sm:$0xff] }
 0x982   : > { %v7299_v31 = vmax.f32 %v7276_v7, 0.0  ;;  %v7277_v13 = vadd.f32 %v21075_v38, %v7248_v29  ;;  %v7421_v41 = vld [vmem:[#allocation4 + $0x9e] sm:$0xff] }
 0x983   : > { %7347 = vst [vmem:[#allocation4 + $0xb8] sm:$0xff] %v21123_v28  ;;  %v7366_v51 = vld [vmem:[#allocation4 + $0x84] sm:$0xff] }
 0x984   : > { %v7322_v49 = vmul.f32 0.0, %v7299_v31  ;;  %v7300_v2 = vmax.f32 %v7277_v13, 0.0  ;;  %17919 = vmatpush3.bf16.msra.mxu0 %v19868_v21  ;;  %v7365_v21 = vld [vmem:[#allocation4 + $0x7c] sm:$0xff] }
 0x985   : > { %v7419_v57 = vld [vmem:[#allocation4 + $0x8e] sm:$0xff]  ;;  %v7420_v48 = vld [vmem:[#allocation4 + $0x96] sm:$0xff]  ;;  %17944 = vmatprep.subr.bf16.mxu0 %v19869_v0  ;;  %v7380_v5 = vpack.c.bf16 %v7365_v21, %v7364_v45 }
 0x986   : > { %7345 = vst [vmem:[#allocation4 + $0xa8] sm:$0xff] %v7322_v49  ;;  %7346 = vst [vmem:[#allocation4 + $0xb0] sm:$0xff] %v7300_v2  ;;  %v7433_v8 = vpack.c.bf16 %v7419_v57, %v7418_v52  ;;  %v7434_v19 = vpack.c.bf16 %v7421_v41, %v7420_v48  ;;  %v21127_v23 = vpack.c.bf16 %v7300_v2, %v7322_v49  ;;  %v7367_v40 = vld [vmem:[#allocation4 + $0x8c] sm:$0xff]  ;;  %v7368_v7 = vld [vmem:[#allocation4 + $0x94] sm:$0xff] }
 0x987   : > { %v7381_v50 = vpack.c.bf16 %v7367_v40, %v7366_v51  ;;  %v7369_v31 = vld [vmem:[#allocation4 + $0x9c] sm:$0xff]  ;;  %v19878_v48 = vld [vmem:[#allocation5 + $0x348] sm:$0xff]   ;;  %v21177_v51 = vld [vmem:[#allocation2 + $0x10] sm:$0xff] }
 0x988   : > { %17896 = vmatprep.mubr.bf16.mxu0 %v7433_v8  ;;  %v7382_v13 = vpack.c.bf16 %v7369_v31, %v7368_v7  ;;  %v19877_v57 = vld [vmem:[#allocation5 + $0x340] sm:$0xff]   ;;  %v21154_v41 = vld [vmem:[#allocation2 + $0x68] sm:$0xff] }
 0x989   : > { %17897 = vmatmul.mubr.bf16.gmra.mrb[136].mxu0 %v7434_v19  ;;  %17984 = vmatprep.subr.bf16.mxu1 %v19877_v57  ;;  %8305 = vst [vmem:[#allocation3 + $0x68] sm:$0xff] %v21154_v41  ;;  %v21157_v8 = vld [vmem:[#allocation2 + $0x80] sm:$0xff]  ;;  %v21160_v19 = vld [vmem:[#allocation2 + $0x98] sm:$0xff] }
 0x98a   : > { %17985 = vmatpush3.bf16.msra.mxu1 %v19877_v57  ;;  %8308 = vst [vmem:[#allocation3 + $0x80] sm:$0xff] %v21157_v8  ;;  %8311 = vst [vmem:[#allocation3 + $0x98] sm:$0xff] %v21160_v19 }
 0x98b   : > { %17986 = vmatprep.subr.bf16.mxu1 %v19878_v48 }
 0x98d   : > { %v7422_v38 = vld [vmem:[#allocation4 + $0xa6] sm:$0xff]  ;;  %v7423_v55 = vld [vmem:[#allocation4 + $0xae] sm:$0xff]  ;;  %v7424_v47 = vld [vmem:[#allocation4 + $0xb6] sm:$0xff] }
 0x98e   : > { %v7435_v33 = vpack.c.bf16 %v7423_v55, %v7422_v38  ;;  %v7436_v14 = vpack.c.bf16 %v7424_v47, %v7424_v47  ;;  %v7370_v29 = vld [vmem:[#allocation4 + $0xa4] sm:$0xff]  ;;  %v7372_v2 = vld [vmem:[#allocation4 + $0xb4] sm:$0xff]  ;;  %17987 = vmatpush3.bf16.msra.mxu1 %v19878_v48 }
 0x98f   : > { %v7384_v52 = vpack.c.bf16 %v7372_v2, %v7372_v2 }
 0x990   : > { %17900 = vmatprep.mubr.bf16.mxu0 %v7435_v33 }
 0x991   : > { %17901 = vmatmul.mubr.bf16.gmra.mrb[140].mxu0 %v7436_v14 }
 0x992   : > { %17920 = vmatprep.mubr.bf16.mxu0 %v7373_v10 }
 0x999   : > { %17921 = vmatmul.mubr.bf16.vlgmr.msra.gmra.mrb[120].mxu0 %v7374_v34 }
 0x99a   : > { %17924 = vmatprep.mubr.bf16.mxu0 %v7375_v43  ;;  %17945 = vmatpush3.bf16.msra.mxu0 %v19869_v0  ;;  %v7371_v0 = vld [vmem:[#allocation4 + $0xac] sm:$0xff] }
 0x99b   : > { %17946 = vmatprep.subr.bf16.mxu0 %v19870_v32  ;;  %v7383_v49 = vpack.c.bf16 %v7371_v0, %v7370_v29  ;;  %v8119_v0 = vld [vmem:[#allocation3 + $0x58] sm:$0xff] }
 0x99e   : > { %17947 = vmatpush3.bf16.msra.mxu0 %v19870_v32 }
 0x99f   : > { %17948 = vmatprep.subr.bf16.mxu0 %v19871_v26 }
 0x9a1   : > { %17925 = vmatmul.mubr.bf16.gmra.mrb[124].mxu0 %v7376_v3 }
 0x9a2   : > { %17928 = vmatprep.mubr.bf16.mxu0 %v7377_v25  ;;  %17949 = vmatpush3.bf16.msra.mxu0 %v19871_v26 }
 0x9a3   : > { %17950 = vmatprep.subr.bf16.mxu0 %v19872_v24 }
 0x9a6   : > { %17951 = vmatpush3.bf16.msra.mxu0 %v19872_v24 }
 0x9a7   : > { %17952 = vmatprep.subr.bf16.mxu0 %v19873_v58 }
 0x9a9   : > { %17929 = vmatmul.mubr.bf16.gmra.mrb[128].mxu0 %v7378_v63 }
 0x9aa   : > { %17932 = vmatprep.mubr.bf16.mxu0 %v7379_v6  ;;  %17953 = vmatpush3.bf16.msra.mxu0 %v19873_v58 }
 0x9ab   : > { %17954 = vmatprep.subr.bf16.mxu0 %v19874_v35 }
 0x9ae   : > { %17955 = vmatpush3.bf16.msra.mxu0 %v19874_v35  ;;  %v8116_v35 = vld [vmem:[#allocation3 + $0x40] sm:$0xff] }
 0x9af   : > { %17956 = vmatprep.subr.bf16.mxu0 %v19875_v12 }
 0x9b1   : > { %17933 = vmatmul.mubr.bf16.gmra.mrb[132].mxu0 %v7380_v5 }
 0x9b2   : > { %17936 = vmatprep.mubr.bf16.mxu0 %v7381_v50  ;;  %17957 = vmatpush3.bf16.msra.mxu0 %v19875_v12 }
 0x9b3   : > { %17958 = vmatprep.subr.bf16.mxu0 %v19876_v22 }
 0x9b6   : > { %17959 = vmatpush3.bf16.msra.mxu0 %v19876_v22 }
 0x9b9   : > { %17937 = vmatmul.mubr.bf16.gmra.mrb[136].mxu0 %v7382_v13 }
 0x9ba   : > { %17940 = vmatprep.mubr.bf16.mxu0 %v7383_v49  ;;  %v21182_v49 = vld [vmem:[#allocation2 + $0x28] sm:$0xff] }
 0x9c1   : > { %17941 = vmatmul.mubr.bf16.gmra.mrb[144].mxu0 %v7384_v52  ;;  %v21184_v52 = vld [vmem:[#allocation2 + $0x40] sm:$0xff] }
 0x9c2   : > { %17960 = vmatprep.mubr.bf16.mxu0 %v21083_v62  ;;  %v19879_v62 = vld [vmem:[#allocation5 + $0x350] sm:$0xff]  }
 0x9c3   : > { %17988 = vmatprep.subr.bf16.mxu1 %v19879_v62 }
 0x9c4   : > { %17989 = vmatpush3.bf16.msra.mxu1 %v19879_v62 }
 0x9c9   : > { %17961 = vmatmul.mubr.bf16.vlgmr.msra.gmra.mrb[120].mxu0 %v21081_v44  ;;  %v7840_v44 = vpack.c.bf16 %v21123_v28, %v21123_v28  ;;  %v21151_v28 = vld [vmem:[#allocation5 + $0x300] sm:$0xff]  }
 0x9ca   : > { %17964 = vmatprep.mubr.bf16.mxu0 %v21093_v59  ;;  %v19881_v59 = vld [vmem:[#allocation5 + $0x360] sm:$0xff]  }
 0x9d1   : > { %17965 = vmatmul.mubr.bf16.gmra.mrb[124].mxu0 %v21089_v18  ;;  %v19880_v18 = vld [vmem:[#allocation5 + $0x358] sm:$0xff]  }
 0x9d2   : > { %17968 = vmatprep.mubr.bf16.mxu0 %v21098_v54  ;;  %17990 = vmatprep.subr.bf16.mxu1 %v19880_v18  ;;  %v19882_v54 = vld [vmem:[#allocation5 + $0x368] sm:$0xff]  }
 0x9d3   : > { %17991 = vmatpush3.bf16.msra.mxu1 %v19880_v18 }
 0x9d4   : > { %17992 = vmatprep.subr.bf16.mxu1 %v19881_v59 }
 0x9d7   : > { %17993 = vmatpush3.bf16.msra.mxu1 %v19881_v59 }
 0x9d8   : > { %17994 = vmatprep.subr.bf16.mxu1 %v19882_v54 }
 0x9d9   : > { %17969 = vmatmul.mubr.bf16.gmra.mrb[128].mxu0 %v21101_v39  ;;  %v21142_v39 = vld [vmem:[#allocation2 + $0x20] sm:$0xff] }
 0x9da   : > { %17972 = vmatprep.mubr.bf16.mxu0 %v21108_v16  ;;  %8296 = vst [vmem:[#allocation3 + $0x20] sm:$0xff] %v21142_v39  ;;  %v19884_v16 = vld [vmem:[#allocation5 + $0x378] sm:$0xff]  }
 0x9db   : > { %17995 = vmatpush3.bf16.msra.mxu1 %v19882_v54 }
 0x9e1   : > { %17973 = vmatmul.mubr.bf16.gmra.mrb[132].mxu0 %v21106_v27  ;;  %v19883_v27 = vld [vmem:[#allocation5 + $0x370] sm:$0xff]   ;;  %v8373_v62 = vld [vmem:[#allocation3 + $0x1f] sm:$0xff] }
 0x9e2   : > { %17976 = vmatprep.mubr.bf16.mxu0 %v21118_v46  ;;  %17996 = vmatprep.subr.bf16.mxu1 %v19883_v27  ;;  %v21148_v46 = vld [vmem:[#allocation2 + $0x50] sm:$0xff] }
 0x9e3   : > { %17997 = vmatpush3.bf16.msra.mxu1 %v19883_v27  ;;  %8302 = vst [vmem:[#allocation3 + $0x50] sm:$0xff] %v21148_v46 }
 0x9e4   : > { %17998 = vmatprep.subr.bf16.mxu1 %v19884_v16 }
 0x9e7   : > { %17999 = vmatpush3.bf16.msra.mxu1 %v19884_v16 }
 0x9e8   : > { %18024 = vmatprep.subr.bf16.mxu1 %v21151_v28 }
 0x9e9   : > { %17977 = vmatmul.mubr.bf16.gmra.mrb[136].mxu0 %v21114_v17  ;;  %v21145_v17 = vld [vmem:[#allocation2 + $0x38] sm:$0xff] }
 0x9ea   : > { %17980 = vmatprep.mubr.bf16.mxu0 %v21127_v23  ;;  %8299 = vst [vmem:[#allocation3 + $0x38] sm:$0xff] %v21145_v17  ;;  %v21163_v23 = vld [vmem:[#allocation2 + $0xb0] sm:$0xff] }
 0x9eb   : > { %8314 = vst [vmem:[#allocation3 + $0xb0] sm:$0xff] %v21163_v23 }
 0x9f1   : > { %17981 = vmatmul.mubr.bf16.gmra.mrb[148].mxu0 %v7840_v44  ;;  %v8370_v44 = vld [vmem:[#allocation3 + $0x7] sm:$0xff] }
 0xa64   : > { %v17902_v11 = vpop.f32.mrb[140].mxu0 }
 0xa65   : > { %v7616_v38 = vpop.f32.mrb[141].mxu0 }
 0xa66   : > { %v17903_v55 = vpop.f32.mrb[142].mxu0 }
 0xa67   : > { %v7619_v47 = vpop.f32.mrb[143].mxu0 }
 0xa68   : > { %v19886_v47 = vld [vmem:[#allocation5 + $0x308] sm:$0xff]  }
 0xa94   : > { %v17942_v33 = vpop.f32.mrb[144].mxu0 }
 0xa95   : > { %v21166_v14 = vadd.f32 %v17942_v33, %v17902_v11  ;;  %v7792_v1 = vpop.f32.mrb[145].mxu0 }
 0xa96   : > { %v17943_v10 = vpop.f32.mrb[146].mxu0  ;;  %v21193_v1 = vld [vmem:[#allocation2 + $0x58] sm:$0xff] }
 0xa97   : > { %v7795_v61 = vpop.f32.mrb[147].mxu0  ;;  %v8122_v10 = vld [vmem:[#allocation3 + $0x70] sm:$0xff] }
 0xa9c   : > { %v17962_v42 = vpop.f32.mrb[120].mxu0 }
 0xa9d   : > { %v7940_v34 = vpop.f32.mrb[121].mxu0 }
 0xa9e   : > { %v17963_v37 = vpop.f32.mrb[122].mxu0 }
 0xa9f   : > { %v7943_v32 = vpop.f32.mrb[123].mxu0  ;;  %v8376_v37 = vld [vmem:[#allocation3 + $0x37] sm:$0xff] }
 0xaa0   : > { %v8064_v43 = vadd.f32 %v21171_v20, %v7943_v32  ;;  %v8379_v32 = vld [vmem:[#allocation3 + $0x4f] sm:$0xff] }
 0xaa2   : > { %v8087_v26 = vmax.f32 %v8064_v43, 0.0 }
 0xaa4   : > { %v8133_v56 = vadd.f32 %v8110_v36, %v8087_v26  ;;  %v17966_v30 = vpop.f32.mrb[124].mxu0 }
 0xaa5   : > { %v7956_v53 = vpop.f32.mrb[125].mxu0 }
 0xaa6   : > { %v8156_v3 = vmax.f32 %v8133_v56, 0.0  ;;  %v8067_v24 = vadd.f32 %v21171_v20, %v7956_v53  ;;  %v17967_v25 = vpop.f32.mrb[126].mxu0  ;;  %v19887_v56 = vld [vmem:[#allocation5 + $0x310] sm:$0xff]  }
 0xaa7   : > { %v8070_v58 = vadd.f32 %v17967_v25, %v21171_v20  ;;  %v7959_v15 = vpop.f32.mrb[127].mxu0 }
 0xaa8   : > { %8202 = vst [vmem:[#allocation3 + $0x10] sm:$0xff] %v8156_v3  ;;  %v8090_v60 = vmax.f32 %v8067_v24, 0.0 }
 0xaa9   : > { %v8093_v63 = vmax.f32 %v8070_v58, 0.0 }
 0xaaa   : > { %v8136_v4 = vadd.f32 %v8113_v9, %v8090_v60 }
 0xaab   : > { %v8139_v6 = vadd.f32 %v8116_v35, %v8093_v63 }
 0xaac   : > { %v8159_v12 = vmax.f32 %v8136_v4, 0.0  ;;  %v17970_v45 = vpop.f32.mrb[128].mxu0  ;;  %v8125_v4 = vld [vmem:[#allocation3 + $0x88] sm:$0xff] }
 0xaad   : > { %v8162_v21 = vmax.f32 %v8139_v6, 0.0  ;;  %v8073_v40 = vadd.f32 %v17970_v45, %v21171_v20  ;;  %v7972_v5 = vpop.f32.mrb[129].mxu0  ;;  %v19888_v6 = vld [vmem:[#allocation5 + $0x318] sm:$0xff]   ;;  %v8128_v45 = vld [vmem:[#allocation3 + $0xa0] sm:$0xff] }
 0xaae   : > { %8205 = vst [vmem:[#allocation3 + $0x28] sm:$0xff] %v8159_v12  ;;  %v17971_v22 = vpop.f32.mrb[130].mxu0 }
 0xaaf   : > { %v21179_v50 = vld [vmem:[#allocation3 + $0x17] sm:$0x1]  ;;  %8208 = vst [vmem:[#allocation3 + $0x40] sm:$0xff] %v8162_v21  ;;  %v8096_v7 = vmax.f32 %v8073_v40, 0.0  ;;  %v7975_v29 = vpop.f32.mrb[131].mxu0 }
 0xab0   : > { %8294 = vst [vmem:[#allocation3 + $0x10] sm:$0xff] %v21177_v51 }
 0xab1   : > { %v8142_v31 = vadd.f32 %v8119_v0, %v8096_v7 }
 0xab3   : > { %v8165_v13 = vmax.f32 %v8142_v31, 0.0 }
 0xab4   : > { %v17974_v2 = vpop.f32.mrb[132].mxu0 }
 0xab5   : > { %v21186_v57 = vld [vmem:[#allocation3 + $0x2f] sm:$0x1]  ;;  %8211 = vst [vmem:[#allocation3 + $0x58] sm:$0xff] %v8165_v13  ;;  %v7988_v48 = vpop.f32.mrb[133].mxu0  ;;  %v21202_v13 = vld [vmem:[#allocation2 + $0x70] sm:$0xff]  ;;  %v19889_v2 = vld [vmem:[#allocation5 + $0x320] sm:$0xff]  }
 0xab6   : > { %v21188_v18 = vld [vmem:[#allocation3 + $0x47] sm:$0x1]  ;;  %v17975_v59 = vpop.f32.mrb[134].mxu0  ;;  %8297 = vst [vmem:[#allocation3 + $0x28] sm:$0xff] %v21182_v49 }
 0xab7   : > { %v7991_v54 = vpop.f32.mrb[135].mxu0  ;;  %v8371_v27 = vld [vmem:[#allocation3 + $0xf] sm:$0xff]  ;;  %v8372_v16 = vld [vmem:[#allocation3 + $0x17] sm:$0xff]  ;;  %8300 = vst [vmem:[#allocation3 + $0x40] sm:$0xff] %v21184_v52 }
 0xab8   : > { %v8076_v11 = vadd.f32 %v21171_v20, %v7991_v54  ;;  %v8393_v38 = vpack.c.bf16 %v8371_v27, %v8370_v44  ;;  %v8394_v55 = vpack.c.bf16 %v8373_v62, %v8372_v16  ;;  %v8131_v16 = vld [vmem:[#allocation3 + $0xb8] sm:$0xff] }
 0xaba   : > { %v8099_v33 = vmax.f32 %v8076_v11, 0.0  ;;  %18000 = vmatprep.mubr.bf16.mxu1 %v8393_v38  ;;  %v21208_v38 = vld [vmem:[#allocation2 + $0x88] sm:$0xff] }
 0xabb   : > { %18001 = vmatmul.mubr.bf16.vlgmr.msra.gmra.mrb[128].mxu1 %v8394_v55  ;;  %v8382_v55 = vld [vmem:[#allocation3 + $0x67] sm:$0xff] }
 0xabc   : > { %v21195_v61 = vld [vmem:[#allocation3 + $0x5f] sm:$0x1]  ;;  %v8145_v42 = vadd.f32 %v8122_v10, %v8099_v33  ;;  %v17978_v34 = vpop.f32.mrb[136].mxu0  ;;  %18025 = vmatpush3.bf16.msra.mxu1 %v21151_v28 }
 0xabd   : > { %v8004_v43 = vpop.f32.mrb[137].mxu0  ;;  %18026 = vmatprep.subr.bf16.mxu1 %v19886_v47  ;;  %v8374_v26 = vld [vmem:[#allocation3 + $0x27] sm:$0xff]  ;;  %v8375_v36 = vld [vmem:[#allocation3 + $0x2f] sm:$0xff]  ;;  %8303 = vst [vmem:[#allocation3 + $0x58] sm:$0xff] %v21193_v1  ;;  %v8385_v10 = vld [vmem:[#allocation3 + $0x7f] sm:$0xff] }
 0xabe   : > { %v8168_v30 = vmax.f32 %v8145_v42, 0.0  ;;  %v8079_v53 = vadd.f32 %v21171_v20, %v8004_v43  ;;  %v17979_v3 = vpop.f32.mrb[138].mxu0  ;;  %v8395_v24 = vpack.c.bf16 %v8375_v36, %v8374_v26  ;;  %v8377_v25 = vld [vmem:[#allocation3 + $0x3f] sm:$0xff]  ;;  %v8378_v58 = vld [vmem:[#allocation3 + $0x47] sm:$0xff]  ;;  %v19891_v42 = vld [vmem:[#allocation5 + $0x330] sm:$0xff]  }
 0xabf   : > { %v8082_v15 = vadd.f32 %v17979_v3, %v21171_v20  ;;  %v8007_v60 = vpop.f32.mrb[139].mxu0  ;;  %v8396_v28 = vpack.c.bf16 %v8377_v25, %v8376_v37  ;;  %v8397_v63 = vpack.c.bf16 %v8379_v32, %v8378_v58  ;;  %v19892_v36 = vld [vmem:[#allocation5 + $0x338] sm:$0xff]   ;;  %v19893_v25 = vld [vmem:[#allocation5 + $0x380] sm:$0xff]  }
 0xac0   : > { %8214 = vst [vmem:[#allocation3 + $0x70] sm:$0xff] %v8168_v30  ;;  %v8102_v9 = vmax.f32 %v8079_v53, 0.0  ;;  %18004 = vmatprep.mubr.bf16.mxu1 %v8395_v24  ;;  %18027 = vmatpush3.bf16.msra.mxu1 %v19886_v47  ;;  %v21210_v47 = vld [vmem:[#allocation2 + $0xa0] sm:$0xff]  ;;  %v8391_v30 = vld [vmem:[#allocation3 + $0xaf] sm:$0xff]  ;;  %v21218_v53 = vld [vmem:[#allocation2 + $0xb8] sm:$0xff] }
 0xac1   : > { %v8105_v35 = vmax.f32 %v8082_v15, 0.0  ;;  %18028 = vmatprep.subr.bf16.mxu1 %v19887_v56 }
 0xac2   : > { %v8148_v12 = vadd.f32 %v8125_v4, %v8102_v9  ;;  %v8318_v4 = vld [vmem:[#allocation3 + $0x6] sm:$0xff] }
 0xac3   : > { %v8151_v21 = vadd.f32 %v8128_v45, %v8105_v35  ;;  %18005 = vmatmul.mubr.bf16.gmra.mrb[132].mxu1 %v8396_v28  ;;  %v8319_v35 = vld [vmem:[#allocation3 + $0xe] sm:$0xff] }
 0xac4   : > { %v8171_v40 = vmax.f32 %v8148_v12, 0.0  ;;  %v17982_v5 = vpop.f32.mrb[148].mxu0  ;;  %18029 = vmatpush3.bf16.msra.mxu1 %v19887_v56  ;;  %18008 = vmatprep.mubr.bf16.mxu1 %v8397_v63  ;;  %v8380_v22 = vld [vmem:[#allocation3 + $0x57] sm:$0xff]  ;;  %v8381_v7 = vld [vmem:[#allocation3 + $0x5f] sm:$0xff]  ;;  %v8341_v45 = vpack.c.bf16 %v8319_v35, %v8318_v4 }
 0xac5   : > { %v8174_v29 = vmax.f32 %v8151_v21, 0.0  ;;  %v8056_v0 = vadd.f32 %v17982_v5, %v21166_v14  ;;  %v8020_v31 = vpop.f32.mrb[149].mxu0  ;;  %18030 = vmatprep.subr.bf16.mxu1 %v19888_v6  ;;  %v8398_v54 = vpack.c.bf16 %v8381_v7, %v8380_v22  ;;  %v19890_v14 = vld [vmem:[#allocation5 + $0x328] sm:$0xff]   ;;  %v8388_v56 = vld [vmem:[#allocation3 + $0x97] sm:$0xff] }
 0xac6   : > { %8217 = vst [vmem:[#allocation3 + $0x88] sm:$0xff] %v8171_v40  ;;  %v17983_v48 = vpop.f32.mrb[150].mxu0  ;;  %v8320_v21 = vld [vmem:[#allocation3 + $0x16] sm:$0xff]  ;;  %v8321_v40 = vld [vmem:[#allocation3 + $0x1e] sm:$0xff]  ;;  %v8322_v5 = vld [vmem:[#allocation3 + $0x26] sm:$0xff] }
 0xac7   : > { %v21204_v44 = vld [vmem:[#allocation3 + $0x77] sm:$0x1]  ;;  %8220 = vst [vmem:[#allocation3 + $0xa0] sm:$0xff] %v8174_v29  ;;  %v8085_v62 = vadd.f32 %v21171_v20, %v8056_v0  ;;  %v8023_v59 = vpop.f32.mrb[151].mxu0  ;;  %v8323_v22 = vld [vmem:[#allocation3 + $0x2e] sm:$0xff]  ;;  %v8342_v7 = vpack.c.bf16 %v8321_v40, %v8320_v21  ;;  %v21224_v21 = vld [vmem:[#allocation2] sm:$0xff] }
 0xac8   : > { %18031 = vmatpush3.bf16.msra.mxu1 %v19888_v6  ;;  %8306 = vst [vmem:[#allocation3 + $0x70] sm:$0xff] %v21202_v13  ;;  %v8343_v29 = vpack.c.bf16 %v8323_v22, %v8322_v5  ;;  %v19894_v0 = vld [vmem:[#allocation5 + $0x388] sm:$0xff]   ;;  %v8324_v31 = vld [vmem:[#allocation3 + $0x36] sm:$0xff]  ;;  %v8798_v40 = vpack.c.bf16 %v21142_v39, %v21224_v21  ;;  %v8799_v5 = vpack.c.bf16 %v21224_v21, %v21182_v49 }
 0xac9   : > { %v8108_v27 = vmax.f32 %v8085_v62, 0.0  ;;  %18032 = vmatprep.subr.bf16.mxu1 %v19889_v2  ;;  %v19895_v48 = vld [vmem:[#allocation5 + $0x390] sm:$0xff]   ;;  %v8326_v62 = vld [vmem:[#allocation3 + $0x46] sm:$0xff]  ;;  %v8800_v22 = vpack.c.bf16 %v21184_v52, %v21145_v17  ;;  %v8804_v39 = vpack.c.bf16 %v21157_v8, %v21224_v21  ;;  %v8805_v49 = vpack.c.bf16 %v21224_v21, %v21208_v38 }
 0xaca   : > { %v8327_v59 = vld [vmem:[#allocation3 + $0x4e] sm:$0xff]  ;;  %v8806_v17 = vpack.c.bf16 %v21210_v47, %v21160_v19  ;;  %v19901_v52 = vld [vmem:[#allocation7 + $0x340] sm:$0xff]   ;;  %v8808_v8 = vpack.c.bf16 %v21218_v53, %v21218_v53 }
 0xacb   : > { %v8154_v11 = vadd.f32 %v8131_v16, %v8108_v27  ;;  %18009 = vmatmul.mubr.bf16.gmra.mrb[136].mxu1 %v8398_v54  ;;  %v8345_v27 = vpack.c.bf16 %v8327_v59, %v8326_v62  ;;  %v8328_v16 = vld [vmem:[#allocation3 + $0x56] sm:$0xff]  ;;  %18104 = vmatprep.subr.bf16.mxu0 %v19901_v52  ;;  %v19905_v19 = vld [vmem:[#allocation7 + $0x360] sm:$0xff]   ;;  %v19920_v59 = vld [vmem:[%s22025_s5 + $0x48] sm:$0xff]  }
 0xacc   : > { %18033 = vmatpush3.bf16.msra.mxu1 %v19889_v2  ;;  %v8325_v2 = vld [vmem:[#allocation3 + $0x3e] sm:$0xff]  ;;  %18105 = vmatpush3.bf16.msra.mxu0 %v19901_v52 }
 0xacd   : > { %v21212_v33 = vld [vmem:[#allocation3 + $0x8f] sm:$0x1]  ;;  %v8177_v20 = vmax.f32 %v8154_v11, 0.0  ;;  %18034 = vmatprep.subr.bf16.mxu1 %v19890_v14  ;;  %v8344_v54 = vpack.c.bf16 %v8325_v2, %v8324_v31  ;;  %v8329_v11 = vld [vmem:[#allocation3 + $0x5e] sm:$0xff] }
 0xace   : > { %v21214_v34 = vld [vmem:[#allocation3 + $0xa7] sm:$0x1]  ;;  %8309 = vst [vmem:[#allocation3 + $0x88] sm:$0xff] %v21208_v38  ;;  %v19907_v38 = vld [vmem:[#allocation7 + $0x370] sm:$0xff]  }
 0xacf   : > { %8223 = vst [vmem:[#allocation3 + $0xb8] sm:$0xff] %v8177_v20  ;;  %v8383_v37 = vld [vmem:[#allocation3 + $0x6f] sm:$0xff]  ;;  %v8384_v32 = vld [vmem:[#allocation3 + $0x77] sm:$0xff]  ;;  %8312 = vst [vmem:[#allocation3 + $0xa0] sm:$0xff] %v21210_v47 }
 0xad0   : > { %v8399_v43 = vpack.c.bf16 %v8383_v37, %v8382_v55  ;;  %v8400_v26 = vpack.c.bf16 %v8385_v10, %v8384_v32  ;;  %18035 = vmatpush3.bf16.msra.mxu1 %v19890_v14  ;;  %v19896_v14 = vld [vmem:[#allocation5 + $0x398] sm:$0xff]   ;;  %v8330_v55 = vld [vmem:[#allocation3 + $0x66] sm:$0xff]  ;;  %v8331_v20 = vld [vmem:[#allocation3 + $0x6e] sm:$0xff] }
 0xad1   : > { %18036 = vmatprep.subr.bf16.mxu1 %v19891_v42  ;;  %v19897_v10 = vld [vmem:[#allocation5 + $0x3a0] sm:$0xff]   ;;  %v8347_v37 = vpack.c.bf16 %v8331_v20, %v8330_v55  ;;  %v19898_v32 = vld [vmem:[#allocation5 + $0x3a8] sm:$0xff]   ;;  %v19908_v47 = vld [vmem:[#allocation7 + $0x378] sm:$0xff]  }
 0xad2   : > { %18012 = vmatprep.mubr.bf16.mxu1 %v8399_v43  ;;  %v8332_v43 = vld [vmem:[#allocation3 + $0x76] sm:$0xff]  ;;  %v9884_v20 = vld [vmem:[#allocation3 + $0x8] sm:$0xff] }
 0xad3   : > { %18013 = vmatmul.mubr.bf16.gmra.mrb[140].mxu1 %v8400_v26  ;;  %v8333_v26 = vld [vmem:[#allocation3 + $0x7e] sm:$0xff] }
 0xad4   : > { %18037 = vmatpush3.bf16.msra.mxu1 %v19891_v42  ;;  %v8346_v42 = vpack.c.bf16 %v8329_v11, %v8328_v16  ;;  %v19928_v16 = vld [vmem:[%s22025_s5 + $0x68] sm:$0xff]   ;;  %v19930_v11 = vld [vmem:[%s22025_s5 + $0x70] sm:$0xff]   ;;  %v19932_v55 = vld [vmem:[%s22025_s5 + $0x78] sm:$0xff]  }
 0xad5   : > { %v8386_v3 = vld [vmem:[#allocation3 + $0x87] sm:$0xff]  ;;  %v8387_v24 = vld [vmem:[#allocation3 + $0x8f] sm:$0xff]  ;;  %18038 = vmatprep.subr.bf16.mxu1 %v19892_v36 }
 0xad6   : > { %v21220_v58 = vld [vmem:[#allocation3 + $0xbf] sm:$0x1]  ;;  %v8401_v15 = vpack.c.bf16 %v8387_v24, %v8386_v3  ;;  %v8390_v28 = vld [vmem:[#allocation3 + $0xa7] sm:$0xff]  ;;  %v8348_v3 = vpack.c.bf16 %v8333_v26, %v8332_v43 }
 0xad7   : > { %v8389_v60 = vld [vmem:[#allocation3 + $0x9f] sm:$0xff]  ;;  %8315 = vst [vmem:[#allocation3 + $0xb8] sm:$0xff] %v21218_v53  ;;  %v8403_v63 = vpack.c.bf16 %v8391_v30, %v8390_v28  ;;  %v19899_v30 = vld [vmem:[#allocation5 + $0x3b0] sm:$0xff]   ;;  %v9888_v43 = vld [vmem:[#allocation3 + $0x28] sm:$0xff] }
 0xad8   : > { %v8402_v9 = vpack.c.bf16 %v8389_v60, %v8388_v56  ;;  %18016 = vmatprep.mubr.bf16.mxu1 %v8401_v15  ;;  %18039 = vmatpush3.bf16.msra.mxu1 %v19892_v36  ;;  %v8334_v36 = vld [vmem:[#allocation3 + $0x86] sm:$0xff]  ;;  %v8335_v56 = vld [vmem:[#allocation3 + $0x8e] sm:$0xff]  ;;  %v8336_v15 = vld [vmem:[#allocation3 + $0x96] sm:$0xff]  ;;  %v9909_v26 = vpack.c.bf16 %v21224_v21, %v9888_v43 }
 0xad9   : > { %18064 = vmatprep.subr.bf16.mxu1 %v19893_v25  ;;  %v8349_v24 = vpack.c.bf16 %v8335_v56, %v8334_v36  ;;  %v8337_v60 = vld [vmem:[#allocation3 + $0x9e] sm:$0xff]  ;;  %v8338_v28 = vld [vmem:[#allocation3 + $0xa6] sm:$0xff] }
 0xada   : > { %v21248_v53 = vld [vmem:[#allocation7 + $0x300] sm:$0xff]  }
 0xadb   : > { %18017 = vmatmul.mubr.bf16.gmra.mrb[144].mxu1 %v8402_v9  ;;  %v8339_v9 = vld [vmem:[#allocation3 + $0xae] sm:$0xff] }
 0xadc   : > { %18020 = vmatprep.mubr.bf16.mxu1 %v8403_v63  ;;  %v8350_v63 = vpack.c.bf16 %v8337_v60, %v8336_v15  ;;  %v8351_v4 = vpack.c.bf16 %v8339_v9, %v8338_v28  ;;  %v9890_v60 = vld [vmem:[#allocation3 + $0x38] sm:$0xff]  ;;  %v9891_v28 = vld [vmem:[#allocation3 + $0x40] sm:$0xff] }
 0xadd   : > { %v9910_v9 = vpack.c.bf16 %v9891_v28, %v9890_v60 }
 0xade   : > { %v8392_v6 = vld [vmem:[#allocation3 + $0xb7] sm:$0xff] }
 0xadf   : > { %v8404_v12 = vpack.c.bf16 %v8392_v6, %v8392_v6  ;;  %v8340_v35 = vld [vmem:[#allocation3 + $0xb6] sm:$0xff] }
 0xae0   : > { %v8352_v6 = vpack.c.bf16 %v8340_v35, %v8340_v35 }
 0xae3   : > { %18021 = vmatmul.mubr.bf16.gmra.mrb[148].mxu1 %v8404_v12  ;;  %v20089_v12 = vld [vmem:[#allocation3 + $0x8] sm:$0xff] }
 0xae4   : > { %18040 = vmatprep.mubr.bf16.mxu1 %v8341_v45  ;;  %v8797_v45 = vpack.c.bf16 %v21177_v51, %v20089_v12  ;;  %v8802_v51 = vpack.c.bf16 %v21224_v21, %v21193_v1  ;;  %v19902_v1 = vld [vmem:[#allocation7 + $0x348] sm:$0xff]  }
 0xae5   : > { %18106 = vmatprep.subr.bf16.mxu0 %v19902_v1 }
 0xae6   : > { %18107 = vmatpush3.bf16.msra.mxu0 %v19902_v1 }
 0xaeb   : > { %18041 = vmatmul.mubr.bf16.vlgmr.msra.gmra.mrb[128].mxu1 %v8342_v7  ;;  %v8801_v7 = vpack.c.bf16 %v21148_v46, %v21224_v21  ;;  %v8807_v46 = vpack.c.bf16 %v21163_v23, %v21224_v21  ;;  %v19906_v23 = vld [vmem:[#allocation7 + $0x368] sm:$0xff]  }
 0xaec   : > { %18065 = vmatpush3.bf16.msra.mxu1 %v19893_v25  ;;  %18044 = vmatprep.mubr.bf16.mxu1 %v8343_v29  ;;  %v19900_v25 = vld [vmem:[#allocation5 + $0x3b8] sm:$0xff]   ;;  %v8803_v29 = vpack.c.bf16 %v21202_v13, %v21154_v41  ;;  %v19903_v41 = vld [vmem:[#allocation7 + $0x350] sm:$0xff]  }
 0xaed   : > { %18066 = vmatprep.subr.bf16.mxu1 %v19894_v0  ;;  %18108 = vmatprep.subr.bf16.mxu0 %v19903_v41  ;;  %v19904_v13 = vld [vmem:[#allocation7 + $0x358] sm:$0xff]  }
 0xaee   : > { %18109 = vmatpush3.bf16.msra.mxu0 %v19903_v41  ;;  %v9896_v41 = vld [vmem:[#allocation3 + $0x68] sm:$0xff] }
 0xaef   : > { %18110 = vmatprep.subr.bf16.mxu0 %v19904_v13 }
 0xaf0   : > { %18067 = vmatpush3.bf16.msra.mxu1 %v19894_v0  ;;  %v19918_v0 = vld [vmem:[%s22025_s5 + $0x40] sm:$0xff]  }
 0xaf1   : > { %18068 = vmatprep.subr.bf16.mxu1 %v19895_v48 }
 0xaf2   : > { %18111 = vmatpush3.bf16.msra.mxu0 %v19904_v13 }
 0xaf3   : > { %18045 = vmatmul.mubr.bf16.gmra.mrb[132].mxu1 %v8344_v54  ;;  %18112 = vmatprep.subr.bf16.mxu0 %v19905_v19  ;;  %v19922_v54 = vld [vmem:[%s22025_s5 + $0x50] sm:$0xff]  }
 0xaf4   : > { %18069 = vmatpush3.bf16.msra.mxu1 %v19895_v48  ;;  %18048 = vmatprep.mubr.bf16.mxu1 %v8345_v27  ;;  %v19924_v27 = vld [vmem:[%s22025_s5 + $0x58] sm:$0xff]  }
 0xaf5   : > { %18070 = vmatprep.subr.bf16.mxu1 %v19896_v14 }
 0xaf6   : > { %18113 = vmatpush3.bf16.msra.mxu0 %v19905_v19 }
 0xaf7   : > { %18114 = vmatprep.subr.bf16.mxu0 %v19906_v23 }
 0xaf8   : > { %18071 = vmatpush3.bf16.msra.mxu1 %v19896_v14  ;;  %v19926_v14 = vld [vmem:[%s22025_s5 + $0x60] sm:$0xff]  }
 0xaf9   : > { %18072 = vmatprep.subr.bf16.mxu1 %v19897_v10 }
 0xafa   : > { %18115 = vmatpush3.bf16.msra.mxu0 %v19906_v23 }
 0xafb   : > { %18049 = vmatmul.mubr.bf16.gmra.mrb[136].mxu1 %v8346_v42  ;;  %18116 = vmatprep.subr.bf16.mxu0 %v19907_v38 }
 0xafc   : > { %18052 = vmatprep.mubr.bf16.mxu1 %v8347_v37  ;;  %18073 = vmatpush3.bf16.msra.mxu1 %v19897_v10  ;;  %v9885_v10 = vld [vmem:[#allocation3 + $0x10] sm:$0xff]  ;;  %v9887_v37 = vld [vmem:[#allocation3 + $0x20] sm:$0xff] }
 0xafd   : > { %18074 = vmatprep.subr.bf16.mxu1 %v19898_v32  ;;  %v9907_v42 = vpack.c.bf16 %v9885_v10, %v9884_v20  ;;  %v9900_v10 = vld [vmem:[#allocation3 + $0x88] sm:$0xff] }
 0xafe   : > { %18117 = vmatpush3.bf16.msra.mxu0 %v19907_v38 }
 0xaff   : > { %18118 = vmatprep.subr.bf16.mxu0 %v19908_v47 }
 0xb00   : > { %18075 = vmatpush3.bf16.msra.mxu1 %v19898_v32  ;;  %v9908_v32 = vpack.c.bf16 %v9887_v37, %v21224_v21 }
 0xb01   : > { %18076 = vmatprep.subr.bf16.mxu1 %v19899_v30 }
 0xb02   : > { %18119 = vmatpush3.bf16.msra.mxu0 %v19908_v47 }
 0xb03   : > { %18053 = vmatmul.mubr.bf16.gmra.mrb[140].mxu1 %v8348_v3  ;;  %18144 = vmatprep.subr.bf16.mxu0 %v21248_v53 }
 0xb04   : > { %18056 = vmatprep.mubr.bf16.mxu1 %v8349_v24  ;;  %18077 = vmatpush3.bf16.msra.mxu1 %v19899_v30 }
 0xb05   : > { %18078 = vmatprep.subr.bf16.mxu1 %v19900_v25 }
 0xb08   : > { %18079 = vmatpush3.bf16.msra.mxu1 %v19900_v25 }
 0xb09   : > { %18224 = vmatprep.subr.bf16.mxu1 %v19918_v0 }
 0xb0b   : > { %18057 = vmatmul.mubr.bf16.gmra.mrb[144].mxu1 %v8350_v63  ;;  %v21286_v63 = vld [vmem:[%s22022_s2 + $0x4] ss:$0 sm:$0xff] }
 0xb0c   : > { %18060 = vmatprep.mubr.bf16.mxu1 %v8351_v4  ;;  %v9893_v4 = vld [vmem:[#allocation3 + $0x50] sm:$0xff] }
 0xb0d   : > { %v9911_v35 = vpack.c.bf16 %v9893_v4, %v21224_v21 }
 0xb13   : > { %18061 = vmatmul.mubr.bf16.gmra.mrb[152].mxu1 %v8352_v6 }
 0xb14   : > { %18080 = vmatprep.mubr.bf16.mxu1 %v8797_v45 }
 0xb1b   : > { %18081 = vmatmul.mubr.bf16.vlgmr.msra.gmra.mrb[128].mxu1 %v8798_v40 }
 0xb1c   : > { %18084 = vmatprep.mubr.bf16.mxu1 %v8799_v5  ;;  %18225 = vmatpush3.bf16.msra.mxu1 %v19918_v0 }
 0xb1d   : > { %18226 = vmatprep.subr.bf16.mxu1 %v19920_v59 }
 0xb20   : > { %18227 = vmatpush3.bf16.msra.mxu1 %v19920_v59 }
 0xb21   : > { %18228 = vmatprep.subr.bf16.mxu1 %v19922_v54 }
 0xb23   : > { %18085 = vmatmul.mubr.bf16.gmra.mrb[132].mxu1 %v8800_v22 }
 0xb24   : > { %18088 = vmatprep.mubr.bf16.mxu1 %v8801_v7  ;;  %18229 = vmatpush3.bf16.msra.mxu1 %v19922_v54 }
 0xb25   : > { %18230 = vmatprep.subr.bf16.mxu1 %v19924_v27 }
 0xb28   : > { %18231 = vmatpush3.bf16.msra.mxu1 %v19924_v27 }
 0xb29   : > { %18232 = vmatprep.subr.bf16.mxu1 %v19926_v14 }
 0xb2b   : > { %18089 = vmatmul.mubr.bf16.gmra.mrb[136].mxu1 %v8802_v51 }
 0xb2c   : > { %18092 = vmatprep.mubr.bf16.mxu1 %v8803_v29  ;;  %18233 = vmatpush3.bf16.msra.mxu1 %v19926_v14  ;;  %v9899_v14 = vld [vmem:[#allocation3 + $0x80] sm:$0xff] }
 0xb2d   : > { %18234 = vmatprep.subr.bf16.mxu1 %v19928_v16 }
 0xb30   : > { %18235 = vmatpush3.bf16.msra.mxu1 %v19928_v16 }
 0xb31   : > { %18236 = vmatprep.subr.bf16.mxu1 %v19930_v11 }
 0xb33   : > { %18093 = vmatmul.mubr.bf16.gmra.mrb[140].mxu1 %v8804_v39 }
 0xb34   : > { %18096 = vmatprep.mubr.bf16.mxu1 %v8805_v49  ;;  %18237 = vmatpush3.bf16.msra.mxu1 %v19930_v11  ;;  %v9894_v49 = vld [vmem:[#allocation3 + $0x58] sm:$0xff]  ;;  %v9914_v11 = vpack.c.bf16 %v9899_v14, %v21224_v21 }
 0xb35   : > { %18238 = vmatprep.subr.bf16.mxu1 %v19932_v55  ;;  %v9912_v52 = vpack.c.bf16 %v21224_v21, %v9894_v49 }
 0xb38   : > { %18239 = vmatpush3.bf16.msra.mxu1 %v19932_v55 }
 0xb3b   : > { %18097 = vmatmul.mubr.bf16.gmra.mrb[144].mxu1 %v8806_v17 }
 0xb3c   : > { %18100 = vmatprep.mubr.bf16.mxu1 %v8807_v46 }
 0xb43   : > { %18101 = vmatmul.mubr.bf16.gmra.mrb[156].mxu1 %v8808_v8  ;;  %v9897_v8 = vld [vmem:[#allocation3 + $0x70] sm:$0xff] }
 0xb44   : > { %18240 = vmatprep.mubr.bf16.mxu1 %v9907_v42  ;;  %v9913_v19 = vpack.c.bf16 %v9897_v8, %v9896_v41  ;;  %v19912_v8 = vld [vmem:[#allocation7 + $0x318] sm:$0xff]  }
 0xb4b   : > { %18241 = vmatmul.mubr.bf16.vlgmr.msra.gmra.mrb[160].mxu1 %v9908_v32 }
 0xb4c   : > { %18244 = vmatprep.mubr.bf16.mxu1 %v9909_v26  ;;  %v9915_v26 = vpack.c.bf16 %v21224_v21, %v9900_v10 }
 0xb53   : > { %18245 = vmatmul.mubr.bf16.gmra.mrb[164].mxu1 %v9910_v9  ;;  %v19910_v9 = vld [vmem:[#allocation7 + $0x308] sm:$0xff]  }
 0xb54   : > { %18248 = vmatprep.mubr.bf16.mxu1 %v9911_v35 }
 0xb5b   : > { %18249 = vmatmul.mubr.bf16.gmra.mrb[168].mxu1 %v9912_v52 }
 0xb5c   : > { %18252 = vmatprep.mubr.bf16.mxu1 %v9913_v19 }
 0xb63   : > { %18253 = vmatmul.mubr.bf16.gmra.mrb[172].mxu1 %v9914_v11 }
 0xb64   : > { %18256 = vmatprep.mubr.bf16.mxu1 %v9915_v26 }
 0xbb6   : > { %v18022_v31 = vpop.f32.mrb[148].mxu1 }
 0xbb7   : > { %v8584_v2 = vpop.f32.mrb[149].mxu1 }
 0xbb8   : > { %v18023_v48 = vpop.f32.mrb[150].mxu1 }
 0xbb9   : > { %v8587_v62 = vpop.f32.mrb[151].mxu1 }
 0xbe6   : > { %v18062_v36 = vpop.f32.mrb[152].mxu1 }
 0xbe7   : > { %v21277_v56 = vadd.f32 %v18062_v36, %v18022_v31  ;;  %v8760_v30 = vpop.f32.mrb[153].mxu1 }
 0xbe8   : > { %v21279_v3 = vadd.f32 %v8760_v30, %v8584_v2  ;;  %v18063_v24 = vpop.f32.mrb[154].mxu1 }
 0xbe9   : > { %v8763_v25 = vpop.f32.mrb[155].mxu1 }
 0xbea   : > { %v21281_v15 = vadd.f32 %v8763_v25, %v8587_v62 }
 0xbee   : > { %v18082_v6 = vpop.f32.mrb[128].mxu1 }
 0xbef   : > { %v9033_v12 = vadd.f32 %v18082_v6, %v21286_v63  ;;  %v8908_v45 = vpop.f32.mrb[129].mxu1 }
 0xbf0   : > { %v9031_v40 = vadd.f32 %v21286_v63, %v8908_v45  ;;  %v18083_v5 = vpop.f32.mrb[130].mxu1 }
 0xbf1   : > { %v9056_v22 = vmax.f32 %v9033_v12, 0.0  ;;  %v9034_v7 = vadd.f32 %v18083_v5, %v21286_v63  ;;  %v8911_v51 = vpop.f32.mrb[131].mxu1 }
 0xbf2   : > { %v9054_v29 = vmax.f32 %v9031_v40, 0.0  ;;  %v9032_v39 = vadd.f32 %v21286_v63, %v8911_v51  ;;  %v9903_v51 = vld [vmem:[#allocation3 + $0xa0] sm:$0xff] }
 0xbf3   : > { %v9079_v17 = vmul.f32 0.0, %v9056_v22  ;;  %v9057_v46 = vmax.f32 %v9034_v7, 0.0  ;;  %v9902_v7 = vld [vmem:[#allocation3 + $0x98] sm:$0xff] }
 0xbf4   : > { %9100 = vst [vmem:[#allocation4 + $0x8] sm:$0xff] %v9054_v29  ;;  %v9055_v1 = vmax.f32 %v9032_v39, 0.0  ;;  %v19911_v39 = vld [vmem:[#allocation7 + $0x310] sm:$0xff]   ;;  %v9916_v49 = vpack.c.bf16 %v9903_v51, %v9902_v7 }
 0xbf5   : > { %9102 = vst [vmem:[#allocation4 + $0x18] sm:$0xff] %v9079_v17  ;;  %9103 = vst [vmem:[#allocation4 + $0x20] sm:$0xff] %v9057_v46  ;;  %v21294_v13 = vpack.c.bf16 %v9057_v46, %v9079_v17 }
 0xbf6   : > { %9101 = vst [vmem:[#allocation4 + $0x10] sm:$0xff] %v9055_v1  ;;  %v18086_v23 = vpop.f32.mrb[132].mxu1  ;;  %v21296_v38 = vpack.c.bf16 %v9055_v1, %v9054_v29  ;;  %18257 = vmatmul.mubr.bf16.gmra.mrb[176].mxu1 %v9916_v49 }
 0xbf7   : > { %v9037_v47 = vadd.f32 %v18086_v23, %v21286_v63  ;;  %v8924_v0 = vpop.f32.mrb[133].mxu1 }
 0xbf8   : > { %v9035_v31 = vadd.f32 %v21286_v63, %v8924_v0  ;;  %v18087_v2 = vpop.f32.mrb[134].mxu1 }
 0xbf9   : > { %v9060_v48 = vmax.f32 %v9037_v47, 0.0  ;;  %v9038_v62 = vadd.f32 %v18087_v2, %v21286_v63  ;;  %v8927_v59 = vpop.f32.mrb[135].mxu1 }
 0xbfa   : > { %v9058_v54 = vmax.f32 %v9035_v31, 0.0  ;;  %v9036_v27 = vadd.f32 %v21286_v63, %v8927_v59 }
 0xbfb   : > { %9106 = vst [vmem:[#allocation4 + $0x38] sm:$0xff] %v9060_v48  ;;  %v9061_v16 = vmax.f32 %v9038_v62, 0.0  ;;  %v9177_v42 = vld [vmem:[#allocation4 + $0x7] sm:$0xff] }
 0xbfc   : > { %9104 = vst [vmem:[#allocation4 + $0x28] sm:$0xff] %v9058_v54  ;;  %v9059_v55 = vmax.f32 %v9036_v27, 0.0  ;;  %v9180_v20 = vld [vmem:[#allocation4 + $0x1f] sm:$0xff] }
 0xbfd   : > { %9107 = vst [vmem:[#allocation4 + $0x40] sm:$0xff] %v9061_v16  ;;  %v9178_v37 = vld [vmem:[#allocation4 + $0xf] sm:$0xff]  ;;  %v9179_v32 = vld [vmem:[#allocation4 + $0x17] sm:$0xff]  ;;  %v21303_v43 = vpack.c.bf16 %v9061_v16, %v9060_v48 }
 0xbfe   : > { %v9082_v36 = vmul.f32 0.0, %v9059_v55  ;;  %v18090_v30 = vpop.f32.mrb[136].mxu1  ;;  %v9200_v24 = vpack.c.bf16 %v9178_v37, %v9177_v42  ;;  %v9201_v25 = vpack.c.bf16 %v9180_v20, %v9179_v32  ;;  %v19913_v42 = vld [vmem:[#allocation7 + $0x320] sm:$0xff]   ;;  %v9905_v37 = vld [vmem:[#allocation3 + $0xb0] sm:$0xff]  ;;  %v9906_v32 = vld [vmem:[#allocation3 + $0xb8] sm:$0xff] }
 0xbff   : > { %v9041_v60 = vadd.f32 %v18090_v30, %v21286_v63  ;;  %v8940_v28 = vpop.f32.mrb[137].mxu1  ;;  %v9918_v30 = vpack.c.bf16 %v9906_v32, %v9906_v32 }
 0xc00   : > { %9105 = vst [vmem:[#allocation4 + $0x30] sm:$0xff] %v9082_v36  ;;  %v9039_v4 = vadd.f32 %v21286_v63, %v8940_v28  ;;  %v18091_v35 = vpop.f32.mrb[138].mxu1  ;;  %18120 = vmatprep.mubr.bf16.mxu0 %v9200_v24  ;;  %v21308_v6 = vpack.c.bf16 %v9082_v36, %v9058_v54  ;;  %v9917_v36 = vpack.c.bf16 %v9905_v37, %v21224_v21  ;;  %v19914_v21 = vld [vmem:[#allocation7 + $0x328] sm:$0xff]   ;;  %v19917_v37 = vld [vmem:[#allocation7 + $0x380] sm:$0xff]  }
 0xc01   : > { %v9064_v12 = vmax.f32 %v9041_v60, 0.0  ;;  %v9042_v45 = vadd.f32 %v18091_v35, %v21286_v63  ;;  %v8943_v40 = vpop.f32.mrb[139].mxu1  ;;  %18121 = vmatmul.mubr.bf16.vlgmr.msra.gmra.mrb[152].mxu0 %v9201_v25 }
 0xc02   : > { %v9062_v5 = vmax.f32 %v9039_v4, 0.0  ;;  %v9040_v22 = vadd.f32 %v21286_v63, %v8943_v40  ;;  %18145 = vmatpush3.bf16.msra.mxu0 %v21248_v53  ;;  %18260 = vmatprep.mubr.bf16.mxu1 %v9917_v36 }
 0xc03   : > { %9110 = vst [vmem:[#allocation4 + $0x58] sm:$0xff] %v9064_v12  ;;  %v9065_v29 = vmax.f32 %v9042_v45, 0.0  ;;  %18146 = vmatprep.subr.bf16.mxu0 %v19910_v9  ;;  %v9181_v41 = vld [vmem:[#allocation4 + $0x27] sm:$0xff]  ;;  %18261 = vmatmul.mubr.bf16.gmra.mrb[180].mxu1 %v9918_v30 }
 0xc04   : > { %v9085_v17 = vmul.f32 0.0, %v9062_v5  ;;  %v9063_v46 = vmax.f32 %v9040_v22, 0.0  ;;  %v9184_v31 = vld [vmem:[#allocation4 + $0x3f] sm:$0xff] }
 0xc05   : > { %v9088_v52 = vmul.f32 0.0, %v9065_v29 }
 0xc06   : > { %9108 = vst [vmem:[#allocation4 + $0x48] sm:$0xff] %v9085_v17  ;;  %9109 = vst [vmem:[#allocation4 + $0x50] sm:$0xff] %v9063_v46  ;;  %v18094_v1 = vpop.f32.mrb[140].mxu1  ;;  %18147 = vmatpush3.bf16.msra.mxu0 %v19910_v9  ;;  %v21313_v19 = vpack.c.bf16 %v9063_v46, %v9085_v17 }
 0xc07   : > { %9111 = vst [vmem:[#allocation4 + $0x60] sm:$0xff] %v9088_v52  ;;  %v9045_v53 = vadd.f32 %v18094_v1, %v21286_v63  ;;  %v8956_v23 = vpop.f32.mrb[141].mxu1  ;;  %v9182_v47 = vld [vmem:[#allocation4 + $0x2f] sm:$0xff]  ;;  %v9183_v0 = vld [vmem:[#allocation4 + $0x37] sm:$0xff]  ;;  %18148 = vmatprep.subr.bf16.mxu0 %v19911_v39  ;;  %v21316_v2 = vpack.c.bf16 %v9088_v52, %v9064_v12 }
 0xc08   : > { %v9043_v48 = vadd.f32 %v21286_v63, %v8956_v23  ;;  %v18095_v62 = vpop.f32.mrb[142].mxu1  ;;  %v9202_v59 = vpack.c.bf16 %v9182_v47, %v9181_v41  ;;  %v9203_v54 = vpack.c.bf16 %v9184_v31, %v9183_v0  ;;  %v19915_v52 = vld [vmem:[#allocation7 + $0x330] sm:$0xff]  }
 0xc09   : > { %v9068_v27 = vmax.f32 %v9045_v53, 0.0  ;;  %v9046_v14 = vadd.f32 %v18095_v62, %v21286_v63  ;;  %v8959_v16 = vpop.f32.mrb[143].mxu1 }
 0xc0a   : > { %v9066_v11 = vmax.f32 %v9043_v48, 0.0  ;;  %v9044_v55 = vadd.f32 %v21286_v63, %v8959_v16  ;;  %18124 = vmatprep.mubr.bf16.mxu0 %v9202_v59  ;;  %18149 = vmatpush3.bf16.msra.mxu0 %v19911_v39 }
 0xc0b   : > { %v9091_v20 = vmul.f32 0.0, %v9068_v27  ;;  %v9069_v10 = vmax.f32 %v9046_v14, 0.0  ;;  %18125 = vmatmul.mubr.bf16.gmra.mrb[156].mxu0 %v9203_v54  ;;  %18150 = vmatprep.subr.bf16.mxu0 %v19912_v8  ;;  %v19916_v54 = vld [vmem:[#allocation7 + $0x338] sm:$0xff]  }
 0xc0c   : > { %9112 = vst [vmem:[#allocation4 + $0x68] sm:$0xff] %v9066_v11  ;;  %v9067_v26 = vmax.f32 %v9044_v55, 0.0 }
 0xc0d   : > { %9114 = vst [vmem:[#allocation4 + $0x78] sm:$0xff] %v9091_v20  ;;  %9115 = vst [vmem:[#allocation4 + $0x80] sm:$0xff] %v9069_v10  ;;  %v9185_v24 = vld [vmem:[#allocation4 + $0x47] sm:$0xff]  ;;  %v9186_v25 = vld [vmem:[#allocation4 + $0x4f] sm:$0xff]  ;;  %v21322_v60 = vpack.c.bf16 %v9069_v10, %v9091_v20 }
 0xc0e   : > { %9113 = vst [vmem:[#allocation4 + $0x70] sm:$0xff] %v9067_v26  ;;  %v18098_v28 = vpop.f32.mrb[144].mxu1  ;;  %v9204_v9 = vpack.c.bf16 %v9186_v25, %v9185_v24  ;;  %v9187_v4 = vld [vmem:[#allocation4 + $0x57] sm:$0xff]  ;;  %v9188_v35 = vld [vmem:[#allocation4 + $0x5f] sm:$0xff]  ;;  %18151 = vmatpush3.bf16.msra.mxu0 %v19912_v8  ;;  %v21324_v12 = vpack.c.bf16 %v9067_v26, %v9066_v11 }
 0xc0f   : > { %v9049_v45 = vadd.f32 %v18098_v28, %v21286_v63  ;;  %v8972_v40 = vpop.f32.mrb[145].mxu1  ;;  %18152 = vmatprep.subr.bf16.mxu0 %v19913_v42  ;;  %v9205_v39 = vpack.c.bf16 %v9188_v35, %v9187_v4  ;;  %v9126_v35 = vld [vmem:[#allocation4 + $0xe] sm:$0xff] }
 0xc10   : > { %v9047_v5 = vadd.f32 %v21286_v63, %v8972_v40  ;;  %v18099_v22 = vpop.f32.mrb[146].mxu1  ;;  %18128 = vmatprep.mubr.bf16.mxu0 %v9204_v9 }
 0xc11   : > { %v9072_v7 = vmax.f32 %v9049_v45, 0.0  ;;  %v9050_v51 = vadd.f32 %v18099_v22, %v21286_v63  ;;  %v8975_v29 = vpop.f32.mrb[147].mxu1  ;;  %v9125_v22 = vld [vmem:[#allocation4 + $0x6] sm:$0xff] }
 0xc12   : > { %v9070_v49 = vmax.f32 %v9047_v5, 0.0  ;;  %v9048_v17 = vadd.f32 %v21286_v63, %v8975_v29  ;;  %18153 = vmatpush3.bf16.msra.mxu0 %v19913_v42  ;;  %v9128_v29 = vld [vmem:[#allocation4 + $0x1e] sm:$0xff] }
 0xc13   : > { %9118 = vst [vmem:[#allocation4 + $0x98] sm:$0xff] %v9072_v7  ;;  %v9073_v46 = vmax.f32 %v9050_v51, 0.0  ;;  %18129 = vmatmul.mubr.bf16.gmra.mrb[160].mxu0 %v9205_v39  ;;  %18154 = vmatprep.subr.bf16.mxu0 %v19914_v21  ;;  %v9189_v41 = vld [vmem:[#allocation4 + $0x67] sm:$0xff]  ;;  %v9127_v51 = vld [vmem:[#allocation4 + $0x16] sm:$0xff] }
 0xc14   : > { %9116 = vst [vmem:[#allocation4 + $0x88] sm:$0xff] %v9070_v49  ;;  %v9071_v1 = vmax.f32 %v9048_v17, 0.0  ;;  %v9192_v48 = vld [vmem:[#allocation4 + $0x7f] sm:$0xff]  ;;  %v9130_v39 = vld [vmem:[#allocation4 + $0x2e] sm:$0xff] }
 0xc15   : > { %9119 = vst [vmem:[#allocation4 + $0xa0] sm:$0xff] %v9073_v46  ;;  %v9190_v8 = vld [vmem:[#allocation4 + $0x6f] sm:$0xff]  ;;  %v21330_v53 = vpack.c.bf16 %v9073_v46, %v9072_v7  ;;  %v9191_v31 = vld [vmem:[#allocation4 + $0x77] sm:$0xff]  ;;  %v9148_v7 = vpack.c.bf16 %v9126_v35, %v9125_v22  ;;  %v9129_v17 = vld [vmem:[#allocation4 + $0x26] sm:$0xff] }
 0xc16   : > { %v9094_v23 = vmul.f32 0.0, %v9071_v1  ;;  %v18102_v47 = vpop.f32.mrb[156].mxu1  ;;  %v9206_v0 = vpack.c.bf16 %v9190_v8, %v9189_v41  ;;  %18155 = vmatpush3.bf16.msra.mxu0 %v19914_v21  ;;  %v9207_v20 = vpack.c.bf16 %v9192_v48, %v9191_v31  ;;  %v19919_v46 = vld [vmem:[#allocation7 + $0x388] sm:$0xff]   ;;  %v19921_v1 = vld [vmem:[#allocation7 + $0x390] sm:$0xff]   ;;  %v19923_v31 = vld [vmem:[#allocation7 + $0x398] sm:$0xff]  }
 0xc17   : > { %v9024_v62 = vadd.f32 %v18102_v47, %v21277_v56  ;;  %v8988_v59 = vpop.f32.mrb[157].mxu1  ;;  %18156 = vmatprep.subr.bf16.mxu0 %v19915_v52  ;;  %v9131_v41 = vld [vmem:[#allocation4 + $0x36] sm:$0xff]  ;;  %v9133_v8 = vld [vmem:[#allocation4 + $0x46] sm:$0xff]  ;;  %v9132_v47 = vld [vmem:[#allocation4 + $0x3e] sm:$0xff] }
 0xc18   : > { %9117 = vst [vmem:[#allocation4 + $0x90] sm:$0xff] %v9094_v23  ;;  %v9022_v27 = vadd.f32 %v8988_v59, %v21279_v3  ;;  %v18103_v14 = vpop.f32.mrb[158].mxu1  ;;  %18132 = vmatprep.mubr.bf16.mxu0 %v9206_v0  ;;  %v21334_v16 = vpack.c.bf16 %v9094_v23, %v9070_v49  ;;  %v9149_v49 = vpack.c.bf16 %v9128_v29, %v9127_v51  ;;  %v9134_v23 = vld [vmem:[#allocation4 + $0x4e] sm:$0xff]  ;;  %v9135_v59 = vld [vmem:[#allocation4 + $0x56] sm:$0xff] }
 0xc19   : > { %v9053_v11 = vadd.f32 %v21286_v63, %v9024_v62  ;;  %v8991_v55 = vpop.f32.mrb[159].mxu1  ;;  %v9151_v0 = vpack.c.bf16 %v9132_v47, %v9131_v41  ;;  %v9152_v48 = vpack.c.bf16 %v9134_v23, %v9133_v8  ;;  %v19925_v62 = vld [vmem:[#allocation7 + $0x3a0] sm:$0xff]   ;;  %v19939_v22 = vld [vmem:[#allocation5 + $0x430] sm:$0xff]  }
 0xc1a   : > { %v9051_v10 = vadd.f32 %v21286_v63, %v9022_v27  ;;  %v9023_v42 = vadd.f32 %v8991_v55, %v21281_v15  ;;  %18157 = vmatpush3.bf16.msra.mxu0 %v19915_v52  ;;  %v9150_v52 = vpack.c.bf16 %v9130_v39, %v9129_v17  ;;  %v9138_v27 = vld [vmem:[#allocation4 + $0x6e] sm:$0xff]  ;;  %v19940_v39 = vld [vmem:[#allocation5 + $0x438] sm:$0xff]   ;;  %v21388_v8 = vld [vmem:[#allocation5 + $0x3c0] sm:$0xff]  }
 0xc1b   : > { %v21339_v56 = vmax.f32 %v9053_v11, 0.0  ;;  %18133 = vmatmul.mubr.bf16.gmra.mrb[164].mxu0 %v9207_v20  ;;  %18158 = vmatprep.subr.bf16.mxu0 %v19916_v54  ;;  %v9193_v30 = vld [vmem:[#allocation4 + $0x87] sm:$0xff] }
 0xc1c   : > { %v9074_v32 = vmax.f32 %v9051_v10, 0.0  ;;  %v9052_v3 = vadd.f32 %v21286_v63, %v9023_v42  ;;  %v9196_v28 = vld [vmem:[#allocation4 + $0x9f] sm:$0xff]  ;;  %v19927_v55 = vld [vmem:[#allocation7 + $0x3a8] sm:$0xff]   ;;  %v19929_v10 = vld [vmem:[#allocation7 + $0x3b0] sm:$0xff]  }
 0xc1d   : > { %9122 = vst [vmem:[#allocation4 + $0xb8] sm:$0xff] %v21339_v56  ;;  %v9137_v11 = vld [vmem:[#allocation4 + $0x66] sm:$0xff]  ;;  %v9139_v42 = vld [vmem:[#allocation4 + $0x76] sm:$0xff] }
 0xc1e   : > { %v9097_v26 = vmul.f32 0.0, %v9074_v32  ;;  %v9075_v36 = vmax.f32 %v9052_v3, 0.0  ;;  %18159 = vmatpush3.bf16.msra.mxu0 %v19916_v54  ;;  %v9136_v54 = vld [vmem:[#allocation4 + $0x5e] sm:$0xff]  ;;  %v9154_v20 = vpack.c.bf16 %v9138_v27, %v9137_v11 }
 0xc1f   : > { %v9194_v24 = vld [vmem:[#allocation4 + $0x8f] sm:$0xff]  ;;  %v9195_v25 = vld [vmem:[#allocation4 + $0x97] sm:$0xff]  ;;  %18184 = vmatprep.subr.bf16.mxu0 %v19917_v37  ;;  %v9153_v14 = vpack.c.bf16 %v9136_v54, %v9135_v59 }
 0xc20   : > { %9120 = vst [vmem:[#allocation4 + $0xa8] sm:$0xff] %v9097_v26  ;;  %9121 = vst [vmem:[#allocation4 + $0xb0] sm:$0xff] %v9075_v36  ;;  %v9208_v15 = vpack.c.bf16 %v9194_v24, %v9193_v30  ;;  %v9209_v9 = vpack.c.bf16 %v9196_v28, %v9195_v25  ;;  %v21343_v4 = vpack.c.bf16 %v9075_v36, %v9097_v26  ;;  %v9142_v32 = vld [vmem:[#allocation4 + $0x8e] sm:$0xff]  ;;  %v9141_v26 = vld [vmem:[#allocation4 + $0x86] sm:$0xff] }
 0xc21   : > { %v19931_v36 = vld [vmem:[#allocation7 + $0x3b8] sm:$0xff]   ;;  %v9156_v30 = vpack.c.bf16 %v9142_v32, %v9141_v26  ;;  %v21412_v26 = vld [vmem:[%s22024_s4 + $0x4] ss:$0 sm:$0xff] }
 0xc22   : > { %18136 = vmatprep.mubr.bf16.mxu0 %v9208_v15  ;;  %v9143_v24 = vld [vmem:[#allocation4 + $0x96] sm:$0xff]  ;;  %v9144_v15 = vld [vmem:[#allocation4 + $0x9e] sm:$0xff] }
 0xc23   : > { %18137 = vmatmul.mubr.bf16.gmra.mrb[168].mxu0 %v9209_v9  ;;  %v9157_v9 = vpack.c.bf16 %v9144_v15, %v9143_v24 }
 0xc27   : > { %v9197_v63 = vld [vmem:[#allocation4 + $0xa7] sm:$0xff]  ;;  %v9198_v45 = vld [vmem:[#allocation4 + $0xaf] sm:$0xff]  ;;  %v9199_v40 = vld [vmem:[#allocation4 + $0xb7] sm:$0xff] }
 0xc28   : > { %v9210_v21 = vpack.c.bf16 %v9198_v45, %v9197_v63  ;;  %v9211_v5 = vpack.c.bf16 %v9199_v40, %v9199_v40  ;;  %v9145_v25 = vld [vmem:[#allocation4 + $0xa6] sm:$0xff]  ;;  %v9146_v28 = vld [vmem:[#allocation4 + $0xae] sm:$0xff]  ;;  %v9147_v63 = vld [vmem:[#allocation4 + $0xb6] sm:$0xff] }
 0xc29   : > { %v9158_v35 = vpack.c.bf16 %v9146_v28, %v9145_v25  ;;  %v9159_v45 = vpack.c.bf16 %v9147_v63, %v9147_v63  ;;  %v19933_v40 = vld [vmem:[#allocation5 + $0x400] sm:$0xff]  }
 0xc2a   : > { %18140 = vmatprep.mubr.bf16.mxu0 %v9210_v21  ;;  %v19934_v21 = vld [vmem:[#allocation5 + $0x408] sm:$0xff]  }
 0xc2b   : > { %18141 = vmatmul.mubr.bf16.gmra.mrb[172].mxu0 %v9211_v5 }
 0xc2c   : > { %18160 = vmatprep.mubr.bf16.mxu0 %v9148_v7 }
 0xc33   : > { %18161 = vmatmul.mubr.bf16.vlgmr.msra.gmra.mrb[152].mxu0 %v9149_v49 }
 0xc34   : > { %18164 = vmatprep.mubr.bf16.mxu0 %v9150_v52  ;;  %18185 = vmatpush3.bf16.msra.mxu0 %v19917_v37  ;;  %v9140_v37 = vld [vmem:[#allocation4 + $0x7e] sm:$0xff] }
 0xc35   : > { %18186 = vmatprep.subr.bf16.mxu0 %v19919_v46  ;;  %v9155_v3 = vpack.c.bf16 %v9140_v37, %v9139_v42 }
 0xc38   : > { %18187 = vmatpush3.bf16.msra.mxu0 %v19919_v46 }
 0xc39   : > { %18188 = vmatprep.subr.bf16.mxu0 %v19921_v1 }
 0xc3b   : > { %18165 = vmatmul.mubr.bf16.gmra.mrb[156].mxu0 %v9151_v0 }
 0xc3c   : > { %18168 = vmatprep.mubr.bf16.mxu0 %v9152_v48  ;;  %18189 = vmatpush3.bf16.msra.mxu0 %v19921_v1 }
 0xc3d   : > { %18190 = vmatprep.subr.bf16.mxu0 %v19923_v31 }
 0xc40   : > { %18191 = vmatpush3.bf16.msra.mxu0 %v19923_v31 }
 0xc41   : > { %18192 = vmatprep.subr.bf16.mxu0 %v19925_v62 }
 0xc43   : > { %18169 = vmatmul.mubr.bf16.gmra.mrb[160].mxu0 %v9153_v14 }
 0xc44   : > { %18172 = vmatprep.mubr.bf16.mxu0 %v9154_v20  ;;  %18193 = vmatpush3.bf16.msra.mxu0 %v19925_v62 }
 0xc45   : > { %18194 = vmatprep.subr.bf16.mxu0 %v19927_v55 }
 0xc48   : > { %18195 = vmatpush3.bf16.msra.mxu0 %v19927_v55 }
 0xc49   : > { %18196 = vmatprep.subr.bf16.mxu0 %v19929_v10 }
 0xc4b   : > { %18173 = vmatmul.mubr.bf16.gmra.mrb[164].mxu0 %v9155_v3 }
 0xc4c   : > { %18176 = vmatprep.mubr.bf16.mxu0 %v9156_v30  ;;  %18197 = vmatpush3.bf16.msra.mxu0 %v19929_v10 }
 0xc4d   : > { %18198 = vmatprep.subr.bf16.mxu0 %v19931_v36 }
 0xc50   : > { %18199 = vmatpush3.bf16.msra.mxu0 %v19931_v36  ;;  %v21417_v36 = vld [vmem:[%s22026_s6 + $0x1] ss:$0 sm:$0xff] }
 0xc51   : > { %18264 = vmatprep.subr.bf16.mxu0 %v19933_v40 }
 0xc53   : > { %18177 = vmatmul.mubr.bf16.gmra.mrb[168].mxu0 %v9157_v9 }
 0xc54   : > { %18180 = vmatprep.mubr.bf16.mxu0 %v9158_v35 }
 0xc5b   : > { %18181 = vmatmul.mubr.bf16.gmra.mrb[176].mxu0 %v9159_v45 }
 0xc5c   : > { %18200 = vmatprep.mubr.bf16.mxu0 %v21296_v38  ;;  %v9615_v38 = vpack.c.bf16 %v21339_v56, %v21339_v56  ;;  %v19938_v56 = vld [vmem:[#allocation5 + $0x428] sm:$0xff]  }
 0xc63   : > { %18201 = vmatmul.mubr.bf16.vlgmr.msra.gmra.mrb[152].mxu0 %v21294_v13  ;;  %v19935_v13 = vld [vmem:[#allocation5 + $0x410] sm:$0xff]  }
 0xc64   : > { %18204 = vmatprep.mubr.bf16.mxu0 %v21308_v6  ;;  %18265 = vmatpush3.bf16.msra.mxu0 %v19933_v40  ;;  %v18242_v6 = vpop.f32.mrb[160].mxu1 }
 0xc65   : > { %18266 = vmatprep.subr.bf16.mxu0 %v19934_v21  ;;  %v10035_v25 = vadd.f32 %v18242_v6, %v21417_v36 }
 0xc68   : > { %18267 = vmatpush3.bf16.msra.mxu0 %v19934_v21 }
 0xc69   : > { %18268 = vmatprep.subr.bf16.mxu0 %v19935_v13 }
 0xc6b   : > { %18205 = vmatmul.mubr.bf16.gmra.mrb[156].mxu0 %v21303_v43  ;;  %v19936_v43 = vld [vmem:[#allocation5 + $0x418] sm:$0xff]  }
 0xc6c   : > { %18208 = vmatprep.mubr.bf16.mxu0 %v21313_v19  ;;  %18269 = vmatpush3.bf16.msra.mxu0 %v19935_v13  ;;  %v10026_v19 = vpop.f32.mrb[161].mxu1 }
 0xc6d   : > { %18270 = vmatprep.subr.bf16.mxu0 %v19936_v43  ;;  %v10027_v9 = vadd.f32 %v21417_v36, %v10026_v19 }
 0xc70   : > { %18271 = vmatpush3.bf16.msra.mxu0 %v19936_v43 }
 0xc73   : > { %18209 = vmatmul.mubr.bf16.gmra.mrb[160].mxu0 %v21316_v2  ;;  %v21358_v2 = vpop.f32.mrb[162].mxu1 }
 0xc74   : > { %18212 = vmatprep.mubr.bf16.mxu0 %v21324_v12  ;;  %v19937_v12 = vld [vmem:[#allocation5 + $0x420] sm:$0xff]  }
 0xc75   : > { %18272 = vmatprep.subr.bf16.mxu0 %v19937_v12 }
 0xc76   : > { %18273 = vmatpush3.bf16.msra.mxu0 %v19937_v12  ;;  %v10038_v12 = vadd.f32 %v21358_v2, %v21417_v36 }
 0xc77   : > { %18274 = vmatprep.subr.bf16.mxu0 %v19938_v56 }
 0xc7a   : > { %18275 = vmatpush3.bf16.msra.mxu0 %v19938_v56 }
 0xc7b   : > { %18213 = vmatmul.mubr.bf16.gmra.mrb[164].mxu0 %v21322_v60  ;;  %v21360_v60 = vpop.f32.mrb[163].mxu1  ;;  %18276 = vmatprep.subr.bf16.mxu0 %v19939_v22 }
 0xc7c   : > { %18216 = vmatprep.mubr.bf16.mxu0 %v21334_v16 }
 0xc7e   : > { %18277 = vmatpush3.bf16.msra.mxu0 %v19939_v22  ;;  %v10030_v22 = vadd.f32 %v21417_v36, %v21360_v60 }
 0xc7f   : > { %18278 = vmatprep.subr.bf16.mxu0 %v19940_v39 }
 0xc82   : > { %18279 = vmatpush3.bf16.msra.mxu0 %v19940_v39 }
 0xc83   : > { %18217 = vmatmul.mubr.bf16.gmra.mrb[168].mxu0 %v21330_v53  ;;  %v21362_v53 = vpop.f32.mrb[164].mxu1  ;;  %18304 = vmatprep.subr.bf16.mxu0 %v21388_v8 }
 0xc84   : > { %18220 = vmatprep.mubr.bf16.mxu0 %v21343_v4  ;;  %v21364_v16 = vpop.f32.mrb[165].mxu1 }
 0xc85   : > { %v21366_v4 = vpop.f32.mrb[166].mxu1  ;;  %v10043_v60 = vadd.f32 %v21417_v36, %v21364_v16 }
 0xc86   : > { %v21368_v5 = vpop.f32.mrb[167].mxu1  ;;  %v10054_v16 = vadd.f32 %v21366_v4, %v21417_v36 }
 0xc87   : > { %v21370_v7 = vpop.f32.mrb[168].mxu1 }
 0xc88   : > { %v21372_v51 = vpop.f32.mrb[169].mxu1 }
 0xc89   : > { %v21374_v29 = vpop.f32.mrb[170].mxu1 }
 0xc8a   : > { %v21376_v49 = vpop.f32.mrb[171].mxu1 }
 0xc8b   : > { %18221 = vmatmul.mubr.bf16.gmra.mrb[180].mxu0 %v9615_v38  ;;  %v21378_v17 = vpop.f32.mrb[172].mxu1 }
 0xc8c   : > { %v21380_v46 = vpop.f32.mrb[173].mxu1 }
 0xc8d   : > { %v21382_v52 = vpop.f32.mrb[174].mxu1 }
 0xc8e   : > { %v21384_v1 = vpop.f32.mrb[175].mxu1 }
 0xcc9   : > { %v21386_v41 = vpop.f32.mrb[176].mxu1 }
 0xcca   : > { %v21390_v23 = vpop.f32.mrb[177].mxu1 }
 0xccb   : > { %v21392_v47 = vpop.f32.mrb[178].mxu1 }
 0xccc   : > { %v21395_v0 = vpop.f32.mrb[179].mxu1 }
 0xcd6   : > { %v21397_v31 = vpop.f32.mrb[180].mxu1 }
 0xcd7   : > { %v21399_v48 = vpop.f32.mrb[181].mxu1 }
 0xcd8   : > { %v18263_v62 = vpop.f32.mrb[182].mxu1 }
 0xcd9   : > { %v21401_v59 = vpop.f32.mrb[183].mxu1 }
 0xcfe   : > { %v18142_v54 = vpop.f32.mrb[172].mxu0 }
 0xcff   : > { %v9391_v27 = vpop.f32.mrb[173].mxu0 }
 0xd00   : > { %v18143_v14 = vpop.f32.mrb[174].mxu0 }
 0xd01   : > { %v9394_v11 = vpop.f32.mrb[175].mxu0 }
 0xd2e   : > { %v18182_v55 = vpop.f32.mrb[176].mxu0 }
 0xd2f   : > { %v21403_v20 = vadd.f32 %v18182_v55, %v18142_v54  ;;  %v9567_v10 = vpop.f32.mrb[177].mxu0 }
 0xd30   : > { %v21405_v42 = vadd.f32 %v9567_v10, %v9391_v27  ;;  %v18183_v37 = vpop.f32.mrb[178].mxu0  ;;  %v10051_v10 = vadd.f32 %v21362_v53, %v21417_v36 }
 0xd31   : > { %v9570_v32 = vpop.f32.mrb[179].mxu0 }
 0xd32   : > { %v21407_v3 = vadd.f32 %v9570_v32, %v9394_v11 }
 0xd36   : > { %v18202_v30 = vpop.f32.mrb[152].mxu0 }
 0xd37   : > { %v9840_v24 = vadd.f32 %v18202_v30, %v21412_v26  ;;  %v9715_v28 = vpop.f32.mrb[153].mxu0 }
 0xd38   : > { %v9838_v15 = vadd.f32 %v21412_v26, %v9715_v28  ;;  %v18203_v35 = vpop.f32.mrb[154].mxu0 }
 0xd39   : > { %v9863_v63 = vmax.f32 %v9840_v24, 0.0  ;;  %v9841_v45 = vadd.f32 %v18203_v35, %v21412_v26  ;;  %v9718_v40 = vpop.f32.mrb[155].mxu0 }
 0xd3a   : > { %v9861_v21 = vmax.f32 %v9838_v15, 0.0  ;;  %v9839_v13 = vadd.f32 %v21412_v26, %v9718_v40 }
 0xd3b   : > { %v10122_v38 = vadd.f32 %v10035_v25, %v9863_v63  ;;  %v9864_v43 = vmax.f32 %v9841_v45, 0.0 }
 0xd3c   : > { %v10120_v56 = vadd.f32 %v10027_v9, %v9861_v21  ;;  %v9862_v6 = vmax.f32 %v9839_v13, 0.0  ;;  %v10046_v13 = vadd.f32 %v21417_v36, %v21368_v5  ;;  %v10059_v5 = vadd.f32 %v21417_v36, %v21372_v51 }
 0xd3d   : > { %v10145_v39 = vmax.f32 %v10122_v38, 0.0  ;;  %v10123_v19 = vadd.f32 %v10038_v12, %v9864_v43  ;;  %v10070_v51 = vadd.f32 %v21374_v29, %v21417_v36 }
 0xd3e   : > { %v10143_v62 = vmax.f32 %v10120_v56, 0.0  ;;  %v10121_v54 = vadd.f32 %v10030_v22, %v9862_v6  ;;  %v18206_v27 = vpop.f32.mrb[156].mxu0 }
 0xd3f   : > { %v10168_v14 = vmul.f32 0.0, %v10145_v39  ;;  %v10146_v11 = vmax.f32 %v10123_v19, 0.0  ;;  %v9844_v55 = vadd.f32 %v18206_v27, %v21412_v26  ;;  %v9731_v37 = vpop.f32.mrb[157].mxu0  ;;  %v10067_v19 = vadd.f32 %v21370_v7, %v21417_v36 }
 0xd40   : > { %10189 = vst [vmem:[#allocation3 + $0x8] sm:$0xff] %v10143_v62  ;;  %v10144_v2 = vmax.f32 %v10121_v54, 0.0  ;;  %v9842_v32 = vadd.f32 %v21412_v26, %v9731_v37  ;;  %v18207_v30 = vpop.f32.mrb[158].mxu0 }
 0xd41   : > { %10191 = vst [vmem:[#allocation3 + $0x18] sm:$0xff] %v10168_v14  ;;  %10192 = vst [vmem:[#allocation3 + $0x20] sm:$0xff] %v10146_v11  ;;  %v9867_v24 = vmax.f32 %v9844_v55, 0.0  ;;  %v9845_v25 = vadd.f32 %v18207_v30, %v21412_v26  ;;  %v9734_v28 = vpop.f32.mrb[159].mxu0  ;;  %v21436_v15 = vpack.c.bf16 %v10146_v11, %v10168_v14 }
 0xd42   : > { %10190 = vst [vmem:[#allocation3 + $0x10] sm:$0xff] %v10144_v2  ;;  %v9865_v9 = vmax.f32 %v9842_v32, 0.0  ;;  %v9843_v53 = vadd.f32 %v21412_v26, %v9734_v28  ;;  %v21439_v35 = vpack.c.bf16 %v10144_v2, %v10143_v62 }
 0xd43   : > { %v10126_v63 = vadd.f32 %v10051_v10, %v9867_v24  ;;  %v9868_v45 = vmax.f32 %v9845_v25, 0.0 }
 0xd44   : > { %v10124_v40 = vadd.f32 %v10043_v60, %v9865_v9  ;;  %v9866_v21 = vmax.f32 %v9843_v53, 0.0 }
 0xd45   : > { %v10149_v38 = vmax.f32 %v10126_v63, 0.0  ;;  %v10127_v43 = vadd.f32 %v10054_v16, %v9868_v45  ;;  %v19942_v63 = vld [vmem:[#allocation5 + $0x3c8] sm:$0xff]  }
 0xd46   : > { %v10147_v12 = vmax.f32 %v10124_v40, 0.0  ;;  %v10125_v56 = vadd.f32 %v10046_v13, %v9866_v21  ;;  %v18210_v6 = vpop.f32.mrb[160].mxu0  ;;  %v10062_v40 = vadd.f32 %v21417_v36, %v21376_v49  ;;  %v19943_v49 = vld [vmem:[#allocation5 + $0x3d0] sm:$0xff]  }
 0xd47   : > { %10195 = vst [vmem:[#allocation3 + $0x38] sm:$0xff] %v10149_v38  ;;  %v10150_v22 = vmax.f32 %v10127_v43, 0.0  ;;  %v9848_v39 = vadd.f32 %v18210_v6, %v21412_v26  ;;  %v9747_v62 = vpop.f32.mrb[161].mxu0  ;;  %v10266_v37 = vld [vmem:[#allocation3 + $0x6] sm:$0xff] }
 0xd48   : > { %10193 = vst [vmem:[#allocation3 + $0x28] sm:$0xff] %v10147_v12  ;;  %v10148_v4 = vmax.f32 %v10125_v56, 0.0  ;;  %v9846_v54 = vadd.f32 %v21412_v26, %v9747_v62  ;;  %v18211_v27 = vpop.f32.mrb[162].mxu0  ;;  %v10269_v14 = vld [vmem:[#allocation3 + $0x1e] sm:$0xff] }
 0xd49   : > { %10196 = vst [vmem:[#allocation3 + $0x40] sm:$0xff] %v10150_v22  ;;  %v9871_v11 = vmax.f32 %v9848_v39, 0.0  ;;  %v9849_v55 = vadd.f32 %v18211_v27, %v21412_v26  ;;  %v9750_v10 = vpop.f32.mrb[163].mxu0  ;;  %v10267_v2 = vld [vmem:[#allocation3 + $0xe] sm:$0xff]  ;;  %v10268_v32 = vld [vmem:[#allocation3 + $0x16] sm:$0xff]  ;;  %v21452_v60 = vpack.c.bf16 %v10150_v22, %v10149_v38  ;;  %v10083_v39 = vadd.f32 %v21378_v17, %v21417_v36 }
 0xd4a   : > { %v10171_v7 = vmul.f32 0.0, %v10148_v4  ;;  %v9869_v30 = vmax.f32 %v9846_v54, 0.0  ;;  %v9847_v24 = vadd.f32 %v21412_v26, %v9750_v10  ;;  %v10289_v25 = vpack.c.bf16 %v10267_v2, %v10266_v37  ;;  %v19944_v2 = vld [vmem:[#allocation5 + $0x3d8] sm:$0xff]  }
 0xd4b   : > { %v10130_v28 = vadd.f32 %v10067_v19, %v9871_v11  ;;  %v9872_v9 = vmax.f32 %v9849_v55, 0.0  ;;  %v10290_v53 = vpack.c.bf16 %v10269_v14, %v10268_v32  ;;  %v10075_v54 = vadd.f32 %v21417_v36, %v21380_v46 }
 0xd4c   : > { %10194 = vst [vmem:[#allocation3 + $0x30] sm:$0xff] %v10171_v7  ;;  %v10128_v45 = vadd.f32 %v10059_v5, %v9869_v30  ;;  %v9870_v16 = vmax.f32 %v9847_v24, 0.0  ;;  %18280 = vmatprep.mubr.bf16.mxu0 %v10289_v25  ;;  %v21459_v21 = vpack.c.bf16 %v10171_v7, %v10147_v12  ;;  %v10086_v17 = vadd.f32 %v21382_v52, %v21417_v36 }
 0xd4d   : > { %v10153_v13 = vmax.f32 %v10130_v28, 0.0  ;;  %v10131_v38 = vadd.f32 %v10070_v51, %v9872_v9  ;;  %18281 = vmatmul.mubr.bf16.vlgmr.msra.gmra.mrb[184].mxu0 %v10290_v53  ;;  %v10078_v30 = vadd.f32 %v21417_v36, %v21384_v1 }
 0xd4e   : > { %v10151_v43 = vmax.f32 %v10128_v45, 0.0  ;;  %v10129_v56 = vadd.f32 %v10062_v40, %v9870_v16  ;;  %v18214_v6 = vpop.f32.mrb[164].mxu0  ;;  %18305 = vmatpush3.bf16.msra.mxu0 %v21388_v8 }
 0xd4f   : > { %10199 = vst [vmem:[#allocation3 + $0x58] sm:$0xff] %v10153_v13  ;;  %v10154_v29 = vmax.f32 %v10131_v38, 0.0  ;;  %v9852_v22 = vadd.f32 %v18214_v6, %v21412_v26  ;;  %v9763_v19 = vpop.f32.mrb[165].mxu0  ;;  %18306 = vmatprep.subr.bf16.mxu0 %v19942_v63  ;;  %v10270_v37 = vld [vmem:[#allocation3 + $0x26] sm:$0xff] }
 0xd50   : > { %v10174_v12 = vmul.f32 0.0, %v10151_v43  ;;  %v10152_v62 = vmax.f32 %v10129_v56, 0.0  ;;  %v9850_v4 = vadd.f32 %v21412_v26, %v9763_v19  ;;  %v18215_v5 = vpop.f32.mrb[166].mxu0  ;;  %v10273_v28 = vld [vmem:[#allocation3 + $0x3e] sm:$0xff] }
 0xd51   : > { %v10177_v27 = vmul.f32 0.0, %v10154_v29  ;;  %v9875_v8 = vmax.f32 %v9852_v22, 0.0  ;;  %v9853_v14 = vadd.f32 %v18215_v5, %v21412_v26  ;;  %v9766_v11 = vpop.f32.mrb[167].mxu0  ;;  %v10099_v29 = vadd.f32 %v21386_v41, %v21417_v36  ;;  %v19945_v22 = vld [vmem:[#allocation5 + $0x3e0] sm:$0xff]  }
 0xd52   : > { %10197 = vst [vmem:[#allocation3 + $0x48] sm:$0xff] %v10174_v12  ;;  %10198 = vst [vmem:[#allocation3 + $0x50] sm:$0xff] %v10152_v62  ;;  %v9873_v55 = vmax.f32 %v9850_v4, 0.0  ;;  %v9851_v10 = vadd.f32 %v21412_v26, %v9766_v11  ;;  %18307 = vmatpush3.bf16.msra.mxu0 %v19942_v63  ;;  %v21472_v32 = vpack.c.bf16 %v10152_v62, %v10174_v12 }
 0xd53   : > { %10200 = vst [vmem:[#allocation3 + $0x60] sm:$0xff] %v10177_v27  ;;  %v10134_v46 = vadd.f32 %v10083_v39, %v9875_v8  ;;  %v9876_v7 = vmax.f32 %v9853_v14, 0.0  ;;  %v10271_v24 = vld [vmem:[#allocation3 + $0x2e] sm:$0xff]  ;;  %v10272_v25 = vld [vmem:[#allocation3 + $0x36] sm:$0xff]  ;;  %18308 = vmatprep.subr.bf16.mxu0 %v19943_v49  ;;  %v21476_v9 = vpack.c.bf16 %v10177_v27, %v10153_v13  ;;  %v10091_v12 = vadd.f32 %v21417_v36, %v21390_v23 }
 0xd54   : > { %v10132_v52 = vadd.f32 %v10075_v54, %v9873_v55  ;;  %v9874_v51 = vmax.f32 %v9851_v10, 0.0  ;;  %v10291_v53 = vpack.c.bf16 %v10271_v24, %v10270_v37  ;;  %v10292_v45 = vpack.c.bf16 %v10273_v28, %v10272_v25 }
 0xd55   : > { %v10157_v63 = vmax.f32 %v10134_v46, 0.0  ;;  %v10135_v16 = vadd.f32 %v10086_v17, %v9876_v7  ;;  %v10102_v46 = vadd.f32 %v21392_v47, %v21417_v36  ;;  %v19946_v7 = vld [vmem:[#allocation5 + $0x3e8] sm:$0xff]   ;;  %v10094_v25 = vadd.f32 %v21417_v36, %v21395_v0 }
 0xd56   : > { %v10155_v40 = vmax.f32 %v10132_v52, 0.0  ;;  %v10133_v38 = vadd.f32 %v10078_v30, %v9874_v51  ;;  %v18218_v43 = vpop.f32.mrb[168].mxu0  ;;  %18284 = vmatprep.mubr.bf16.mxu0 %v10291_v53  ;;  %18309 = vmatpush3.bf16.msra.mxu0 %v19943_v49 }
 0xd57   : > { %v10180_v56 = vmul.f32 0.0, %v10157_v63  ;;  %v10158_v6 = vmax.f32 %v10135_v16, 0.0  ;;  %v9856_v1 = vadd.f32 %v18218_v43, %v21412_v26  ;;  %v9779_v13 = vpop.f32.mrb[169].mxu0  ;;  %18285 = vmatmul.mubr.bf16.gmra.mrb[188].mxu0 %v10292_v45  ;;  %18310 = vmatprep.subr.bf16.mxu0 %v19944_v2 }
 0xd58   : > { %10201 = vst [vmem:[#allocation3 + $0x68] sm:$0xff] %v10155_v40  ;;  %v10156_v39 = vmax.f32 %v10133_v38, 0.0  ;;  %v9854_v19 = vadd.f32 %v21412_v26, %v9779_v13  ;;  %v18219_v62 = vpop.f32.mrb[170].mxu0 }
 0xd59   : > { %10203 = vst [vmem:[#allocation3 + $0x78] sm:$0xff] %v10180_v56  ;;  %10204 = vst [vmem:[#allocation3 + $0x80] sm:$0xff] %v10158_v6  ;;  %v9879_v49 = vmax.f32 %v9856_v1, 0.0  ;;  %v9857_v4 = vadd.f32 %v18219_v62, %v21412_v26  ;;  %v9782_v54 = vpop.f32.mrb[171].mxu0  ;;  %v10274_v5 = vld [vmem:[#allocation3 + $0x46] sm:$0xff]  ;;  %v10275_v41 = vld [vmem:[#allocation3 + $0x4e] sm:$0xff]  ;;  %v21485_v27 = vpack.c.bf16 %v10158_v6, %v10180_v56  ;;  %v10115_v6 = vadd.f32 %v21397_v31, %v21417_v36 }
 0xd5a   : > { %10202 = vst [vmem:[#allocation3 + $0x70] sm:$0xff] %v10156_v39  ;;  %v9877_v8 = vmax.f32 %v9854_v19, 0.0  ;;  %v9855_v14 = vadd.f32 %v21412_v26, %v9782_v54  ;;  %v10293_v11 = vpack.c.bf16 %v10275_v41, %v10274_v5  ;;  %v10276_v55 = vld [vmem:[#allocation3 + $0x56] sm:$0xff]  ;;  %v10277_v17 = vld [vmem:[#allocation3 + $0x5e] sm:$0xff]  ;;  %18311 = vmatpush3.bf16.msra.mxu0 %v19944_v2  ;;  %v21488_v23 = vpack.c.bf16 %v10156_v39, %v10155_v40 }
 0xd5b   : > { %v10138_v10 = vadd.f32 %v10099_v29, %v9879_v49  ;;  %v9880_v37 = vmax.f32 %v9857_v4, 0.0  ;;  %18312 = vmatprep.subr.bf16.mxu0 %v19945_v22  ;;  %v10294_v51 = vpack.c.bf16 %v10277_v17, %v10276_v55  ;;  %v19947_v40 = vld [vmem:[#allocation5 + $0x3f0] sm:$0xff]   ;;  %v10107_v29 = vadd.f32 %v21417_v36, %v21399_v48  ;;  %v19948_v31 = vld [vmem:[#allocation5 + $0x3f8] sm:$0xff]   ;;  %v19949_v17 = vld [vmem:[#allocation5 + $0x440] sm:$0xff]  }
 0xd5c   : > { %v10136_v30 = vadd.f32 %v10091_v12, %v9877_v8  ;;  %v9878_v24 = vmax.f32 %v9855_v14, 0.0  ;;  %18288 = vmatprep.mubr.bf16.mxu0 %v10293_v11 }
 0xd5d   : > { %v10161_v28 = vmax.f32 %v10138_v10, 0.0  ;;  %v10139_v52 = vadd.f32 %v10102_v46, %v9880_v37 }
 0xd5e   : > { %v10159_v53 = vmax.f32 %v10136_v30, 0.0  ;;  %v10137_v2 = vadd.f32 %v10094_v25, %v9878_v24  ;;  %v18222_v45 = vpop.f32.mrb[180].mxu0  ;;  %18313 = vmatpush3.bf16.msra.mxu0 %v19945_v22 }
 0xd5f   : > { %10207 = vst [vmem:[#allocation3 + $0x98] sm:$0xff] %v10161_v28  ;;  %v10162_v63 = vmax.f32 %v10139_v52, 0.0  ;;  %v9831_v16 = vadd.f32 %v18222_v45, %v21403_v20  ;;  %v9795_v47 = vpop.f32.mrb[181].mxu0  ;;  %18289 = vmatmul.mubr.bf16.gmra.mrb[192].mxu0 %v10294_v51  ;;  %18314 = vmatprep.subr.bf16.mxu0 %v19946_v7  ;;  %v10278_v20 = vld [vmem:[#allocation3 + $0x66] sm:$0xff] }
 0xd60   : > { %10205 = vst [vmem:[#allocation3 + $0x88] sm:$0xff] %v10159_v53  ;;  %v10160_v38 = vmax.f32 %v10137_v2, 0.0  ;;  %v9829_v0 = vadd.f32 %v9795_v47, %v21405_v42  ;;  %v18223_v43 = vpop.f32.mrb[182].mxu0  ;;  %v10281_v49 = vld [vmem:[#allocation3 + $0x7e] sm:$0xff]  ;;  %v10215_v52 = vld [vmem:[#allocation3 + $0xc] sm:$0xff] }
 0xd61   : > { %10208 = vst [vmem:[#allocation3 + $0xa0] sm:$0xff] %v10162_v63  ;;  %v9860_v56 = vadd.f32 %v21412_v26, %v9831_v16  ;;  %v9798_v1 = vpop.f32.mrb[183].mxu0  ;;  %v10279_v13 = vld [vmem:[#allocation3 + $0x6e] sm:$0xff]  ;;  %v21501_v22 = vpack.c.bf16 %v10162_v63, %v10161_v28  ;;  %v10280_v62 = vld [vmem:[#allocation3 + $0x76] sm:$0xff]  ;;  %v10214_v16 = vld [vmem:[#allocation3 + $0x4] sm:$0xff] }
 0xd62   : > { %v10183_v39 = vmul.f32 0.0, %v10160_v38  ;;  %v9858_v19 = vadd.f32 %v21412_v26, %v9829_v0  ;;  %v9830_v42 = vadd.f32 %v9798_v1, %v21407_v3  ;;  %v10295_v12 = vpack.c.bf16 %v10279_v13, %v10278_v20  ;;  %18315 = vmatpush3.bf16.msra.mxu0 %v19946_v7  ;;  %v10217_v38 = vld [vmem:[#allocation3 + $0x1c] sm:$0xff]  ;;  %v10219_v0 = vld [vmem:[#allocation3 + $0x2c] sm:$0xff]  ;;  %v10220_v20 = vld [vmem:[#allocation3 + $0x34] sm:$0xff] }
 0xd63   : > { %v9883_v4 = vmax.f32 %v9860_v56, 0.0  ;;  %18316 = vmatprep.subr.bf16.mxu0 %v19947_v40  ;;  %v10296_v8 = vpack.c.bf16 %v10281_v49, %v10280_v62  ;;  %v10110_v3 = vadd.f32 %v21417_v36, %v21401_v59  ;;  %v10237_v47 = vpack.c.bf16 %v10215_v52, %v10214_v16  ;;  %v10218_v56 = vld [vmem:[#allocation3 + $0x24] sm:$0xff] }
 0xd64   : > { %10206 = vst [vmem:[#allocation3 + $0x90] sm:$0xff] %v10183_v39  ;;  %v9881_v54 = vmax.f32 %v9858_v19, 0.0  ;;  %v9859_v48 = vadd.f32 %v21412_v26, %v9830_v42  ;;  %18292 = vmatprep.mubr.bf16.mxu0 %v10295_v12  ;;  %v21506_v5 = vpack.c.bf16 %v10183_v39, %v10159_v53  ;;  %v10239_v1 = vpack.c.bf16 %v10219_v0, %v10218_v56  ;;  %v10222_v13 = vld [vmem:[#allocation3 + $0x44] sm:$0xff]  ;;  %v10223_v39 = vld [vmem:[#allocation3 + $0x4c] sm:$0xff]  ;;  %v10221_v19 = vld [vmem:[#allocation3 + $0x3c] sm:$0xff] }
 0xd65   : > { %v10142_v41 = vadd.f32 %v10115_v6, %v9883_v4  ;;  %v19950_v6 = vld [vmem:[#allocation5 + $0x448] sm:$0xff]   ;;  %v10240_v42 = vpack.c.bf16 %v10221_v19, %v10220_v20  ;;  %v19952_v12 = vld [vmem:[#allocation5 + $0x458] sm:$0xff]   ;;  %v10241_v62 = vpack.c.bf16 %v10223_v39, %v10222_v13  ;;  %v19953_v49 = vld [vmem:[#allocation5 + $0x460] sm:$0xff]  }
 0xd66   : > { %v9882_v14 = vmax.f32 %v9859_v48, 0.0  ;;  %v10140_v11 = vadd.f32 %v10107_v29, %v9881_v54  ;;  %18317 = vmatpush3.bf16.msra.mxu0 %v19947_v40  ;;  %v10216_v40 = vld [vmem:[#allocation3 + $0x14] sm:$0xff]  ;;  %v10227_v54 = vld [vmem:[#allocation3 + $0x6c] sm:$0xff]  ;;  %v21540_v56 = vld [vmem:[%s22022_s2 + $0x5] ss:$0 sm:$0xff] }
 0xd67   : > { %v21510_v55 = vmax.f32 %v10142_v41, 0.0  ;;  %18293 = vmatmul.mubr.bf16.gmra.mrb[196].mxu0 %v10296_v8  ;;  %18318 = vmatprep.subr.bf16.mxu0 %v19948_v31  ;;  %v10282_v7 = vld [vmem:[#allocation3 + $0x86] sm:$0xff]  ;;  %v10238_v43 = vpack.c.bf16 %v10217_v38, %v10216_v40  ;;  %v19951_v29 = vld [vmem:[#allocation5 + $0x450] sm:$0xff]  }
 0xd68   : > { %v10163_v10 = vmax.f32 %v10140_v11, 0.0  ;;  %v10141_v37 = vadd.f32 %v10110_v3, %v9882_v14  ;;  %v10285_v25 = vld [vmem:[#allocation3 + $0x9e] sm:$0xff]  ;;  %v10224_v4 = vld [vmem:[#allocation3 + $0x54] sm:$0xff]  ;;  %v19954_v8 = vld [vmem:[#allocation5 + $0x468] sm:$0xff]  }
 0xd69   : > { %10211 = vst [vmem:[#allocation3 + $0xb8] sm:$0xff] %v21510_v55  ;;  %v10226_v41 = vld [vmem:[#allocation3 + $0x64] sm:$0xff]  ;;  %v19955_v11 = vld [vmem:[#allocation5 + $0x470] sm:$0xff]  }
 0xd6a   : > { %v10186_v26 = vmul.f32 0.0, %v10163_v10  ;;  %v10164_v46 = vmax.f32 %v10141_v37, 0.0  ;;  %18319 = vmatpush3.bf16.msra.mxu0 %v19948_v31  ;;  %v10225_v31 = vld [vmem:[#allocation3 + $0x5c] sm:$0xff]  ;;  %v10243_v14 = vpack.c.bf16 %v10227_v54, %v10226_v41  ;;  %v10228_v3 = vld [vmem:[#allocation3 + $0x74] sm:$0xff] }
 0xd6b   : > { %v10283_v30 = vld [vmem:[#allocation3 + $0x8e] sm:$0xff]  ;;  %v10284_v24 = vld [vmem:[#allocation3 + $0x96] sm:$0xff]  ;;  %18344 = vmatprep.subr.bf16.mxu0 %v19949_v17  ;;  %v10242_v48 = vpack.c.bf16 %v10225_v31, %v10224_v4 }
 0xd6c   : > { %10209 = vst [vmem:[#allocation3 + $0xa8] sm:$0xff] %v10186_v26  ;;  %10210 = vst [vmem:[#allocation3 + $0xb0] sm:$0xff] %v10164_v46  ;;  %v10297_v59 = vpack.c.bf16 %v10283_v30, %v10282_v7  ;;  %v10298_v36 = vpack.c.bf16 %v10285_v25, %v10284_v24  ;;  %v21513_v28 = vpack.c.bf16 %v10164_v46, %v10186_v26  ;;  %v10231_v10 = vld [vmem:[#allocation3 + $0x8c] sm:$0xff]  ;;  %v10230_v26 = vld [vmem:[#allocation3 + $0x84] sm:$0xff] }
 0xd6d   : > { %v19956_v46 = vld [vmem:[#allocation5 + $0x478] sm:$0xff]   ;;  %v10245_v7 = vpack.c.bf16 %v10231_v10, %v10230_v26 }
 0xd6e   : > { %18296 = vmatprep.mubr.bf16.mxu0 %v10297_v59  ;;  %v10232_v30 = vld [vmem:[#allocation3 + $0x94] sm:$0xff]  ;;  %v10233_v59 = vld [vmem:[#allocation3 + $0x9c] sm:$0xff] }
 0xd6f   : > { %18297 = vmatmul.mubr.bf16.gmra.mrb[200].mxu0 %v10298_v36  ;;  %v10246_v36 = vpack.c.bf16 %v10233_v59, %v10232_v30 }
 0xd73   : > { %v10286_v51 = vld [vmem:[#allocation3 + $0xa6] sm:$0xff]  ;;  %v10287_v53 = vld [vmem:[#allocation3 + $0xae] sm:$0xff]  ;;  %v10288_v2 = vld [vmem:[#allocation3 + $0xb6] sm:$0xff] }
 0xd74   : > { %v10299_v45 = vpack.c.bf16 %v10287_v53, %v10286_v51  ;;  %v10300_v63 = vpack.c.bf16 %v10288_v2, %v10288_v2  ;;  %v10234_v24 = vld [vmem:[#allocation3 + $0xa4] sm:$0xff]  ;;  %v10235_v25 = vld [vmem:[#allocation3 + $0xac] sm:$0xff]  ;;  %v10236_v51 = vld [vmem:[#allocation3 + $0xb4] sm:$0xff] }
 0xd75   : > { %v10247_v52 = vpack.c.bf16 %v10235_v25, %v10234_v24  ;;  %v10248_v53 = vpack.c.bf16 %v10236_v51, %v10236_v51  ;;  %v19957_v2 = vld [vmem:[#allocation7 + $0x400] sm:$0xff]  }
 0xd76   : > { %18300 = vmatprep.mubr.bf16.mxu0 %v10299_v45  ;;  %v19958_v45 = vld [vmem:[#allocation7 + $0x408] sm:$0xff]   ;;  %18384 = vmatprep.subr.bf16.mxu1 %v19957_v2 }
 0xd77   : > { %18301 = vmatmul.mubr.bf16.gmra.mrb[204].mxu0 %v10300_v63  ;;  %18385 = vmatpush3.bf16.msra.mxu1 %v19957_v2 }
 0xd78   : > { %18320 = vmatprep.mubr.bf16.mxu0 %v10237_v47  ;;  %18386 = vmatprep.subr.bf16.mxu1 %v19958_v45 }
 0xd7b   : > { %18387 = vmatpush3.bf16.msra.mxu1 %v19958_v45 }
 0xd7f   : > { %18321 = vmatmul.mubr.bf16.vlgmr.msra.gmra.mrb[184].mxu0 %v10238_v43 }
 0xd80   : > { %18324 = vmatprep.mubr.bf16.mxu0 %v10239_v1  ;;  %18345 = vmatpush3.bf16.msra.mxu0 %v19949_v17  ;;  %v10229_v17 = vld [vmem:[#allocation3 + $0x7c] sm:$0xff] }
 0xd81   : > { %18346 = vmatprep.subr.bf16.mxu0 %v19950_v6  ;;  %v10244_v37 = vpack.c.bf16 %v10229_v17, %v10228_v3 }
 0xd84   : > { %18347 = vmatpush3.bf16.msra.mxu0 %v19950_v6 }
 0xd85   : > { %18348 = vmatprep.subr.bf16.mxu0 %v19951_v29 }
 0xd87   : > { %18325 = vmatmul.mubr.bf16.gmra.mrb[188].mxu0 %v10240_v42 }
 0xd88   : > { %18328 = vmatprep.mubr.bf16.mxu0 %v10241_v62  ;;  %18349 = vmatpush3.bf16.msra.mxu0 %v19951_v29 }
 0xd89   : > { %18350 = vmatprep.subr.bf16.mxu0 %v19952_v12 }
 0xd8c   : > { %18351 = vmatpush3.bf16.msra.mxu0 %v19952_v12 }
 0xd8d   : > { %18352 = vmatprep.subr.bf16.mxu0 %v19953_v49 }
 0xd8f   : > { %18329 = vmatmul.mubr.bf16.gmra.mrb[192].mxu0 %v10242_v48 }
 0xd90   : > { %18332 = vmatprep.mubr.bf16.mxu0 %v10243_v14  ;;  %18353 = vmatpush3.bf16.msra.mxu0 %v19953_v49 }
 0xd91   : > { %18354 = vmatprep.subr.bf16.mxu0 %v19954_v8 }
 0xd94   : > { %18355 = vmatpush3.bf16.msra.mxu0 %v19954_v8 }
 0xd95   : > { %18356 = vmatprep.subr.bf16.mxu0 %v19955_v11 }
 0xd97   : > { %18333 = vmatmul.mubr.bf16.gmra.mrb[196].mxu0 %v10244_v37 }
 0xd98   : > { %18336 = vmatprep.mubr.bf16.mxu0 %v10245_v7  ;;  %18357 = vmatpush3.bf16.msra.mxu0 %v19955_v11 }
 0xd99   : > { %18358 = vmatprep.subr.bf16.mxu0 %v19956_v46 }
 0xd9c   : > { %18359 = vmatpush3.bf16.msra.mxu0 %v19956_v46 }
 0xd9f   : > { %18337 = vmatmul.mubr.bf16.gmra.mrb[200].mxu0 %v10246_v36 }
 0xda0   : > { %18340 = vmatprep.mubr.bf16.mxu0 %v10247_v52 }
 0xda7   : > { %18341 = vmatmul.mubr.bf16.gmra.mrb[208].mxu0 %v10248_v53 }
 0xda8   : > { %18360 = vmatprep.mubr.bf16.mxu0 %v21439_v35  ;;  %v10704_v35 = vpack.c.bf16 %v21510_v55, %v21510_v55 }
 0xdaf   : > { %18361 = vmatmul.mubr.bf16.vlgmr.msra.gmra.mrb[184].mxu0 %v21436_v15  ;;  %v19959_v15 = vld [vmem:[#allocation7 + $0x410] sm:$0xff]  }
 0xdb0   : > { %18364 = vmatprep.mubr.bf16.mxu0 %v21459_v21  ;;  %18388 = vmatprep.subr.bf16.mxu1 %v19959_v15  ;;  %v19961_v21 = vld [vmem:[#allocation7 + $0x420] sm:$0xff]  }
 0xdb1   : > { %18389 = vmatpush3.bf16.msra.mxu1 %v19959_v15 }
 0xdb7   : > { %18365 = vmatmul.mubr.bf16.gmra.mrb[188].mxu0 %v21452_v60  ;;  %v19960_v60 = vld [vmem:[#allocation7 + $0x418] sm:$0xff]  }
 0xdb8   : > { %18368 = vmatprep.mubr.bf16.mxu0 %v21472_v32  ;;  %18390 = vmatprep.subr.bf16.mxu1 %v19960_v60  ;;  %v19962_v32 = vld [vmem:[#allocation7 + $0x428] sm:$0xff]  }
 0xdb9   : > { %18391 = vmatpush3.bf16.msra.mxu1 %v19960_v60  ;;  %v19966_v60 = vld [vmem:[#allocation7 + $0x3c8] sm:$0xff]  }
 0xdba   : > { %18392 = vmatprep.subr.bf16.mxu1 %v19961_v21 }
 0xdbd   : > { %18393 = vmatpush3.bf16.msra.mxu1 %v19961_v21 }
 0xdbe   : > { %18394 = vmatprep.subr.bf16.mxu1 %v19962_v32 }
 0xdbf   : > { %18369 = vmatmul.mubr.bf16.gmra.mrb[192].mxu0 %v21476_v9  ;;  %v19963_v9 = vld [vmem:[#allocation7 + $0x430] sm:$0xff]  }
 0xdc0   : > { %18372 = vmatprep.mubr.bf16.mxu0 %v21488_v23  ;;  %v21528_v23 = vld [vmem:[#allocation7 + $0x3c0] sm:$0xff]  }
 0xdc1   : > { %18395 = vmatpush3.bf16.msra.mxu1 %v19962_v32 }
 0xdc2   : > { %18396 = vmatprep.subr.bf16.mxu1 %v19963_v9 }
 0xdc5   : > { %18397 = vmatpush3.bf16.msra.mxu1 %v19963_v9 }
 0xdc7   : > { %18373 = vmatmul.mubr.bf16.gmra.mrb[196].mxu0 %v21485_v27  ;;  %v19964_v27 = vld [vmem:[#allocation7 + $0x438] sm:$0xff]  }
 0xdc8   : > { %18376 = vmatprep.mubr.bf16.mxu0 %v21506_v5  ;;  %18398 = vmatprep.subr.bf16.mxu1 %v19964_v27 }
 0xdc9   : > { %18399 = vmatpush3.bf16.msra.mxu1 %v19964_v27 }
 0xdca   : > { %18424 = vmatprep.subr.bf16.mxu1 %v21528_v23 }
 0xdcf   : > { %18377 = vmatmul.mubr.bf16.gmra.mrb[200].mxu0 %v21501_v22 }
 0xdd0   : > { %18380 = vmatprep.mubr.bf16.mxu0 %v21513_v28 }
 0xdd7   : > { %18381 = vmatmul.mubr.bf16.gmra.mrb[212].mxu0 %v10704_v35 }
 0xe4a   : > { %v18302_v22 = vpop.f32.mrb[204].mxu0 }
 0xe4b   : > { %v10480_v5 = vpop.f32.mrb[205].mxu0 }
 0xe4c   : > { %v18303_v55 = vpop.f32.mrb[206].mxu0 }
 0xe4d   : > { %v10483_v28 = vpop.f32.mrb[207].mxu0 }
 0xe7a   : > { %v18342_v63 = vpop.f32.mrb[208].mxu0 }
 0xe7b   : > { %v21531_v16 = vadd.f32 %v18342_v63, %v18302_v22  ;;  %v10656_v47 = vpop.f32.mrb[209].mxu0 }
 0xe7c   : > { %v21533_v40 = vadd.f32 %v10656_v47, %v10480_v5  ;;  %v18343_v38 = vpop.f32.mrb[210].mxu0  ;;  %v19967_v47 = vld [vmem:[#allocation7 + $0x3d0] sm:$0xff]  }
 0xe7d   : > { %v10659_v0 = vpop.f32.mrb[211].mxu0 }
 0xe7e   : > { %v21535_v43 = vadd.f32 %v10659_v0, %v10483_v28 }
 0xe82   : > { %v18362_v6 = vpop.f32.mrb[184].mxu0 }
 0xe83   : > { %v10929_v1 = vadd.f32 %v18362_v6, %v21540_v56  ;;  %v10804_v29 = vpop.f32.mrb[185].mxu0 }
 0xe84   : > { %v10927_v20 = vadd.f32 %v21540_v56, %v10804_v29  ;;  %v18363_v13 = vpop.f32.mrb[186].mxu0 }
 0xe85   : > { %v10952_v39 = vmax.f32 %v10929_v1, 0.0  ;;  %v10930_v19 = vadd.f32 %v18363_v13, %v21540_v56  ;;  %v10807_v42 = vpop.f32.mrb[187].mxu0 }
 0xe86   : > { %v10950_v12 = vmax.f32 %v10927_v20, 0.0  ;;  %v10928_v62 = vadd.f32 %v21540_v56, %v10807_v42  ;;  %v19968_v20 = vld [vmem:[#allocation7 + $0x3d8] sm:$0xff]  }
 0xe87   : > { %v10975_v49 = vmul.f32 0.0, %v10952_v39  ;;  %v10953_v4 = vmax.f32 %v10930_v19, 0.0 }
 0xe88   : > { %10996 = vst [vmem:[#allocation4 + $0x8] sm:$0xff] %v10950_v12  ;;  %v10951_v31 = vmax.f32 %v10928_v62, 0.0 }
 0xe89   : > { %10998 = vst [vmem:[#allocation4 + $0x18] sm:$0xff] %v10975_v49  ;;  %10999 = vst [vmem:[#allocation4 + $0x20] sm:$0xff] %v10953_v4  ;;  %v21546_v54 = vpack.c.bf16 %v10953_v4, %v10975_v49 }
 0xe8a   : > { %10997 = vst [vmem:[#allocation4 + $0x10] sm:$0xff] %v10951_v31  ;;  %v18366_v48 = vpop.f32.mrb[188].mxu0  ;;  %v21548_v41 = vpack.c.bf16 %v10951_v31, %v10950_v12 }
 0xe8b   : > { %v10933_v8 = vadd.f32 %v18366_v48, %v21540_v56  ;;  %v10820_v14 = vpop.f32.mrb[189].mxu0 }
 0xe8c   : > { %v10931_v11 = vadd.f32 %v21540_v56, %v10820_v14  ;;  %v18367_v3 = vpop.f32.mrb[190].mxu0 }
 0xe8d   : > { %v10956_v17 = vmax.f32 %v10933_v8, 0.0  ;;  %v10934_v10 = vadd.f32 %v18367_v3, %v21540_v56  ;;  %v10823_v37 = vpop.f32.mrb[191].mxu0 }
 0xe8e   : > { %v10954_v26 = vmax.f32 %v10931_v11, 0.0  ;;  %v10932_v46 = vadd.f32 %v21540_v56, %v10823_v37 }
 0xe8f   : > { %11002 = vst [vmem:[#allocation4 + $0x38] sm:$0xff] %v10956_v17  ;;  %v10957_v7 = vmax.f32 %v10934_v10, 0.0  ;;  %v11073_v25 = vld [vmem:[#allocation4 + $0x6] sm:$0xff] }
 0xe90   : > { %11000 = vst [vmem:[#allocation4 + $0x28] sm:$0xff] %v10954_v26  ;;  %v10955_v30 = vmax.f32 %v10932_v46, 0.0  ;;  %v11076_v24 = vld [vmem:[#allocation4 + $0x1e] sm:$0xff] }
 0xe91   : > { %11003 = vst [vmem:[#allocation4 + $0x40] sm:$0xff] %v10957_v7  ;;  %v11074_v59 = vld [vmem:[#allocation4 + $0xe] sm:$0xff]  ;;  %v11075_v36 = vld [vmem:[#allocation4 + $0x16] sm:$0xff]  ;;  %v21554_v52 = vpack.c.bf16 %v10957_v7, %v10956_v17 }
 0xe92   : > { %v10978_v51 = vmul.f32 0.0, %v10955_v30  ;;  %v18370_v53 = vpop.f32.mrb[192].mxu0  ;;  %v11096_v2 = vpack.c.bf16 %v11074_v59, %v11073_v25  ;;  %v11097_v45 = vpack.c.bf16 %v11076_v24, %v11075_v36 }
 0xe93   : > { %v10937_v15 = vadd.f32 %v18370_v53, %v21540_v56  ;;  %v10836_v35 = vpop.f32.mrb[193].mxu0 }
 0xe94   : > { %11001 = vst [vmem:[#allocation4 + $0x30] sm:$0xff] %v10978_v51  ;;  %v10935_v21 = vadd.f32 %v21540_v56, %v10836_v35  ;;  %v18371_v32 = vpop.f32.mrb[194].mxu0  ;;  %18400 = vmatprep.mubr.bf16.mxu1 %v11096_v2  ;;  %v21558_v9 = vpack.c.bf16 %v10978_v51, %v10954_v26  ;;  %v19969_v26 = vld [vmem:[#allocation7 + $0x3e0] sm:$0xff]  }
 0xe95   : > { %v10960_v27 = vmax.f32 %v10937_v15, 0.0  ;;  %v10938_v22 = vadd.f32 %v18371_v32, %v21540_v56  ;;  %v10839_v5 = vpop.f32.mrb[195].mxu0  ;;  %18401 = vmatmul.mubr.bf16.vlgmr.msra.gmra.mrb[184].mxu1 %v11097_v45  ;;  %v19970_v15 = vld [vmem:[#allocation7 + $0x3e8] sm:$0xff]  }
 0xe96   : > { %v10958_v55 = vmax.f32 %v10935_v21, 0.0  ;;  %v10936_v28 = vadd.f32 %v21540_v56, %v10839_v5  ;;  %18425 = vmatpush3.bf16.msra.mxu1 %v21528_v23 }
 0xe97   : > { %11006 = vst [vmem:[#allocation4 + $0x58] sm:$0xff] %v10960_v27  ;;  %v10961_v63 = vmax.f32 %v10938_v22, 0.0  ;;  %18426 = vmatprep.subr.bf16.mxu1 %v19966_v60  ;;  %v11077_v29 = vld [vmem:[#allocation4 + $0x26] sm:$0xff] }
 0xe98   : > { %v10981_v38 = vmul.f32 0.0, %v10958_v55  ;;  %v10959_v0 = vmax.f32 %v10936_v28, 0.0  ;;  %v11080_v12 = vld [vmem:[#allocation4 + $0x3e] sm:$0xff] }
 0xe99   : > { %v10984_v6 = vmul.f32 0.0, %v10961_v63  ;;  %v19971_v63 = vld [vmem:[#allocation7 + $0x3f0] sm:$0xff]  }
 0xe9a   : > { %11004 = vst [vmem:[#allocation4 + $0x48] sm:$0xff] %v10981_v38  ;;  %11005 = vst [vmem:[#allocation4 + $0x50] sm:$0xff] %v10959_v0  ;;  %v18374_v1 = vpop.f32.mrb[196].mxu0  ;;  %18427 = vmatpush3.bf16.msra.mxu1 %v19966_v60  ;;  %v21563_v13 = vpack.c.bf16 %v10959_v0, %v10981_v38 }
 0xe9b   : > { %11007 = vst [vmem:[#allocation4 + $0x60] sm:$0xff] %v10984_v6  ;;  %v10941_v39 = vadd.f32 %v18374_v1, %v21540_v56  ;;  %v10852_v19 = vpop.f32.mrb[197].mxu0  ;;  %v11078_v23 = vld [vmem:[#allocation4 + $0x2e] sm:$0xff]  ;;  %v11079_v42 = vld [vmem:[#allocation4 + $0x36] sm:$0xff]  ;;  %18428 = vmatprep.subr.bf16.mxu1 %v19967_v47  ;;  %v21566_v62 = vpack.c.bf16 %v10984_v6, %v10960_v27 }
 0xe9c   : > { %v10939_v49 = vadd.f32 %v21540_v56, %v10852_v19  ;;  %v18375_v4 = vpop.f32.mrb[198].mxu0  ;;  %v11098_v31 = vpack.c.bf16 %v11078_v23, %v11077_v29  ;;  %v11099_v48 = vpack.c.bf16 %v11080_v12, %v11079_v42  ;;  %v19972_v12 = vld [vmem:[#allocation7 + $0x3f8] sm:$0xff]  }
 0xe9d   : > { %v10964_v8 = vmax.f32 %v10941_v39, 0.0  ;;  %v10942_v14 = vadd.f32 %v18375_v4, %v21540_v56  ;;  %v10855_v11 = vpop.f32.mrb[199].mxu0 }
 0xe9e   : > { %v10962_v3 = vmax.f32 %v10939_v49, 0.0  ;;  %v10940_v17 = vadd.f32 %v21540_v56, %v10855_v11  ;;  %18404 = vmatprep.mubr.bf16.mxu1 %v11098_v31  ;;  %18429 = vmatpush3.bf16.msra.mxu1 %v19967_v47 }
 0xe9f   : > { %v10987_v10 = vmul.f32 0.0, %v10964_v8  ;;  %v10965_v37 = vmax.f32 %v10942_v14, 0.0  ;;  %18405 = vmatmul.mubr.bf16.gmra.mrb[188].mxu1 %v11099_v48  ;;  %18430 = vmatprep.subr.bf16.mxu1 %v19968_v20 }
 0xea0   : > { %11008 = vst [vmem:[#allocation4 + $0x68] sm:$0xff] %v10962_v3  ;;  %v10963_v46 = vmax.f32 %v10940_v17, 0.0  ;;  %v19973_v17 = vld [vmem:[#allocation7 + $0x440] sm:$0xff]  }
 0xea1   : > { %11010 = vst [vmem:[#allocation4 + $0x78] sm:$0xff] %v10987_v10  ;;  %11011 = vst [vmem:[#allocation4 + $0x80] sm:$0xff] %v10965_v37  ;;  %v11081_v7 = vld [vmem:[#allocation4 + $0x46] sm:$0xff]  ;;  %v11082_v30 = vld [vmem:[#allocation4 + $0x4e] sm:$0xff]  ;;  %v21571_v24 = vpack.c.bf16 %v10965_v37, %v10987_v10 }
 0xea2   : > { %11009 = vst [vmem:[#allocation4 + $0x70] sm:$0xff] %v10963_v46  ;;  %v18378_v25 = vpop.f32.mrb[200].mxu0  ;;  %v11100_v59 = vpack.c.bf16 %v11082_v30, %v11081_v7  ;;  %v11083_v36 = vld [vmem:[#allocation4 + $0x56] sm:$0xff]  ;;  %v11084_v51 = vld [vmem:[#allocation4 + $0x5e] sm:$0xff]  ;;  %18431 = vmatpush3.bf16.msra.mxu1 %v19968_v20  ;;  %v21573_v53 = vpack.c.bf16 %v10963_v46, %v10962_v3 }
 0xea3   : > { %v10945_v2 = vadd.f32 %v18378_v25, %v21540_v56  ;;  %v10868_v45 = vpop.f32.mrb[201].mxu0  ;;  %18432 = vmatprep.subr.bf16.mxu1 %v19969_v26  ;;  %v11101_v22 = vpack.c.bf16 %v11084_v51, %v11083_v36  ;;  %v11022_v51 = vld [vmem:[#allocation4 + $0xc] sm:$0xff] }
 0xea4   : > { %v10943_v35 = vadd.f32 %v21540_v56, %v10868_v45  ;;  %v18379_v60 = vpop.f32.mrb[202].mxu0  ;;  %18408 = vmatprep.mubr.bf16.mxu1 %v11100_v59 }
 0xea5   : > { %v10968_v21 = vmax.f32 %v10945_v2, 0.0  ;;  %v10946_v32 = vadd.f32 %v18379_v60, %v21540_v56  ;;  %v10871_v27 = vpop.f32.mrb[203].mxu0  ;;  %v11021_v60 = vld [vmem:[#allocation4 + $0x4] sm:$0xff] }
 0xea6   : > { %v10966_v5 = vmax.f32 %v10943_v35, 0.0  ;;  %v10944_v55 = vadd.f32 %v21540_v56, %v10871_v27  ;;  %18433 = vmatpush3.bf16.msra.mxu1 %v19969_v26  ;;  %v11024_v27 = vld [vmem:[#allocation4 + $0x1c] sm:$0xff] }
 0xea7   : > { %11014 = vst [vmem:[#allocation4 + $0x98] sm:$0xff] %v10968_v21  ;;  %v10969_v28 = vmax.f32 %v10946_v32, 0.0  ;;  %18409 = vmatmul.mubr.bf16.gmra.mrb[192].mxu1 %v11101_v22  ;;  %18434 = vmatprep.subr.bf16.mxu1 %v19970_v15  ;;  %v11085_v38 = vld [vmem:[#allocation4 + $0x66] sm:$0xff]  ;;  %v11023_v32 = vld [vmem:[#allocation4 + $0x14] sm:$0xff] }
 0xea8   : > { %11012 = vst [vmem:[#allocation4 + $0x88] sm:$0xff] %v10966_v5  ;;  %v10967_v47 = vmax.f32 %v10944_v55, 0.0  ;;  %v11088_v19 = vld [vmem:[#allocation4 + $0x7e] sm:$0xff]  ;;  %v11026_v22 = vld [vmem:[#allocation4 + $0x2c] sm:$0xff] }
 0xea9   : > { %11015 = vst [vmem:[#allocation4 + $0xa0] sm:$0xff] %v10969_v28  ;;  %v11086_v0 = vld [vmem:[#allocation4 + $0x6e] sm:$0xff]  ;;  %v21579_v6 = vpack.c.bf16 %v10969_v28, %v10968_v21  ;;  %v11087_v39 = vld [vmem:[#allocation4 + $0x76] sm:$0xff]  ;;  %v11044_v21 = vpack.c.bf16 %v11022_v51, %v11021_v60  ;;  %v11025_v55 = vld [vmem:[#allocation4 + $0x24] sm:$0xff] }
 0xeaa   : > { %v10990_v1 = vmul.f32 0.0, %v10967_v47  ;;  %v18382_v29 = vpop.f32.mrb[212].mxu0  ;;  %v11102_v20 = vpack.c.bf16 %v11086_v0, %v11085_v38  ;;  %18435 = vmatpush3.bf16.msra.mxu1 %v19970_v15  ;;  %v11103_v14 = vpack.c.bf16 %v11088_v19, %v11087_v39  ;;  %v19974_v28 = vld [vmem:[#allocation7 + $0x448] sm:$0xff]   ;;  %v19975_v47 = vld [vmem:[#allocation7 + $0x450] sm:$0xff]   ;;  %v19976_v39 = vld [vmem:[#allocation7 + $0x458] sm:$0xff]  }
 0xeab   : > { %v10920_v23 = vadd.f32 %v18382_v29, %v21531_v16  ;;  %v10884_v42 = vpop.f32.mrb[213].mxu0  ;;  %18436 = vmatprep.subr.bf16.mxu1 %v19971_v63  ;;  %v11027_v38 = vld [vmem:[#allocation4 + $0x34] sm:$0xff]  ;;  %v11029_v0 = vld [vmem:[#allocation4 + $0x44] sm:$0xff]  ;;  %v11028_v29 = vld [vmem:[#allocation4 + $0x3c] sm:$0xff] }
 0xeac   : > { %11013 = vst [vmem:[#allocation4 + $0x90] sm:$0xff] %v10990_v1  ;;  %v10918_v49 = vadd.f32 %v10884_v42, %v21533_v40  ;;  %v18383_v4 = vpop.f32.mrb[214].mxu0  ;;  %18412 = vmatprep.mubr.bf16.mxu1 %v11102_v20  ;;  %v21583_v31 = vpack.c.bf16 %v10990_v1, %v10966_v5  ;;  %v11045_v5 = vpack.c.bf16 %v11024_v27, %v11023_v32  ;;  %v11030_v1 = vld [vmem:[#allocation4 + $0x4c] sm:$0xff]  ;;  %v11031_v42 = vld [vmem:[#allocation4 + $0x54] sm:$0xff] }
 0xead   : > { %v10949_v48 = vadd.f32 %v21540_v56, %v10920_v23  ;;  %v10887_v8 = vpop.f32.mrb[215].mxu0  ;;  %v11047_v20 = vpack.c.bf16 %v11028_v29, %v11027_v38  ;;  %v11048_v19 = vpack.c.bf16 %v11030_v1, %v11029_v0  ;;  %v19977_v23 = vld [vmem:[#allocation7 + $0x460] sm:$0xff]  }
 0xeae   : > { %v10947_v11 = vadd.f32 %v21540_v56, %v10918_v49  ;;  %v10919_v3 = vadd.f32 %v10887_v8, %v21535_v43  ;;  %18437 = vmatpush3.bf16.msra.mxu1 %v19971_v63  ;;  %v11046_v63 = vpack.c.bf16 %v11026_v22, %v11025_v55  ;;  %v11034_v49 = vld [vmem:[#allocation4 + $0x6c] sm:$0xff]  ;;  %v21619_v55 = vld [vmem:[%s22024_s4 + $0x5] ss:$0 sm:$0xff] }
 0xeaf   : > { %v21588_v16 = vmax.f32 %v10949_v48, 0.0  ;;  %18413 = vmatmul.mubr.bf16.gmra.mrb[196].mxu1 %v11103_v14  ;;  %18438 = vmatprep.subr.bf16.mxu1 %v19972_v12  ;;  %v11089_v46 = vld [vmem:[#allocation4 + $0x86] sm:$0xff] }
 0xeb0   : > { %v10970_v10 = vmax.f32 %v10947_v11, 0.0  ;;  %v10948_v40 = vadd.f32 %v21540_v56, %v10919_v3  ;;  %v11092_v25 = vld [vmem:[#allocation4 + $0x9e] sm:$0xff]  ;;  %v19978_v8 = vld [vmem:[#allocation7 + $0x468] sm:$0xff]   ;;  %v19979_v11 = vld [vmem:[#allocation7 + $0x470] sm:$0xff]  }
 0xeb1   : > { %11018 = vst [vmem:[#allocation4 + $0xb8] sm:$0xff] %v21588_v16  ;;  %v11033_v48 = vld [vmem:[#allocation4 + $0x64] sm:$0xff]  ;;  %v11035_v3 = vld [vmem:[#allocation4 + $0x74] sm:$0xff] }
 0xeb2   : > { %v10993_v37 = vmul.f32 0.0, %v10970_v10  ;;  %v10971_v26 = vmax.f32 %v10948_v40, 0.0  ;;  %18439 = vmatpush3.bf16.msra.mxu1 %v19972_v12  ;;  %v11032_v12 = vld [vmem:[#allocation4 + $0x5c] sm:$0xff]  ;;  %v11050_v14 = vpack.c.bf16 %v11034_v49, %v11033_v48 }
 0xeb3   : > { %v11090_v7 = vld [vmem:[#allocation4 + $0x8e] sm:$0xff]  ;;  %v11091_v30 = vld [vmem:[#allocation4 + $0x96] sm:$0xff]  ;;  %18464 = vmatprep.subr.bf16.mxu1 %v19973_v17  ;;  %v11049_v4 = vpack.c.bf16 %v11032_v12, %v11031_v42  ;;  %v11783_v48 = vld [vmem:[#allocation3 + $0x20] sm:$0xff] }
 0xeb4   : > { %11016 = vst [vmem:[#allocation4 + $0xa8] sm:$0xff] %v10993_v37  ;;  %11017 = vst [vmem:[#allocation4 + $0xb0] sm:$0xff] %v10971_v26  ;;  %v11104_v43 = vpack.c.bf16 %v11090_v7, %v11089_v46  ;;  %v11105_v59 = vpack.c.bf16 %v11092_v25, %v11091_v30  ;;  %v21592_v36 = vpack.c.bf16 %v10971_v26, %v10993_v37  ;;  %v11038_v10 = vld [vmem:[#allocation4 + $0x8c] sm:$0xff]  ;;  %v11037_v37 = vld [vmem:[#allocation4 + $0x84] sm:$0xff] }
 0xeb5   : > { %v19980_v26 = vld [vmem:[#allocation7 + $0x478] sm:$0xff]   ;;  %v11052_v46 = vpack.c.bf16 %v11038_v10, %v11037_v37  ;;  %v11780_v12 = vld [vmem:[#allocation3 + $0x8] sm:$0xff] }
 0xeb6   : > { %18416 = vmatprep.mubr.bf16.mxu1 %v11104_v43  ;;  %v11039_v7 = vld [vmem:[#allocation4 + $0x94] sm:$0xff]  ;;  %v11040_v43 = vld [vmem:[#allocation4 + $0x9c] sm:$0xff] }
 0xeb7   : > { %18417 = vmatmul.mubr.bf16.gmra.mrb[200].mxu1 %v11105_v59  ;;  %v11053_v59 = vpack.c.bf16 %v11040_v43, %v11039_v7 }
 0xebb   : > { %v11093_v56 = vld [vmem:[#allocation4 + $0xa6] sm:$0xff]  ;;  %v11094_v2 = vld [vmem:[#allocation4 + $0xae] sm:$0xff]  ;;  %v11095_v45 = vld [vmem:[#allocation4 + $0xb6] sm:$0xff] }
 0xebc   : > { %v11106_v15 = vpack.c.bf16 %v11094_v2, %v11093_v56  ;;  %v11107_v35 = vpack.c.bf16 %v11095_v45, %v11095_v45  ;;  %v11041_v30 = vld [vmem:[#allocation4 + $0xa4] sm:$0xff]  ;;  %v11042_v25 = vld [vmem:[#allocation4 + $0xac] sm:$0xff]  ;;  %v11043_v56 = vld [vmem:[#allocation4 + $0xb4] sm:$0xff] }
 0xebd   : > { %v11054_v51 = vpack.c.bf16 %v11042_v25, %v11041_v30  ;;  %v11055_v2 = vpack.c.bf16 %v11043_v56, %v11043_v56  ;;  %v19981_v45 = vld [vmem:[#allocation5 + $0x4c0] sm:$0xff]  }
 0xebe   : > { %18420 = vmatprep.mubr.bf16.mxu1 %v11106_v15  ;;  %v19982_v15 = vld [vmem:[#allocation5 + $0x4c8] sm:$0xff]   ;;  %18504 = vmatprep.subr.bf16.mxu0 %v19981_v45 }
 0xebf   : > { %18421 = vmatmul.mubr.bf16.gmra.mrb[204].mxu1 %v11107_v35  ;;  %18505 = vmatpush3.bf16.msra.mxu0 %v19981_v45  ;;  %v11786_v45 = vld [vmem:[#allocation3 + $0x38] sm:$0xff] }
 0xec0   : > { %18440 = vmatprep.mubr.bf16.mxu1 %v11044_v21  ;;  %18506 = vmatprep.subr.bf16.mxu0 %v19982_v15 }
 0xec3   : > { %18507 = vmatpush3.bf16.msra.mxu0 %v19982_v15 }
 0xec7   : > { %18441 = vmatmul.mubr.bf16.vlgmr.msra.gmra.mrb[184].mxu1 %v11045_v5 }
 0xec8   : > { %18444 = vmatprep.mubr.bf16.mxu1 %v11046_v63  ;;  %18465 = vmatpush3.bf16.msra.mxu1 %v19973_v17  ;;  %v11036_v17 = vld [vmem:[#allocation4 + $0x7c] sm:$0xff] }
 0xec9   : > { %18466 = vmatprep.subr.bf16.mxu1 %v19974_v28  ;;  %v11051_v40 = vpack.c.bf16 %v11036_v17, %v11035_v3  ;;  %v11781_v3 = vld [vmem:[#allocation3 + $0x10] sm:$0xff] }
 0xecc   : > { %18467 = vmatpush3.bf16.msra.mxu1 %v19974_v28 }
 0xecd   : > { %18468 = vmatprep.subr.bf16.mxu1 %v19975_v47 }
 0xecf   : > { %18445 = vmatmul.mubr.bf16.gmra.mrb[188].mxu1 %v11047_v20 }
 0xed0   : > { %18448 = vmatprep.mubr.bf16.mxu1 %v11048_v19  ;;  %18469 = vmatpush3.bf16.msra.mxu1 %v19975_v47 }
 0xed1   : > { %18470 = vmatprep.subr.bf16.mxu1 %v19976_v39 }
 0xed4   : > { %18471 = vmatpush3.bf16.msra.mxu1 %v19976_v39  ;;  %v11782_v39 = vld [vmem:[#allocation3 + $0x18] sm:$0xff] }
 0xed5   : > { %18472 = vmatprep.subr.bf16.mxu1 %v19977_v23 }
 0xed7   : > { %18449 = vmatmul.mubr.bf16.gmra.mrb[192].mxu1 %v11049_v4 }
 0xed8   : > { %18452 = vmatprep.mubr.bf16.mxu1 %v11050_v14  ;;  %18473 = vmatpush3.bf16.msra.mxu1 %v19977_v23 }
 0xed9   : > { %18474 = vmatprep.subr.bf16.mxu1 %v19978_v8 }
 0xedc   : > { %18475 = vmatpush3.bf16.msra.mxu1 %v19978_v8 }
 0xedd   : > { %18476 = vmatprep.subr.bf16.mxu1 %v19979_v11 }
 0xedf   : > { %18453 = vmatmul.mubr.bf16.gmra.mrb[196].mxu1 %v11051_v40 }
 0xee0   : > { %18456 = vmatprep.mubr.bf16.mxu1 %v11052_v46  ;;  %18477 = vmatpush3.bf16.msra.mxu1 %v19979_v11 }
 0xee1   : > { %18478 = vmatprep.subr.bf16.mxu1 %v19980_v26 }
 0xee4   : > { %18479 = vmatpush3.bf16.msra.mxu1 %v19980_v26 }
 0xee7   : > { %18457 = vmatmul.mubr.bf16.gmra.mrb[200].mxu1 %v11053_v59 }
 0xee8   : > { %18460 = vmatprep.mubr.bf16.mxu1 %v11054_v51 }
 0xeef   : > { %18461 = vmatmul.mubr.bf16.gmra.mrb[208].mxu1 %v11055_v2 }
 0xef0   : > { %18480 = vmatprep.mubr.bf16.mxu1 %v21548_v41  ;;  %v11511_v41 = vpack.c.bf16 %v21588_v16, %v21588_v16 }
 0xef7   : > { %18481 = vmatmul.mubr.bf16.vlgmr.msra.gmra.mrb[184].mxu1 %v21546_v54  ;;  %v19983_v54 = vld [vmem:[#allocation5 + $0x4d0] sm:$0xff]  }
 0xef8   : > { %18484 = vmatprep.mubr.bf16.mxu1 %v21558_v9  ;;  %18508 = vmatprep.subr.bf16.mxu0 %v19983_v54  ;;  %v19985_v9 = vld [vmem:[#allocation5 + $0x4e0] sm:$0xff]  }
 0xef9   : > { %18509 = vmatpush3.bf16.msra.mxu0 %v19983_v54 }
 0xeff   : > { %18485 = vmatmul.mubr.bf16.gmra.mrb[188].mxu1 %v21554_v52  ;;  %v19984_v52 = vld [vmem:[#allocation5 + $0x4d8] sm:$0xff]  }
 0xf00   : > { %18488 = vmatprep.mubr.bf16.mxu1 %v21563_v13  ;;  %18510 = vmatprep.subr.bf16.mxu0 %v19984_v52  ;;  %v19986_v13 = vld [vmem:[#allocation5 + $0x4e8] sm:$0xff]  }
 0xf01   : > { %18511 = vmatpush3.bf16.msra.mxu0 %v19984_v52 }
 0xf02   : > { %18512 = vmatprep.subr.bf16.mxu0 %v19985_v9 }
 0xf05   : > { %18513 = vmatpush3.bf16.msra.mxu0 %v19985_v9  ;;  %v11784_v9 = vld [vmem:[#allocation3 + $0x28] sm:$0xff] }
 0xf06   : > { %18514 = vmatprep.subr.bf16.mxu0 %v19986_v13 }
 0xf07   : > { %18489 = vmatmul.mubr.bf16.gmra.mrb[192].mxu1 %v21566_v62  ;;  %v19987_v62 = vld [vmem:[#allocation5 + $0x4f0] sm:$0xff]  }
 0xf08   : > { %18492 = vmatprep.mubr.bf16.mxu1 %v21573_v53  ;;  %v21607_v53 = vld [vmem:[#allocation5 + $0x480] sm:$0xff]  }
 0xf09   : > { %18515 = vmatpush3.bf16.msra.mxu0 %v19986_v13 }
 0xf0a   : > { %18516 = vmatprep.subr.bf16.mxu0 %v19987_v62 }
 0xf0d   : > { %18517 = vmatpush3.bf16.msra.mxu0 %v19987_v62 }
 0xf0f   : > { %18493 = vmatmul.mubr.bf16.gmra.mrb[196].mxu1 %v21571_v24  ;;  %v19988_v24 = vld [vmem:[#allocation5 + $0x4f8] sm:$0xff]  }
 0xf10   : > { %18496 = vmatprep.mubr.bf16.mxu1 %v21583_v31  ;;  %18518 = vmatprep.subr.bf16.mxu0 %v19988_v24 }
 0xf11   : > { %18519 = vmatpush3.bf16.msra.mxu0 %v19988_v24  ;;  %v11787_v24 = vld [vmem:[#allocation3 + $0x40] sm:$0xff] }
 0xf12   : > { %18544 = vmatprep.subr.bf16.mxu0 %v21607_v53 }
 0xf17   : > { %18497 = vmatmul.mubr.bf16.gmra.mrb[200].mxu1 %v21579_v6 }
 0xf18   : > { %18500 = vmatprep.mubr.bf16.mxu1 %v21592_v36 }
 0xf1f   : > { %18501 = vmatmul.mubr.bf16.gmra.mrb[212].mxu1 %v11511_v41 }
 0xf92   : > { %v18422_v6 = vpop.f32.mrb[204].mxu1 }
 0xf93   : > { %v11287_v31 = vpop.f32.mrb[205].mxu1 }
 0xf94   : > { %v18423_v16 = vpop.f32.mrb[206].mxu1 }
 0xf95   : > { %v11290_v36 = vpop.f32.mrb[207].mxu1 }
 0xfc2   : > { %v18462_v35 = vpop.f32.mrb[208].mxu1 }
 0xfc3   : > { %v21610_v60 = vadd.f32 %v18462_v35, %v18422_v6  ;;  %v11463_v21 = vpop.f32.mrb[209].mxu1 }
 0xfc4   : > { %v21612_v32 = vadd.f32 %v11463_v21, %v11287_v31  ;;  %v18463_v27 = vpop.f32.mrb[210].mxu1 }
 0xfc5   : > { %v11466_v22 = vpop.f32.mrb[211].mxu1 }
 0xfc6   : > { %v21614_v5 = vadd.f32 %v11466_v22, %v11290_v36  ;;  %v11785_v36 = vld [vmem:[#allocation3 + $0x30] sm:$0xff] }
 0xfca   : > { %v18482_v28 = vpop.f32.mrb[184].mxu1 }
 0xfcb   : > { %v11736_v63 = vadd.f32 %v18482_v28, %v21619_v55  ;;  %v11611_v47 = vpop.f32.mrb[185].mxu1 }
 0xfcc   : > { %v11734_v38 = vadd.f32 %v21619_v55, %v11611_v47  ;;  %v18483_v0 = vpop.f32.mrb[186].mxu1 }
 0xfcd   : > { %v11759_v1 = vmax.f32 %v11736_v63, 0.0  ;;  %v11737_v29 = vadd.f32 %v18483_v0, %v21619_v55  ;;  %v11614_v20 = vpop.f32.mrb[187].mxu1 }
 0xfce   : > { %v11757_v19 = vmax.f32 %v11734_v38, 0.0  ;;  %v11735_v23 = vadd.f32 %v21619_v55, %v11614_v20 }
 0xfcf   : > { %v11805_v42 = vadd.f32 %v11782_v39, %v11759_v1  ;;  %v11760_v49 = vmax.f32 %v11737_v29, 0.0 }
 0xfd0   : > { %v11803_v4 = vadd.f32 %v11780_v12, %v11757_v19  ;;  %v11758_v8 = vmax.f32 %v11735_v23, 0.0 }
 0xfd1   : > { %v11828_v14 = vmax.f32 %v11805_v42, 0.0  ;;  %v11806_v11 = vadd.f32 %v11783_v48, %v11760_v49 }
 0xfd2   : > { %v11826_v17 = vmax.f32 %v11803_v4, 0.0  ;;  %v11804_v10 = vadd.f32 %v11781_v3, %v11758_v8  ;;  %v18486_v40 = vpop.f32.mrb[188].mxu1  ;;  %v11790_v4 = vld [vmem:[#allocation3 + $0x58] sm:$0xff]  ;;  %v11788_v3 = vld [vmem:[#allocation3 + $0x48] sm:$0xff] }
 0xfd3   : > { %v11851_v37 = vmul.f32 0.0, %v11828_v14  ;;  %v11829_v26 = vmax.f32 %v11806_v11, 0.0  ;;  %v11740_v46 = vadd.f32 %v18486_v40, %v21619_v55  ;;  %v11627_v7 = vpop.f32.mrb[189].mxu1  ;;  %v19990_v40 = vld [vmem:[#allocation5 + $0x488] sm:$0xff]  }
 0xfd4   : > { %11872 = vst [vmem:[#allocation3 + $0x8] sm:$0xff] %v11826_v17  ;;  %v11827_v30 = vmax.f32 %v11804_v10, 0.0  ;;  %v11738_v25 = vadd.f32 %v21619_v55, %v11627_v7  ;;  %v18487_v43 = vpop.f32.mrb[190].mxu1 }
 0xfd5   : > { %11874 = vst [vmem:[#allocation3 + $0x18] sm:$0xff] %v11851_v37  ;;  %11875 = vst [vmem:[#allocation3 + $0x20] sm:$0xff] %v11829_v26  ;;  %v11763_v59 = vmax.f32 %v11740_v46, 0.0  ;;  %v11741_v51 = vadd.f32 %v18487_v43, %v21619_v55  ;;  %v11630_v56 = vpop.f32.mrb[191].mxu1  ;;  %v21628_v2 = vpack.c.bf16 %v11829_v26, %v11851_v37  ;;  %v11791_v26 = vld [vmem:[#allocation3 + $0x60] sm:$0xff]  ;;  %v11789_v43 = vld [vmem:[#allocation3 + $0x50] sm:$0xff] }
 0xfd6   : > { %11873 = vst [vmem:[#allocation3 + $0x10] sm:$0xff] %v11827_v30  ;;  %v11761_v15 = vmax.f32 %v11738_v25, 0.0  ;;  %v11739_v54 = vadd.f32 %v21619_v55, %v11630_v56  ;;  %v21631_v41 = vpack.c.bf16 %v11827_v30, %v11826_v17 }
 0xfd7   : > { %v11809_v52 = vadd.f32 %v11786_v45, %v11763_v59  ;;  %v11764_v13 = vmax.f32 %v11741_v51, 0.0 }
 0xfd8   : > { %v11807_v62 = vadd.f32 %v11784_v9, %v11761_v15  ;;  %v11762_v6 = vmax.f32 %v11739_v54, 0.0 }
 0xfd9   : > { %v11832_v31 = vmax.f32 %v11809_v52, 0.0  ;;  %v11810_v16 = vadd.f32 %v11787_v24, %v11764_v13  ;;  %v19991_v52 = vld [vmem:[#allocation5 + $0x490] sm:$0xff]  }
 0xfda   : > { %v11830_v35 = vmax.f32 %v11807_v62, 0.0  ;;  %v11808_v21 = vadd.f32 %v11785_v36, %v11762_v6  ;;  %v18490_v27 = vpop.f32.mrb[192].mxu1 }
 0xfdb   : > { %11878 = vst [vmem:[#allocation3 + $0x38] sm:$0xff] %v11832_v31  ;;  %v11833_v22 = vmax.f32 %v11810_v16, 0.0  ;;  %v11744_v28 = vadd.f32 %v18490_v27, %v21619_v55  ;;  %v11643_v63 = vpop.f32.mrb[193].mxu1  ;;  %v11949_v19 = vld [vmem:[#allocation3 + $0x7] sm:$0xff] }
 0xfdc   : > { %11876 = vst [vmem:[#allocation3 + $0x28] sm:$0xff] %v11830_v35  ;;  %v11831_v47 = vmax.f32 %v11808_v21, 0.0  ;;  %v11742_v38 = vadd.f32 %v21619_v55, %v11643_v63  ;;  %v18491_v0 = vpop.f32.mrb[194].mxu1  ;;  %v11952_v1 = vld [vmem:[#allocation3 + $0x1f] sm:$0xff]  ;;  %v11792_v16 = vld [vmem:[#allocation3 + $0x68] sm:$0xff] }
 0xfdd   : > { %11879 = vst [vmem:[#allocation3 + $0x40] sm:$0xff] %v11833_v22  ;;  %v11767_v29 = vmax.f32 %v11744_v28, 0.0  ;;  %v11745_v20 = vadd.f32 %v18491_v0, %v21619_v55  ;;  %v11646_v39 = vpop.f32.mrb[195].mxu1  ;;  %v11950_v23 = vld [vmem:[#allocation3 + $0xf] sm:$0xff]  ;;  %v11951_v42 = vld [vmem:[#allocation3 + $0x17] sm:$0xff]  ;;  %v21636_v12 = vpack.c.bf16 %v11833_v22, %v11832_v31 }
 0xfde   : > { %v11854_v49 = vmul.f32 0.0, %v11831_v47  ;;  %v11765_v48 = vmax.f32 %v11742_v38, 0.0  ;;  %v11743_v8 = vadd.f32 %v21619_v55, %v11646_v39  ;;  %v11972_v14 = vpack.c.bf16 %v11950_v23, %v11949_v19  ;;  %v19992_v28 = vld [vmem:[#allocation5 + $0x498] sm:$0xff]   ;;  %v11795_v19 = vld [vmem:[#allocation3 + $0x80] sm:$0xff] }
 0xfdf   : > { %v11813_v11 = vadd.f32 %v11790_v4, %v11767_v29  ;;  %v11768_v17 = vmax.f32 %v11745_v20, 0.0  ;;  %v11973_v10 = vpack.c.bf16 %v11952_v1, %v11951_v42 }
 0xfe0   : > { %11877 = vst [vmem:[#allocation3 + $0x30] sm:$0xff] %v11854_v49  ;;  %v11811_v37 = vadd.f32 %v11788_v3, %v11765_v48  ;;  %v11766_v46 = vmax.f32 %v11743_v8, 0.0  ;;  %18520 = vmatprep.mubr.bf16.mxu0 %v11972_v14  ;;  %v21639_v7 = vpack.c.bf16 %v11854_v49, %v11830_v35  ;;  %v11793_v8 = vld [vmem:[#allocation3 + $0x70] sm:$0xff] }
 0xfe1   : > { %v11836_v30 = vmax.f32 %v11813_v11, 0.0  ;;  %v11814_v25 = vadd.f32 %v11791_v26, %v11768_v17  ;;  %18521 = vmatmul.mubr.bf16.vlgmr.msra.gmra.mrb[216].mxu0 %v11973_v10  ;;  %v19993_v26 = vld [vmem:[#allocation5 + $0x4a0] sm:$0xff]  }
 0xfe2   : > { %v11834_v59 = vmax.f32 %v11811_v37, 0.0  ;;  %v11812_v51 = vadd.f32 %v11789_v43, %v11766_v46  ;;  %v18494_v56 = vpop.f32.mrb[196].mxu1  ;;  %18545 = vmatpush3.bf16.msra.mxu0 %v21607_v53  ;;  %v11794_v53 = vld [vmem:[#allocation3 + $0x78] sm:$0xff] }
 0xfe3   : > { %11882 = vst [vmem:[#allocation3 + $0x58] sm:$0xff] %v11836_v30  ;;  %v11837_v45 = vmax.f32 %v11814_v25, 0.0  ;;  %v11748_v15 = vadd.f32 %v18494_v56, %v21619_v55  ;;  %v11659_v54 = vpop.f32.mrb[197].mxu1  ;;  %18546 = vmatprep.subr.bf16.mxu0 %v19990_v40  ;;  %v11953_v22 = vld [vmem:[#allocation3 + $0x27] sm:$0xff] }
 0xfe4   : > { %v11857_v9 = vmul.f32 0.0, %v11834_v59  ;;  %v11835_v13 = vmax.f32 %v11812_v51, 0.0  ;;  %v11746_v62 = vadd.f32 %v21619_v55, %v11659_v54  ;;  %v18495_v24 = vpop.f32.mrb[198].mxu1  ;;  %v11956_v29 = vld [vmem:[#allocation3 + $0x3f] sm:$0xff] }
 0xfe5   : > { %v11860_v6 = vmul.f32 0.0, %v11837_v45  ;;  %v11771_v31 = vmax.f32 %v11748_v15, 0.0  ;;  %v11749_v36 = vadd.f32 %v18495_v24, %v21619_v55  ;;  %v11662_v35 = vpop.f32.mrb[199].mxu1  ;;  %v11798_v54 = vld [vmem:[#allocation3 + $0x98] sm:$0xff] }
 0xfe6   : > { %11880 = vst [vmem:[#allocation3 + $0x48] sm:$0xff] %v11857_v9  ;;  %11881 = vst [vmem:[#allocation3 + $0x50] sm:$0xff] %v11835_v13  ;;  %v11769_v21 = vmax.f32 %v11746_v62, 0.0  ;;  %v11747_v27 = vadd.f32 %v21619_v55, %v11662_v35  ;;  %18547 = vmatpush3.bf16.msra.mxu0 %v19990_v40  ;;  %v21646_v63 = vpack.c.bf16 %v11835_v13, %v11857_v9  ;;  %v19994_v35 = vld [vmem:[#allocation5 + $0x4a8] sm:$0xff]  }
 0xfe7   : > { %11883 = vst [vmem:[#allocation3 + $0x60] sm:$0xff] %v11860_v6  ;;  %v11817_v47 = vadd.f32 %v11794_v53, %v11771_v31  ;;  %v11772_v38 = vmax.f32 %v11749_v36, 0.0  ;;  %v11954_v0 = vld [vmem:[#allocation3 + $0x2f] sm:$0xff]  ;;  %v11955_v1 = vld [vmem:[#allocation3 + $0x37] sm:$0xff]  ;;  %18548 = vmatprep.subr.bf16.mxu0 %v19991_v52  ;;  %v21648_v20 = vpack.c.bf16 %v11860_v6, %v11836_v30 }
 0xfe8   : > { %v11815_v39 = vadd.f32 %v11792_v16, %v11769_v21  ;;  %v11770_v23 = vmax.f32 %v11747_v27, 0.0  ;;  %v11974_v42 = vpack.c.bf16 %v11954_v0, %v11953_v22  ;;  %v11975_v49 = vpack.c.bf16 %v11956_v29, %v11955_v1  ;;  %v11796_v16 = vld [vmem:[#allocation3 + $0x88] sm:$0xff]  ;;  %v11799_v21 = vld [vmem:[#allocation3 + $0xa0] sm:$0xff] }
 0xfe9   : > { %v11840_v4 = vmax.f32 %v11817_v47, 0.0  ;;  %v11818_v48 = vadd.f32 %v11795_v19, %v11772_v38  ;;  %v11797_v38 = vld [vmem:[#allocation3 + $0x90] sm:$0xff] }
 0xfea   : > { %v11838_v14 = vmax.f32 %v11815_v39, 0.0  ;;  %v11816_v11 = vadd.f32 %v11793_v8, %v11770_v23  ;;  %v18498_v3 = vpop.f32.mrb[200].mxu1  ;;  %18524 = vmatprep.mubr.bf16.mxu0 %v11974_v42  ;;  %18549 = vmatpush3.bf16.msra.mxu0 %v19991_v52  ;;  %v19995_v42 = vld [vmem:[#allocation5 + $0x4b0] sm:$0xff]  }
 0xfeb   : > { %v11863_v17 = vmul.f32 0.0, %v11840_v4  ;;  %v11841_v10 = vmax.f32 %v11818_v48, 0.0  ;;  %v11752_v40 = vadd.f32 %v18498_v3, %v21619_v55  ;;  %v11675_v37 = vpop.f32.mrb[201].mxu1  ;;  %18525 = vmatmul.mubr.bf16.gmra.mrb[220].mxu0 %v11975_v49  ;;  %18550 = vmatprep.subr.bf16.mxu0 %v19992_v28 }
 0xfec   : > { %11884 = vst [vmem:[#allocation3 + $0x68] sm:$0xff] %v11838_v14  ;;  %v11839_v46 = vmax.f32 %v11816_v11, 0.0  ;;  %v11750_v30 = vadd.f32 %v21619_v55, %v11675_v37  ;;  %v18499_v25 = vpop.f32.mrb[202].mxu1 }
 0xfed   : > { %11886 = vst [vmem:[#allocation3 + $0x78] sm:$0xff] %v11863_v17  ;;  %11887 = vst [vmem:[#allocation3 + $0x80] sm:$0xff] %v11841_v10  ;;  %v11775_v43 = vmax.f32 %v11752_v40, 0.0  ;;  %v11753_v59 = vadd.f32 %v18499_v25, %v21619_v55  ;;  %v11678_v51 = vpop.f32.mrb[203].mxu1  ;;  %v11957_v56 = vld [vmem:[#allocation3 + $0x47] sm:$0xff]  ;;  %v11958_v45 = vld [vmem:[#allocation3 + $0x4f] sm:$0xff]  ;;  %v21653_v15 = vpack.c.bf16 %v11841_v10, %v11863_v17 }
 0xfee   : > { %11885 = vst [vmem:[#allocation3 + $0x70] sm:$0xff] %v11839_v46  ;;  %v11773_v52 = vmax.f32 %v11750_v30, 0.0  ;;  %v11751_v9 = vadd.f32 %v21619_v55, %v11678_v51  ;;  %v11976_v13 = vpack.c.bf16 %v11958_v45, %v11957_v56  ;;  %v11959_v62 = vld [vmem:[#allocation3 + $0x57] sm:$0xff]  ;;  %v11960_v24 = vld [vmem:[#allocation3 + $0x5f] sm:$0xff]  ;;  %18551 = vmatpush3.bf16.msra.mxu0 %v19992_v28  ;;  %v21656_v6 = vpack.c.bf16 %v11839_v46, %v11838_v14  ;;  %v11800_v45 = vld [vmem:[#allocation3 + $0xa8] sm:$0xff] }
 0xfef   : > { %v11821_v31 = vadd.f32 %v11798_v54, %v11775_v43  ;;  %v11776_v36 = vmax.f32 %v11753_v59, 0.0  ;;  %18552 = vmatprep.subr.bf16.mxu0 %v19993_v26  ;;  %v11977_v0 = vpack.c.bf16 %v11960_v24, %v11959_v62  ;;  %v11802_v25 = vld [vmem:[#allocation3 + $0xb8] sm:$0xff]  ;;  %v19997_v62 = vld [vmem:[#allocation5 + $0x500] sm:$0xff]  }
 0xff0   : > { %v11819_v53 = vadd.f32 %v11796_v16, %v11773_v52  ;;  %v11774_v27 = vmax.f32 %v11751_v9, 0.0  ;;  %18528 = vmatprep.mubr.bf16.mxu0 %v11976_v13  ;;  %v11801_v13 = vld [vmem:[#allocation3 + $0xb0] sm:$0xff] }
 0xff1   : > { %v11844_v22 = vmax.f32 %v11821_v31, 0.0  ;;  %v11822_v47 = vadd.f32 %v11799_v21, %v11776_v36 }
 0xff2   : > { %v11842_v1 = vmax.f32 %v11819_v53, 0.0  ;;  %v11820_v29 = vadd.f32 %v11797_v38, %v11774_v27  ;;  %v18502_v39 = vpop.f32.mrb[212].mxu1  ;;  %18553 = vmatpush3.bf16.msra.mxu0 %v19993_v26  ;;  %v11898_v38 = vld [vmem:[#allocation3 + $0xe] sm:$0xff] }
 0xff3   : > { %11890 = vst [vmem:[#allocation3 + $0x98] sm:$0xff] %v11844_v22  ;;  %v11845_v28 = vmax.f32 %v11822_v47, 0.0  ;;  %v11727_v19 = vadd.f32 %v18502_v39, %v21610_v60  ;;  %v11691_v23 = vpop.f32.mrb[213].mxu1  ;;  %18529 = vmatmul.mubr.bf16.gmra.mrb[224].mxu0 %v11977_v0  ;;  %18554 = vmatprep.subr.bf16.mxu0 %v19994_v35  ;;  %v11961_v11 = vld [vmem:[#allocation3 + $0x67] sm:$0xff] }
 0xff4   : > { %11888 = vst [vmem:[#allocation3 + $0x88] sm:$0xff] %v11842_v1  ;;  %v11843_v49 = vmax.f32 %v11820_v29, 0.0  ;;  %v11725_v4 = vadd.f32 %v11691_v23, %v21612_v32  ;;  %v18503_v48 = vpop.f32.mrb[214].mxu1  ;;  %v11964_v46 = vld [vmem:[#allocation3 + $0x7f] sm:$0xff] }
 0xff5   : > { %11891 = vst [vmem:[#allocation3 + $0xa0] sm:$0xff] %v11845_v28  ;;  %v11756_v8 = vadd.f32 %v21619_v55, %v11727_v19  ;;  %v11694_v14 = vpop.f32.mrb[215].mxu1  ;;  %v11962_v3 = vld [vmem:[#allocation3 + $0x6f] sm:$0xff]  ;;  %v21661_v17 = vpack.c.bf16 %v11845_v28, %v11844_v22  ;;  %v11963_v26 = vld [vmem:[#allocation3 + $0x77] sm:$0xff]  ;;  %v11897_v19 = vld [vmem:[#allocation3 + $0x6] sm:$0xff] }
 0xff6   : > { %v11866_v10 = vmul.f32 0.0, %v11843_v49  ;;  %v11754_v60 = vadd.f32 %v21619_v55, %v11725_v4  ;;  %v11726_v40 = vadd.f32 %v11694_v14, %v21614_v5  ;;  %v11978_v37 = vpack.c.bf16 %v11962_v3, %v11961_v11  ;;  %18555 = vmatpush3.bf16.msra.mxu0 %v19994_v35  ;;  %v19996_v32 = vld [vmem:[#allocation5 + $0x4b8] sm:$0xff]   ;;  %v11902_v4 = vld [vmem:[#allocation3 + $0x2e] sm:$0xff] }
 0xff7   : > { %v11779_v30 = vmax.f32 %v11756_v8, 0.0  ;;  %18556 = vmatprep.subr.bf16.mxu0 %v19995_v42  ;;  %v11979_v54 = vpack.c.bf16 %v11964_v46, %v11963_v26  ;;  %v11920_v23 = vpack.c.bf16 %v11898_v38, %v11897_v19  ;;  %v11900_v49 = vld [vmem:[#allocation3 + $0x1e] sm:$0xff]  ;;  %v11901_v8 = vld [vmem:[#allocation3 + $0x26] sm:$0xff]  ;;  %v19999_v3 = vld [vmem:[#allocation5 + $0x510] sm:$0xff]  }
 0xff8   : > { %11889 = vst [vmem:[#allocation3 + $0x90] sm:$0xff] %v11866_v10  ;;  %v11777_v43 = vmax.f32 %v11754_v60, 0.0  ;;  %v11755_v59 = vadd.f32 %v21619_v55, %v11726_v40  ;;  %18532 = vmatprep.mubr.bf16.mxu0 %v11978_v37  ;;  %v21666_v51 = vpack.c.bf16 %v11866_v10, %v11842_v1  ;;  %v19998_v14 = vld [vmem:[#allocation5 + $0x508] sm:$0xff]   ;;  %v11922_v11 = vpack.c.bf16 %v11902_v4, %v11901_v8  ;;  %v11903_v10 = vld [vmem:[#allocation3 + $0x36] sm:$0xff]  ;;  %v11904_v37 = vld [vmem:[#allocation3 + $0x3e] sm:$0xff] }
 0xff9   : > { %v11825_v56 = vadd.f32 %v11802_v25, %v11779_v30  ;;  %v11905_v60 = vld [vmem:[#allocation3 + $0x46] sm:$0xff]  ;;  %v11906_v40 = vld [vmem:[#allocation3 + $0x4e] sm:$0xff]  ;;  %v11923_v26 = vpack.c.bf16 %v11904_v37, %v11903_v10  ;;  %v20000_v46 = vld [vmem:[#allocation5 + $0x518] sm:$0xff]  }
 0xffa   : > { %v11823_v52 = vadd.f32 %v11800_v45, %v11777_v43  ;;  %v11778_v5 = vmax.f32 %v11755_v59, 0.0  ;;  %18557 = vmatpush3.bf16.msra.mxu0 %v19995_v42  ;;  %v11899_v42 = vld [vmem:[#allocation3 + $0x16] sm:$0xff]  ;;  %v11924_v30 = vpack.c.bf16 %v11906_v40, %v11905_v60  ;;  %v11908_v43 = vld [vmem:[#allocation3 + $0x5e] sm:$0xff]  ;;  %v11910_v59 = vld [vmem:[#allocation3 + $0x6e] sm:$0xff] }
 0xffb   : > { %v21668_v9 = vmax.f32 %v11825_v56, 0.0  ;;  %18533 = vmatmul.mubr.bf16.gmra.mrb[228].mxu0 %v11979_v54  ;;  %18558 = vmatprep.subr.bf16.mxu0 %v19996_v32  ;;  %v11965_v36 = vld [vmem:[#allocation3 + $0x87] sm:$0xff]  ;;  %v11921_v48 = vpack.c.bf16 %v11900_v49, %v11899_v42  ;;  %v11907_v25 = vld [vmem:[#allocation3 + $0x56] sm:$0xff]  ;;  %v21698_v8 = vld [vmem:[%s22022_s2 + $0x6] ss:$0 sm:$0xff] }
 0xffc   : > { %v11846_v24 = vmax.f32 %v11823_v52, 0.0  ;;  %v11824_v31 = vadd.f32 %v11801_v13, %v11778_v5  ;;  %v11968_v21 = vld [vmem:[#allocation3 + $0x9f] sm:$0xff]  ;;  %v11925_v56 = vpack.c.bf16 %v11908_v43, %v11907_v25  ;;  %v20002_v54 = vld [vmem:[#allocation5 + $0x528] sm:$0xff]   ;;  %v20003_v5 = vld [vmem:[#allocation5 + $0x530] sm:$0xff]  }
 0xffd   : > { %11894 = vst [vmem:[#allocation3 + $0xb8] sm:$0xff] %v21668_v9  ;;  %v11909_v45 = vld [vmem:[#allocation3 + $0x66] sm:$0xff]  ;;  %v11911_v13 = vld [vmem:[#allocation3 + $0x76] sm:$0xff] }
 0xffe   : > { %v11869_v55 = vmul.f32 0.0, %v11846_v24  ;;  %v11847_v16 = vmax.f32 %v11824_v31, 0.0  ;;  %18559 = vmatpush3.bf16.msra.mxu0 %v19996_v32  ;;  %v20001_v32 = vld [vmem:[#allocation5 + $0x520] sm:$0xff]   ;;  %v11926_v52 = vpack.c.bf16 %v11910_v59, %v11909_v45 }
 0xfff   : > { %v11966_v35 = vld [vmem:[#allocation3 + $0x8f] sm:$0xff]  ;;  %v11967_v53 = vld [vmem:[#allocation3 + $0x97] sm:$0xff]  ;;  %18584 = vmatprep.subr.bf16.mxu0 %v19997_v62 }
0x1000   : > { %11892 = vst [vmem:[#allocation3 + $0xa8] sm:$0xff] %v11869_v55  ;;  %11893 = vst [vmem:[#allocation3 + $0xb0] sm:$0xff] %v11847_v16  ;;  %v11980_v27 = vpack.c.bf16 %v11966_v35, %v11965_v36  ;;  %v11981_v22 = vpack.c.bf16 %v11968_v21, %v11967_v53  ;;  %v21671_v47 = vpack.c.bf16 %v11847_v16, %v11869_v55  ;;  %v11914_v24 = vld [vmem:[#allocation3 + $0x8e] sm:$0xff]  ;;  %v11913_v55 = vld [vmem:[#allocation3 + $0x86] sm:$0xff] }
0x1001   : > { %v20004_v16 = vld [vmem:[#allocation5 + $0x538] sm:$0xff]   ;;  %v11928_v36 = vpack.c.bf16 %v11914_v24, %v11913_v55 }
0x1002   : > { %18536 = vmatprep.mubr.bf16.mxu0 %v11980_v27  ;;  %v11915_v35 = vld [vmem:[#allocation3 + $0x96] sm:$0xff]  ;;  %v11916_v27 = vld [vmem:[#allocation3 + $0x9e] sm:$0xff] }
0x1003   : > { %18537 = vmatmul.mubr.bf16.gmra.mrb[232].mxu0 %v11981_v22  ;;  %v11929_v22 = vpack.c.bf16 %v11916_v27, %v11915_v35 }
0x1007   : > { %v11969_v0 = vld [vmem:[#allocation3 + $0xa7] sm:$0xff]  ;;  %v11970_v1 = vld [vmem:[#allocation3 + $0xaf] sm:$0xff]  ;;  %v11971_v29 = vld [vmem:[#allocation3 + $0xb7] sm:$0xff] }
0x1008   : > { %v11982_v39 = vpack.c.bf16 %v11970_v1, %v11969_v0  ;;  %v11983_v28 = vpack.c.bf16 %v11971_v29, %v11971_v29  ;;  %v11917_v53 = vld [vmem:[#allocation3 + $0xa6] sm:$0xff]  ;;  %v11918_v21 = vld [vmem:[#allocation3 + $0xae] sm:$0xff]  ;;  %v11919_v0 = vld [vmem:[#allocation3 + $0xb6] sm:$0xff] }
0x1009   : > { %v11930_v38 = vpack.c.bf16 %v11918_v21, %v11917_v53  ;;  %v11931_v1 = vpack.c.bf16 %v11919_v0, %v11919_v0  ;;  %v20005_v29 = vld [vmem:[#allocation7 + $0x4c0] sm:$0xff]  }
0x100a   : > { %18540 = vmatprep.mubr.bf16.mxu0 %v11982_v39  ;;  %v20006_v39 = vld [vmem:[#allocation7 + $0x4c8] sm:$0xff]   ;;  %18624 = vmatprep.subr.bf16.mxu1 %v20005_v29 }
0x100b   : > { %18541 = vmatmul.mubr.bf16.gmra.mrb[236].mxu0 %v11983_v28  ;;  %18625 = vmatpush3.bf16.msra.mxu1 %v20005_v29 }
0x100c   : > { %18560 = vmatprep.mubr.bf16.mxu0 %v11920_v23  ;;  %18626 = vmatprep.subr.bf16.mxu1 %v20006_v39 }
0x100f   : > { %18627 = vmatpush3.bf16.msra.mxu1 %v20006_v39 }
0x1013   : > { %18561 = vmatmul.mubr.bf16.vlgmr.msra.gmra.mrb[216].mxu0 %v11921_v48 }
0x1014   : > { %18564 = vmatprep.mubr.bf16.mxu0 %v11922_v11  ;;  %18585 = vmatpush3.bf16.msra.mxu0 %v19997_v62  ;;  %v11912_v62 = vld [vmem:[#allocation3 + $0x7e] sm:$0xff] }
0x1015   : > { %18586 = vmatprep.subr.bf16.mxu0 %v19998_v14  ;;  %v11927_v31 = vpack.c.bf16 %v11912_v62, %v11911_v13 }
0x1018   : > { %18587 = vmatpush3.bf16.msra.mxu0 %v19998_v14 }
0x1019   : > { %18588 = vmatprep.subr.bf16.mxu0 %v19999_v3 }
0x101b   : > { %18565 = vmatmul.mubr.bf16.gmra.mrb[220].mxu0 %v11923_v26 }
0x101c   : > { %18568 = vmatprep.mubr.bf16.mxu0 %v11924_v30  ;;  %18589 = vmatpush3.bf16.msra.mxu0 %v19999_v3 }
0x101d   : > { %18590 = vmatprep.subr.bf16.mxu0 %v20000_v46 }
0x1020   : > { %18591 = vmatpush3.bf16.msra.mxu0 %v20000_v46 }
0x1021   : > { %18592 = vmatprep.subr.bf16.mxu0 %v20001_v32 }
0x1023   : > { %18569 = vmatmul.mubr.bf16.gmra.mrb[224].mxu0 %v11925_v56 }
0x1024   : > { %18572 = vmatprep.mubr.bf16.mxu0 %v11926_v52  ;;  %18593 = vmatpush3.bf16.msra.mxu0 %v20001_v32 }
0x1025   : > { %18594 = vmatprep.subr.bf16.mxu0 %v20002_v54 }
0x1028   : > { %18595 = vmatpush3.bf16.msra.mxu0 %v20002_v54 }
0x1029   : > { %18596 = vmatprep.subr.bf16.mxu0 %v20003_v5 }
0x102b   : > { %18573 = vmatmul.mubr.bf16.gmra.mrb[228].mxu0 %v11927_v31 }
0x102c   : > { %18576 = vmatprep.mubr.bf16.mxu0 %v11928_v36  ;;  %18597 = vmatpush3.bf16.msra.mxu0 %v20003_v5 }
0x102d   : > { %18598 = vmatprep.subr.bf16.mxu0 %v20004_v16 }
0x1030   : > { %18599 = vmatpush3.bf16.msra.mxu0 %v20004_v16 }
0x1033   : > { %18577 = vmatmul.mubr.bf16.gmra.mrb[232].mxu0 %v11929_v22 }
0x1034   : > { %18580 = vmatprep.mubr.bf16.mxu0 %v11930_v38 }
0x103b   : > { %18581 = vmatmul.mubr.bf16.gmra.mrb[240].mxu0 %v11931_v1 }
0x103c   : > { %18600 = vmatprep.mubr.bf16.mxu0 %v21631_v41  ;;  %v12387_v41 = vpack.c.bf16 %v21668_v9, %v21668_v9 }
0x1043   : > { %18601 = vmatmul.mubr.bf16.vlgmr.msra.gmra.mrb[216].mxu0 %v21628_v2  ;;  %v20007_v2 = vld [vmem:[#allocation7 + $0x4d0] sm:$0xff]  }
0x1044   : > { %18604 = vmatprep.mubr.bf16.mxu0 %v21639_v7  ;;  %18628 = vmatprep.subr.bf16.mxu1 %v20007_v2  ;;  %v20009_v7 = vld [vmem:[#allocation7 + $0x4e0] sm:$0xff]  }
0x1045   : > { %18629 = vmatpush3.bf16.msra.mxu1 %v20007_v2 }
0x104b   : > { %18605 = vmatmul.mubr.bf16.gmra.mrb[220].mxu0 %v21636_v12  ;;  %v20008_v12 = vld [vmem:[#allocation7 + $0x4d8] sm:$0xff]  }
0x104c   : > { %18608 = vmatprep.mubr.bf16.mxu0 %v21646_v63  ;;  %18630 = vmatprep.subr.bf16.mxu1 %v20008_v12  ;;  %v20010_v63 = vld [vmem:[#allocation7 + $0x4e8] sm:$0xff]  }
0x104d   : > { %18631 = vmatpush3.bf16.msra.mxu1 %v20008_v12  ;;  %v20014_v12 = vld [vmem:[#allocation7 + $0x488] sm:$0xff]  }
0x104e   : > { %18632 = vmatprep.subr.bf16.mxu1 %v20009_v7 }
0x1051   : > { %18633 = vmatpush3.bf16.msra.mxu1 %v20009_v7 }
0x1052   : > { %18634 = vmatprep.subr.bf16.mxu1 %v20010_v63 }
0x1053   : > { %18609 = vmatmul.mubr.bf16.gmra.mrb[224].mxu0 %v21648_v20  ;;  %v20011_v20 = vld [vmem:[#allocation7 + $0x4f0] sm:$0xff]  }
0x1054   : > { %18612 = vmatprep.mubr.bf16.mxu0 %v21656_v6  ;;  %v21686_v6 = vld [vmem:[#allocation7 + $0x480] sm:$0xff]  }
0x1055   : > { %18635 = vmatpush3.bf16.msra.mxu1 %v20010_v63 }
0x1056   : > { %18636 = vmatprep.subr.bf16.mxu1 %v20011_v20 }
0x1059   : > { %18637 = vmatpush3.bf16.msra.mxu1 %v20011_v20 }
0x105b   : > { %18613 = vmatmul.mubr.bf16.gmra.mrb[228].mxu0 %v21653_v15  ;;  %v20012_v15 = vld [vmem:[#allocation7 + $0x4f8] sm:$0xff]  }
0x105c   : > { %18616 = vmatprep.mubr.bf16.mxu0 %v21666_v51  ;;  %18638 = vmatprep.subr.bf16.mxu1 %v20012_v15 }
0x105d   : > { %18639 = vmatpush3.bf16.msra.mxu1 %v20012_v15 }
0x105e   : > { %18664 = vmatprep.subr.bf16.mxu1 %v21686_v6 }
0x1063   : > { %18617 = vmatmul.mubr.bf16.gmra.mrb[232].mxu0 %v21661_v17 }
0x1064   : > { %18620 = vmatprep.mubr.bf16.mxu0 %v21671_v47 }
0x106b   : > { %18621 = vmatmul.mubr.bf16.gmra.mrb[244].mxu0 %v12387_v41 }
0x10de   : > { %v18542_v17 = vpop.f32.mrb[236].mxu0 }
0x10df   : > { %v12163_v51 = vpop.f32.mrb[237].mxu0 }
0x10e0   : > { %v18543_v9 = vpop.f32.mrb[238].mxu0 }
0x10e1   : > { %v12166_v47 = vpop.f32.mrb[239].mxu0 }
0x110e   : > { %v18582_v28 = vpop.f32.mrb[240].mxu0 }
0x110f   : > { %v21689_v19 = vadd.f32 %v18582_v28, %v18542_v17  ;;  %v12339_v23 = vpop.f32.mrb[241].mxu0 }
0x1110   : > { %v21691_v42 = vadd.f32 %v12339_v23, %v12163_v51  ;;  %v18583_v49 = vpop.f32.mrb[242].mxu0  ;;  %v20015_v23 = vld [vmem:[#allocation7 + $0x490] sm:$0xff]  }
0x1111   : > { %v12342_v4 = vpop.f32.mrb[243].mxu0 }
0x1112   : > { %v21693_v48 = vadd.f32 %v12342_v4, %v12166_v47 }
0x1116   : > { %v18602_v14 = vpop.f32.mrb[216].mxu0 }
0x1117   : > { %v12612_v11 = vadd.f32 %v18602_v14, %v21698_v8  ;;  %v12487_v3 = vpop.f32.mrb[217].mxu0 }
0x1118   : > { %v12610_v10 = vadd.f32 %v21698_v8, %v12487_v3  ;;  %v18603_v60 = vpop.f32.mrb[218].mxu0 }
0x1119   : > { %v12635_v40 = vmax.f32 %v12612_v11, 0.0  ;;  %v12613_v37 = vadd.f32 %v18603_v60, %v21698_v8  ;;  %v12490_v26 = vpop.f32.mrb[219].mxu0 }
0x111a   : > { %v12633_v46 = vmax.f32 %v12610_v10, 0.0  ;;  %v12611_v30 = vadd.f32 %v21698_v8, %v12490_v26  ;;  %v20016_v10 = vld [vmem:[#allocation7 + $0x498] sm:$0xff]  }
0x111b   : > { %v12658_v32 = vmul.f32 0.0, %v12635_v40  ;;  %v12636_v25 = vmax.f32 %v12613_v37, 0.0 }
0x111c   : > { %12679 = vst [vmem:[#allocation4 + $0x8] sm:$0xff] %v12633_v46  ;;  %v12634_v43 = vmax.f32 %v12611_v30, 0.0 }
0x111d   : > { %12681 = vst [vmem:[#allocation4 + $0x18] sm:$0xff] %v12658_v32  ;;  %12682 = vst [vmem:[#allocation4 + $0x20] sm:$0xff] %v12636_v25  ;;  %v21704_v59 = vpack.c.bf16 %v12636_v25, %v12658_v32 }
0x111e   : > { %12680 = vst [vmem:[#allocation4 + $0x10] sm:$0xff] %v12634_v43  ;;  %v18606_v56 = vpop.f32.mrb[220].mxu0  ;;  %v21706_v45 = vpack.c.bf16 %v12634_v43, %v12633_v46 }
0x111f   : > { %v12616_v54 = vadd.f32 %v18606_v56, %v21698_v8  ;;  %v12503_v52 = vpop.f32.mrb[221].mxu0 }
0x1120   : > { %v12614_v5 = vadd.f32 %v21698_v8, %v12503_v52  ;;  %v18607_v13 = vpop.f32.mrb[222].mxu0 }
0x1121   : > { %v12639_v62 = vmax.f32 %v12616_v54, 0.0  ;;  %v12617_v24 = vadd.f32 %v18607_v13, %v21698_v8  ;;  %v12506_v31 = vpop.f32.mrb[223].mxu0 }
0x1122   : > { %v12637_v55 = vmax.f32 %v12614_v5, 0.0  ;;  %v12615_v16 = vadd.f32 %v21698_v8, %v12506_v31 }
0x1123   : > { %12685 = vst [vmem:[#allocation4 + $0x38] sm:$0xff] %v12639_v62  ;;  %v12640_v36 = vmax.f32 %v12617_v24, 0.0  ;;  %v12756_v21 = vld [vmem:[#allocation4 + $0x7] sm:$0xff] }
0x1124   : > { %12683 = vst [vmem:[#allocation4 + $0x28] sm:$0xff] %v12637_v55  ;;  %v12638_v35 = vmax.f32 %v12615_v16, 0.0  ;;  %v12759_v53 = vld [vmem:[#allocation4 + $0x1f] sm:$0xff] }
0x1125   : > { %12686 = vst [vmem:[#allocation4 + $0x40] sm:$0xff] %v12640_v36  ;;  %v12757_v27 = vld [vmem:[#allocation4 + $0xf] sm:$0xff]  ;;  %v12758_v22 = vld [vmem:[#allocation4 + $0x17] sm:$0xff]  ;;  %v21712_v38 = vpack.c.bf16 %v12640_v36, %v12639_v62 }
0x1126   : > { %v12661_v0 = vmul.f32 0.0, %v12638_v35  ;;  %v18610_v1 = vpop.f32.mrb[224].mxu0  ;;  %v12779_v29 = vpack.c.bf16 %v12757_v27, %v12756_v21  ;;  %v12780_v39 = vpack.c.bf16 %v12759_v53, %v12758_v22 }
0x1127   : > { %v12620_v2 = vadd.f32 %v18610_v1, %v21698_v8  ;;  %v12519_v41 = vpop.f32.mrb[225].mxu0 }
0x1128   : > { %12684 = vst [vmem:[#allocation4 + $0x30] sm:$0xff] %v12661_v0  ;;  %v12618_v7 = vadd.f32 %v21698_v8, %v12519_v41  ;;  %v18611_v63 = vpop.f32.mrb[226].mxu0  ;;  %18640 = vmatprep.mubr.bf16.mxu1 %v12779_v29  ;;  %v21716_v20 = vpack.c.bf16 %v12661_v0, %v12637_v55  ;;  %v20017_v55 = vld [vmem:[#allocation7 + $0x4a0] sm:$0xff]  }
0x1129   : > { %v12643_v15 = vmax.f32 %v12620_v2, 0.0  ;;  %v12621_v17 = vadd.f32 %v18611_v63, %v21698_v8  ;;  %v12522_v51 = vpop.f32.mrb[227].mxu0  ;;  %18641 = vmatmul.mubr.bf16.vlgmr.msra.gmra.mrb[216].mxu1 %v12780_v39  ;;  %v20018_v2 = vld [vmem:[#allocation7 + $0x4a8] sm:$0xff]  }
0x112a   : > { %v12641_v9 = vmax.f32 %v12618_v7, 0.0  ;;  %v12619_v47 = vadd.f32 %v21698_v8, %v12522_v51  ;;  %18665 = vmatpush3.bf16.msra.mxu1 %v21686_v6 }
0x112b   : > { %12689 = vst [vmem:[#allocation4 + $0x58] sm:$0xff] %v12643_v15  ;;  %v12644_v28 = vmax.f32 %v12621_v17, 0.0  ;;  %18666 = vmatprep.subr.bf16.mxu1 %v20014_v12  ;;  %v12760_v3 = vld [vmem:[#allocation4 + $0x27] sm:$0xff] }
0x112c   : > { %v12664_v49 = vmul.f32 0.0, %v12641_v9  ;;  %v12642_v4 = vmax.f32 %v12619_v47, 0.0  ;;  %v12763_v46 = vld [vmem:[#allocation4 + $0x3f] sm:$0xff] }
0x112d   : > { %v12667_v14 = vmul.f32 0.0, %v12644_v28  ;;  %v20019_v28 = vld [vmem:[#allocation7 + $0x4b0] sm:$0xff]  }
0x112e   : > { %12687 = vst [vmem:[#allocation4 + $0x48] sm:$0xff] %v12664_v49  ;;  %12688 = vst [vmem:[#allocation4 + $0x50] sm:$0xff] %v12642_v4  ;;  %v18614_v11 = vpop.f32.mrb[228].mxu0  ;;  %18667 = vmatpush3.bf16.msra.mxu1 %v20014_v12  ;;  %v21721_v60 = vpack.c.bf16 %v12642_v4, %v12664_v49 }
0x112f   : > { %12690 = vst [vmem:[#allocation4 + $0x60] sm:$0xff] %v12667_v14  ;;  %v12624_v40 = vadd.f32 %v18614_v11, %v21698_v8  ;;  %v12535_v37 = vpop.f32.mrb[229].mxu0  ;;  %v12761_v6 = vld [vmem:[#allocation4 + $0x2f] sm:$0xff]  ;;  %v12762_v26 = vld [vmem:[#allocation4 + $0x37] sm:$0xff]  ;;  %18668 = vmatprep.subr.bf16.mxu1 %v20015_v23  ;;  %v21724_v30 = vpack.c.bf16 %v12667_v14, %v12643_v15 }
0x1130   : > { %v12622_v32 = vadd.f32 %v21698_v8, %v12535_v37  ;;  %v18615_v25 = vpop.f32.mrb[230].mxu0  ;;  %v12781_v43 = vpack.c.bf16 %v12761_v6, %v12760_v3  ;;  %v12782_v56 = vpack.c.bf16 %v12763_v46, %v12762_v26  ;;  %v20020_v46 = vld [vmem:[#allocation7 + $0x4b8] sm:$0xff]  }
0x1131   : > { %v12647_v54 = vmax.f32 %v12624_v40, 0.0  ;;  %v12625_v52 = vadd.f32 %v18615_v25, %v21698_v8  ;;  %v12538_v5 = vpop.f32.mrb[231].mxu0 }
0x1132   : > { %v12645_v13 = vmax.f32 %v12622_v32, 0.0  ;;  %v12623_v62 = vadd.f32 %v21698_v8, %v12538_v5  ;;  %18644 = vmatprep.mubr.bf16.mxu1 %v12781_v43  ;;  %18669 = vmatpush3.bf16.msra.mxu1 %v20015_v23 }
0x1133   : > { %v12670_v24 = vmul.f32 0.0, %v12647_v54  ;;  %v12648_v31 = vmax.f32 %v12625_v52, 0.0  ;;  %18645 = vmatmul.mubr.bf16.gmra.mrb[220].mxu1 %v12782_v56  ;;  %18670 = vmatprep.subr.bf16.mxu1 %v20016_v10 }
0x1134   : > { %12691 = vst [vmem:[#allocation4 + $0x68] sm:$0xff] %v12645_v13  ;;  %v12646_v16 = vmax.f32 %v12623_v62, 0.0  ;;  %v20021_v62 = vld [vmem:[#allocation7 + $0x500] sm:$0xff]  }
0x1135   : > { %12693 = vst [vmem:[#allocation4 + $0x78] sm:$0xff] %v12670_v24  ;;  %12694 = vst [vmem:[#allocation4 + $0x80] sm:$0xff] %v12648_v31  ;;  %v12764_v36 = vld [vmem:[#allocation4 + $0x47] sm:$0xff]  ;;  %v12765_v35 = vld [vmem:[#allocation4 + $0x4f] sm:$0xff]  ;;  %v21729_v53 = vpack.c.bf16 %v12648_v31, %v12670_v24 }
0x1136   : > { %12692 = vst [vmem:[#allocation4 + $0x70] sm:$0xff] %v12646_v16  ;;  %v18618_v21 = vpop.f32.mrb[232].mxu0  ;;  %v12783_v27 = vpack.c.bf16 %v12765_v35, %v12764_v36  ;;  %v12766_v22 = vld [vmem:[#allocation4 + $0x57] sm:$0xff]  ;;  %v12767_v0 = vld [vmem:[#allocation4 + $0x5f] sm:$0xff]  ;;  %18671 = vmatpush3.bf16.msra.mxu1 %v20016_v10  ;;  %v21731_v1 = vpack.c.bf16 %v12646_v16, %v12645_v13 }
0x1137   : > { %v12628_v29 = vadd.f32 %v18618_v21, %v21698_v8  ;;  %v12551_v39 = vpop.f32.mrb[233].mxu0  ;;  %18672 = vmatprep.subr.bf16.mxu1 %v20017_v55  ;;  %v12784_v17 = vpack.c.bf16 %v12767_v0, %v12766_v22  ;;  %v12705_v0 = vld [vmem:[#allocation4 + $0xe] sm:$0xff] }
0x1138   : > { %v12626_v41 = vadd.f32 %v21698_v8, %v12551_v39  ;;  %v18619_v12 = vpop.f32.mrb[234].mxu0  ;;  %18648 = vmatprep.mubr.bf16.mxu1 %v12783_v27 }
0x1139   : > { %v12651_v7 = vmax.f32 %v12628_v29, 0.0  ;;  %v12629_v63 = vadd.f32 %v18619_v12, %v21698_v8  ;;  %v12554_v15 = vpop.f32.mrb[235].mxu0  ;;  %v12704_v12 = vld [vmem:[#allocation4 + $0x6] sm:$0xff] }
0x113a   : > { %v12649_v51 = vmax.f32 %v12626_v41, 0.0  ;;  %v12627_v9 = vadd.f32 %v21698_v8, %v12554_v15  ;;  %18673 = vmatpush3.bf16.msra.mxu1 %v20017_v55  ;;  %v12707_v15 = vld [vmem:[#allocation4 + $0x1e] sm:$0xff] }
0x113b   : > { %12697 = vst [vmem:[#allocation4 + $0x98] sm:$0xff] %v12651_v7  ;;  %v12652_v47 = vmax.f32 %v12629_v63, 0.0  ;;  %18649 = vmatmul.mubr.bf16.gmra.mrb[224].mxu1 %v12784_v17  ;;  %18674 = vmatprep.subr.bf16.mxu1 %v20018_v2  ;;  %v12768_v49 = vld [vmem:[#allocation4 + $0x67] sm:$0xff]  ;;  %v12706_v63 = vld [vmem:[#allocation4 + $0x16] sm:$0xff] }
0x113c   : > { %12695 = vst [vmem:[#allocation4 + $0x88] sm:$0xff] %v12649_v51  ;;  %v12650_v23 = vmax.f32 %v12627_v9, 0.0  ;;  %v12771_v37 = vld [vmem:[#allocation4 + $0x7f] sm:$0xff]  ;;  %v12709_v17 = vld [vmem:[#allocation4 + $0x2e] sm:$0xff] }
0x113d   : > { %12698 = vst [vmem:[#allocation4 + $0xa0] sm:$0xff] %v12652_v47  ;;  %v12769_v4 = vld [vmem:[#allocation4 + $0x6f] sm:$0xff]  ;;  %v21737_v14 = vpack.c.bf16 %v12652_v47, %v12651_v7  ;;  %v12770_v40 = vld [vmem:[#allocation4 + $0x77] sm:$0xff]  ;;  %v12727_v7 = vpack.c.bf16 %v12705_v0, %v12704_v12  ;;  %v12708_v9 = vld [vmem:[#allocation4 + $0x26] sm:$0xff] }
0x113e   : > { %v12673_v11 = vmul.f32 0.0, %v12650_v23  ;;  %v18622_v3 = vpop.f32.mrb[244].mxu0  ;;  %v12785_v10 = vpack.c.bf16 %v12769_v4, %v12768_v49  ;;  %18675 = vmatpush3.bf16.msra.mxu1 %v20018_v2  ;;  %v12786_v52 = vpack.c.bf16 %v12771_v37, %v12770_v40  ;;  %v20022_v47 = vld [vmem:[#allocation7 + $0x508] sm:$0xff]   ;;  %v20023_v23 = vld [vmem:[#allocation7 + $0x510] sm:$0xff]   ;;  %v20024_v40 = vld [vmem:[#allocation7 + $0x518] sm:$0xff]  }
0x113f   : > { %v12603_v6 = vadd.f32 %v18622_v3, %v21689_v19  ;;  %v12567_v26 = vpop.f32.mrb[245].mxu0  ;;  %18676 = vmatprep.subr.bf16.mxu1 %v20019_v28  ;;  %v12710_v49 = vld [vmem:[#allocation4 + $0x36] sm:$0xff]  ;;  %v12712_v4 = vld [vmem:[#allocation4 + $0x46] sm:$0xff]  ;;  %v12711_v3 = vld [vmem:[#allocation4 + $0x3e] sm:$0xff] }
0x1140   : > { %12696 = vst [vmem:[#allocation4 + $0x90] sm:$0xff] %v12673_v11  ;;  %v12601_v32 = vadd.f32 %v12567_v26, %v21691_v42  ;;  %v18623_v25 = vpop.f32.mrb[246].mxu0  ;;  %18652 = vmatprep.mubr.bf16.mxu1 %v12785_v10  ;;  %v21741_v43 = vpack.c.bf16 %v12673_v11, %v12649_v51  ;;  %v12728_v51 = vpack.c.bf16 %v12707_v15, %v12706_v63  ;;  %v12713_v11 = vld [vmem:[#allocation4 + $0x4e] sm:$0xff]  ;;  %v12714_v26 = vld [vmem:[#allocation4 + $0x56] sm:$0xff] }
0x1141   : > { %v12632_v56 = vadd.f32 %v21698_v8, %v12603_v6  ;;  %v12570_v54 = vpop.f32.mrb[247].mxu0  ;;  %v12730_v10 = vpack.c.bf16 %v12711_v3, %v12710_v49  ;;  %v12731_v37 = vpack.c.bf16 %v12713_v11, %v12712_v4  ;;  %v20025_v6 = vld [vmem:[#allocation7 + $0x520] sm:$0xff]  }
0x1142   : > { %v12630_v5 = vadd.f32 %v21698_v8, %v12601_v32  ;;  %v12602_v13 = vadd.f32 %v12570_v54, %v21693_v48  ;;  %18677 = vmatpush3.bf16.msra.mxu1 %v20019_v28  ;;  %v12729_v28 = vpack.c.bf16 %v12709_v17, %v12708_v9  ;;  %v12717_v32 = vld [vmem:[#allocation4 + $0x6e] sm:$0xff]  ;;  %v21777_v9 = vld [vmem:[%s22024_s4 + $0x6] ss:$0 sm:$0xff] }
0x1143   : > { %v21746_v19 = vmax.f32 %v12632_v56, 0.0  ;;  %18653 = vmatmul.mubr.bf16.gmra.mrb[228].mxu1 %v12786_v52  ;;  %18678 = vmatprep.subr.bf16.mxu1 %v20020_v46  ;;  %v12772_v16 = vld [vmem:[#allocation4 + $0x87] sm:$0xff] }
0x1144   : > { %v12653_v24 = vmax.f32 %v12630_v5, 0.0  ;;  %v12631_v42 = vadd.f32 %v21698_v8, %v12602_v13  ;;  %v12775_v21 = vld [vmem:[#allocation4 + $0x9f] sm:$0xff]  ;;  %v20026_v54 = vld [vmem:[#allocation7 + $0x528] sm:$0xff]   ;;  %v20027_v5 = vld [vmem:[#allocation7 + $0x530] sm:$0xff]  }
0x1145   : > { %12701 = vst [vmem:[#allocation4 + $0xb8] sm:$0xff] %v21746_v19  ;;  %v12716_v56 = vld [vmem:[#allocation4 + $0x66] sm:$0xff]  ;;  %v12718_v13 = vld [vmem:[#allocation4 + $0x76] sm:$0xff] }
0x1146   : > { %v12676_v31 = vmul.f32 0.0, %v12653_v24  ;;  %v12654_v55 = vmax.f32 %v12631_v42, 0.0  ;;  %18679 = vmatpush3.bf16.msra.mxu1 %v20020_v46  ;;  %v12715_v46 = vld [vmem:[#allocation4 + $0x5e] sm:$0xff]  ;;  %v12733_v52 = vpack.c.bf16 %v12717_v32, %v12716_v56 }
0x1147   : > { %v12773_v36 = vld [vmem:[#allocation4 + $0x8f] sm:$0xff]  ;;  %v12774_v35 = vld [vmem:[#allocation4 + $0x97] sm:$0xff]  ;;  %18704 = vmatprep.subr.bf16.mxu1 %v20021_v62  ;;  %v12732_v25 = vpack.c.bf16 %v12715_v46, %v12714_v26  ;;  %v13466_v56 = vld [vmem:[#allocation3 + $0x20] sm:$0xff] }
0x1148   : > { %12699 = vst [vmem:[#allocation4 + $0xa8] sm:$0xff] %v12676_v31  ;;  %12700 = vst [vmem:[#allocation4 + $0xb0] sm:$0xff] %v12654_v55  ;;  %v12787_v48 = vpack.c.bf16 %v12773_v36, %v12772_v16  ;;  %v12788_v27 = vpack.c.bf16 %v12775_v21, %v12774_v35  ;;  %v21750_v22 = vpack.c.bf16 %v12654_v55, %v12676_v31  ;;  %v12721_v24 = vld [vmem:[#allocation4 + $0x8e] sm:$0xff]  ;;  %v12720_v31 = vld [vmem:[#allocation4 + $0x86] sm:$0xff] }
0x1149   : > { %v20028_v55 = vld [vmem:[#allocation7 + $0x538] sm:$0xff]   ;;  %v12735_v16 = vpack.c.bf16 %v12721_v24, %v12720_v31  ;;  %v13463_v46 = vld [vmem:[#allocation3 + $0x8] sm:$0xff] }
0x114a   : > { %18656 = vmatprep.mubr.bf16.mxu1 %v12787_v48  ;;  %v12722_v36 = vld [vmem:[#allocation4 + $0x96] sm:$0xff]  ;;  %v12723_v48 = vld [vmem:[#allocation4 + $0x9e] sm:$0xff] }
0x114b   : > { %18657 = vmatmul.mubr.bf16.gmra.mrb[232].mxu1 %v12788_v27  ;;  %v12736_v27 = vpack.c.bf16 %v12723_v48, %v12722_v36 }
0x114f   : > { %v12776_v8 = vld [vmem:[#allocation4 + $0xa7] sm:$0xff]  ;;  %v12777_v29 = vld [vmem:[#allocation4 + $0xaf] sm:$0xff]  ;;  %v12778_v39 = vld [vmem:[#allocation4 + $0xb7] sm:$0xff] }
0x1150   : > { %v12789_v2 = vpack.c.bf16 %v12777_v29, %v12776_v8  ;;  %v12790_v41 = vpack.c.bf16 %v12778_v39, %v12778_v39  ;;  %v12724_v35 = vld [vmem:[#allocation4 + $0xa6] sm:$0xff]  ;;  %v12725_v21 = vld [vmem:[#allocation4 + $0xae] sm:$0xff]  ;;  %v12726_v8 = vld [vmem:[#allocation4 + $0xb6] sm:$0xff] }
0x1151   : > { %v12737_v0 = vpack.c.bf16 %v12725_v21, %v12724_v35  ;;  %v12738_v29 = vpack.c.bf16 %v12726_v8, %v12726_v8  ;;  %v20029_v39 = vld [vmem:[#allocation5 + $0x580] sm:$0xff]  }
0x1152   : > { %18660 = vmatprep.mubr.bf16.mxu1 %v12789_v2  ;;  %v20030_v2 = vld [vmem:[#allocation5 + $0x588] sm:$0xff]   ;;  %18744 = vmatprep.subr.bf16.mxu0 %v20029_v39 }
0x1153   : > { %18661 = vmatmul.mubr.bf16.gmra.mrb[236].mxu1 %v12790_v41  ;;  %18745 = vmatpush3.bf16.msra.mxu0 %v20029_v39  ;;  %v13469_v39 = vld [vmem:[#allocation3 + $0x38] sm:$0xff] }
0x1154   : > { %18680 = vmatprep.mubr.bf16.mxu1 %v12727_v7  ;;  %18746 = vmatprep.subr.bf16.mxu0 %v20030_v2 }
0x1157   : > { %18747 = vmatpush3.bf16.msra.mxu0 %v20030_v2 }
0x115b   : > { %18681 = vmatmul.mubr.bf16.vlgmr.msra.gmra.mrb[216].mxu1 %v12728_v51 }
0x115c   : > { %18684 = vmatprep.mubr.bf16.mxu1 %v12729_v28  ;;  %18705 = vmatpush3.bf16.msra.mxu1 %v20021_v62  ;;  %v12719_v62 = vld [vmem:[#allocation4 + $0x7e] sm:$0xff] }
0x115d   : > { %18706 = vmatprep.subr.bf16.mxu1 %v20022_v47  ;;  %v12734_v42 = vpack.c.bf16 %v12719_v62, %v12718_v13  ;;  %v13464_v13 = vld [vmem:[#allocation3 + $0x10] sm:$0xff] }
0x1160   : > { %18707 = vmatpush3.bf16.msra.mxu1 %v20022_v47 }
0x1161   : > { %18708 = vmatprep.subr.bf16.mxu1 %v20023_v23 }
0x1163   : > { %18685 = vmatmul.mubr.bf16.gmra.mrb[220].mxu1 %v12730_v10 }
0x1164   : > { %18688 = vmatprep.mubr.bf16.mxu1 %v12731_v37  ;;  %18709 = vmatpush3.bf16.msra.mxu1 %v20023_v23 }
0x1165   : > { %18710 = vmatprep.subr.bf16.mxu1 %v20024_v40 }
0x1168   : > { %18711 = vmatpush3.bf16.msra.mxu1 %v20024_v40  ;;  %v13465_v40 = vld [vmem:[#allocation3 + $0x18] sm:$0xff] }
0x1169   : > { %18712 = vmatprep.subr.bf16.mxu1 %v20025_v6 }
0x116b   : > { %18689 = vmatmul.mubr.bf16.gmra.mrb[224].mxu1 %v12732_v25 }
0x116c   : > { %18692 = vmatprep.mubr.bf16.mxu1 %v12733_v52  ;;  %18713 = vmatpush3.bf16.msra.mxu1 %v20025_v6 }
0x116d   : > { %18714 = vmatprep.subr.bf16.mxu1 %v20026_v54 }
0x1170   : > { %18715 = vmatpush3.bf16.msra.mxu1 %v20026_v54 }
0x1171   : > { %18716 = vmatprep.subr.bf16.mxu1 %v20027_v5 }
0x1173   : > { %18693 = vmatmul.mubr.bf16.gmra.mrb[228].mxu1 %v12734_v42 }
0x1174   : > { %18696 = vmatprep.mubr.bf16.mxu1 %v12735_v16  ;;  %18717 = vmatpush3.bf16.msra.mxu1 %v20027_v5 }
0x1175   : > { %18718 = vmatprep.subr.bf16.mxu1 %v20028_v55 }
0x1178   : > { %18719 = vmatpush3.bf16.msra.mxu1 %v20028_v55 }
0x117b   : > { %18697 = vmatmul.mubr.bf16.gmra.mrb[232].mxu1 %v12736_v27 }
0x117c   : > { %18700 = vmatprep.mubr.bf16.mxu1 %v12737_v0 }
0x1183   : > { %18701 = vmatmul.mubr.bf16.gmra.mrb[240].mxu1 %v12738_v29 }
0x1184   : > { %18720 = vmatprep.mubr.bf16.mxu1 %v21706_v45  ;;  %v13194_v45 = vpack.c.bf16 %v21746_v19, %v21746_v19 }
0x118b   : > { %18721 = vmatmul.mubr.bf16.vlgmr.msra.gmra.mrb[216].mxu1 %v21704_v59  ;;  %v20031_v59 = vld [vmem:[#allocation5 + $0x590] sm:$0xff]  }
0x118c   : > { %18724 = vmatprep.mubr.bf16.mxu1 %v21716_v20  ;;  %18748 = vmatprep.subr.bf16.mxu0 %v20031_v59  ;;  %v20033_v20 = vld [vmem:[#allocation5 + $0x5a0] sm:$0xff]  }
0x118d   : > { %18749 = vmatpush3.bf16.msra.mxu0 %v20031_v59 }
0x1193   : > { %18725 = vmatmul.mubr.bf16.gmra.mrb[220].mxu1 %v21712_v38  ;;  %v20032_v38 = vld [vmem:[#allocation5 + $0x598] sm:$0xff]  }
0x1194   : > { %18728 = vmatprep.mubr.bf16.mxu1 %v21721_v60  ;;  %18750 = vmatprep.subr.bf16.mxu0 %v20032_v38  ;;  %v20034_v60 = vld [vmem:[#allocation5 + $0x5a8] sm:$0xff]  }
0x1195   : > { %18751 = vmatpush3.bf16.msra.mxu0 %v20032_v38 }
0x1196   : > { %18752 = vmatprep.subr.bf16.mxu0 %v20033_v20 }
0x1199   : > { %18753 = vmatpush3.bf16.msra.mxu0 %v20033_v20  ;;  %v13467_v20 = vld [vmem:[#allocation3 + $0x28] sm:$0xff] }
0x119a   : > { %18754 = vmatprep.subr.bf16.mxu0 %v20034_v60 }
0x119b   : > { %18729 = vmatmul.mubr.bf16.gmra.mrb[224].mxu1 %v21724_v30  ;;  %v20035_v30 = vld [vmem:[#allocation5 + $0x5b0] sm:$0xff]  }
0x119c   : > { %18732 = vmatprep.mubr.bf16.mxu1 %v21731_v1  ;;  %v21765_v1 = vld [vmem:[#allocation5 + $0x540] sm:$0xff]  }
0x119d   : > { %18755 = vmatpush3.bf16.msra.mxu0 %v20034_v60 }
0x119e   : > { %18756 = vmatprep.subr.bf16.mxu0 %v20035_v30 }
0x11a1   : > { %18757 = vmatpush3.bf16.msra.mxu0 %v20035_v30 }
0x11a3   : > { %18733 = vmatmul.mubr.bf16.gmra.mrb[228].mxu1 %v21729_v53  ;;  %v20036_v53 = vld [vmem:[#allocation5 + $0x5b8] sm:$0xff]  }
0x11a4   : > { %18736 = vmatprep.mubr.bf16.mxu1 %v21741_v43  ;;  %18758 = vmatprep.subr.bf16.mxu0 %v20036_v53 }
0x11a5   : > { %18759 = vmatpush3.bf16.msra.mxu0 %v20036_v53  ;;  %v13470_v53 = vld [vmem:[#allocation3 + $0x40] sm:$0xff] }
0x11a6   : > { %18784 = vmatprep.subr.bf16.mxu0 %v21765_v1 }
0x11ab   : > { %18737 = vmatmul.mubr.bf16.gmra.mrb[232].mxu1 %v21737_v14 }
0x11ac   : > { %18740 = vmatprep.mubr.bf16.mxu1 %v21750_v22 }
0x11b3   : > { %18741 = vmatmul.mubr.bf16.gmra.mrb[244].mxu1 %v13194_v45 }
0x1226   : > { %v18662_v14 = vpop.f32.mrb[236].mxu1 }
0x1227   : > { %v12970_v43 = vpop.f32.mrb[237].mxu1 }
0x1228   : > { %v18663_v19 = vpop.f32.mrb[238].mxu1 }
0x1229   : > { %v12973_v22 = vpop.f32.mrb[239].mxu1 }
0x1256   : > { %v18702_v41 = vpop.f32.mrb[240].mxu1 }
0x1257   : > { %v21768_v12 = vadd.f32 %v18702_v41, %v18662_v14  ;;  %v13146_v7 = vpop.f32.mrb[241].mxu1 }
0x1258   : > { %v21770_v63 = vadd.f32 %v13146_v7, %v12970_v43  ;;  %v18703_v15 = vpop.f32.mrb[242].mxu1 }
0x1259   : > { %v13149_v17 = vpop.f32.mrb[243].mxu1 }
0x125a   : > { %v21772_v51 = vadd.f32 %v13149_v17, %v12973_v22  ;;  %v13468_v22 = vld [vmem:[#allocation3 + $0x30] sm:$0xff] }
0x125e   : > { %v18722_v47 = vpop.f32.mrb[216].mxu1 }
0x125f   : > { %v13419_v28 = vadd.f32 %v18722_v47, %v21777_v9  ;;  %v13294_v23 = vpop.f32.mrb[217].mxu1 }
0x1260   : > { %v13417_v49 = vadd.f32 %v21777_v9, %v13294_v23  ;;  %v18723_v4 = vpop.f32.mrb[218].mxu1 }
0x1261   : > { %v13442_v11 = vmax.f32 %v13419_v28, 0.0  ;;  %v13420_v3 = vadd.f32 %v18723_v4, %v21777_v9  ;;  %v13297_v10 = vpop.f32.mrb[219].mxu1 }
0x1262   : > { %v13440_v37 = vmax.f32 %v13417_v49, 0.0  ;;  %v13418_v6 = vadd.f32 %v21777_v9, %v13297_v10 }
0x1263   : > { %v13488_v26 = vadd.f32 %v13465_v40, %v13442_v11  ;;  %v13443_v32 = vmax.f32 %v13420_v3, 0.0 }
0x1264   : > { %v13486_v25 = vadd.f32 %v13463_v46, %v13440_v37  ;;  %v13441_v54 = vmax.f32 %v13418_v6, 0.0 }
0x1265   : > { %v13511_v52 = vmax.f32 %v13488_v26, 0.0  ;;  %v13489_v5 = vadd.f32 %v13466_v56, %v13443_v32 }
0x1266   : > { %v13509_v62 = vmax.f32 %v13486_v25, 0.0  ;;  %v13487_v24 = vadd.f32 %v13464_v13, %v13441_v54  ;;  %v18726_v42 = vpop.f32.mrb[220].mxu1  ;;  %v13473_v25 = vld [vmem:[#allocation3 + $0x58] sm:$0xff]  ;;  %v13471_v13 = vld [vmem:[#allocation3 + $0x48] sm:$0xff] }
0x1267   : > { %v13534_v31 = vmul.f32 0.0, %v13511_v52  ;;  %v13512_v55 = vmax.f32 %v13489_v5, 0.0  ;;  %v13423_v16 = vadd.f32 %v18726_v42, %v21777_v9  ;;  %v13310_v36 = vpop.f32.mrb[221].mxu1  ;;  %v20038_v42 = vld [vmem:[#allocation5 + $0x548] sm:$0xff]  }
0x1268   : > { %13555 = vst [vmem:[#allocation3 + $0x8] sm:$0xff] %v13509_v62  ;;  %v13510_v35 = vmax.f32 %v13487_v24, 0.0  ;;  %v13421_v21 = vadd.f32 %v21777_v9, %v13310_v36  ;;  %v18727_v48 = vpop.f32.mrb[222].mxu1 }
0x1269   : > { %13557 = vst [vmem:[#allocation3 + $0x18] sm:$0xff] %v13534_v31  ;;  %13558 = vst [vmem:[#allocation3 + $0x20] sm:$0xff] %v13512_v55  ;;  %v13446_v27 = vmax.f32 %v13423_v16, 0.0  ;;  %v13424_v0 = vadd.f32 %v18727_v48, %v21777_v9  ;;  %v13313_v8 = vpop.f32.mrb[223].mxu1  ;;  %v21786_v29 = vpack.c.bf16 %v13512_v55, %v13534_v31  ;;  %v13474_v55 = vld [vmem:[#allocation3 + $0x60] sm:$0xff]  ;;  %v13472_v48 = vld [vmem:[#allocation3 + $0x50] sm:$0xff] }
0x126a   : > { %13556 = vst [vmem:[#allocation3 + $0x10] sm:$0xff] %v13510_v35  ;;  %v13444_v2 = vmax.f32 %v13421_v21, 0.0  ;;  %v13422_v59 = vadd.f32 %v21777_v9, %v13313_v8  ;;  %v21789_v45 = vpack.c.bf16 %v13510_v35, %v13509_v62 }
0x126b   : > { %v13492_v38 = vadd.f32 %v13469_v39, %v13446_v27  ;;  %v13447_v60 = vmax.f32 %v13424_v0, 0.0 }
0x126c   : > { %v13490_v30 = vadd.f32 %v13467_v20, %v13444_v2  ;;  %v13445_v14 = vmax.f32 %v13422_v59, 0.0 }
0x126d   : > { %v13515_v43 = vmax.f32 %v13492_v38, 0.0  ;;  %v13493_v19 = vadd.f32 %v13470_v53, %v13447_v60  ;;  %v20039_v38 = vld [vmem:[#allocation5 + $0x550] sm:$0xff]  }
0x126e   : > { %v13513_v41 = vmax.f32 %v13490_v30, 0.0  ;;  %v13491_v7 = vadd.f32 %v13468_v22, %v13445_v14  ;;  %v18730_v15 = vpop.f32.mrb[224].mxu1 }
0x126f   : > { %13561 = vst [vmem:[#allocation3 + $0x38] sm:$0xff] %v13515_v43  ;;  %v13516_v17 = vmax.f32 %v13493_v19, 0.0  ;;  %v13427_v47 = vadd.f32 %v18730_v15, %v21777_v9  ;;  %v13326_v28 = vpop.f32.mrb[225].mxu1  ;;  %v13632_v37 = vld [vmem:[#allocation3 + $0x6] sm:$0xff] }
0x1270   : > { %13559 = vst [vmem:[#allocation3 + $0x28] sm:$0xff] %v13513_v41  ;;  %v13514_v23 = vmax.f32 %v13491_v7, 0.0  ;;  %v13425_v49 = vadd.f32 %v21777_v9, %v13326_v28  ;;  %v18731_v4 = vpop.f32.mrb[226].mxu1  ;;  %v13635_v11 = vld [vmem:[#allocation3 + $0x1e] sm:$0xff]  ;;  %v13475_v19 = vld [vmem:[#allocation3 + $0x68] sm:$0xff] }
0x1271   : > { %13562 = vst [vmem:[#allocation3 + $0x40] sm:$0xff] %v13516_v17  ;;  %v13450_v3 = vmax.f32 %v13427_v47, 0.0  ;;  %v13428_v10 = vadd.f32 %v18731_v4, %v21777_v9  ;;  %v13329_v40 = vpop.f32.mrb[227].mxu1  ;;  %v13633_v6 = vld [vmem:[#allocation3 + $0xe] sm:$0xff]  ;;  %v13634_v26 = vld [vmem:[#allocation3 + $0x16] sm:$0xff]  ;;  %v21794_v46 = vpack.c.bf16 %v13516_v17, %v13515_v43 }
0x1272   : > { %v13537_v32 = vmul.f32 0.0, %v13514_v23  ;;  %v13448_v56 = vmax.f32 %v13425_v49, 0.0  ;;  %v13426_v54 = vadd.f32 %v21777_v9, %v13329_v40  ;;  %v13655_v52 = vpack.c.bf16 %v13633_v6, %v13632_v37  ;;  %v20040_v47 = vld [vmem:[#allocation5 + $0x558] sm:$0xff]   ;;  %v13478_v37 = vld [vmem:[#allocation3 + $0x80] sm:$0xff] }
0x1273   : > { %v13496_v5 = vadd.f32 %v13473_v25, %v13450_v3  ;;  %v13451_v62 = vmax.f32 %v13428_v10, 0.0  ;;  %v13656_v24 = vpack.c.bf16 %v13635_v11, %v13634_v26 }
0x1274   : > { %13560 = vst [vmem:[#allocation3 + $0x30] sm:$0xff] %v13537_v32  ;;  %v13494_v31 = vadd.f32 %v13471_v13, %v13448_v56  ;;  %v13449_v16 = vmax.f32 %v13426_v54, 0.0  ;;  %18760 = vmatprep.mubr.bf16.mxu0 %v13655_v52  ;;  %v21797_v36 = vpack.c.bf16 %v13537_v32, %v13513_v41  ;;  %v13476_v54 = vld [vmem:[#allocation3 + $0x70] sm:$0xff] }
0x1275   : > { %v13519_v35 = vmax.f32 %v13496_v5, 0.0  ;;  %v13497_v21 = vadd.f32 %v13474_v55, %v13451_v62  ;;  %18761 = vmatmul.mubr.bf16.vlgmr.msra.gmra.mrb[248].mxu0 %v13656_v24  ;;  %v20041_v55 = vld [vmem:[#allocation5 + $0x560] sm:$0xff]  }
0x1276   : > { %v13517_v27 = vmax.f32 %v13494_v31, 0.0  ;;  %v13495_v0 = vadd.f32 %v13472_v48, %v13449_v16  ;;  %v18734_v8 = vpop.f32.mrb[228].mxu1  ;;  %18785 = vmatpush3.bf16.msra.mxu0 %v21765_v1  ;;  %v13477_v1 = vld [vmem:[#allocation3 + $0x78] sm:$0xff] }
0x1277   : > { %13565 = vst [vmem:[#allocation3 + $0x58] sm:$0xff] %v13519_v35  ;;  %v13520_v39 = vmax.f32 %v13497_v21, 0.0  ;;  %v13431_v2 = vadd.f32 %v18734_v8, %v21777_v9  ;;  %v13342_v59 = vpop.f32.mrb[229].mxu1  ;;  %18786 = vmatprep.subr.bf16.mxu0 %v20038_v42  ;;  %v13636_v17 = vld [vmem:[#allocation3 + $0x26] sm:$0xff] }
0x1278   : > { %v13540_v20 = vmul.f32 0.0, %v13517_v27  ;;  %v13518_v60 = vmax.f32 %v13495_v0, 0.0  ;;  %v13429_v30 = vadd.f32 %v21777_v9, %v13342_v59  ;;  %v18735_v53 = vpop.f32.mrb[230].mxu1  ;;  %v13639_v3 = vld [vmem:[#allocation3 + $0x3e] sm:$0xff] }
0x1279   : > { %v13543_v14 = vmul.f32 0.0, %v13520_v39  ;;  %v13454_v43 = vmax.f32 %v13431_v2, 0.0  ;;  %v13432_v22 = vadd.f32 %v18735_v53, %v21777_v9  ;;  %v13345_v41 = vpop.f32.mrb[231].mxu1  ;;  %v13481_v59 = vld [vmem:[#allocation3 + $0x98] sm:$0xff] }
0x127a   : > { %13563 = vst [vmem:[#allocation3 + $0x48] sm:$0xff] %v13540_v20  ;;  %13564 = vst [vmem:[#allocation3 + $0x50] sm:$0xff] %v13518_v60  ;;  %v13452_v7 = vmax.f32 %v13429_v30, 0.0  ;;  %v13430_v15 = vadd.f32 %v21777_v9, %v13345_v41  ;;  %18787 = vmatpush3.bf16.msra.mxu0 %v20038_v42  ;;  %v21804_v28 = vpack.c.bf16 %v13518_v60, %v13540_v20  ;;  %v20042_v41 = vld [vmem:[#allocation5 + $0x568] sm:$0xff]  }
0x127b   : > { %13566 = vst [vmem:[#allocation3 + $0x60] sm:$0xff] %v13543_v14  ;;  %v13500_v23 = vadd.f32 %v13477_v1, %v13454_v43  ;;  %v13455_v49 = vmax.f32 %v13432_v22, 0.0  ;;  %v13637_v4 = vld [vmem:[#allocation3 + $0x2e] sm:$0xff]  ;;  %v13638_v11 = vld [vmem:[#allocation3 + $0x36] sm:$0xff]  ;;  %18788 = vmatprep.subr.bf16.mxu0 %v20039_v38  ;;  %v21806_v10 = vpack.c.bf16 %v13543_v14, %v13519_v35 }
0x127c   : > { %v13498_v40 = vadd.f32 %v13475_v19, %v13452_v7  ;;  %v13453_v6 = vmax.f32 %v13430_v15, 0.0  ;;  %v13657_v26 = vpack.c.bf16 %v13637_v4, %v13636_v17  ;;  %v13658_v32 = vpack.c.bf16 %v13639_v3, %v13638_v11  ;;  %v13479_v19 = vld [vmem:[#allocation3 + $0x88] sm:$0xff]  ;;  %v13482_v7 = vld [vmem:[#allocation3 + $0xa0] sm:$0xff] }
0x127d   : > { %v13523_v25 = vmax.f32 %v13500_v23, 0.0  ;;  %v13501_v56 = vadd.f32 %v13478_v37, %v13455_v49  ;;  %v13480_v49 = vld [vmem:[#allocation3 + $0x90] sm:$0xff] }
0x127e   : > { %v13521_v52 = vmax.f32 %v13498_v40, 0.0  ;;  %v13499_v5 = vadd.f32 %v13476_v54, %v13453_v6  ;;  %v18738_v13 = vpop.f32.mrb[232].mxu1  ;;  %18764 = vmatprep.mubr.bf16.mxu0 %v13657_v26  ;;  %18789 = vmatpush3.bf16.msra.mxu0 %v20039_v38  ;;  %v20043_v26 = vld [vmem:[#allocation5 + $0x570] sm:$0xff]  }
0x127f   : > { %v13546_v62 = vmul.f32 0.0, %v13523_v25  ;;  %v13524_v24 = vmax.f32 %v13501_v56, 0.0  ;;  %v13435_v42 = vadd.f32 %v18738_v13, %v21777_v9  ;;  %v13358_v31 = vpop.f32.mrb[233].mxu1  ;;  %18765 = vmatmul.mubr.bf16.gmra.mrb[252].mxu0 %v13658_v32  ;;  %18790 = vmatprep.subr.bf16.mxu0 %v20040_v47 }
0x1280   : > { %13567 = vst [vmem:[#allocation3 + $0x68] sm:$0xff] %v13521_v52  ;;  %v13522_v16 = vmax.f32 %v13499_v5, 0.0  ;;  %v13433_v35 = vadd.f32 %v21777_v9, %v13358_v31  ;;  %v18739_v21 = vpop.f32.mrb[234].mxu1 }
0x1281   : > { %13569 = vst [vmem:[#allocation3 + $0x78] sm:$0xff] %v13546_v62  ;;  %13570 = vst [vmem:[#allocation3 + $0x80] sm:$0xff] %v13524_v24  ;;  %v13458_v48 = vmax.f32 %v13435_v42, 0.0  ;;  %v13436_v27 = vadd.f32 %v18739_v21, %v21777_v9  ;;  %v13361_v0 = vpop.f32.mrb[235].mxu1  ;;  %v13640_v8 = vld [vmem:[#allocation3 + $0x46] sm:$0xff]  ;;  %v13641_v39 = vld [vmem:[#allocation3 + $0x4e] sm:$0xff]  ;;  %v21811_v2 = vpack.c.bf16 %v13524_v24, %v13546_v62 }
0x1282   : > { %13568 = vst [vmem:[#allocation3 + $0x70] sm:$0xff] %v13522_v16  ;;  %v13456_v38 = vmax.f32 %v13433_v35, 0.0  ;;  %v13434_v20 = vadd.f32 %v21777_v9, %v13361_v0  ;;  %v13659_v60 = vpack.c.bf16 %v13641_v39, %v13640_v8  ;;  %v13642_v30 = vld [vmem:[#allocation3 + $0x56] sm:$0xff]  ;;  %v13643_v53 = vld [vmem:[#allocation3 + $0x5e] sm:$0xff]  ;;  %18791 = vmatpush3.bf16.msra.mxu0 %v20040_v47  ;;  %v21814_v14 = vpack.c.bf16 %v13522_v16, %v13521_v52  ;;  %v13483_v39 = vld [vmem:[#allocation3 + $0xa8] sm:$0xff] }
0x1283   : > { %v13504_v43 = vadd.f32 %v13481_v59, %v13458_v48  ;;  %v13459_v22 = vmax.f32 %v13436_v27, 0.0  ;;  %18792 = vmatprep.subr.bf16.mxu0 %v20041_v55  ;;  %v13660_v4 = vpack.c.bf16 %v13643_v53, %v13642_v30  ;;  %v13485_v21 = vld [vmem:[#allocation3 + $0xb8] sm:$0xff]  ;;  %v20045_v30 = vld [vmem:[#allocation5 + $0x5c0] sm:$0xff]  }
0x1284   : > { %v13502_v1 = vadd.f32 %v13479_v19, %v13456_v38  ;;  %v13457_v15 = vmax.f32 %v13434_v20, 0.0  ;;  %18768 = vmatprep.mubr.bf16.mxu0 %v13659_v60  ;;  %v13484_v60 = vld [vmem:[#allocation3 + $0xb0] sm:$0xff] }
0x1285   : > { %v13527_v17 = vmax.f32 %v13504_v43, 0.0  ;;  %v13505_v23 = vadd.f32 %v13482_v7, %v13459_v22 }
0x1286   : > { %v13525_v11 = vmax.f32 %v13502_v1, 0.0  ;;  %v13503_v3 = vadd.f32 %v13480_v49, %v13457_v15  ;;  %v18742_v40 = vpop.f32.mrb[244].mxu1  ;;  %18793 = vmatpush3.bf16.msra.mxu0 %v20041_v55  ;;  %v13581_v49 = vld [vmem:[#allocation3 + $0xc] sm:$0xff] }
0x1287   : > { %13573 = vst [vmem:[#allocation3 + $0x98] sm:$0xff] %v13527_v17  ;;  %v13528_v47 = vmax.f32 %v13505_v23, 0.0  ;;  %v13410_v37 = vadd.f32 %v18742_v40, %v21768_v12  ;;  %v13374_v6 = vpop.f32.mrb[245].mxu1  ;;  %18769 = vmatmul.mubr.bf16.gmra.mrb[20].mxu0 %v13660_v4  ;;  %18794 = vmatprep.subr.bf16.mxu0 %v20042_v41  ;;  %v13644_v5 = vld [vmem:[#allocation3 + $0x66] sm:$0xff] }
0x1288   : > { %13571 = vst [vmem:[#allocation3 + $0x88] sm:$0xff] %v13525_v11  ;;  %v13526_v32 = vmax.f32 %v13503_v3, 0.0  ;;  %v13408_v25 = vadd.f32 %v13374_v6, %v21770_v63  ;;  %v18743_v56 = vpop.f32.mrb[246].mxu1  ;;  %v13647_v16 = vld [vmem:[#allocation3 + $0x7e] sm:$0xff] }
0x1289   : > { %13574 = vst [vmem:[#allocation3 + $0xa0] sm:$0xff] %v13528_v47  ;;  %v13439_v54 = vadd.f32 %v21777_v9, %v13410_v37  ;;  %v13377_v52 = vpop.f32.mrb[247].mxu1  ;;  %v13645_v13 = vld [vmem:[#allocation3 + $0x6e] sm:$0xff]  ;;  %v21819_v62 = vpack.c.bf16 %v13528_v47, %v13527_v17  ;;  %v13646_v55 = vld [vmem:[#allocation3 + $0x76] sm:$0xff]  ;;  %v13580_v37 = vld [vmem:[#allocation3 + $0x4] sm:$0xff] }
0x128a   : > { %v13549_v24 = vmul.f32 0.0, %v13526_v32  ;;  %v13437_v12 = vadd.f32 %v21777_v9, %v13408_v25  ;;  %v13409_v42 = vadd.f32 %v13377_v52, %v21772_v51  ;;  %v13661_v31 = vpack.c.bf16 %v13645_v13, %v13644_v5  ;;  %18795 = vmatpush3.bf16.msra.mxu0 %v20042_v41  ;;  %v20044_v63 = vld [vmem:[#allocation5 + $0x578] sm:$0xff]   ;;  %v13585_v25 = vld [vmem:[#allocation3 + $0x2c] sm:$0xff] }
0x128b   : > { %v13462_v35 = vmax.f32 %v13439_v54, 0.0  ;;  %18796 = vmatprep.subr.bf16.mxu0 %v20043_v26  ;;  %v13662_v59 = vpack.c.bf16 %v13647_v16, %v13646_v55  ;;  %v13603_v6 = vpack.c.bf16 %v13581_v49, %v13580_v37  ;;  %v13583_v32 = vld [vmem:[#allocation3 + $0x1c] sm:$0xff]  ;;  %v13584_v54 = vld [vmem:[#allocation3 + $0x24] sm:$0xff]  ;;  %v20047_v13 = vld [vmem:[#allocation5 + $0x5d0] sm:$0xff]  }
0x128c   : > { %13572 = vst [vmem:[#allocation3 + $0x90] sm:$0xff] %v13549_v24  ;;  %v13460_v48 = vmax.f32 %v13437_v12, 0.0  ;;  %v13438_v27 = vadd.f32 %v21777_v9, %v13409_v42  ;;  %18772 = vmatprep.mubr.bf16.mxu0 %v13661_v31  ;;  %v21824_v0 = vpack.c.bf16 %v13549_v24, %v13525_v11  ;;  %v20046_v52 = vld [vmem:[#allocation5 + $0x5c8] sm:$0xff]   ;;  %v13605_v5 = vpack.c.bf16 %v13585_v25, %v13584_v54  ;;  %v13586_v24 = vld [vmem:[#allocation3 + $0x34] sm:$0xff]  ;;  %v13587_v31 = vld [vmem:[#allocation3 + $0x3c] sm:$0xff] }
0x128d   : > { %v13508_v8 = vadd.f32 %v13485_v21, %v13462_v35  ;;  %v13588_v12 = vld [vmem:[#allocation3 + $0x44] sm:$0xff]  ;;  %v13589_v42 = vld [vmem:[#allocation3 + $0x4c] sm:$0xff]  ;;  %v13606_v55 = vpack.c.bf16 %v13587_v31, %v13586_v24  ;;  %v20048_v16 = vld [vmem:[#allocation5 + $0x5d8] sm:$0xff]  }
0x128e   : > { %v13506_v38 = vadd.f32 %v13483_v39, %v13460_v48  ;;  %v13461_v51 = vmax.f32 %v13438_v27, 0.0  ;;  %18797 = vmatpush3.bf16.msra.mxu0 %v20043_v26  ;;  %v13582_v26 = vld [vmem:[#allocation3 + $0x14] sm:$0xff]  ;;  %v13607_v35 = vpack.c.bf16 %v13589_v42, %v13588_v12  ;;  %v13591_v48 = vld [vmem:[#allocation3 + $0x5c] sm:$0xff]  ;;  %v13593_v27 = vld [vmem:[#allocation3 + $0x6c] sm:$0xff] }
0x128f   : > { %v21826_v20 = vmax.f32 %v13508_v8, 0.0  ;;  %18773 = vmatmul.mubr.bf16.gmra.mrb[24].mxu0 %v13662_v59  ;;  %18798 = vmatprep.subr.bf16.mxu0 %v20044_v63  ;;  %v13648_v22 = vld [vmem:[#allocation3 + $0x86] sm:$0xff]  ;;  %v13604_v56 = vpack.c.bf16 %v13583_v32, %v13582_v26  ;;  %v13590_v21 = vld [vmem:[#allocation3 + $0x54] sm:$0xff] }
0x1290   : > { %v13529_v53 = vmax.f32 %v13506_v38, 0.0  ;;  %v13507_v43 = vadd.f32 %v13484_v60, %v13461_v51  ;;  %v13651_v7 = vld [vmem:[#allocation3 + $0x9e] sm:$0xff]  ;;  %v13608_v8 = vpack.c.bf16 %v13591_v48, %v13590_v21  ;;  %v20050_v59 = vld [vmem:[#allocation5 + $0x5e8] sm:$0xff]   ;;  %v20051_v51 = vld [vmem:[#allocation5 + $0x5f0] sm:$0xff]  }
0x1291   : > { %13577 = vst [vmem:[#allocation3 + $0xb8] sm:$0xff] %v21826_v20  ;;  %v13592_v39 = vld [vmem:[#allocation3 + $0x64] sm:$0xff]  ;;  %v13594_v60 = vld [vmem:[#allocation3 + $0x74] sm:$0xff] }
0x1292   : > { %v13552_v9 = vmul.f32 0.0, %v13529_v53  ;;  %v13530_v19 = vmax.f32 %v13507_v43, 0.0  ;;  %18799 = vmatpush3.bf16.msra.mxu0 %v20044_v63  ;;  %v20049_v63 = vld [vmem:[#allocation5 + $0x5e0] sm:$0xff]   ;;  %v13609_v38 = vpack.c.bf16 %v13593_v27, %v13592_v39 }
0x1293   : > { %v13649_v41 = vld [vmem:[#allocation3 + $0x8e] sm:$0xff]  ;;  %v13650_v1 = vld [vmem:[#allocation3 + $0x96] sm:$0xff]  ;;  %18824 = vmatprep.subr.bf16.mxu0 %v20045_v30  ;;  %v21831_v49 = vld [vmem:[#allocation2] sm:$0xff] }
0x1294   : > { %13575 = vst [vmem:[#allocation3 + $0xa8] sm:$0xff] %v13552_v9  ;;  %13576 = vst [vmem:[#allocation3 + $0xb0] sm:$0xff] %v13530_v19  ;;  %v13663_v15 = vpack.c.bf16 %v13649_v41, %v13648_v22  ;;  %v13664_v17 = vpack.c.bf16 %v13651_v7, %v13650_v1  ;;  %v21829_v23 = vpack.c.bf16 %v13530_v19, %v13552_v9  ;;  %v13597_v53 = vld [vmem:[#allocation3 + $0x8c] sm:$0xff]  ;;  %v13596_v9 = vld [vmem:[#allocation3 + $0x84] sm:$0xff] }
0x1295   : > { %v20052_v19 = vld [vmem:[#allocation5 + $0x5f8] sm:$0xff]   ;;  %v13611_v22 = vpack.c.bf16 %v13597_v53, %v13596_v9 }
0x1296   : > { %18776 = vmatprep.mubr.bf16.mxu0 %v13663_v15  ;;  %v13598_v41 = vld [vmem:[#allocation3 + $0x94] sm:$0xff]  ;;  %v13599_v15 = vld [vmem:[#allocation3 + $0x9c] sm:$0xff] }
0x1297   : > { %18777 = vmatmul.mubr.bf16.gmra.mrb[0].mxu0 %v13664_v17  ;;  %v13612_v17 = vpack.c.bf16 %v13599_v15, %v13598_v41 }
0x129b   : > { %v13652_v4 = vld [vmem:[#allocation3 + $0xa6] sm:$0xff]  ;;  %v13653_v11 = vld [vmem:[#allocation3 + $0xae] sm:$0xff]  ;;  %v13654_v3 = vld [vmem:[#allocation3 + $0xb6] sm:$0xff] }
0x129c   : > { %v13665_v40 = vpack.c.bf16 %v13653_v11, %v13652_v4  ;;  %v13666_v47 = vpack.c.bf16 %v13654_v3, %v13654_v3  ;;  %v13600_v1 = vld [vmem:[#allocation3 + $0xa4] sm:$0xff]  ;;  %v13601_v7 = vld [vmem:[#allocation3 + $0xac] sm:$0xff]  ;;  %v13602_v11 = vld [vmem:[#allocation3 + $0xb4] sm:$0xff] }
0x129d   : > { %v13613_v4 = vpack.c.bf16 %v13601_v7, %v13600_v1  ;;  %v13614_v3 = vpack.c.bf16 %v13602_v11, %v13602_v11 }
0x129e   : > { %18780 = vmatprep.mubr.bf16.mxu0 %v13665_v40  ;;  %v20053_v40 = vld [vmem:[#allocation7 + $0x580] sm:$0xff]  }
0x129f   : > { %18781 = vmatmul.mubr.bf16.gmra.mrb[4].mxu0 %v13666_v47  ;;  %v20054_v47 = vld [vmem:[#allocation7 + $0x588] sm:$0xff]   ;;  %18864 = vmatprep.subr.bf16.mxu1 %v20053_v40 }
0x12a0   : > { %18800 = vmatprep.mubr.bf16.mxu0 %v13603_v6  ;;  %18865 = vmatpush3.bf16.msra.mxu1 %v20053_v40 }
0x12a1   : > { %18866 = vmatprep.subr.bf16.mxu1 %v20054_v47 }
0x12a4   : > { %18867 = vmatpush3.bf16.msra.mxu1 %v20054_v47 }
0x12a7   : > { %18801 = vmatmul.mubr.bf16.vlgmr.msra.gmra.mrb[248].mxu0 %v13604_v56 }
0x12a8   : > { %18804 = vmatprep.mubr.bf16.mxu0 %v13605_v5  ;;  %18825 = vmatpush3.bf16.msra.mxu0 %v20045_v30  ;;  %v13595_v30 = vld [vmem:[#allocation3 + $0x7c] sm:$0xff] }
0x12a9   : > { %18826 = vmatprep.subr.bf16.mxu0 %v20046_v52  ;;  %v13610_v43 = vpack.c.bf16 %v13595_v30, %v13594_v60 }
0x12ac   : > { %18827 = vmatpush3.bf16.msra.mxu0 %v20046_v52  ;;  %v21859_v52 = vld [vmem:[%s22022_s2 + $0x7] ss:$0 sm:$0xff] }
0x12ad   : > { %18828 = vmatprep.subr.bf16.mxu0 %v20047_v13 }
0x12af   : > { %18805 = vmatmul.mubr.bf16.gmra.mrb[252].mxu0 %v13606_v55 }
0x12b0   : > { %18808 = vmatprep.mubr.bf16.mxu0 %v13607_v35  ;;  %18829 = vmatpush3.bf16.msra.mxu0 %v20047_v13 }
0x12b1   : > { %18830 = vmatprep.subr.bf16.mxu0 %v20048_v16 }
0x12b4   : > { %18831 = vmatpush3.bf16.msra.mxu0 %v20048_v16 }
0x12b5   : > { %18832 = vmatprep.subr.bf16.mxu0 %v20049_v63 }
0x12b7   : > { %18809 = vmatmul.mubr.bf16.gmra.mrb[20].mxu0 %v13608_v8 }
0x12b8   : > { %18812 = vmatprep.mubr.bf16.mxu0 %v13609_v38  ;;  %18833 = vmatpush3.bf16.msra.mxu0 %v20049_v63 }
0x12b9   : > { %18834 = vmatprep.subr.bf16.mxu0 %v20050_v59 }
0x12bc   : > { %18835 = vmatpush3.bf16.msra.mxu0 %v20050_v59 }
0x12bd   : > { %18836 = vmatprep.subr.bf16.mxu0 %v20051_v51 }
0x12bf   : > { %18813 = vmatmul.mubr.bf16.gmra.mrb[24].mxu0 %v13610_v43 }
0x12c0   : > { %18816 = vmatprep.mubr.bf16.mxu0 %v13611_v22  ;;  %18837 = vmatpush3.bf16.msra.mxu0 %v20051_v51 }
0x12c1   : > { %18838 = vmatprep.subr.bf16.mxu0 %v20052_v19 }
0x12c4   : > { %18839 = vmatpush3.bf16.msra.mxu0 %v20052_v19 }
0x12c5   : > { %18984 = vmatprep.subr.bf16.mxu0 %v21831_v49 }
0x12c7   : > { %18817 = vmatmul.mubr.bf16.gmra.mrb[0].mxu0 %v13612_v17 }
0x12c8   : > { %18820 = vmatprep.mubr.bf16.mxu0 %v13613_v4 }
0x12cf   : > { %18821 = vmatmul.mubr.bf16.gmra.mrb[8].mxu0 %v13614_v3 }
0x12d0   : > { %18840 = vmatprep.mubr.bf16.mxu0 %v21789_v45  ;;  %v14070_v45 = vpack.c.bf16 %v21826_v20, %v21826_v20 }
0x12d7   : > { %18841 = vmatmul.mubr.bf16.vlgmr.msra.gmra.mrb[248].mxu0 %v21786_v29  ;;  %v20055_v29 = vld [vmem:[#allocation7 + $0x590] sm:$0xff]  }
0x12d8   : > { %18844 = vmatprep.mubr.bf16.mxu0 %v21797_v36  ;;  %18868 = vmatprep.subr.bf16.mxu1 %v20055_v29  ;;  %v20057_v36 = vld [vmem:[#allocation7 + $0x5a0] sm:$0xff]  }
0x12d9   : > { %18869 = vmatpush3.bf16.msra.mxu1 %v20055_v29 }
0x12df   : > { %18845 = vmatmul.mubr.bf16.gmra.mrb[252].mxu0 %v21794_v46  ;;  %v20056_v46 = vld [vmem:[#allocation7 + $0x598] sm:$0xff]  }
0x12e0   : > { %18848 = vmatprep.mubr.bf16.mxu0 %v21804_v28  ;;  %18870 = vmatprep.subr.bf16.mxu1 %v20056_v46  ;;  %v20058_v28 = vld [vmem:[#allocation7 + $0x5a8] sm:$0xff]  }
0x12e1   : > { %18871 = vmatpush3.bf16.msra.mxu1 %v20056_v46 }
0x12e2   : > { %18872 = vmatprep.subr.bf16.mxu1 %v20057_v36 }
0x12e5   : > { %18873 = vmatpush3.bf16.msra.mxu1 %v20057_v36  ;;  %v20062_v36 = vld [vmem:[#allocation7 + $0x548] sm:$0xff]  }
0x12e6   : > { %18874 = vmatprep.subr.bf16.mxu1 %v20058_v28 }
0x12e7   : > { %18849 = vmatmul.mubr.bf16.gmra.mrb[20].mxu0 %v21806_v10  ;;  %v20059_v10 = vld [vmem:[#allocation7 + $0x5b0] sm:$0xff]  }
0x12e8   : > { %18852 = vmatprep.mubr.bf16.mxu0 %v21814_v14  ;;  %v21847_v14 = vld [vmem:[#allocation7 + $0x540] sm:$0xff]  }
0x12e9   : > { %18875 = vmatpush3.bf16.msra.mxu1 %v20058_v28 }
0x12ea   : > { %18876 = vmatprep.subr.bf16.mxu1 %v20059_v10 }
0x12ed   : > { %18877 = vmatpush3.bf16.msra.mxu1 %v20059_v10 }
0x12ef   : > { %18853 = vmatmul.mubr.bf16.gmra.mrb[24].mxu0 %v21811_v2  ;;  %v20060_v2 = vld [vmem:[#allocation7 + $0x5b8] sm:$0xff]  }
0x12f0   : > { %18856 = vmatprep.mubr.bf16.mxu0 %v21824_v0  ;;  %18878 = vmatprep.subr.bf16.mxu1 %v20060_v2 }
0x12f1   : > { %18879 = vmatpush3.bf16.msra.mxu1 %v20060_v2 }
0x12f2   : > { %18904 = vmatprep.subr.bf16.mxu1 %v21847_v14 }
0x12f7   : > { %18857 = vmatmul.mubr.bf16.gmra.mrb[0].mxu0 %v21819_v62 }
0x12f8   : > { %18860 = vmatprep.mubr.bf16.mxu0 %v21829_v23 }
0x12ff   : > { %18861 = vmatmul.mubr.bf16.gmra.mrb[12].mxu0 %v14070_v45 }
0x1300   : > { %19000 = vmatprep.mubr.msk.bf16.mxu0 %vm20169_vm1, %v21831_v49 }
0x1372   : > { %v18782_v62 = vpop.f32.mrb[4].mxu0 }
0x1373   : > { %v13846_v0 = vpop.f32.mrb[5].mxu0 }
0x1374   : > { %v18783_v20 = vpop.f32.mrb[6].mxu0 }
0x1375   : > { %v13849_v23 = vpop.f32.mrb[7].mxu0 }
0x13a2   : > { %v18822_v37 = vpop.f32.mrb[8].mxu0 }
0x13a3   : > { %v21850_v6 = vadd.f32 %v18822_v37, %v18782_v62  ;;  %v14022_v26 = vpop.f32.mrb[9].mxu0 }
0x13a4   : > { %v21852_v32 = vadd.f32 %v14022_v26, %v13846_v0  ;;  %v18823_v25 = vpop.f32.mrb[10].mxu0 }
0x13a5   : > { %v14025_v56 = vpop.f32.mrb[11].mxu0  ;;  %v20063_v25 = vld [vmem:[#allocation7 + $0x550] sm:$0xff]  }
0x13a6   : > { %v21854_v54 = vadd.f32 %v14025_v56, %v13849_v23 }
0x13aa   : > { %v18842_v5 = vpop.f32.mrb[248].mxu0 }
0x13ab   : > { %v14295_v13 = vadd.f32 %v18842_v5, %v21859_v52  ;;  %v14170_v24 = vpop.f32.mrb[249].mxu0 }
0x13ac   : > { %v14293_v12 = vadd.f32 %v21859_v52, %v14170_v24  ;;  %v18843_v42 = vpop.f32.mrb[250].mxu0 }
0x13ad   : > { %v14318_v31 = vmax.f32 %v14295_v13, 0.0  ;;  %v14296_v55 = vadd.f32 %v18843_v42, %v21859_v52  ;;  %v14173_v16 = vpop.f32.mrb[251].mxu0  ;;  %v20064_v42 = vld [vmem:[#allocation7 + $0x558] sm:$0xff]  }
0x13ae   : > { %v14316_v35 = vmax.f32 %v14293_v12, 0.0  ;;  %v14294_v63 = vadd.f32 %v21859_v52, %v14173_v16 }
0x13af   : > { %v14341_v21 = vmul.f32 0.0, %v14318_v31  ;;  %v14319_v48 = vmax.f32 %v14296_v55, 0.0 }
0x13b0   : > { %14362 = vst [vmem:[#allocation4 + $0x8] sm:$0xff] %v14316_v35  ;;  %v14317_v27 = vmax.f32 %v14294_v63, 0.0 }
0x13b1   : > { %14364 = vst [vmem:[#allocation4 + $0x18] sm:$0xff] %v14341_v21  ;;  %14365 = vst [vmem:[#allocation4 + $0x20] sm:$0xff] %v14319_v48  ;;  %v21865_v8 = vpack.c.bf16 %v14319_v48, %v14341_v21 }
0x13b2   : > { %14363 = vst [vmem:[#allocation4 + $0x10] sm:$0xff] %v14317_v27  ;;  %v18846_v39 = vpop.f32.mrb[252].mxu0  ;;  %v21867_v59 = vpack.c.bf16 %v14317_v27, %v14316_v35 }
0x13b3   : > { %v14299_v38 = vadd.f32 %v18846_v39, %v21859_v52  ;;  %v14186_v51 = vpop.f32.mrb[253].mxu0 }
0x13b4   : > { %v14297_v60 = vadd.f32 %v21859_v52, %v14186_v51  ;;  %v18847_v30 = vpop.f32.mrb[254].mxu0 }
0x13b5   : > { %v14322_v53 = vmax.f32 %v14299_v38, 0.0  ;;  %v14300_v43 = vadd.f32 %v18847_v30, %v21859_v52  ;;  %v14189_v9 = vpop.f32.mrb[255].mxu0 }
0x13b6   : > { %v14320_v19 = vmax.f32 %v14297_v60, 0.0  ;;  %v14298_v22 = vadd.f32 %v21859_v52, %v14189_v9 }
0x13b7   : > { %14368 = vst [vmem:[#allocation4 + $0x38] sm:$0xff] %v14322_v53  ;;  %v14323_v41 = vmax.f32 %v14300_v43, 0.0  ;;  %v14439_v15 = vld [vmem:[#allocation4 + $0x6] sm:$0xff] }
0x13b8   : > { %14366 = vst [vmem:[#allocation4 + $0x28] sm:$0xff] %v14320_v19  ;;  %v14321_v1 = vmax.f32 %v14298_v22, 0.0  ;;  %v14442_v7 = vld [vmem:[#allocation4 + $0x1e] sm:$0xff] }
0x13b9   : > { %14369 = vst [vmem:[#allocation4 + $0x40] sm:$0xff] %v14323_v41  ;;  %v14440_v17 = vld [vmem:[#allocation4 + $0xe] sm:$0xff]  ;;  %v14441_v4 = vld [vmem:[#allocation4 + $0x16] sm:$0xff]  ;;  %v21873_v11 = vpack.c.bf16 %v14323_v41, %v14322_v53  ;;  %v20065_v22 = vld [vmem:[#allocation7 + $0x560] sm:$0xff]  }
0x13ba   : > { %v14344_v3 = vmul.f32 0.0, %v14321_v1  ;;  %v18850_v40 = vpop.f32.mrb[20].mxu0  ;;  %v14462_v47 = vpack.c.bf16 %v14440_v17, %v14439_v15  ;;  %v14463_v29 = vpack.c.bf16 %v14442_v7, %v14441_v4 }
0x13bb   : > { %v14303_v45 = vadd.f32 %v18850_v40, %v21859_v52  ;;  %v14202_v46 = vpop.f32.mrb[21].mxu0 }
0x13bc   : > { %14367 = vst [vmem:[#allocation4 + $0x30] sm:$0xff] %v14344_v3  ;;  %v14301_v28 = vadd.f32 %v21859_v52, %v14202_v46  ;;  %v18851_v10 = vpop.f32.mrb[22].mxu0  ;;  %18880 = vmatprep.mubr.bf16.mxu1 %v14462_v47  ;;  %v21877_v2 = vpack.c.bf16 %v14344_v3, %v14320_v19  ;;  %v20066_v46 = vld [vmem:[#allocation7 + $0x568] sm:$0xff]  }
0x13bd   : > { %v14326_v62 = vmax.f32 %v14303_v45, 0.0  ;;  %v14304_v0 = vadd.f32 %v18851_v10, %v21859_v52  ;;  %v14205_v20 = vpop.f32.mrb[23].mxu0  ;;  %18881 = vmatmul.mubr.bf16.vlgmr.msra.gmra.mrb[248].mxu1 %v14463_v29 }
0x13be   : > { %v14324_v23 = vmax.f32 %v14301_v28, 0.0  ;;  %v14302_v37 = vadd.f32 %v21859_v52, %v14205_v20  ;;  %18905 = vmatpush3.bf16.msra.mxu1 %v21847_v14 }
0x13bf   : > { %14372 = vst [vmem:[#allocation4 + $0x58] sm:$0xff] %v14326_v62  ;;  %v14327_v26 = vmax.f32 %v14304_v0, 0.0  ;;  %18906 = vmatprep.subr.bf16.mxu1 %v20062_v36  ;;  %v14443_v12 = vld [vmem:[#allocation4 + $0x26] sm:$0xff] }
0x13c0   : > { %v14347_v56 = vmul.f32 0.0, %v14324_v23  ;;  %v14325_v5 = vmax.f32 %v14302_v37, 0.0  ;;  %v14446_v63 = vld [vmem:[#allocation4 + $0x3e] sm:$0xff] }
0x13c1   : > { %v14350_v13 = vmul.f32 0.0, %v14327_v26 }
0x13c2   : > { %14370 = vst [vmem:[#allocation4 + $0x48] sm:$0xff] %v14347_v56  ;;  %14371 = vst [vmem:[#allocation4 + $0x50] sm:$0xff] %v14325_v5  ;;  %v18854_v24 = vpop.f32.mrb[24].mxu0  ;;  %18907 = vmatpush3.bf16.msra.mxu1 %v20062_v36  ;;  %v21882_v31 = vpack.c.bf16 %v14325_v5, %v14347_v56 }
0x13c3   : > { %14373 = vst [vmem:[#allocation4 + $0x60] sm:$0xff] %v14350_v13  ;;  %v14307_v55 = vadd.f32 %v18854_v24, %v21859_v52  ;;  %v14218_v16 = vpop.f32.mrb[25].mxu0  ;;  %v14444_v14 = vld [vmem:[#allocation4 + $0x2e] sm:$0xff]  ;;  %v14445_v35 = vld [vmem:[#allocation4 + $0x36] sm:$0xff]  ;;  %18908 = vmatprep.subr.bf16.mxu1 %v20063_v25  ;;  %v21885_v21 = vpack.c.bf16 %v14350_v13, %v14326_v62 }
0x13c4   : > { %v14305_v48 = vadd.f32 %v21859_v52, %v14218_v16  ;;  %v18855_v27 = vpop.f32.mrb[26].mxu0  ;;  %v14464_v39 = vpack.c.bf16 %v14444_v14, %v14443_v12  ;;  %v14465_v38 = vpack.c.bf16 %v14446_v63, %v14445_v35 }
0x13c5   : > { %v14330_v51 = vmax.f32 %v14307_v55, 0.0  ;;  %v14308_v60 = vadd.f32 %v18855_v27, %v21859_v52  ;;  %v14221_v30 = vpop.f32.mrb[27].mxu0 }
0x13c6   : > { %v14328_v53 = vmax.f32 %v14305_v48, 0.0  ;;  %v14306_v43 = vadd.f32 %v21859_v52, %v14221_v30  ;;  %18884 = vmatprep.mubr.bf16.mxu1 %v14464_v39  ;;  %18909 = vmatpush3.bf16.msra.mxu1 %v20063_v25  ;;  %v20067_v25 = vld [vmem:[#allocation7 + $0x570] sm:$0xff]   ;;  %v20068_v48 = vld [vmem:[#allocation7 + $0x578] sm:$0xff]  }
0x13c7   : > { %v14353_v9 = vmul.f32 0.0, %v14330_v51  ;;  %v14331_v19 = vmax.f32 %v14308_v60, 0.0  ;;  %18885 = vmatmul.mubr.bf16.gmra.mrb[252].mxu1 %v14465_v38  ;;  %18910 = vmatprep.subr.bf16.mxu1 %v20064_v42 }
0x13c8   : > { %14374 = vst [vmem:[#allocation4 + $0x68] sm:$0xff] %v14328_v53  ;;  %v14329_v41 = vmax.f32 %v14306_v43, 0.0 }
0x13c9   : > { %14376 = vst [vmem:[#allocation4 + $0x78] sm:$0xff] %v14353_v9  ;;  %14377 = vst [vmem:[#allocation4 + $0x80] sm:$0xff] %v14331_v19  ;;  %v14447_v1 = vld [vmem:[#allocation4 + $0x46] sm:$0xff]  ;;  %v14448_v7 = vld [vmem:[#allocation4 + $0x4e] sm:$0xff]  ;;  %v21890_v15 = vpack.c.bf16 %v14331_v19, %v14353_v9 }
0x13ca   : > { %14375 = vst [vmem:[#allocation4 + $0x70] sm:$0xff] %v14329_v41  ;;  %v18858_v17 = vpop.f32.mrb[0].mxu0  ;;  %v14466_v4 = vpack.c.bf16 %v14448_v7, %v14447_v1  ;;  %v14449_v3 = vld [vmem:[#allocation4 + $0x56] sm:$0xff]  ;;  %v14450_v40 = vld [vmem:[#allocation4 + $0x5e] sm:$0xff]  ;;  %18911 = vmatpush3.bf16.msra.mxu1 %v20064_v42  ;;  %v21892_v47 = vpack.c.bf16 %v14329_v41, %v14328_v53 }
0x13cb   : > { %v14311_v29 = vadd.f32 %v18858_v17, %v21859_v52  ;;  %v14234_v45 = vpop.f32.mrb[1].mxu0  ;;  %18912 = vmatprep.subr.bf16.mxu1 %v20065_v22  ;;  %v14467_v20 = vpack.c.bf16 %v14450_v40, %v14449_v3  ;;  %v20069_v9 = vld [vmem:[#allocation7 + $0x5c0] sm:$0xff]  }
0x13cc   : > { %v14309_v36 = vadd.f32 %v21859_v52, %v14234_v45  ;;  %v18859_v28 = vpop.f32.mrb[2].mxu0  ;;  %18888 = vmatprep.mubr.bf16.mxu1 %v14466_v4 }
0x13cd   : > { %v14334_v10 = vmax.f32 %v14311_v29, 0.0  ;;  %v14312_v62 = vadd.f32 %v18859_v28, %v21859_v52  ;;  %v14237_v0 = vpop.f32.mrb[3].mxu0  ;;  %v14388_v29 = vld [vmem:[#allocation4 + $0xc] sm:$0xff] }
0x13ce   : > { %v14332_v23 = vmax.f32 %v14309_v36, 0.0  ;;  %v14310_v37 = vadd.f32 %v21859_v52, %v14237_v0  ;;  %18913 = vmatpush3.bf16.msra.mxu1 %v20065_v22  ;;  %v14389_v0 = vld [vmem:[#allocation4 + $0x14] sm:$0xff] }
0x13cf   : > { %14380 = vst [vmem:[#allocation4 + $0x98] sm:$0xff] %v14334_v10  ;;  %v14335_v26 = vmax.f32 %v14312_v62, 0.0  ;;  %18889 = vmatmul.mubr.bf16.gmra.mrb[20].mxu1 %v14467_v20  ;;  %18914 = vmatprep.subr.bf16.mxu1 %v20066_v46  ;;  %v14451_v5 = vld [vmem:[#allocation4 + $0x66] sm:$0xff]  ;;  %v14390_v20 = vld [vmem:[#allocation4 + $0x1c] sm:$0xff] }
0x13d0   : > { %14378 = vst [vmem:[#allocation4 + $0x88] sm:$0xff] %v14332_v23  ;;  %v14333_v56 = vmax.f32 %v14310_v37, 0.0  ;;  %v14454_v14 = vld [vmem:[#allocation4 + $0x7e] sm:$0xff]  ;;  %v14411_v37 = vpack.c.bf16 %v14390_v20, %v14389_v0 }
0x13d1   : > { %14381 = vst [vmem:[#allocation4 + $0xa0] sm:$0xff] %v14335_v26  ;;  %v14452_v13 = vld [vmem:[#allocation4 + $0x6e] sm:$0xff]  ;;  %v21898_v24 = vpack.c.bf16 %v14335_v26, %v14334_v10  ;;  %v14453_v16 = vld [vmem:[#allocation4 + $0x76] sm:$0xff]  ;;  %v14387_v10 = vld [vmem:[#allocation4 + $0x4] sm:$0xff] }
0x13d2   : > { %v14356_v12 = vmul.f32 0.0, %v14333_v56  ;;  %v18862_v42 = vpop.f32.mrb[12].mxu0  ;;  %v14468_v55 = vpack.c.bf16 %v14452_v13, %v14451_v5  ;;  %18915 = vmatpush3.bf16.msra.mxu1 %v20066_v46  ;;  %v14469_v30 = vpack.c.bf16 %v14454_v14, %v14453_v16  ;;  %v14410_v62 = vpack.c.bf16 %v14388_v29, %v14387_v10  ;;  %v14391_v26 = vld [vmem:[#allocation4 + $0x24] sm:$0xff]  ;;  %v20071_v5 = vld [vmem:[#allocation7 + $0x5d0] sm:$0xff]   ;;  %v20072_v14 = vld [vmem:[#allocation7 + $0x5d8] sm:$0xff]  }
0x13d3   : > { %v14286_v35 = vadd.f32 %v18862_v42, %v21850_v6  ;;  %v14250_v63 = vpop.f32.mrb[13].mxu0  ;;  %18916 = vmatprep.subr.bf16.mxu1 %v20067_v25  ;;  %v14393_v13 = vld [vmem:[#allocation4 + $0x34] sm:$0xff]  ;;  %v14396_v42 = vld [vmem:[#allocation4 + $0x4c] sm:$0xff] }
0x13d4   : > { %14379 = vst [vmem:[#allocation4 + $0x90] sm:$0xff] %v14356_v12  ;;  %v14284_v27 = vadd.f32 %v14250_v63, %v21852_v32  ;;  %v18863_v39 = vpop.f32.mrb[14].mxu0  ;;  %18892 = vmatprep.mubr.bf16.mxu1 %v14468_v55  ;;  %v21902_v38 = vpack.c.bf16 %v14356_v12, %v14332_v23  ;;  %v14392_v23 = vld [vmem:[#allocation4 + $0x2c] sm:$0xff]  ;;  %v14395_v12 = vld [vmem:[#allocation4 + $0x44] sm:$0xff]  ;;  %v14394_v55 = vld [vmem:[#allocation4 + $0x3c] sm:$0xff] }
0x13d5   : > { %v14315_v51 = vadd.f32 %v21859_v52, %v14286_v35  ;;  %v14253_v60 = vpop.f32.mrb[15].mxu0  ;;  %v14412_v56 = vpack.c.bf16 %v14392_v23, %v14391_v26  ;;  %v14413_v16 = vpack.c.bf16 %v14394_v55, %v14393_v13  ;;  %v14414_v35 = vpack.c.bf16 %v14396_v42, %v14395_v12  ;;  %v20073_v63 = vld [vmem:[#allocation7 + $0x5e0] sm:$0xff]   ;;  %v14400_v39 = vld [vmem:[#allocation4 + $0x6c] sm:$0xff] }
0x13d6   : > { %v14313_v53 = vadd.f32 %v21859_v52, %v14284_v27  ;;  %v14285_v43 = vadd.f32 %v14253_v60, %v21854_v54  ;;  %18917 = vmatpush3.bf16.msra.mxu1 %v20067_v25  ;;  %v20070_v25 = vld [vmem:[#allocation7 + $0x5c8] sm:$0xff]   ;;  %v14398_v27 = vld [vmem:[#allocation4 + $0x5c] sm:$0xff]  ;;  %v21967_v26 = vld [vmem:[%s22024_s4 + $0x7] ss:$0 sm:$0xff] }
0x13d7   : > { %v21907_v6 = vmax.f32 %v14315_v51, 0.0  ;;  %18893 = vmatmul.mubr.bf16.gmra.mrb[24].mxu1 %v14469_v30  ;;  %18918 = vmatprep.subr.bf16.mxu1 %v20068_v48  ;;  %v14455_v1 = vld [vmem:[#allocation4 + $0x86] sm:$0xff] }
0x13d8   : > { %v14336_v19 = vmax.f32 %v14313_v53, 0.0  ;;  %v14314_v32 = vadd.f32 %v21859_v52, %v14285_v43  ;;  %v14458_v4 = vld [vmem:[#allocation4 + $0x9e] sm:$0xff]  ;;  %v20074_v30 = vld [vmem:[#allocation7 + $0x5e8] sm:$0xff]   ;;  %v20075_v43 = vld [vmem:[#allocation7 + $0x5f0] sm:$0xff]  }
0x13d9   : > { %14384 = vst [vmem:[#allocation4 + $0xb8] sm:$0xff] %v21907_v6  ;;  %v14399_v60 = vld [vmem:[#allocation4 + $0x64] sm:$0xff] }
0x13da   : > { %v14359_v22 = vmul.f32 0.0, %v14336_v19  ;;  %v14337_v41 = vmax.f32 %v14314_v32, 0.0  ;;  %18919 = vmatpush3.bf16.msra.mxu1 %v20068_v48  ;;  %v14397_v48 = vld [vmem:[#allocation4 + $0x54] sm:$0xff]  ;;  %v14416_v53 = vpack.c.bf16 %v14400_v39, %v14399_v60  ;;  %v14402_v19 = vld [vmem:[#allocation4 + $0x7c] sm:$0xff] }
0x13db   : > { %v14456_v7 = vld [vmem:[#allocation4 + $0x8e] sm:$0xff]  ;;  %v14457_v17 = vld [vmem:[#allocation4 + $0x96] sm:$0xff]  ;;  %18944 = vmatprep.subr.bf16.mxu1 %v20069_v9  ;;  %v14415_v51 = vpack.c.bf16 %v14398_v27, %v14397_v48 }
0x13dc   : > { %14382 = vst [vmem:[#allocation4 + $0xa8] sm:$0xff] %v14359_v22  ;;  %14383 = vst [vmem:[#allocation4 + $0xb0] sm:$0xff] %v14337_v41  ;;  %v14470_v54 = vpack.c.bf16 %v14456_v7, %v14455_v1  ;;  %v14471_v3 = vpack.c.bf16 %v14458_v4, %v14457_v17  ;;  %v21911_v40 = vpack.c.bf16 %v14337_v41, %v14359_v22  ;;  %v14404_v32 = vld [vmem:[#allocation4 + $0x8c] sm:$0xff]  ;;  %v14403_v41 = vld [vmem:[#allocation4 + $0x84] sm:$0xff] }
0x13dd   : > { %v20076_v1 = vld [vmem:[#allocation7 + $0x5f8] sm:$0xff]   ;;  %v14418_v7 = vpack.c.bf16 %v14404_v32, %v14403_v41  ;;  %v15146_v48 = vld [vmem:[#allocation3 + $0x8] sm:$0xff] }
0x13de   : > { %18896 = vmatprep.mubr.bf16.mxu1 %v14470_v54  ;;  %v14405_v17 = vld [vmem:[#allocation4 + $0x94] sm:$0xff] }
0x13df   : > { %18897 = vmatmul.mubr.bf16.gmra.mrb[0].mxu1 %v14471_v3  ;;  %v14406_v3 = vld [vmem:[#allocation4 + $0x9c] sm:$0xff] }
0x13e0   : > { %v14419_v29 = vpack.c.bf16 %v14406_v3, %v14405_v17 }
0x13e3   : > { %v14459_v52 = vld [vmem:[#allocation4 + $0xa6] sm:$0xff]  ;;  %v14460_v45 = vld [vmem:[#allocation4 + $0xae] sm:$0xff]  ;;  %v14461_v46 = vld [vmem:[#allocation4 + $0xb6] sm:$0xff] }
0x13e4   : > { %v14472_v36 = vpack.c.bf16 %v14460_v45, %v14459_v52  ;;  %v14473_v28 = vpack.c.bf16 %v14461_v46, %v14461_v46  ;;  %v14407_v4 = vld [vmem:[#allocation4 + $0xa4] sm:$0xff]  ;;  %v14408_v54 = vld [vmem:[#allocation4 + $0xac] sm:$0xff]  ;;  %v14409_v45 = vld [vmem:[#allocation4 + $0xb4] sm:$0xff] }
0x13e5   : > { %v14420_v52 = vpack.c.bf16 %v14408_v54, %v14407_v4  ;;  %v14421_v46 = vpack.c.bf16 %v14409_v45, %v14409_v45  ;;  %v15152_v45 = vld [vmem:[#allocation3 + $0x38] sm:$0xff] }
0x13e6   : > { %18900 = vmatprep.mubr.bf16.mxu1 %v14472_v36 }
0x13e7   : > { %18901 = vmatmul.mubr.bf16.gmra.mrb[4].mxu1 %v14473_v28 }
0x13e8   : > { %18920 = vmatprep.mubr.bf16.mxu1 %v14410_v62 }
0x13ef   : > { %18921 = vmatmul.mubr.bf16.vlgmr.msra.gmra.mrb[248].mxu1 %v14411_v37 }
0x13f0   : > { %18924 = vmatprep.mubr.bf16.mxu1 %v14412_v56  ;;  %18945 = vmatpush3.bf16.msra.mxu1 %v20069_v9  ;;  %v14401_v9 = vld [vmem:[#allocation4 + $0x74] sm:$0xff] }
0x13f1   : > { %18946 = vmatprep.subr.bf16.mxu1 %v20070_v25  ;;  %v14417_v22 = vpack.c.bf16 %v14402_v19, %v14401_v9 }
0x13f4   : > { %18947 = vmatpush3.bf16.msra.mxu1 %v20070_v25 }
0x13f5   : > { %18948 = vmatprep.subr.bf16.mxu1 %v20071_v5 }
0x13f7   : > { %18925 = vmatmul.mubr.bf16.gmra.mrb[252].mxu1 %v14413_v16  ;;  %v15148_v16 = vld [vmem:[#allocation3 + $0x18] sm:$0xff] }
0x13f8   : > { %18928 = vmatprep.mubr.bf16.mxu1 %v14414_v35  ;;  %18949 = vmatpush3.bf16.msra.mxu1 %v20071_v5 }
0x13f9   : > { %18950 = vmatprep.subr.bf16.mxu1 %v20072_v14 }
0x13fc   : > { %18951 = vmatpush3.bf16.msra.mxu1 %v20072_v14 }
0x13fd   : > { %18952 = vmatprep.subr.bf16.mxu1 %v20073_v63 }
0x13ff   : > { %18929 = vmatmul.mubr.bf16.gmra.mrb[20].mxu1 %v14415_v51  ;;  %v15149_v51 = vld [vmem:[#allocation3 + $0x20] sm:$0xff] }
0x1400   : > { %18932 = vmatprep.mubr.bf16.mxu1 %v14416_v53  ;;  %18953 = vmatpush3.bf16.msra.mxu1 %v20073_v63 }
0x1401   : > { %18954 = vmatprep.subr.bf16.mxu1 %v20074_v30 }
0x1404   : > { %18955 = vmatpush3.bf16.msra.mxu1 %v20074_v30 }
0x1405   : > { %18956 = vmatprep.subr.bf16.mxu1 %v20075_v43 }
0x1407   : > { %18933 = vmatmul.mubr.bf16.gmra.mrb[24].mxu1 %v14417_v22 }
0x1408   : > { %18936 = vmatprep.mubr.bf16.mxu1 %v14418_v7  ;;  %18957 = vmatpush3.bf16.msra.mxu1 %v20075_v43  ;;  %v15147_v43 = vld [vmem:[#allocation3 + $0x10] sm:$0xff] }
0x1409   : > { %18958 = vmatprep.subr.bf16.mxu1 %v20076_v1 }
0x140c   : > { %18959 = vmatpush3.bf16.msra.mxu1 %v20076_v1 }
0x140f   : > { %18937 = vmatmul.mubr.bf16.gmra.mrb[0].mxu1 %v14419_v29 }
0x1410   : > { %18940 = vmatprep.mubr.bf16.mxu1 %v14420_v52 }
0x1417   : > { %18941 = vmatmul.mubr.bf16.gmra.mrb[8].mxu1 %v14421_v46 }
0x1418   : > { %18960 = vmatprep.mubr.bf16.mxu1 %v21867_v59  ;;  %v20077_v59 = vld [vmem:[%s22027_s7] sm:$0xff]  }
0x1419   : > { %18985 = vmatpush3.bf16.msra.mxu0 %v20077_v59 }
0x141a   : > { %18986 = vmatprep.subr.bf16.mxu0 %v21831_v49 }
0x141f   : > { %18961 = vmatmul.mubr.bf16.vlgmr.msra.gmra.mrb[248].mxu1 %v21865_v8  ;;  %v14877_v8 = vpack.c.bf16 %v21907_v6, %v21907_v6 }
0x1420   : > { %18964 = vmatprep.mubr.bf16.mxu1 %v21877_v2  ;;  %v20079_v2 = vld [vmem:[%s22027_s7 + $0x10] sm:$0xff]  }
0x1427   : > { %18965 = vmatmul.mubr.bf16.gmra.mrb[252].mxu1 %v21873_v11  ;;  %v20078_v11 = vld [vmem:[%s22027_s7 + $0x8] sm:$0xff]  }
0x1428   : > { %18968 = vmatprep.mubr.bf16.mxu1 %v21882_v31  ;;  %18987 = vmatpush3.bf16.msra.mxu0 %v20078_v11  ;;  %v20080_v31 = vld [vmem:[%s22027_s7 + $0x18] sm:$0xff]   ;;  %v15150_v11 = vld [vmem:[#allocation3 + $0x28] sm:$0xff] }
0x1429   : > { %18988 = vmatprep.subr.bf16.mxu0 %v21831_v49 }
0x142c   : > { %18989 = vmatpush3.bf16.msra.mxu0 %v20079_v2 }
0x142d   : > { %18990 = vmatprep.subr.bf16.mxu0 %v21831_v49 }
0x142f   : > { %18969 = vmatmul.mubr.bf16.gmra.mrb[20].mxu1 %v21885_v21  ;;  %v20081_v21 = vld [vmem:[%s22027_s7 + $0x20] sm:$0xff]  }
0x1430   : > { %18972 = vmatprep.mubr.bf16.mxu1 %v21892_v47  ;;  %18991 = vmatpush3.bf16.msra.mxu0 %v20080_v31  ;;  %v20083_v47 = vld [vmem:[%s22027_s7 + $0x30] sm:$0xff]  }
0x1431   : > { %18992 = vmatprep.subr.bf16.mxu0 %v21831_v49 }
0x1434   : > { %18993 = vmatpush3.bf16.msra.mxu0 %v20081_v21  ;;  %v15153_v21 = vld [vmem:[#allocation3 + $0x40] sm:$0xff] }
0x1435   : > { %18994 = vmatprep.subr.bf16.mxu0 %v21831_v49 }
0x1437   : > { %18973 = vmatmul.mubr.bf16.gmra.mrb[24].mxu1 %v21890_v15  ;;  %v20082_v15 = vld [vmem:[%s22027_s7 + $0x28] sm:$0xff]  }
0x1438   : > { %18976 = vmatprep.mubr.bf16.mxu1 %v21902_v38  ;;  %18995 = vmatpush3.bf16.msra.mxu0 %v20082_v15 }
0x1439   : > { %18996 = vmatprep.subr.bf16.mxu0 %v21831_v49 }
0x143c   : > { %18997 = vmatpush3.bf16.msra.mxu0 %v20083_v47 }
0x143d   : > { %18998 = vmatprep.subr.bf16.mxu0 %v21831_v49 }
0x143f   : > { %18977 = vmatmul.mubr.bf16.gmra.mrb[0].mxu1 %v21898_v24  ;;  %v20084_v24 = vld [vmem:[%s22027_s7 + $0x38] sm:$0xff]  }
0x1440   : > { %18980 = vmatprep.mubr.bf16.mxu1 %v21911_v40  ;;  %18999 = vmatpush3.bf16.msra.mxu0 %v20084_v24 }
0x1447   : > { %18981 = vmatmul.mubr.bf16.gmra.mrb[12].mxu1 %v14877_v8 }
0x14ba   : > { %v18902_v38 = vpop.f32.mrb[4].mxu1 }
0x14bb   : > { %v14653_v6 = vpop.f32.mrb[5].mxu1 }
0x14bc   : > { %v18903_v40 = vpop.f32.mrb[6].mxu1 }
0x14bd   : > { %v14656_v36 = vpop.f32.mrb[7].mxu1 }
0x14ea   : > { %v18942_v28 = vpop.f32.mrb[8].mxu1 }
0x14eb   : > { %v21958_v10 = vadd.f32 %v18942_v28, %v18902_v38  ;;  %v14829_v62 = vpop.f32.mrb[9].mxu1  ;;  %v15151_v38 = vld [vmem:[#allocation3 + $0x30] sm:$0xff] }
0x14ec   : > { %v21960_v0 = vadd.f32 %v14829_v62, %v14653_v6  ;;  %v18943_v20 = vpop.f32.mrb[10].mxu1 }
0x14ed   : > { %v14832_v23 = vpop.f32.mrb[11].mxu1 }
0x14ee   : > { %v21962_v37 = vadd.f32 %v14832_v23, %v14656_v36 }
0x14f2   : > { %v18962_v49 = vpop.f32.mrb[248].mxu1 }
0x14f3   : > { %v15102_v25 = vadd.f32 %v18962_v49, %v21967_v26  ;;  %v14977_v56 = vpop.f32.mrb[249].mxu1 }
0x14f4   : > { %v15100_v5 = vadd.f32 %v21967_v26, %v14977_v56  ;;  %v18963_v13 = vpop.f32.mrb[250].mxu1 }
0x14f5   : > { %v15125_v12 = vmax.f32 %v15102_v25, 0.0  ;;  %v15103_v42 = vadd.f32 %v18963_v13, %v21967_v26  ;;  %v14980_v55 = vpop.f32.mrb[251].mxu1 }
0x14f6   : > { %v15123_v14 = vmax.f32 %v15100_v5, 0.0  ;;  %v15101_v35 = vadd.f32 %v21967_v26, %v14980_v55 }
0x14f7   : > { %v15171_v63 = vadd.f32 %v15148_v16, %v15125_v12  ;;  %v15126_v27 = vmax.f32 %v15103_v42, 0.0  ;;  %v15156_v42 = vld [vmem:[#allocation3 + $0x58] sm:$0xff] }
0x14f8   : > { %v15169_v39 = vadd.f32 %v15146_v48, %v15123_v14  ;;  %v15124_v60 = vmax.f32 %v15101_v35, 0.0  ;;  %v15154_v35 = vld [vmem:[#allocation3 + $0x48] sm:$0xff] }
0x14f9   : > { %v15194_v30 = vmax.f32 %v15171_v63, 0.0  ;;  %v15172_v53 = vadd.f32 %v15149_v51, %v15126_v27  ;;  %v15157_v27 = vld [vmem:[#allocation3 + $0x60] sm:$0xff] }
0x14fa   : > { %v15192_v9 = vmax.f32 %v15169_v39, 0.0  ;;  %v15170_v19 = vadd.f32 %v15147_v43, %v15124_v60  ;;  %v18966_v32 = vpop.f32.mrb[252].mxu1 }
0x14fb   : > { %v15217_v22 = vmul.f32 0.0, %v15194_v30  ;;  %v15195_v41 = vmax.f32 %v15172_v53, 0.0  ;;  %v15106_v1 = vadd.f32 %v18966_v32, %v21967_v26  ;;  %v14993_v7 = vpop.f32.mrb[253].mxu1  ;;  %v15155_v30 = vld [vmem:[#allocation3 + $0x50] sm:$0xff] }
0x14fc   : > { %15238 = vst [vmem:[#allocation3 + $0x8] sm:$0xff] %v15192_v9  ;;  %v15193_v17 = vmax.f32 %v15170_v19, 0.0  ;;  %v15104_v4 = vadd.f32 %v21967_v26, %v14993_v7  ;;  %v18967_v54 = vpop.f32.mrb[254].mxu1 }
0x14fd   : > { %15240 = vst [vmem:[#allocation3 + $0x18] sm:$0xff] %v15217_v22  ;;  %15241 = vst [vmem:[#allocation3 + $0x20] sm:$0xff] %v15195_v41  ;;  %v15129_v3 = vmax.f32 %v15106_v1, 0.0  ;;  %v15107_v29 = vadd.f32 %v18967_v54, %v21967_v26  ;;  %v14996_v52 = vpop.f32.mrb[255].mxu1 }
0x14fe   : > { %15239 = vst [vmem:[#allocation3 + $0x10] sm:$0xff] %v15193_v17  ;;  %v15127_v46 = vmax.f32 %v15104_v4, 0.0  ;;  %v15105_v8 = vadd.f32 %v21967_v26, %v14996_v52  ;;  %v15160_v52 = vld [vmem:[#allocation3 + $0x78] sm:$0xff] }
0x14ff   : > { %v15175_v59 = vadd.f32 %v15152_v45, %v15129_v3  ;;  %v15130_v2 = vmax.f32 %v15107_v29, 0.0 }
0x1500   : > { %v15173_v31 = vadd.f32 %v15150_v11, %v15127_v46  ;;  %v15128_v15 = vmax.f32 %v15105_v8, 0.0 }
0x1501   : > { %v15198_v47 = vmax.f32 %v15175_v59, 0.0  ;;  %v15176_v24 = vadd.f32 %v15153_v21, %v15130_v2  ;;  %v15158_v59 = vld [vmem:[#allocation3 + $0x68] sm:$0xff] }
0x1502   : > { %v15196_v6 = vmax.f32 %v15173_v31, 0.0  ;;  %v15174_v40 = vadd.f32 %v15151_v38, %v15128_v15  ;;  %v18970_v36 = vpop.f32.mrb[20].mxu1  ;;  %v15161_v31 = vld [vmem:[#allocation3 + $0x80] sm:$0xff] }
0x1503   : > { %15244 = vst [vmem:[#allocation3 + $0x38] sm:$0xff] %v15198_v47  ;;  %v15199_v28 = vmax.f32 %v15176_v24, 0.0  ;;  %v15110_v62 = vadd.f32 %v18970_v36, %v21967_v26  ;;  %v15009_v20 = vpop.f32.mrb[21].mxu1  ;;  %v15159_v24 = vld [vmem:[#allocation3 + $0x70] sm:$0xff] }
0x1504   : > { %15242 = vst [vmem:[#allocation3 + $0x28] sm:$0xff] %v15196_v6  ;;  %v15197_v23 = vmax.f32 %v15174_v40, 0.0  ;;  %v15108_v49 = vadd.f32 %v21967_v26, %v15009_v20  ;;  %v18971_v25 = vpop.f32.mrb[22].mxu1 }
0x1505   : > { %15245 = vst [vmem:[#allocation3 + $0x40] sm:$0xff] %v15199_v28  ;;  %v15133_v56 = vmax.f32 %v15110_v62, 0.0  ;;  %v15111_v5 = vadd.f32 %v18971_v25, %v21967_v26  ;;  %v15012_v13 = vpop.f32.mrb[23].mxu1 }
0x1506   : > { %v15220_v12 = vmul.f32 0.0, %v15197_v23  ;;  %v15131_v55 = vmax.f32 %v15108_v49, 0.0  ;;  %v15109_v16 = vadd.f32 %v21967_v26, %v15012_v13 }
0x1507   : > { %v15179_v14 = vadd.f32 %v15156_v42, %v15133_v56  ;;  %v15134_v63 = vmax.f32 %v15111_v5, 0.0 }
0x1508   : > { %15243 = vst [vmem:[#allocation3 + $0x30] sm:$0xff] %v15220_v12  ;;  %v15177_v48 = vadd.f32 %v15154_v35, %v15131_v55  ;;  %v15132_v39 = vmax.f32 %v15109_v16, 0.0  ;;  %v15164_v12 = vld [vmem:[#allocation3 + $0x98] sm:$0xff] }
0x1509   : > { %v15202_v51 = vmax.f32 %v15179_v14, 0.0  ;;  %v15180_v60 = vadd.f32 %v15157_v27, %v15134_v63  ;;  %v15162_v14 = vld [vmem:[#allocation3 + $0x88] sm:$0xff] }
0x150a   : > { %v15200_v53 = vmax.f32 %v15177_v48, 0.0  ;;  %v15178_v43 = vadd.f32 %v15155_v30, %v15132_v39  ;;  %v18974_v9 = vpop.f32.mrb[24].mxu1  ;;  %v15165_v48 = vld [vmem:[#allocation3 + $0xa0] sm:$0xff] }
0x150b   : > { %15248 = vst [vmem:[#allocation3 + $0x58] sm:$0xff] %v15202_v51  ;;  %v15203_v19 = vmax.f32 %v15180_v60, 0.0  ;;  %v15114_v32 = vadd.f32 %v18974_v9, %v21967_v26  ;;  %v15025_v22 = vpop.f32.mrb[25].mxu1  ;;  %v15163_v60 = vld [vmem:[#allocation3 + $0x90] sm:$0xff] }
0x150c   : > { %v15223_v41 = vmul.f32 0.0, %v15200_v53  ;;  %v15201_v1 = vmax.f32 %v15178_v43, 0.0  ;;  %v15112_v7 = vadd.f32 %v21967_v26, %v15025_v22  ;;  %v18975_v17 = vpop.f32.mrb[26].mxu1 }
0x150d   : > { %v15226_v4 = vmul.f32 0.0, %v15203_v19  ;;  %v15137_v54 = vmax.f32 %v15114_v32, 0.0  ;;  %v15115_v3 = vadd.f32 %v18975_v17, %v21967_v26  ;;  %v15028_v29 = vpop.f32.mrb[27].mxu1 }
0x150e   : > { %15246 = vst [vmem:[#allocation3 + $0x48] sm:$0xff] %v15223_v41  ;;  %15247 = vst [vmem:[#allocation3 + $0x50] sm:$0xff] %v15201_v1  ;;  %v15135_v45 = vmax.f32 %v15112_v7, 0.0  ;;  %v15113_v46 = vadd.f32 %v21967_v26, %v15028_v29  ;;  %v15262_v29 = vld [vmem:[#allocation3 + $0x2f] sm:$0x1] }
0x150f   : > { %15249 = vst [vmem:[#allocation3 + $0x60] sm:$0xff] %v15226_v4  ;;  %v15183_v8 = vadd.f32 %v15160_v52, %v15137_v54  ;;  %v15138_v11 = vmax.f32 %v15115_v3, 0.0 }
0x1510   : > { %v15181_v2 = vadd.f32 %v15158_v59, %v15135_v45  ;;  %v15136_v21 = vmax.f32 %v15113_v46, 0.0  ;;  %v15168_v45 = vld [vmem:[#allocation3 + $0xb8] sm:$0xff]  ;;  %v15166_v59 = vld [vmem:[#allocation3 + $0xa8] sm:$0xff] }
0x1511   : > { %v15206_v15 = vmax.f32 %v15183_v8, 0.0  ;;  %v15184_v47 = vadd.f32 %v15161_v31, %v15138_v11  ;;  %v15263_v11 = vld [vmem:[#allocation3 + $0x47] sm:$0x1] }
0x1512   : > { %v15204_v38 = vmax.f32 %v15181_v2, 0.0  ;;  %v15182_v6 = vadd.f32 %v15159_v24, %v15136_v21  ;;  %v18978_v40 = vpop.f32.mrb[0].mxu1  ;;  %v15270_v2 = vrot.slane %v15262_v29, 7  ;;  %v8236_v24 = vrot.slane %v21188_v18, 6 }
0x1513   : > { %v15229_v36 = vmul.f32 0.0, %v15206_v15  ;;  %v15207_v28 = vmax.f32 %v15184_v47, 0.0  ;;  %v15118_v62 = vadd.f32 %v18978_v40, %v21967_v26  ;;  %v15041_v20 = vpop.f32.mrb[1].mxu1  ;;  %v15264_v15 = vld [vmem:[#allocation3 + $0x5f] sm:$0x1]  ;;  %v8242_v18 = vrot.slane %v21204_v44, 4 }
0x1514   : > { %15250 = vst [vmem:[#allocation3 + $0x68] sm:$0xff] %v15204_v38  ;;  %v15205_v23 = vmax.f32 %v15182_v6, 0.0  ;;  %v15116_v49 = vadd.f32 %v21967_v26, %v15041_v20  ;;  %v18979_v25 = vpop.f32.mrb[2].mxu1  ;;  %v15276_v20 = vrot.slane %v15264_v15, 5 }
0x1515   : > { %15252 = vst [vmem:[#allocation3 + $0x78] sm:$0xff] %v15229_v36  ;;  %15253 = vst [vmem:[#allocation3 + $0x80] sm:$0xff] %v15207_v28  ;;  %v15141_v56 = vmax.f32 %v15118_v62, 0.0  ;;  %v15119_v5 = vadd.f32 %v18979_v25, %v21967_v26  ;;  %v15044_v13 = vpop.f32.mrb[3].mxu1  ;;  %v15273_v28 = vrot.slane %v15263_v11, 6 }
0x1516   : > { %15251 = vst [vmem:[#allocation3 + $0x70] sm:$0xff] %v15205_v23  ;;  %v15139_v42 = vmax.f32 %v15116_v49, 0.0  ;;  %v15117_v55 = vadd.f32 %v21967_v26, %v15044_v13 }
0x1517   : > { %v15187_v16 = vadd.f32 %v15164_v12, %v15141_v56  ;;  %v15142_v35 = vmax.f32 %v15119_v5, 0.0  ;;  %v8245_v5 = vrot.slane %v21212_v33, 3  ;;  %v8251_v33 = vrot.slane %v21220_v58, 1  ;;  %v15963_v58 = vld [vmem:[%s22028_s8] ss:$0 sm:$0xff] }
0x1518   : > { %v15185_v63 = vadd.f32 %v15162_v14, %v15139_v42  ;;  %v15140_v27 = vmax.f32 %v15117_v55, 0.0 }
0x1519   : > { %v15210_v39 = vmax.f32 %v15187_v16, 0.0  ;;  %v15188_v51 = vadd.f32 %v15165_v48, %v15142_v35  ;;  %v8248_v16 = vrot.slane %v21214_v34, 2 }
0x151a   : > { %v15208_v30 = vmax.f32 %v15185_v63, 0.0  ;;  %v15186_v53 = vadd.f32 %v15163_v60, %v15140_v27  ;;  %v18982_v43 = vpop.f32.mrb[12].mxu1 }
0x151b   : > { %15256 = vst [vmem:[#allocation3 + $0x98] sm:$0xff] %v15210_v39  ;;  %v15211_v9 = vmax.f32 %v15188_v51, 0.0  ;;  %v15093_v19 = vadd.f32 %v18982_v43, %v21958_v10  ;;  %v15057_v32 = vpop.f32.mrb[13].mxu1 }
0x151c   : > { %15254 = vst [vmem:[#allocation3 + $0x88] sm:$0xff] %v15208_v30  ;;  %v15209_v22 = vmax.f32 %v15186_v53, 0.0  ;;  %v15091_v41 = vadd.f32 %v15057_v32, %v21960_v0  ;;  %v18983_v1 = vpop.f32.mrb[14].mxu1  ;;  %v8233_v0 = vrot.slane %v21186_v57, 7  ;;  %v8239_v57 = vrot.slane %v21195_v61, 5 }
0x151d   : > { %15257 = vst [vmem:[#allocation3 + $0xa0] sm:$0xff] %v15211_v9  ;;  %v15122_v7 = vadd.f32 %v21967_v26, %v15093_v19  ;;  %v15060_v17 = vpop.f32.mrb[15].mxu1  ;;  %v15265_v38 = vld [vmem:[#allocation3 + $0x77] sm:$0x1] }
0x151e   : > { %v15232_v4 = vmul.f32 0.0, %v15209_v22  ;;  %v15120_v54 = vadd.f32 %v21967_v26, %v15091_v41  ;;  %v15092_v3 = vadd.f32 %v15060_v17, %v21962_v37  ;;  %v15167_v37 = vld [vmem:[#allocation3 + $0xb0] sm:$0xff]  ;;  %v8254_v62 = vsel %vm8253_vm2, %v21179_v50, %v8233_v0 }
0x151f   : > { %v15145_v52 = vmax.f32 %v15122_v7, 0.0  ;;  %v15279_v56 = vrot.slane %v15265_v38, 4  ;;  %v8256_v61 = vsel %vm8255_vm3, %v8254_v62, %v8236_v24 }
0x1520   : > { %15255 = vst [vmem:[#allocation3 + $0x90] sm:$0xff] %v15232_v4  ;;  %v15143_v10 = vmax.f32 %v15120_v54, 0.0  ;;  %v15121_v46 = vadd.f32 %v21967_v26, %v15092_v3  ;;  %v15261_v26 = vld [vmem:[#allocation3 + $0x17] sm:$0x1]  ;;  %v8258_v42 = vsel %vm8257_vm4, %v8256_v61, %v8239_v57 }
0x1521   : > { %v15191_v8 = vadd.f32 %v15168_v45, %v15145_v52  ;;  %v15290_v23 = vsel %vm8253_vm2, %v15261_v26, %v15270_v2  ;;  %v8260_v44 = vsel %vm8259_vm5, %v8258_v42, %v8242_v18 }
0x1522   : > { %v15189_v31 = vadd.f32 %v15166_v59, %v15143_v10  ;;  %v15144_v21 = vmax.f32 %v15121_v46, 0.0  ;;  %v15291_v50 = vsel %vm8255_vm3, %v15290_v23, %v15273_v28  ;;  %v8262_v63 = vsel %vm8261_vm6, %v8260_v44, %v8245_v5 }
0x1523   : > { %v15214_v47 = vmax.f32 %v15191_v8, 0.0  ;;  %v15266_v36 = vld [vmem:[#allocation3 + $0x8f] sm:$0x1]  ;;  %v15292_v55 = vsel %vm8257_vm4, %v15291_v50, %v15276_v20  ;;  %v8264_v51 = vsel %vm8263_vm7, %v8262_v63, %v8248_v16 }
0x1524   : > { %v15212_v6 = vmax.f32 %v15189_v31, 0.0  ;;  %v15190_v40 = vadd.f32 %v15167_v37, %v15144_v21  ;;  %v15267_v13 = vld [vmem:[#allocation3 + $0xa7] sm:$0x1]  ;;  %v15282_v12 = vrot.slane %v15266_v36, 3  ;;  %v15293_v35 = vsel %vm8259_vm5, %v15292_v55, %v15279_v56 }
0x1525   : > { %15260 = vst [vmem:[#allocation3 + $0xb8] sm:$0xff] %v15214_v47  ;;  %v15285_v14 = vrot.slane %v15267_v13, 2  ;;  %v8266_v30 = vsel %vm8265_vm8, %v8264_v51, %v8251_v33 }
0x1526   : > { %v15235_v49 = vmul.f32 0.0, %v15212_v6  ;;  %v15213_v25 = vmax.f32 %v15190_v40, 0.0  ;;  %v15294_v48 = vsel %vm8261_vm6, %v15293_v35, %v15282_v12 }
0x1527   : > { %v15295_v60 = vsel %vm8263_vm7, %v15294_v48, %v15285_v14 }
0x1528   : > { %15258 = vst [vmem:[#allocation3 + $0xa8] sm:$0xff] %v15235_v49  ;;  %15259 = vst [vmem:[#allocation3 + $0xb0] sm:$0xff] %v15213_v25 }
0x152c   : > { %v15268_v27 = vld [vmem:[#allocation3 + $0xbf] sm:$0x1] }
0x152d   : > { %v15288_v39 = vrot.slane %v15268_v27, 1 }
0x152f   : > { %v15296_v53 = vsel %vm8265_vm8, %v15295_v60, %v15288_v39 }
0x1530   : > { %v15297_v43 = vadd.f32 %v15296_v53, %v8266_v30 }
0x1532   : > { %v15298_v9 = vmul.f32 0.70710677, %v15297_v43 }
0x1534   : > { %v15299_v34 = vpack.c.bf16 %v15298_v9, %v15298_v9 }
0x1536   : > { %19001 = vmatmul.mubr.bf16.vlgmr.msra.gmra.mrb[16].mxu0 %v15299_v34 }
0x1609   : > { %v15405_v19 = vpop.f32.mrb[16].mxu0 }
0x160a   : > { %v15406_v32 = vadd.f32 %v15963_v58, %v15405_v19  ;;  %v19002_v22 = vpop.f32.mrb[17].mxu0 }
0x160b   : > { %v15408_v41 = vpop.f32.mrb[18].mxu0 }
0x160c   : > { %15411 = vst [vmem:[%s365_s16] sm:$0xff] %v15406_v32  ;;  %v19003_v1 = vpop.f32.mrb[19].mxu0 }
0x160d PF: > { %s21_s30 = sadd.s32 1, %s20162_s30  }
0x160e   : > { %p18_p10 = scmp.ge.s32.totalorder %s21_s30, 4  }
0x1610   :  { %20 = sbr.rel (!%p18_p10) target bundleno = 2 (0x2), region = 164 }
0x1617   :  { %15431 = vsyncpa [#allocation6], 1 }
0x1618   :  { %15433 = vsyncpa [#allocation6 + $0x1], 1 }
0x1619   :  { %15434 = vsyncpa [#allocation8], 1 }

</bundles_post_ra>
